<compile_context>
chip_gen: v7x
topology: tpu7x:2x2x1
jax: 0.10.0
libtpu: 0.0.40
codegen_flags: <defaults>
</compile_context>

<pallas_src>
import math
import jax
import jax.numpy as jnp
from jax.experimental import pallas as pl
from jax.experimental.pallas import tpu as pltpu

EPS = 1e-5
NEG_SLOPE = 0.1


def _round_up(x, m):
    return ((x + m - 1) // m) * m


# ---------------------------------------------------------------- Pallas kernels
def _conv_bn_lrelu_kernel(p_ref, w_ref, g_ref, b_ref, o_ref, acc_ref):
    k = pl.program_id(1)

    @pl.when(k == 0)
    def _():
        acc_ref[...] = jnp.zeros_like(acc_ref)

    acc_ref[...] += jnp.dot(p_ref[...], w_ref[...],
                            preferred_element_type=jnp.float32)

    @pl.when(k == pl.num_programs(1) - 1)
    def _():
        z = acc_ref[...]
        mean = jnp.mean(z, axis=0, keepdims=True)
        var = jnp.mean(jnp.square(z - mean), axis=0, keepdims=True)
        scale = g_ref[...] * jax.lax.rsqrt(var + EPS)
        shift = b_ref[...] - mean * scale
        y = z * scale + shift
        o_ref[...] = jnp.where(y >= 0, y, NEG_SLOPE * y)


def _conv_bn_lrelu_res_kernel(p_ref, w_ref, g_ref, b_ref, r_ref, o_ref, acc_ref):
    k = pl.program_id(1)

    @pl.when(k == 0)
    def _():
        acc_ref[...] = jnp.zeros_like(acc_ref)

    acc_ref[...] += jnp.dot(p_ref[...], w_ref[...],
                            preferred_element_type=jnp.float32)

    @pl.when(k == pl.num_programs(1) - 1)
    def _():
        z = acc_ref[...]
        mean = jnp.mean(z, axis=0, keepdims=True)
        var = jnp.mean(jnp.square(z - mean), axis=0, keepdims=True)
        scale = g_ref[...] * jax.lax.rsqrt(var + EPS)
        shift = b_ref[...] - mean * scale
        y = z * scale + shift
        o_ref[...] = r_ref[...] + jnp.where(y >= 0, y, NEG_SLOPE * y)


# ---------------------------------------------------------------- JAX glue
def _im2col(x_nhwc, ksize, stride, padding):
    """(N,H,W,C) -> patches (N*OH*OW, KH*KW*C) with K ordered (kh, kw, c)."""
    N, H, W, C = x_nhwc.shape
    if ksize == 1 and stride == 1 and padding == 0:
        return x_nhwc.reshape(N * H * W, C), (N, H, W)
    xp = jnp.pad(x_nhwc, ((0, 0), (padding, padding), (padding, padding), (0, 0)))
    OH = (H + 2 * padding - ksize) // stride + 1
    OW = (W + 2 * padding - ksize) // stride + 1
    cols = []
    for kh in range(ksize):
        for kw in range(ksize):
            cols.append(xp[:, kh:kh + OH * stride:stride, kw:kw + OW * stride:stride, :])
    p = jnp.stack(cols, axis=3)  # (N, OH, OW, KH*KW, C)
    return p.reshape(N * OH * OW, ksize * ksize * C), (N, OH, OW)


def conv_bn_act(x_nhwc, w_mat, gamma, beta, ksize, stride, residual=None):
    """Fused Conv2d(pad=ksize//2) + BatchNorm2d(batch stats) + LeakyReLU(0.1) [+ residual]."""
    # bf16 operands for the MXU; accumulation and epilogue stay f32.
    patches, (N, OH, OW) = _im2col(x_nhwc.astype(jnp.bfloat16), ksize, stride,
                                   padding=ksize // 2)
    M, K = patches.shape
    Cout = w_mat.shape[1]

    # Tile sizes: lane-dense Cout tiles (>=128), K reduction tiles.
    tn = min(256, _round_up(Cout, 128))
    Np = _round_up(Cout, tn)
    tk = min(512, _round_up(K, 128))
    Kp = _round_up(K, tk)

    patches = jnp.pad(patches, ((0, 0), (0, Kp - K)))
    w = jnp.pad(w_mat.astype(jnp.bfloat16), ((0, Kp - K), (0, Np - Cout)))
    g2 = jnp.pad(gamma.reshape(1, Cout), ((0, 0), (0, Np - Cout)))
    b2 = jnp.pad(beta.reshape(1, Cout), ((0, 0), (0, Np - Cout)))

    grid = (Np // tn, Kp // tk)
    in_specs = [
        pl.BlockSpec((M, tk), lambda j, k: (0, k)),   # patches
        pl.BlockSpec((tk, tn), lambda j, k: (k, j)),  # weights
        pl.BlockSpec((1, tn), lambda j, k: (0, j)),   # gamma
        pl.BlockSpec((1, tn), lambda j, k: (0, j)),   # beta
    ]
    args = [patches, w, g2, b2]
    io_aliases = {}
    if residual is None:
        kernel = _conv_bn_lrelu_kernel
    else:
        kernel = _conv_bn_lrelu_res_kernel
        r = jnp.pad(residual.reshape(M, Cout).astype(jnp.float32),
                    ((0, 0), (0, Np - Cout)))
        args.append(r)
        in_specs.append(pl.BlockSpec((M, tn), lambda j, k: (0, j)))
        io_aliases = {4: 0}  # reuse the residual HBM buffer as the output buffer

    out = pl.pallas_call(
        kernel,
        out_shape=jax.ShapeDtypeStruct((M, Np), jnp.float32),
        grid_spec=pltpu.PrefetchScalarGridSpec(
            num_scalar_prefetch=0,
            grid=grid,
            in_specs=in_specs,
            out_specs=pl.BlockSpec((M, tn), lambda j, k: (0, j)),
            scratch_shapes=[pltpu.VMEM((M, tn), jnp.float32)],
        ),
        compiler_params=pltpu.CompilerParams(
            dimension_semantics=("parallel", "arbitrary")),
        input_output_aliases=io_aliases,
    )(*args)
    return out[:, :Cout].reshape(N, OH, OW, Cout)


# ---------------------------------------------------------------- parameters
def make_conv_params(key, cin, cout, ksize):
    # nn.init.kaiming_normal_(mode='fan_out', nonlinearity='relu'):
    #   std = sqrt(2 / fan_out), fan_out = cout * ksize * ksize
    # NOTE: the matmul weight K-axis is ordered (kh, kw, cin); to load PyTorch
    # weights, permute (Cout,Cin,KH,KW) -> (KH,KW,Cin,Cout) and reshape.
    fan_out = cout * ksize * ksize
    std = math.sqrt(2.0 / fan_out)
    w = jax.random.normal(key, (ksize * ksize * cin, cout), jnp.float32) * std
    gamma = jnp.ones((cout,), jnp.float32)   # BN weight init -> 1
    beta = jnp.ones((cout,), jnp.float32)    # BN bias   init -> 1 (per module __init__)
    return {"w": w, "g": gamma, "b": beta}


def make_block_params(key, inc):
    k1, k2 = jax.random.split(key)
    return (make_conv_params(k1, inc, inc // 2, 1),
            make_conv_params(k2, inc // 2, inc, 3))


def make_net_params(key):
    keys = jax.random.split(key, 11)
    return {
        "conv1": make_conv_params(keys[0], 3, 32, 3),
        "conv2": make_conv_params(keys[1], 32, 64, 3),
        "res1": make_block_params(keys[2], 64),
        "conv3": make_conv_params(keys[3], 64, 128, 3),
        "res2": make_block_params(keys[4], 128),
        "conv4": make_conv_params(keys[5], 128, 256, 3),
        "res3": make_block_params(keys[6], 256),
        "conv5": make_conv_params(keys[7], 256, 512, 3),
        "res4": make_block_params(keys[8], 512),
        "conv6": make_conv_params(keys[9], 512, 512, 3),
        "res5": make_block_params(keys[10], 512),
    }


# ---------------------------------------------------------------- forward pass
def block(x, p1, p2):
    h = conv_bn_act(x, p1["w"], p1["g"], p1["b"], ksize=1, stride=1)
    return conv_bn_act(h, p2["w"], p2["g"], p2["b"], ksize=3, stride=1, residual=x)


def net_forward(x_nchw, params):
    x = jnp.transpose(x_nchw, (0, 2, 3, 1))  # NCHW -> NHWC

    def cba(x, name, stride):
        p = params[name]
        return conv_bn_act(x, p["w"], p["g"], p["b"], ksize=3, stride=stride)

    x = cba(x, "conv1", 1)
    x = cba(x, "conv2", 2)
    x = block(x, *params["res1"])           # out[0] (dropped by out[1:])
    outs = []
    x = cba(x, "conv3", 2)
    x = block(x, *params["res2"]); outs.append(x)
    x = cba(x, "conv4", 2)
    x = block(x, *params["res3"]); outs.append(x)
    x = cba(x, "conv5", 2)
    x = block(x, *params["res4"]); outs.append(x)
    x = cba(x, "conv6", 2)
    x = block(x, *params["res5"]); outs.append(x)
    # return out[1:], converted back to NCHW
    return [jnp.transpose(o, (0, 3, 1, 2)) for o in outs]


# ---------------------------------------------------------------- main
if __name__ == "__main__":
    key = jax.random.PRNGKey(0)
    pkey, xkey = jax.random.split(key)
    params = make_net_params(pkey)
    x = jax.random.normal(xkey, (2, 3, 16, 16), jnp.float32)  # NCHW, like PyTorch

    outs = jax.jit(net_forward)(x, params)
    outs = jax.block_until_ready(outs)

    expected = [(2, 128, 4, 4), (2, 256, 2, 2), (2, 512, 1, 1), (2, 512, 1, 1)]
    assert [tuple(o.shape) for o in outs] == expected, [o.shape for o in outs]
    assert all(bool(jnp.isfinite(o).all()) for o in outs)
    print("KERNEL_OK")
</pallas_src>

<mosaic_0001>
module attributes {stable_mosaic.version = 11 : i64} {
  func.func @_conv_bn_lrelu_kernel(%arg0: i32, %arg1: i32, %arg2: memref<512x128xbf16, #tpu.memory_space<vmem>>, %arg3: memref<128x128xbf16, #tpu.memory_space<vmem>>, %arg4: memref<1x128xf32, #tpu.memory_space<vmem>>, %arg5: memref<1x128xf32, #tpu.memory_space<vmem>>, %arg6: memref<512x128xf32, #tpu.memory_space<vmem>>, %arg7: memref<512x128xf32, #tpu.memory_space<vmem>>) attributes {dimension_semantics = [#tpu.dimension_semantics<parallel>, #tpu.dimension_semantics<arbitrary>], iteration_bounds = array<i64: 1, 1>, scalar_prefetch = 0 : i64, scratch_operands = 1 : i64, tpu.core_type = #tpu.core_type<tc>, window_params = [{transform_indices = @transform_0, window_bounds = array<i64: 512, 128>}, {transform_indices = @transform_1, window_bounds = array<i64: 128, 128>}, {transform_indices = @transform_2, window_bounds = array<i64: 1, 128>}, {transform_indices = @transform_3, window_bounds = array<i64: 1, 128>}, {transform_indices = @transform_4, window_bounds = array<i64: 512, 128>}]} {
    %c0_i32 = arith.constant 0 : i32
    %0 = arith.cmpi eq, %arg1, %c0_i32 : i32
    %1 = arith.extui %0 : i1 to i32
    %c0_i32_0 = arith.constant 0 : i32
    %2 = arith.cmpi ne, %1, %c0_i32_0 : i32
    scf.if %2 {
      %cst_10 = arith.constant 0.000000e+00 : f32
      %12 = vector.broadcast %cst_10 : f32 to vector<512x128xf32>
      %c0_11 = arith.constant 0 : index
      %c0_12 = arith.constant 0 : index
      %13 = vector.load %arg7[%c0_11, %c0_12] : memref<512x128xf32, #tpu.memory_space<vmem>>, vector<512x128xf32>
      tpu.vector_store %arg7[%c0_11, %c0_12], %12 {strides = array<i32>} : memref<512x128xf32, #tpu.memory_space<vmem>>, vector<512x128xf32>,
    } else {
    }
    %c0 = arith.constant 0 : index
    %c0_1 = arith.constant 0 : index
    %3 = vector.load %arg7[%c0, %c0_1] : memref<512x128xf32, #tpu.memory_space<vmem>>, vector<512x128xf32>
    %c0_2 = arith.constant 0 : index
    %c0_3 = arith.constant 0 : index
    %4 = vector.load %arg2[%c0_2, %c0_3] : memref<512x128xbf16, #tpu.memory_space<vmem>>, vector<512x128xbf16>
    %c0_4 = arith.constant 0 : index
    %c0_5 = arith.constant 0 : index
    %5 = vector.load %arg3[%c0_4, %c0_5] : memref<128x128xbf16, #tpu.memory_space<vmem>>, vector<128x128xbf16>
    %cst = arith.constant dense<0.000000e+00> : vector<512x128xf32>
    %6 = tpu.matmul %4, %5, %cst {dimension_numbers = #tpu.dot_dimension_numbers<[1], [0], [0], [1], [0, 0, 1, 1], [], []>} : vector<512x128xbf16>, vector<128x128xbf16>, vector<512x128xf32> -> vector<512x128xf32>
    %7 = arith.addf %3, %6 : vector<512x128xf32>
    %c0_6 = arith.constant 0 : index
    %c0_7 = arith.constant 0 : index
    %8 = vector.load %arg7[%c0_6, %c0_7] : memref<512x128xf32, #tpu.memory_space<vmem>>, vector<512x128xf32>
    tpu.vector_store %arg7[%c0_6, %c0_7], %7 {strides = array<i32>} : memref<512x128xf32, #tpu.memory_space<vmem>>, vector<512x128xf32>,
    %c0_i32_8 = arith.constant 0 : i32
    %9 = arith.cmpi eq, %arg1, %c0_i32_8 : i32
    %10 = arith.extui %9 : i1 to i32
    %c0_i32_9 = arith.constant 0 : i32
    %11 = arith.cmpi ne, %10, %c0_i32_9 : i32
    scf.if %11 {
      %c0_10 = arith.constant 0 : index
      %c0_11 = arith.constant 0 : index
      %12 = vector.load %arg7[%c0_10, %c0_11] : memref<512x128xf32, #tpu.memory_space<vmem>>, vector<512x128xf32>
      %cst_12 = arith.constant dense<0.000000e+00> : vector<128xf32>
      %13 = vector.multi_reduction <add>, %12, %cst_12 [0] : vector<512x128xf32> to vector<128xf32>
      %14 = vector.shape_cast %13 : vector<128xf32> to vector<1x128xf32>
      %cst_13 = arith.constant 5.120000e+02 : f32
      %15 = vector.broadcast %cst_13 : f32 to vector<1x128xf32>
      %16 = arith.divf %14, %15 : vector<1x128xf32>
      %17 = vector.broadcast %16 : vector<1x128xf32> to vector<512x128xf32>
      %18 = arith.subf %12, %17 : vector<512x128xf32>
      %19 = arith.mulf %18, %18 : vector<512x128xf32>
      %cst_14 = arith.constant dense<0.000000e+00> : vector<128xf32>
      %20 = vector.multi_reduction <add>, %19, %cst_14 [0] : vector<512x128xf32> to vector<128xf32>
      %21 = vector.shape_cast %20 : vector<128xf32> to vector<1x128xf32>
      %cst_15 = arith.constant 5.120000e+02 : f32
      %22 = vector.broadcast %cst_15 : f32 to vector<1x128xf32>
      %23 = arith.divf %21, %22 : vector<1x128xf32>
      %c0_16 = arith.constant 0 : index
      %c0_17 = arith.constant 0 : index
      %24 = vector.load %arg4[%c0_16, %c0_17] : memref<1x128xf32, #tpu.memory_space<vmem>>, vector<1x128xf32>
      %cst_18 = arith.constant 9.99999974E-6 : f32
      %25 = vector.broadcast %cst_18 : f32 to vector<1x128xf32>
      %26 = arith.addf %23, %25 : vector<1x128xf32>
      %27 = math.rsqrt %26 : vector<1x128xf32>
      %28 = arith.mulf %24, %27 : vector<1x128xf32>
      %c0_19 = arith.constant 0 : index
      %c0_20 = arith.constant 0 : index
      %29 = vector.load %arg5[%c0_19, %c0_20] : memref<1x128xf32, #tpu.memory_space<vmem>>, vector<1x128xf32>
      %30 = arith.mulf %16, %28 : vector<1x128xf32>
      %31 = arith.subf %29, %30 : vector<1x128xf32>
      %32 = vector.broadcast %28 : vector<1x128xf32> to vector<512x128xf32>
      %33 = arith.mulf %12, %32 : vector<512x128xf32>
      %34 = vector.broadcast %31 : vector<1x128xf32> to vector<512x128xf32>
      %35 = arith.addf %33, %34 : vector<512x128xf32>
      %cst_21 = arith.constant 0.000000e+00 : f32
      %36 = vector.broadcast %cst_21 : f32 to vector<512x128xf32>
      %37 = arith.cmpf oge, %35, %36 : vector<512x128xf32>
      %cst_22 = arith.constant 1.000000e-01 : f32
      %38 = vector.broadcast %cst_22 : f32 to vector<512x128xf32>
      %39 = arith.mulf %38, %35 : vector<512x128xf32>
      %40 = arith.select %37, %35, %39 : vector<512x128xi1>, vector<512x128xf32>
      %c0_23 = arith.constant 0 : index
      %c0_24 = arith.constant 0 : index
      %41 = vector.load %arg6[%c0_23, %c0_24] : memref<512x128xf32, #tpu.memory_space<vmem>>, vector<512x128xf32>
      tpu.vector_store %arg6[%c0_23, %c0_24], %40 {strides = array<i32>} : memref<512x128xf32, #tpu.memory_space<vmem>>, vector<512x128xf32>,
    } else {
    }
    return
  }
  func.func @transform_0(%arg0: i32, %arg1: i32) -> (i32, i32) {
    %c0_i32 = arith.constant 0 : i32
    %c0_i32_0 = arith.constant 0 : i32
    return %c0_i32, %arg1 : i32, i32
  }
  func.func @transform_1(%arg0: i32, %arg1: i32) -> (i32, i32) {
    %c0_i32 = arith.constant 0 : i32
    return %arg1, %arg0 : i32, i32
  }
  func.func @transform_2(%arg0: i32, %arg1: i32) -> (i32, i32) {
    %c0_i32 = arith.constant 0 : i32
    %c0_i32_0 = arith.constant 0 : i32
    return %c0_i32, %arg0 : i32, i32
  }
  func.func @transform_3(%arg0: i32, %arg1: i32) -> (i32, i32) {
    %c0_i32 = arith.constant 0 : i32
    %c0_i32_0 = arith.constant 0 : i32
    return %c0_i32, %arg0 : i32, i32
  }
  func.func @transform_4(%arg0: i32, %arg1: i32) -> (i32, i32) {
    %c0_i32 = arith.constant 0 : i32
    %c0_i32_0 = arith.constant 0 : i32
    return %c0_i32, %arg0 : i32, i32
  }
}

module attributes {stable_mosaic.version = 11 : i64} {
  func.func @_conv_bn_lrelu_kernel(%arg0: i32, %arg1: i32, %arg2: memref<128x384xbf16, #tpu.memory_space<vmem>>, %arg3: memref<384x128xbf16, #tpu.memory_space<vmem>>, %arg4: memref<1x128xf32, #tpu.memory_space<vmem>>, %arg5: memref<1x128xf32, #tpu.memory_space<vmem>>, %arg6: memref<128x128xf32, #tpu.memory_space<vmem>>, %arg7: memref<128x128xf32, #tpu.memory_space<vmem>>) attributes {dimension_semantics = [#tpu.dimension_semantics<parallel>, #tpu.dimension_semantics<arbitrary>], iteration_bounds = array<i64: 1, 1>, scalar_prefetch = 0 : i64, scratch_operands = 1 : i64, tpu.core_type = #tpu.core_type<tc>, window_params = [{transform_indices = @transform_0, window_bounds = array<i64: 128, 384>}, {transform_indices = @transform_1, window_bounds = array<i64: 384, 128>}, {transform_indices = @transform_2, window_bounds = array<i64: 1, 128>}, {transform_indices = @transform_3, window_bounds = array<i64: 1, 128>}, {transform_indices = @transform_4, window_bounds = array<i64: 128, 128>}]} {
    %c0_i32 = arith.constant 0 : i32
    %0 = arith.cmpi eq, %arg1, %c0_i32 : i32
    %1 = arith.extui %0 : i1 to i32
    %c0_i32_0 = arith.constant 0 : i32
    %2 = arith.cmpi ne, %1, %c0_i32_0 : i32
    scf.if %2 {
      %cst_10 = arith.constant 0.000000e+00 : f32
      %12 = vector.broadcast %cst_10 : f32 to vector<128x128xf32>
      %c0_11 = arith.constant 0 : index
      %c0_12 = arith.constant 0 : index
      %13 = vector.load %arg7[%c0_11, %c0_12] : memref<128x128xf32, #tpu.memory_space<vmem>>, vector<128x128xf32>
      tpu.vector_store %arg7[%c0_11, %c0_12], %12 {strides = array<i32>} : memref<128x128xf32, #tpu.memory_space<vmem>>, vector<128x128xf32>,
    } else {
    }
    %c0 = arith.constant 0 : index
    %c0_1 = arith.constant 0 : index
    %3 = vector.load %arg7[%c0, %c0_1] : memref<128x128xf32, #tpu.memory_space<vmem>>, vector<128x128xf32>
    %c0_2 = arith.constant 0 : index
    %c0_3 = arith.constant 0 : index
    %4 = vector.load %arg2[%c0_2, %c0_3] : memref<128x384xbf16, #tpu.memory_space<vmem>>, vector<128x384xbf16>
    %c0_4 = arith.constant 0 : index
    %c0_5 = arith.constant 0 : index
    %5 = vector.load %arg3[%c0_4, %c0_5] : memref<384x128xbf16, #tpu.memory_space<vmem>>, vector<384x128xbf16>
    %cst = arith.constant dense<0.000000e+00> : vector<128x128xf32>
    %6 = tpu.matmul %4, %5, %cst {dimension_numbers = #tpu.dot_dimension_numbers<[1], [0], [0], [1], [0, 0, 1, 1], [], []>} : vector<128x384xbf16>, vector<384x128xbf16>, vector<128x128xf32> -> vector<128x128xf32>
    %7 = arith.addf %3, %6 : vector<128x128xf32>
    %c0_6 = arith.constant 0 : index
    %c0_7 = arith.constant 0 : index
    %8 = vector.load %arg7[%c0_6, %c0_7] : memref<128x128xf32, #tpu.memory_space<vmem>>, vector<128x128xf32>
    tpu.vector_store %arg7[%c0_6, %c0_7], %7 {strides = array<i32>} : memref<128x128xf32, #tpu.memory_space<vmem>>, vector<128x128xf32>,
    %c0_i32_8 = arith.constant 0 : i32
    %9 = arith.cmpi eq, %arg1, %c0_i32_8 : i32
    %10 = arith.extui %9 : i1 to i32
    %c0_i32_9 = arith.constant 0 : i32
    %11 = arith.cmpi ne, %10, %c0_i32_9 : i32
    scf.if %11 {
      %c0_10 = arith.constant 0 : index
      %c0_11 = arith.constant 0 : index
      %12 = vector.load %arg7[%c0_10, %c0_11] : memref<128x128xf32, #tpu.memory_space<vmem>>, vector<128x128xf32>
      %cst_12 = arith.constant dense<0.000000e+00> : vector<128xf32>
      %13 = vector.multi_reduction <add>, %12, %cst_12 [0] : vector<128x128xf32> to vector<128xf32>
      %14 = vector.shape_cast %13 : vector<128xf32> to vector<1x128xf32>
      %cst_13 = arith.constant 1.280000e+02 : f32
      %15 = vector.broadcast %cst_13 : f32 to vector<1x128xf32>
      %16 = arith.divf %14, %15 : vector<1x128xf32>
      %17 = vector.broadcast %16 : vector<1x128xf32> to vector<128x128xf32>
      %18 = arith.subf %12, %17 : vector<128x128xf32>
      %19 = arith.mulf %18, %18 : vector<128x128xf32>
      %cst_14 = arith.constant dense<0.000000e+00> : vector<128xf32>
      %20 = vector.multi_reduction <add>, %19, %cst_14 [0] : vector<128x128xf32> to vector<128xf32>
      %21 = vector.shape_cast %20 : vector<128xf32> to vector<1x128xf32>
      %cst_15 = arith.constant 1.280000e+02 : f32
      %22 = vector.broadcast %cst_15 : f32 to vector<1x128xf32>
      %23 = arith.divf %21, %22 : vector<1x128xf32>
      %c0_16 = arith.constant 0 : index
      %c0_17 = arith.constant 0 : index
      %24 = vector.load %arg4[%c0_16, %c0_17] : memref<1x128xf32, #tpu.memory_space<vmem>>, vector<1x128xf32>
      %cst_18 = arith.constant 9.99999974E-6 : f32
      %25 = vector.broadcast %cst_18 : f32 to vector<1x128xf32>
      %26 = arith.addf %23, %25 : vector<1x128xf32>
      %27 = math.rsqrt %26 : vector<1x128xf32>
      %28 = arith.mulf %24, %27 : vector<1x128xf32>
      %c0_19 = arith.constant 0 : index
      %c0_20 = arith.constant 0 : index
      %29 = vector.load %arg5[%c0_19, %c0_20] : memref<1x128xf32, #tpu.memory_space<vmem>>, vector<1x128xf32>
      %30 = arith.mulf %16, %28 : vector<1x128xf32>
      %31 = arith.subf %29, %30 : vector<1x128xf32>
      %32 = vector.broadcast %28 : vector<1x128xf32> to vector<128x128xf32>
      %33 = arith.mulf %12, %32 : vector<128x128xf32>
      %34 = vector.broadcast %31 : vector<1x128xf32> to vector<128x128xf32>
      %35 = arith.addf %33, %34 : vector<128x128xf32>
      %cst_21 = arith.constant 0.000000e+00 : f32
      %36 = vector.broadcast %cst_21 : f32 to vector<128x128xf32>
      %37 = arith.cmpf oge, %35, %36 : vector<128x128xf32>
      %cst_22 = arith.constant 1.000000e-01 : f32
      %38 = vector.broadcast %cst_22 : f32 to vector<128x128xf32>
      %39 = arith.mulf %38, %35 : vector<128x128xf32>
      %40 = arith.select %37, %35, %39 : vector<128x128xi1>, vector<128x128xf32>
      %c0_23 = arith.constant 0 : index
      %c0_24 = arith.constant 0 : index
      %41 = vector.load %arg6[%c0_23, %c0_24] : memref<128x128xf32, #tpu.memory_space<vmem>>, vector<128x128xf32>
      tpu.vector_store %arg6[%c0_23, %c0_24], %40 {strides = array<i32>} : memref<128x128xf32, #tpu.memory_space<vmem>>, vector<128x128xf32>,
    } else {
    }
    return
  }
  func.func @transform_0(%arg0: i32, %arg1: i32) -> (i32, i32) {
    %c0_i32 = arith.constant 0 : i32
    %c0_i32_0 = arith.constant 0 : i32
    return %c0_i32, %arg1 : i32, i32
  }
  func.func @transform_1(%arg0: i32, %arg1: i32) -> (i32, i32) {
    %c0_i32 = arith.constant 0 : i32
    return %arg1, %arg0 : i32, i32
  }
  func.func @transform_2(%arg0: i32, %arg1: i32) -> (i32, i32) {
    %c0_i32 = arith.constant 0 : i32
    %c0_i32_0 = arith.constant 0 : i32
    return %c0_i32, %arg0 : i32, i32
  }
  func.func @transform_3(%arg0: i32, %arg1: i32) -> (i32, i32) {
    %c0_i32 = arith.constant 0 : i32
    %c0_i32_0 = arith.constant 0 : i32
    return %c0_i32, %arg0 : i32, i32
  }
  func.func @transform_4(%arg0: i32, %arg1: i32) -> (i32, i32) {
    %c0_i32 = arith.constant 0 : i32
    %c0_i32_0 = arith.constant 0 : i32
    return %c0_i32, %arg0 : i32, i32
  }
}

module attributes {stable_mosaic.version = 11 : i64} {
  func.func @_conv_bn_lrelu_kernel(%arg0: i32, %arg1: i32, %arg2: memref<128x128xbf16, #tpu.memory_space<vmem>>, %arg3: memref<128x128xbf16, #tpu.memory_space<vmem>>, %arg4: memref<1x128xf32, #tpu.memory_space<vmem>>, %arg5: memref<1x128xf32, #tpu.memory_space<vmem>>, %arg6: memref<128x128xf32, #tpu.memory_space<vmem>>, %arg7: memref<128x128xf32, #tpu.memory_space<vmem>>) attributes {dimension_semantics = [#tpu.dimension_semantics<parallel>, #tpu.dimension_semantics<arbitrary>], iteration_bounds = array<i64: 1, 1>, scalar_prefetch = 0 : i64, scratch_operands = 1 : i64, tpu.core_type = #tpu.core_type<tc>, window_params = [{transform_indices = @transform_0, window_bounds = array<i64: 128, 128>}, {transform_indices = @transform_1, window_bounds = array<i64: 128, 128>}, {transform_indices = @transform_2, window_bounds = array<i64: 1, 128>}, {transform_indices = @transform_3, window_bounds = array<i64: 1, 128>}, {transform_indices = @transform_4, window_bounds = array<i64: 128, 128>}]} {
    %c0_i32 = arith.constant 0 : i32
    %0 = arith.cmpi eq, %arg1, %c0_i32 : i32
    %1 = arith.extui %0 : i1 to i32
    %c0_i32_0 = arith.constant 0 : i32
    %2 = arith.cmpi ne, %1, %c0_i32_0 : i32
    scf.if %2 {
      %cst_10 = arith.constant 0.000000e+00 : f32
      %12 = vector.broadcast %cst_10 : f32 to vector<128x128xf32>
      %c0_11 = arith.constant 0 : index
      %c0_12 = arith.constant 0 : index
      %13 = vector.load %arg7[%c0_11, %c0_12] : memref<128x128xf32, #tpu.memory_space<vmem>>, vector<128x128xf32>
      tpu.vector_store %arg7[%c0_11, %c0_12], %12 {strides = array<i32>} : memref<128x128xf32, #tpu.memory_space<vmem>>, vector<128x128xf32>,
    } else {
    }
    %c0 = arith.constant 0 : index
    %c0_1 = arith.constant 0 : index
    %3 = vector.load %arg7[%c0, %c0_1] : memref<128x128xf32, #tpu.memory_space<vmem>>, vector<128x128xf32>
    %c0_2 = arith.constant 0 : index
    %c0_3 = arith.constant 0 : index
    %4 = vector.load %arg2[%c0_2, %c0_3] : memref<128x128xbf16, #tpu.memory_space<vmem>>, vector<128x128xbf16>
    %c0_4 = arith.constant 0 : index
    %c0_5 = arith.constant 0 : index
    %5 = vector.load %arg3[%c0_4, %c0_5] : memref<128x128xbf16, #tpu.memory_space<vmem>>, vector<128x128xbf16>
    %cst = arith.constant dense<0.000000e+00> : vector<128x128xf32>
    %6 = tpu.matmul %4, %5, %cst {dimension_numbers = #tpu.dot_dimension_numbers<[1], [0], [0], [1], [0, 0, 1, 1], [], []>} : vector<128x128xbf16>, vector<128x128xbf16>, vector<128x128xf32> -> vector<128x128xf32>
    %7 = arith.addf %3, %6 : vector<128x128xf32>
    %c0_6 = arith.constant 0 : index
    %c0_7 = arith.constant 0 : index
    %8 = vector.load %arg7[%c0_6, %c0_7] : memref<128x128xf32, #tpu.memory_space<vmem>>, vector<128x128xf32>
    tpu.vector_store %arg7[%c0_6, %c0_7], %7 {strides = array<i32>} : memref<128x128xf32, #tpu.memory_space<vmem>>, vector<128x128xf32>,
    %c0_i32_8 = arith.constant 0 : i32
    %9 = arith.cmpi eq, %arg1, %c0_i32_8 : i32
    %10 = arith.extui %9 : i1 to i32
    %c0_i32_9 = arith.constant 0 : i32
    %11 = arith.cmpi ne, %10, %c0_i32_9 : i32
    scf.if %11 {
      %c0_10 = arith.constant 0 : index
      %c0_11 = arith.constant 0 : index
      %12 = vector.load %arg7[%c0_10, %c0_11] : memref<128x128xf32, #tpu.memory_space<vmem>>, vector<128x128xf32>
      %cst_12 = arith.constant dense<0.000000e+00> : vector<128xf32>
      %13 = vector.multi_reduction <add>, %12, %cst_12 [0] : vector<128x128xf32> to vector<128xf32>
      %14 = vector.shape_cast %13 : vector<128xf32> to vector<1x128xf32>
      %cst_13 = arith.constant 1.280000e+02 : f32
      %15 = vector.broadcast %cst_13 : f32 to vector<1x128xf32>
      %16 = arith.divf %14, %15 : vector<1x128xf32>
      %17 = vector.broadcast %16 : vector<1x128xf32> to vector<128x128xf32>
      %18 = arith.subf %12, %17 : vector<128x128xf32>
      %19 = arith.mulf %18, %18 : vector<128x128xf32>
      %cst_14 = arith.constant dense<0.000000e+00> : vector<128xf32>
      %20 = vector.multi_reduction <add>, %19, %cst_14 [0] : vector<128x128xf32> to vector<128xf32>
      %21 = vector.shape_cast %20 : vector<128xf32> to vector<1x128xf32>
      %cst_15 = arith.constant 1.280000e+02 : f32
      %22 = vector.broadcast %cst_15 : f32 to vector<1x128xf32>
      %23 = arith.divf %21, %22 : vector<1x128xf32>
      %c0_16 = arith.constant 0 : index
      %c0_17 = arith.constant 0 : index
      %24 = vector.load %arg4[%c0_16, %c0_17] : memref<1x128xf32, #tpu.memory_space<vmem>>, vector<1x128xf32>
      %cst_18 = arith.constant 9.99999974E-6 : f32
      %25 = vector.broadcast %cst_18 : f32 to vector<1x128xf32>
      %26 = arith.addf %23, %25 : vector<1x128xf32>
      %27 = math.rsqrt %26 : vector<1x128xf32>
      %28 = arith.mulf %24, %27 : vector<1x128xf32>
      %c0_19 = arith.constant 0 : index
      %c0_20 = arith.constant 0 : index
      %29 = vector.load %arg5[%c0_19, %c0_20] : memref<1x128xf32, #tpu.memory_space<vmem>>, vector<1x128xf32>
      %30 = arith.mulf %16, %28 : vector<1x128xf32>
      %31 = arith.subf %29, %30 : vector<1x128xf32>
      %32 = vector.broadcast %28 : vector<1x128xf32> to vector<128x128xf32>
      %33 = arith.mulf %12, %32 : vector<128x128xf32>
      %34 = vector.broadcast %31 : vector<1x128xf32> to vector<128x128xf32>
      %35 = arith.addf %33, %34 : vector<128x128xf32>
      %cst_21 = arith.constant 0.000000e+00 : f32
      %36 = vector.broadcast %cst_21 : f32 to vector<128x128xf32>
      %37 = arith.cmpf oge, %35, %36 : vector<128x128xf32>
      %cst_22 = arith.constant 1.000000e-01 : f32
      %38 = vector.broadcast %cst_22 : f32 to vector<128x128xf32>
      %39 = arith.mulf %38, %35 : vector<128x128xf32>
      %40 = arith.select %37, %35, %39 : vector<128x128xi1>, vector<128x128xf32>
      %c0_23 = arith.constant 0 : index
      %c0_24 = arith.constant 0 : index
      %41 = vector.load %arg6[%c0_23, %c0_24] : memref<128x128xf32, #tpu.memory_space<vmem>>, vector<128x128xf32>
      tpu.vector_store %arg6[%c0_23, %c0_24], %40 {strides = array<i32>} : memref<128x128xf32, #tpu.memory_space<vmem>>, vector<128x128xf32>,
    } else {
    }
    return
  }
  func.func @transform_0(%arg0: i32, %arg1: i32) -> (i32, i32) {
    %c0_i32 = arith.constant 0 : i32
    %c0_i32_0 = arith.constant 0 : i32
    return %c0_i32, %arg1 : i32, i32
  }
  func.func @transform_1(%arg0: i32, %arg1: i32) -> (i32, i32) {
    %c0_i32 = arith.constant 0 : i32
    return %arg1, %arg0 : i32, i32
  }
  func.func @transform_2(%arg0: i32, %arg1: i32) -> (i32, i32) {
    %c0_i32 = arith.constant 0 : i32
    %c0_i32_0 = arith.constant 0 : i32
    return %c0_i32, %arg0 : i32, i32
  }
  func.func @transform_3(%arg0: i32, %arg1: i32) -> (i32, i32) {
    %c0_i32 = arith.constant 0 : i32
    %c0_i32_0 = arith.constant 0 : i32
    return %c0_i32, %arg0 : i32, i32
  }
  func.func @transform_4(%arg0: i32, %arg1: i32) -> (i32, i32) {
    %c0_i32 = arith.constant 0 : i32
    %c0_i32_0 = arith.constant 0 : i32
    return %c0_i32, %arg0 : i32, i32
  }
}

module attributes {stable_mosaic.version = 11 : i64} {
  func.func @_conv_bn_lrelu_res_kernel(%arg0: i32, %arg1: i32, %arg2: memref<128x384xbf16, #tpu.memory_space<vmem>>, %arg3: memref<384x128xbf16, #tpu.memory_space<vmem>>, %arg4: memref<1x128xf32, #tpu.memory_space<vmem>>, %arg5: memref<1x128xf32, #tpu.memory_space<vmem>>, %arg6: memref<128x128xf32, #tpu.memory_space<vmem>>, %arg7: memref<128x128xf32, #tpu.memory_space<vmem>>, %arg8: memref<128x128xf32, #tpu.memory_space<vmem>>) attributes {dimension_semantics = [#tpu.dimension_semantics<parallel>, #tpu.dimension_semantics<arbitrary>], iteration_bounds = array<i64: 1, 1>, scalar_prefetch = 0 : i64, scratch_operands = 1 : i64, tpu.core_type = #tpu.core_type<tc>, window_params = [{transform_indices = @transform_0, window_bounds = array<i64: 128, 384>}, {transform_indices = @transform_1, window_bounds = array<i64: 384, 128>}, {transform_indices = @transform_2, window_bounds = array<i64: 1, 128>}, {transform_indices = @transform_3, window_bounds = array<i64: 1, 128>}, {transform_indices = @transform_4, window_bounds = array<i64: 128, 128>}, {transform_indices = @transform_5, window_bounds = array<i64: 128, 128>}]} {
    %c0_i32 = arith.constant 0 : i32
    %0 = arith.cmpi eq, %arg1, %c0_i32 : i32
    %1 = arith.extui %0 : i1 to i32
    %c0_i32_0 = arith.constant 0 : i32
    %2 = arith.cmpi ne, %1, %c0_i32_0 : i32
    scf.if %2 {
      %cst_10 = arith.constant 0.000000e+00 : f32
      %12 = vector.broadcast %cst_10 : f32 to vector<128x128xf32>
      %c0_11 = arith.constant 0 : index
      %c0_12 = arith.constant 0 : index
      %13 = vector.load %arg8[%c0_11, %c0_12] : memref<128x128xf32, #tpu.memory_space<vmem>>, vector<128x128xf32>
      tpu.vector_store %arg8[%c0_11, %c0_12], %12 {strides = array<i32>} : memref<128x128xf32, #tpu.memory_space<vmem>>, vector<128x128xf32>,
    } else {
    }
    %c0 = arith.constant 0 : index
    %c0_1 = arith.constant 0 : index
    %3 = vector.load %arg8[%c0, %c0_1] : memref<128x128xf32, #tpu.memory_space<vmem>>, vector<128x128xf32>
    %c0_2 = arith.constant 0 : index
    %c0_3 = arith.constant 0 : index
    %4 = vector.load %arg2[%c0_2, %c0_3] : memref<128x384xbf16, #tpu.memory_space<vmem>>, vector<128x384xbf16>
    %c0_4 = arith.constant 0 : index
    %c0_5 = arith.constant 0 : index
    %5 = vector.load %arg3[%c0_4, %c0_5] : memref<384x128xbf16, #tpu.memory_space<vmem>>, vector<384x128xbf16>
    %cst = arith.constant dense<0.000000e+00> : vector<128x128xf32>
    %6 = tpu.matmul %4, %5, %cst {dimension_numbers = #tpu.dot_dimension_numbers<[1], [0], [0], [1], [0, 0, 1, 1], [], []>} : vector<128x384xbf16>, vector<384x128xbf16>, vector<128x128xf32> -> vector<128x128xf32>
    %7 = arith.addf %3, %6 : vector<128x128xf32>
    %c0_6 = arith.constant 0 : index
    %c0_7 = arith.constant 0 : index
    %8 = vector.load %arg8[%c0_6, %c0_7] : memref<128x128xf32, #tpu.memory_space<vmem>>, vector<128x128xf32>
    tpu.vector_store %arg8[%c0_6, %c0_7], %7 {strides = array<i32>} : memref<128x128xf32, #tpu.memory_space<vmem>>, vector<128x128xf32>,
    %c0_i32_8 = arith.constant 0 : i32
    %9 = arith.cmpi eq, %arg1, %c0_i32_8 : i32
    %10 = arith.extui %9 : i1 to i32
    %c0_i32_9 = arith.constant 0 : i32
    %11 = arith.cmpi ne, %10, %c0_i32_9 : i32
    scf.if %11 {
      %c0_10 = arith.constant 0 : index
      %c0_11 = arith.constant 0 : index
      %12 = vector.load %arg8[%c0_10, %c0_11] : memref<128x128xf32, #tpu.memory_space<vmem>>, vector<128x128xf32>
      %cst_12 = arith.constant dense<0.000000e+00> : vector<128xf32>
      %13 = vector.multi_reduction <add>, %12, %cst_12 [0] : vector<128x128xf32> to vector<128xf32>
      %14 = vector.shape_cast %13 : vector<128xf32> to vector<1x128xf32>
      %cst_13 = arith.constant 1.280000e+02 : f32
      %15 = vector.broadcast %cst_13 : f32 to vector<1x128xf32>
      %16 = arith.divf %14, %15 : vector<1x128xf32>
      %17 = vector.broadcast %16 : vector<1x128xf32> to vector<128x128xf32>
      %18 = arith.subf %12, %17 : vector<128x128xf32>
      %19 = arith.mulf %18, %18 : vector<128x128xf32>
      %cst_14 = arith.constant dense<0.000000e+00> : vector<128xf32>
      %20 = vector.multi_reduction <add>, %19, %cst_14 [0] : vector<128x128xf32> to vector<128xf32>
      %21 = vector.shape_cast %20 : vector<128xf32> to vector<1x128xf32>
      %cst_15 = arith.constant 1.280000e+02 : f32
      %22 = vector.broadcast %cst_15 : f32 to vector<1x128xf32>
      %23 = arith.divf %21, %22 : vector<1x128xf32>
      %c0_16 = arith.constant 0 : index
      %c0_17 = arith.constant 0 : index
      %24 = vector.load %arg4[%c0_16, %c0_17] : memref<1x128xf32, #tpu.memory_space<vmem>>, vector<1x128xf32>
      %cst_18 = arith.constant 9.99999974E-6 : f32
      %25 = vector.broadcast %cst_18 : f32 to vector<1x128xf32>
      %26 = arith.addf %23, %25 : vector<1x128xf32>
      %27 = math.rsqrt %26 : vector<1x128xf32>
      %28 = arith.mulf %24, %27 : vector<1x128xf32>
      %c0_19 = arith.constant 0 : index
      %c0_20 = arith.constant 0 : index
      %29 = vector.load %arg5[%c0_19, %c0_20] : memref<1x128xf32, #tpu.memory_space<vmem>>, vector<1x128xf32>
      %30 = arith.mulf %16, %28 : vector<1x128xf32>
      %31 = arith.subf %29, %30 : vector<1x128xf32>
      %32 = vector.broadcast %28 : vector<1x128xf32> to vector<128x128xf32>
      %33 = arith.mulf %12, %32 : vector<128x128xf32>
      %34 = vector.broadcast %31 : vector<1x128xf32> to vector<128x128xf32>
      %35 = arith.addf %33, %34 : vector<128x128xf32>
      %c0_21 = arith.constant 0 : index
      %c0_22 = arith.constant 0 : index
      %36 = vector.load %arg6[%c0_21, %c0_22] : memref<128x128xf32, #tpu.memory_space<vmem>>, vector<128x128xf32>
      %cst_23 = arith.constant 0.000000e+00 : f32
      %37 = vector.broadcast %cst_23 : f32 to vector<128x128xf32>
      %38 = arith.cmpf oge, %35, %37 : vector<128x128xf32>
      %cst_24 = arith.constant 1.000000e-01 : f32
      %39 = vector.broadcast %cst_24 : f32 to vector<128x128xf32>
      %40 = arith.mulf %39, %35 : vector<128x128xf32>
      %41 = arith.select %38, %35, %40 : vector<128x128xi1>, vector<128x128xf32>
      %42 = arith.addf %36, %41 : vector<128x128xf32>
      %c0_25 = arith.constant 0 : index
      %c0_26 = arith.constant 0 : index
      %43 = vector.load %arg7[%c0_25, %c0_26] : memref<128x128xf32, #tpu.memory_space<vmem>>, vector<128x128xf32>
      tpu.vector_store %arg7[%c0_25, %c0_26], %42 {strides = array<i32>} : memref<128x128xf32, #tpu.memory_space<vmem>>, vector<128x128xf32>,
    } else {
    }
    return
  }
  func.func @transform_0(%arg0: i32, %arg1: i32) -> (i32, i32) {
    %c0_i32 = arith.constant 0 : i32
    %c0_i32_0 = arith.constant 0 : i32
    return %c0_i32, %arg1 : i32, i32
  }
  func.func @transform_1(%arg0: i32, %arg1: i32) -> (i32, i32) {
    %c0_i32 = arith.constant 0 : i32
    return %arg1, %arg0 : i32, i32
  }
  func.func @transform_2(%arg0: i32, %arg1: i32) -> (i32, i32) {
    %c0_i32 = arith.constant 0 : i32
    %c0_i32_0 = arith.constant 0 : i32
    return %c0_i32, %arg0 : i32, i32
  }
  func.func @transform_3(%arg0: i32, %arg1: i32) -> (i32, i32) {
    %c0_i32 = arith.constant 0 : i32
    %c0_i32_0 = arith.constant 0 : i32
    return %c0_i32, %arg0 : i32, i32
  }
  func.func @transform_4(%arg0: i32, %arg1: i32) -> (i32, i32) {
    %c0_i32 = arith.constant 0 : i32
    %c0_i32_0 = arith.constant 0 : i32
    return %c0_i32, %arg0 : i32, i32
  }
  func.func @transform_5(%arg0: i32, %arg1: i32) -> (i32, i32) {
    %c0_i32 = arith.constant 0 : i32
    %c0_i32_0 = arith.constant 0 : i32
    return %c0_i32, %arg0 : i32, i32
  }
}

module attributes {stable_mosaic.version = 11 : i64} {
  func.func @_conv_bn_lrelu_kernel(%arg0: i32, %arg1: i32, %arg2: memref<32x512xbf16, #tpu.memory_space<vmem>>, %arg3: memref<512x128xbf16, #tpu.memory_space<vmem>>, %arg4: memref<1x128xf32, #tpu.memory_space<vmem>>, %arg5: memref<1x128xf32, #tpu.memory_space<vmem>>, %arg6: memref<32x128xf32, #tpu.memory_space<vmem>>, %arg7: memref<32x128xf32, #tpu.memory_space<vmem>>) attributes {dimension_semantics = [#tpu.dimension_semantics<parallel>, #tpu.dimension_semantics<arbitrary>], iteration_bounds = array<i64: 1, 2>, scalar_prefetch = 0 : i64, scratch_operands = 1 : i64, tpu.core_type = #tpu.core_type<tc>, window_params = [{transform_indices = @transform_0, window_bounds = array<i64: 32, 512>}, {transform_indices = @transform_1, window_bounds = array<i64: 512, 128>}, {transform_indices = @transform_2, window_bounds = array<i64: 1, 128>}, {transform_indices = @transform_3, window_bounds = array<i64: 1, 128>}, {transform_indices = @transform_4, window_bounds = array<i64: 32, 128>}]} {
    %c0_i32 = arith.constant 0 : i32
    %0 = arith.cmpi eq, %arg1, %c0_i32 : i32
    %1 = arith.extui %0 : i1 to i32
    %c0_i32_0 = arith.constant 0 : i32
    %2 = arith.cmpi ne, %1, %c0_i32_0 : i32
    scf.if %2 {
      %cst_9 = arith.constant 0.000000e+00 : f32
      %12 = vector.broadcast %cst_9 : f32 to vector<32x128xf32>
      %c0_10 = arith.constant 0 : index
      %c0_11 = arith.constant 0 : index
      %13 = vector.load %arg7[%c0_10, %c0_11] : memref<32x128xf32, #tpu.memory_space<vmem>>, vector<32x128xf32>
      tpu.vector_store %arg7[%c0_10, %c0_11], %12 {strides = array<i32>} : memref<32x128xf32, #tpu.memory_space<vmem>>, vector<32x128xf32>,
    } else {
    }
    %c0 = arith.constant 0 : index
    %c0_1 = arith.constant 0 : index
    %3 = vector.load %arg7[%c0, %c0_1] : memref<32x128xf32, #tpu.memory_space<vmem>>, vector<32x128xf32>
    %c0_2 = arith.constant 0 : index
    %c0_3 = arith.constant 0 : index
    %4 = vector.load %arg2[%c0_2, %c0_3] : memref<32x512xbf16, #tpu.memory_space<vmem>>, vector<32x512xbf16>
    %c0_4 = arith.constant 0 : index
    %c0_5 = arith.constant 0 : index
    %5 = vector.load %arg3[%c0_4, %c0_5] : memref<512x128xbf16, #tpu.memory_space<vmem>>, vector<512x128xbf16>
    %cst = arith.constant dense<0.000000e+00> : vector<32x128xf32>
    %6 = tpu.matmul %4, %5, %cst {dimension_numbers = #tpu.dot_dimension_numbers<[1], [0], [0], [1], [0, 0, 1, 1], [], []>} : vector<32x512xbf16>, vector<512x128xbf16>, vector<32x128xf32> -> vector<32x128xf32>
    %7 = arith.addf %3, %6 : vector<32x128xf32>
    %c0_6 = arith.constant 0 : index
    %c0_7 = arith.constant 0 : index
    %8 = vector.load %arg7[%c0_6, %c0_7] : memref<32x128xf32, #tpu.memory_space<vmem>>, vector<32x128xf32>
    tpu.vector_store %arg7[%c0_6, %c0_7], %7 {strides = array<i32>} : memref<32x128xf32, #tpu.memory_space<vmem>>, vector<32x128xf32>,
    %c1_i32 = arith.constant 1 : i32
    %9 = arith.cmpi eq, %arg1, %c1_i32 : i32
    %10 = arith.extui %9 : i1 to i32
    %c0_i32_8 = arith.constant 0 : i32
    %11 = arith.cmpi ne, %10, %c0_i32_8 : i32
    scf.if %11 {
      %c0_9 = arith.constant 0 : index
      %c0_10 = arith.constant 0 : index
      %12 = vector.load %arg7[%c0_9, %c0_10] : memref<32x128xf32, #tpu.memory_space<vmem>>, vector<32x128xf32>
      %cst_11 = arith.constant dense<0.000000e+00> : vector<128xf32>
      %13 = vector.multi_reduction <add>, %12, %cst_11 [0] : vector<32x128xf32> to vector<128xf32>
      %14 = vector.shape_cast %13 : vector<128xf32> to vector<1x128xf32>
      %cst_12 = arith.constant 3.200000e+01 : f32
      %15 = vector.broadcast %cst_12 : f32 to vector<1x128xf32>
      %16 = arith.divf %14, %15 : vector<1x128xf32>
      %17 = vector.broadcast %16 : vector<1x128xf32> to vector<32x128xf32>
      %18 = arith.subf %12, %17 : vector<32x128xf32>
      %19 = arith.mulf %18, %18 : vector<32x128xf32>
      %cst_13 = arith.constant dense<0.000000e+00> : vector<128xf32>
      %20 = vector.multi_reduction <add>, %19, %cst_13 [0] : vector<32x128xf32> to vector<128xf32>
      %21 = vector.shape_cast %20 : vector<128xf32> to vector<1x128xf32>
      %cst_14 = arith.constant 3.200000e+01 : f32
      %22 = vector.broadcast %cst_14 : f32 to vector<1x128xf32>
      %23 = arith.divf %21, %22 : vector<1x128xf32>
      %c0_15 = arith.constant 0 : index
      %c0_16 = arith.constant 0 : index
      %24 = vector.load %arg4[%c0_15, %c0_16] : memref<1x128xf32, #tpu.memory_space<vmem>>, vector<1x128xf32>
      %cst_17 = arith.constant 9.99999974E-6 : f32
      %25 = vector.broadcast %cst_17 : f32 to vector<1x128xf32>
      %26 = arith.addf %23, %25 : vector<1x128xf32>
      %27 = math.rsqrt %26 : vector<1x128xf32>
      %28 = arith.mulf %24, %27 : vector<1x128xf32>
      %c0_18 = arith.constant 0 : index
      %c0_19 = arith.constant 0 : index
      %29 = vector.load %arg5[%c0_18, %c0_19] : memref<1x128xf32, #tpu.memory_space<vmem>>, vector<1x128xf32>
      %30 = arith.mulf %16, %28 : vector<1x128xf32>
      %31 = arith.subf %29, %30 : vector<1x128xf32>
      %32 = vector.broadcast %28 : vector<1x128xf32> to vector<32x128xf32>
      %33 = arith.mulf %12, %32 : vector<32x128xf32>
      %34 = vector.broadcast %31 : vector<1x128xf32> to vector<32x128xf32>
      %35 = arith.addf %33, %34 : vector<32x128xf32>
      %cst_20 = arith.constant 0.000000e+00 : f32
      %36 = vector.broadcast %cst_20 : f32 to vector<32x128xf32>
      %37 = arith.cmpf oge, %35, %36 : vector<32x128xf32>
      %cst_21 = arith.constant 1.000000e-01 : f32
      %38 = vector.broadcast %cst_21 : f32 to vector<32x128xf32>
      %39 = arith.mulf %38, %35 : vector<32x128xf32>
      %40 = arith.select %37, %35, %39 : vector<32x128xi1>, vector<32x128xf32>
      %c0_22 = arith.constant 0 : index
      %c0_23 = arith.constant 0 : index
      %41 = vector.load %arg6[%c0_22, %c0_23] : memref<32x128xf32, #tpu.memory_space<vmem>>, vector<32x128xf32>
      tpu.vector_store %arg6[%c0_22, %c0_23], %40 {strides = array<i32>} : memref<32x128xf32, #tpu.memory_space<vmem>>, vector<32x128xf32>,
    } else {
    }
    return
  }
  func.func @transform_0(%arg0: i32, %arg1: i32) -> (i32, i32) {
    %c0_i32 = arith.constant 0 : i32
    %c0_i32_0 = arith.constant 0 : i32
    return %c0_i32, %arg1 : i32, i32
  }
  func.func @transform_1(%arg0: i32, %arg1: i32) -> (i32, i32) {
    %c0_i32 = arith.constant 0 : i32
    return %arg1, %arg0 : i32, i32
  }
  func.func @transform_2(%arg0: i32, %arg1: i32) -> (i32, i32) {
    %c0_i32 = arith.constant 0 : i32
    %c0_i32_0 = arith.constant 0 : i32
    return %c0_i32, %arg0 : i32, i32
  }
  func.func @transform_3(%arg0: i32, %arg1: i32) -> (i32, i32) {
    %c0_i32 = arith.constant 0 : i32
    %c0_i32_0 = arith.constant 0 : i32
    return %c0_i32, %arg0 : i32, i32
  }
  func.func @transform_4(%arg0: i32, %arg1: i32) -> (i32, i32) {
    %c0_i32 = arith.constant 0 : i32
    %c0_i32_0 = arith.constant 0 : i32
    return %c0_i32, %arg0 : i32, i32
  }
}

module attributes {stable_mosaic.version = 11 : i64} {
  func.func @_conv_bn_lrelu_kernel(%arg0: i32, %arg1: i32, %arg2: memref<32x128xbf16, #tpu.memory_space<vmem>>, %arg3: memref<128x128xbf16, #tpu.memory_space<vmem>>, %arg4: memref<1x128xf32, #tpu.memory_space<vmem>>, %arg5: memref<1x128xf32, #tpu.memory_space<vmem>>, %arg6: memref<32x128xf32, #tpu.memory_space<vmem>>, %arg7: memref<32x128xf32, #tpu.memory_space<vmem>>) attributes {dimension_semantics = [#tpu.dimension_semantics<parallel>, #tpu.dimension_semantics<arbitrary>], iteration_bounds = array<i64: 1, 1>, scalar_prefetch = 0 : i64, scratch_operands = 1 : i64, tpu.core_type = #tpu.core_type<tc>, window_params = [{transform_indices = @transform_0, window_bounds = array<i64: 32, 128>}, {transform_indices = @transform_1, window_bounds = array<i64: 128, 128>}, {transform_indices = @transform_2, window_bounds = array<i64: 1, 128>}, {transform_indices = @transform_3, window_bounds = array<i64: 1, 128>}, {transform_indices = @transform_4, window_bounds = array<i64: 32, 128>}]} {
    %c0_i32 = arith.constant 0 : i32
    %0 = arith.cmpi eq, %arg1, %c0_i32 : i32
    %1 = arith.extui %0 : i1 to i32
    %c0_i32_0 = arith.constant 0 : i32
    %2 = arith.cmpi ne, %1, %c0_i32_0 : i32
    scf.if %2 {
      %cst_10 = arith.constant 0.000000e+00 : f32
      %12 = vector.broadcast %cst_10 : f32 to vector<32x128xf32>
      %c0_11 = arith.constant 0 : index
      %c0_12 = arith.constant 0 : index
      %13 = vector.load %arg7[%c0_11, %c0_12] : memref<32x128xf32, #tpu.memory_space<vmem>>, vector<32x128xf32>
      tpu.vector_store %arg7[%c0_11, %c0_12], %12 {strides = array<i32>} : memref<32x128xf32, #tpu.memory_space<vmem>>, vector<32x128xf32>,
    } else {
    }
    %c0 = arith.constant 0 : index
    %c0_1 = arith.constant 0 : index
    %3 = vector.load %arg7[%c0, %c0_1] : memref<32x128xf32, #tpu.memory_space<vmem>>, vector<32x128xf32>
    %c0_2 = arith.constant 0 : index
    %c0_3 = arith.constant 0 : index
    %4 = vector.load %arg2[%c0_2, %c0_3] : memref<32x128xbf16, #tpu.memory_space<vmem>>, vector<32x128xbf16>
    %c0_4 = arith.constant 0 : index
    %c0_5 = arith.constant 0 : index
    %5 = vector.load %arg3[%c0_4, %c0_5] : memref<128x128xbf16, #tpu.memory_space<vmem>>, vector<128x128xbf16>
    %cst = arith.constant dense<0.000000e+00> : vector<32x128xf32>
    %6 = tpu.matmul %4, %5, %cst {dimension_numbers = #tpu.dot_dimension_numbers<[1], [0], [0], [1], [0, 0, 1, 1], [], []>} : vector<32x128xbf16>, vector<128x128xbf16>, vector<32x128xf32> -> vector<32x128xf32>
    %7 = arith.addf %3, %6 : vector<32x128xf32>
    %c0_6 = arith.constant 0 : index
    %c0_7 = arith.constant 0 : index
    %8 = vector.load %arg7[%c0_6, %c0_7] : memref<32x128xf32, #tpu.memory_space<vmem>>, vector<32x128xf32>
    tpu.vector_store %arg7[%c0_6, %c0_7], %7 {strides = array<i32>} : memref<32x128xf32, #tpu.memory_space<vmem>>, vector<32x128xf32>,
    %c0_i32_8 = arith.constant 0 : i32
    %9 = arith.cmpi eq, %arg1, %c0_i32_8 : i32
    %10 = arith.extui %9 : i1 to i32
    %c0_i32_9 = arith.constant 0 : i32
    %11 = arith.cmpi ne, %10, %c0_i32_9 : i32
    scf.if %11 {
      %c0_10 = arith.constant 0 : index
      %c0_11 = arith.constant 0 : index
      %12 = vector.load %arg7[%c0_10, %c0_11] : memref<32x128xf32, #tpu.memory_space<vmem>>, vector<32x128xf32>
      %cst_12 = arith.constant dense<0.000000e+00> : vector<128xf32>
      %13 = vector.multi_reduction <add>, %12, %cst_12 [0] : vector<32x128xf32> to vector<128xf32>
      %14 = vector.shape_cast %13 : vector<128xf32> to vector<1x128xf32>
      %cst_13 = arith.constant 3.200000e+01 : f32
      %15 = vector.broadcast %cst_13 : f32 to vector<1x128xf32>
      %16 = arith.divf %14, %15 : vector<1x128xf32>
      %17 = vector.broadcast %16 : vector<1x128xf32> to vector<32x128xf32>
      %18 = arith.subf %12, %17 : vector<32x128xf32>
      %19 = arith.mulf %18, %18 : vector<32x128xf32>
      %cst_14 = arith.constant dense<0.000000e+00> : vector<128xf32>
      %20 = vector.multi_reduction <add>, %19, %cst_14 [0] : vector<32x128xf32> to vector<128xf32>
      %21 = vector.shape_cast %20 : vector<128xf32> to vector<1x128xf32>
      %cst_15 = arith.constant 3.200000e+01 : f32
      %22 = vector.broadcast %cst_15 : f32 to vector<1x128xf32>
      %23 = arith.divf %21, %22 : vector<1x128xf32>
      %c0_16 = arith.constant 0 : index
      %c0_17 = arith.constant 0 : index
      %24 = vector.load %arg4[%c0_16, %c0_17] : memref<1x128xf32, #tpu.memory_space<vmem>>, vector<1x128xf32>
      %cst_18 = arith.constant 9.99999974E-6 : f32
      %25 = vector.broadcast %cst_18 : f32 to vector<1x128xf32>
      %26 = arith.addf %23, %25 : vector<1x128xf32>
      %27 = math.rsqrt %26 : vector<1x128xf32>
      %28 = arith.mulf %24, %27 : vector<1x128xf32>
      %c0_19 = arith.constant 0 : index
      %c0_20 = arith.constant 0 : index
      %29 = vector.load %arg5[%c0_19, %c0_20] : memref<1x128xf32, #tpu.memory_space<vmem>>, vector<1x128xf32>
      %30 = arith.mulf %16, %28 : vector<1x128xf32>
      %31 = arith.subf %29, %30 : vector<1x128xf32>
      %32 = vector.broadcast %28 : vector<1x128xf32> to vector<32x128xf32>
      %33 = arith.mulf %12, %32 : vector<32x128xf32>
      %34 = vector.broadcast %31 : vector<1x128xf32> to vector<32x128xf32>
      %35 = arith.addf %33, %34 : vector<32x128xf32>
      %cst_21 = arith.constant 0.000000e+00 : f32
      %36 = vector.broadcast %cst_21 : f32 to vector<32x128xf32>
      %37 = arith.cmpf oge, %35, %36 : vector<32x128xf32>
      %cst_22 = arith.constant 1.000000e-01 : f32
      %38 = vector.broadcast %cst_22 : f32 to vector<32x128xf32>
      %39 = arith.mulf %38, %35 : vector<32x128xf32>
      %40 = arith.select %37, %35, %39 : vector<32x128xi1>, vector<32x128xf32>
      %c0_23 = arith.constant 0 : index
      %c0_24 = arith.constant 0 : index
      %41 = vector.load %arg6[%c0_23, %c0_24] : memref<32x128xf32, #tpu.memory_space<vmem>>, vector<32x128xf32>
      tpu.vector_store %arg6[%c0_23, %c0_24], %40 {strides = array<i32>} : memref<32x128xf32, #tpu.memory_space<vmem>>, vector<32x128xf32>,
    } else {
    }
    return
  }
  func.func @transform_0(%arg0: i32, %arg1: i32) -> (i32, i32) {
    %c0_i32 = arith.constant 0 : i32
    %c0_i32_0 = arith.constant 0 : i32
    return %c0_i32, %arg1 : i32, i32
  }
  func.func @transform_1(%arg0: i32, %arg1: i32) -> (i32, i32) {
    %c0_i32 = arith.constant 0 : i32
    return %arg1, %arg0 : i32, i32
  }
  func.func @transform_2(%arg0: i32, %arg1: i32) -> (i32, i32) {
    %c0_i32 = arith.constant 0 : i32
    %c0_i32_0 = arith.constant 0 : i32
    return %c0_i32, %arg0 : i32, i32
  }
  func.func @transform_3(%arg0: i32, %arg1: i32) -> (i32, i32) {
    %c0_i32 = arith.constant 0 : i32
    %c0_i32_0 = arith.constant 0 : i32
    return %c0_i32, %arg0 : i32, i32
  }
  func.func @transform_4(%arg0: i32, %arg1: i32) -> (i32, i32) {
    %c0_i32 = arith.constant 0 : i32
    %c0_i32_0 = arith.constant 0 : i32
    return %c0_i32, %arg0 : i32, i32
  }
}

module attributes {stable_mosaic.version = 11 : i64} {
  func.func @_conv_bn_lrelu_res_kernel(%arg0: i32, %arg1: i32, %arg2: memref<32x512xbf16, #tpu.memory_space<vmem>>, %arg3: memref<512x128xbf16, #tpu.memory_space<vmem>>, %arg4: memref<1x128xf32, #tpu.memory_space<vmem>>, %arg5: memref<1x128xf32, #tpu.memory_space<vmem>>, %arg6: memref<32x128xf32, #tpu.memory_space<vmem>>, %arg7: memref<32x128xf32, #tpu.memory_space<vmem>>, %arg8: memref<32x128xf32, #tpu.memory_space<vmem>>) attributes {dimension_semantics = [#tpu.dimension_semantics<parallel>, #tpu.dimension_semantics<arbitrary>], iteration_bounds = array<i64: 1, 2>, scalar_prefetch = 0 : i64, scratch_operands = 1 : i64, tpu.core_type = #tpu.core_type<tc>, window_params = [{transform_indices = @transform_0, window_bounds = array<i64: 32, 512>}, {transform_indices = @transform_1, window_bounds = array<i64: 512, 128>}, {transform_indices = @transform_2, window_bounds = array<i64: 1, 128>}, {transform_indices = @transform_3, window_bounds = array<i64: 1, 128>}, {transform_indices = @transform_4, window_bounds = array<i64: 32, 128>}, {transform_indices = @transform_5, window_bounds = array<i64: 32, 128>}]} {
    %c0_i32 = arith.constant 0 : i32
    %0 = arith.cmpi eq, %arg1, %c0_i32 : i32
    %1 = arith.extui %0 : i1 to i32
    %c0_i32_0 = arith.constant 0 : i32
    %2 = arith.cmpi ne, %1, %c0_i32_0 : i32
    scf.if %2 {
      %cst_9 = arith.constant 0.000000e+00 : f32
      %12 = vector.broadcast %cst_9 : f32 to vector<32x128xf32>
      %c0_10 = arith.constant 0 : index
      %c0_11 = arith.constant 0 : index
      %13 = vector.load %arg8[%c0_10, %c0_11] : memref<32x128xf32, #tpu.memory_space<vmem>>, vector<32x128xf32>
      tpu.vector_store %arg8[%c0_10, %c0_11], %12 {strides = array<i32>} : memref<32x128xf32, #tpu.memory_space<vmem>>, vector<32x128xf32>,
    } else {
    }
    %c0 = arith.constant 0 : index
    %c0_1 = arith.constant 0 : index
    %3 = vector.load %arg8[%c0, %c0_1] : memref<32x128xf32, #tpu.memory_space<vmem>>, vector<32x128xf32>
    %c0_2 = arith.constant 0 : index
    %c0_3 = arith.constant 0 : index
    %4 = vector.load %arg2[%c0_2, %c0_3] : memref<32x512xbf16, #tpu.memory_space<vmem>>, vector<32x512xbf16>
    %c0_4 = arith.constant 0 : index
    %c0_5 = arith.constant 0 : index
    %5 = vector.load %arg3[%c0_4, %c0_5] : memref<512x128xbf16, #tpu.memory_space<vmem>>, vector<512x128xbf16>
    %cst = arith.constant dense<0.000000e+00> : vector<32x128xf32>
    %6 = tpu.matmul %4, %5, %cst {dimension_numbers = #tpu.dot_dimension_numbers<[1], [0], [0], [1], [0, 0, 1, 1], [], []>} : vector<32x512xbf16>, vector<512x128xbf16>, vector<32x128xf32> -> vector<32x128xf32>
    %7 = arith.addf %3, %6 : vector<32x128xf32>
    %c0_6 = arith.constant 0 : index
    %c0_7 = arith.constant 0 : index
    %8 = vector.load %arg8[%c0_6, %c0_7] : memref<32x128xf32, #tpu.memory_space<vmem>>, vector<32x128xf32>
    tpu.vector_store %arg8[%c0_6, %c0_7], %7 {strides = array<i32>} : memref<32x128xf32, #tpu.memory_space<vmem>>, vector<32x128xf32>,
    %c1_i32 = arith.constant 1 : i32
    %9 = arith.cmpi eq, %arg1, %c1_i32 : i32
    %10 = arith.extui %9 : i1 to i32
    %c0_i32_8 = arith.constant 0 : i32
    %11 = arith.cmpi ne, %10, %c0_i32_8 : i32
    scf.if %11 {
      %c0_9 = arith.constant 0 : index
      %c0_10 = arith.constant 0 : index
      %12 = vector.load %arg8[%c0_9, %c0_10] : memref<32x128xf32, #tpu.memory_space<vmem>>, vector<32x128xf32>
      %cst_11 = arith.constant dense<0.000000e+00> : vector<128xf32>
      %13 = vector.multi_reduction <add>, %12, %cst_11 [0] : vector<32x128xf32> to vector<128xf32>
      %14 = vector.shape_cast %13 : vector<128xf32> to vector<1x128xf32>
      %cst_12 = arith.constant 3.200000e+01 : f32
      %15 = vector.broadcast %cst_12 : f32 to vector<1x128xf32>
      %16 = arith.divf %14, %15 : vector<1x128xf32>
      %17 = vector.broadcast %16 : vector<1x128xf32> to vector<32x128xf32>
      %18 = arith.subf %12, %17 : vector<32x128xf32>
      %19 = arith.mulf %18, %18 : vector<32x128xf32>
      %cst_13 = arith.constant dense<0.000000e+00> : vector<128xf32>
      %20 = vector.multi_reduction <add>, %19, %cst_13 [0] : vector<32x128xf32> to vector<128xf32>
      %21 = vector.shape_cast %20 : vector<128xf32> to vector<1x128xf32>
      %cst_14 = arith.constant 3.200000e+01 : f32
      %22 = vector.broadcast %cst_14 : f32 to vector<1x128xf32>
      %23 = arith.divf %21, %22 : vector<1x128xf32>
      %c0_15 = arith.constant 0 : index
      %c0_16 = arith.constant 0 : index
      %24 = vector.load %arg4[%c0_15, %c0_16] : memref<1x128xf32, #tpu.memory_space<vmem>>, vector<1x128xf32>
      %cst_17 = arith.constant 9.99999974E-6 : f32
      %25 = vector.broadcast %cst_17 : f32 to vector<1x128xf32>
      %26 = arith.addf %23, %25 : vector<1x128xf32>
      %27 = math.rsqrt %26 : vector<1x128xf32>
      %28 = arith.mulf %24, %27 : vector<1x128xf32>
      %c0_18 = arith.constant 0 : index
      %c0_19 = arith.constant 0 : index
      %29 = vector.load %arg5[%c0_18, %c0_19] : memref<1x128xf32, #tpu.memory_space<vmem>>, vector<1x128xf32>
      %30 = arith.mulf %16, %28 : vector<1x128xf32>
      %31 = arith.subf %29, %30 : vector<1x128xf32>
      %32 = vector.broadcast %28 : vector<1x128xf32> to vector<32x128xf32>
      %33 = arith.mulf %12, %32 : vector<32x128xf32>
      %34 = vector.broadcast %31 : vector<1x128xf32> to vector<32x128xf32>
      %35 = arith.addf %33, %34 : vector<32x128xf32>
      %c0_20 = arith.constant 0 : index
      %c0_21 = arith.constant 0 : index
      %36 = vector.load %arg6[%c0_20, %c0_21] : memref<32x128xf32, #tpu.memory_space<vmem>>, vector<32x128xf32>
      %cst_22 = arith.constant 0.000000e+00 : f32
      %37 = vector.broadcast %cst_22 : f32 to vector<32x128xf32>
      %38 = arith.cmpf oge, %35, %37 : vector<32x128xf32>
      %cst_23 = arith.constant 1.000000e-01 : f32
      %39 = vector.broadcast %cst_23 : f32 to vector<32x128xf32>
      %40 = arith.mulf %39, %35 : vector<32x128xf32>
      %41 = arith.select %38, %35, %40 : vector<32x128xi1>, vector<32x128xf32>
      %42 = arith.addf %36, %41 : vector<32x128xf32>
      %c0_24 = arith.constant 0 : index
      %c0_25 = arith.constant 0 : index
      %43 = vector.load %arg7[%c0_24, %c0_25] : memref<32x128xf32, #tpu.memory_space<vmem>>, vector<32x128xf32>
      tpu.vector_store %arg7[%c0_24, %c0_25], %42 {strides = array<i32>} : memref<32x128xf32, #tpu.memory_space<vmem>>, vector<32x128xf32>,
    } else {
    }
    return
  }
  func.func @transform_0(%arg0: i32, %arg1: i32) -> (i32, i32) {
    %c0_i32 = arith.constant 0 : i32
    %c0_i32_0 = arith.constant 0 : i32
    return %c0_i32, %arg1 : i32, i32
  }
  func.func @transform_1(%arg0: i32, %arg1: i32) -> (i32, i32) {
    %c0_i32 = arith.constant 0 : i32
    return %arg1, %arg0 : i32, i32
  }
  func.func @transform_2(%arg0: i32, %arg1: i32) -> (i32, i32) {
    %c0_i32 = arith.constant 0 : i32
    %c0_i32_0 = arith.constant 0 : i32
    return %c0_i32, %arg0 : i32, i32
  }
  func.func @transform_3(%arg0: i32, %arg1: i32) -> (i32, i32) {
    %c0_i32 = arith.constant 0 : i32
    %c0_i32_0 = arith.constant 0 : i32
    return %c0_i32, %arg0 : i32, i32
  }
  func.func @transform_4(%arg0: i32, %arg1: i32) -> (i32, i32) {
    %c0_i32 = arith.constant 0 : i32
    %c0_i32_0 = arith.constant 0 : i32
    return %c0_i32, %arg0 : i32, i32
  }
  func.func @transform_5(%arg0: i32, %arg1: i32) -> (i32, i32) {
    %c0_i32 = arith.constant 0 : i32
    %c0_i32_0 = arith.constant 0 : i32
    return %c0_i32, %arg0 : i32, i32
  }
}

module attributes {stable_mosaic.version = 11 : i64} {
  func.func @_conv_bn_lrelu_kernel(%arg0: i32, %arg1: i32, %arg2: memref<8x512xbf16, #tpu.memory_space<vmem>>, %arg3: memref<512x256xbf16, #tpu.memory_space<vmem>>, %arg4: memref<1x256xf32, #tpu.memory_space<vmem>>, %arg5: memref<1x256xf32, #tpu.memory_space<vmem>>, %arg6: memref<8x256xf32, #tpu.memory_space<vmem>>, %arg7: memref<8x256xf32, #tpu.memory_space<vmem>>) attributes {dimension_semantics = [#tpu.dimension_semantics<parallel>, #tpu.dimension_semantics<arbitrary>], iteration_bounds = array<i64: 1, 3>, scalar_prefetch = 0 : i64, scratch_operands = 1 : i64, tpu.core_type = #tpu.core_type<tc>, window_params = [{transform_indices = @transform_0, window_bounds = array<i64: 8, 512>}, {transform_indices = @transform_1, window_bounds = array<i64: 512, 256>}, {transform_indices = @transform_2, window_bounds = array<i64: 1, 256>}, {transform_indices = @transform_3, window_bounds = array<i64: 1, 256>}, {transform_indices = @transform_4, window_bounds = array<i64: 8, 256>}]} {
    %c0_i32 = arith.constant 0 : i32
    %0 = arith.cmpi eq, %arg1, %c0_i32 : i32
    %1 = arith.extui %0 : i1 to i32
    %c0_i32_0 = arith.constant 0 : i32
    %2 = arith.cmpi ne, %1, %c0_i32_0 : i32
    scf.if %2 {
      %cst_9 = arith.constant 0.000000e+00 : f32
      %12 = vector.broadcast %cst_9 : f32 to vector<8x256xf32>
      %c0_10 = arith.constant 0 : index
      %c0_11 = arith.constant 0 : index
      %13 = vector.load %arg7[%c0_10, %c0_11] : memref<8x256xf32, #tpu.memory_space<vmem>>, vector<8x256xf32>
      tpu.vector_store %arg7[%c0_10, %c0_11], %12 {strides = array<i32>} : memref<8x256xf32, #tpu.memory_space<vmem>>, vector<8x256xf32>,
    } else {
    }
    %c0 = arith.constant 0 : index
    %c0_1 = arith.constant 0 : index
    %3 = vector.load %arg7[%c0, %c0_1] : memref<8x256xf32, #tpu.memory_space<vmem>>, vector<8x256xf32>
    %c0_2 = arith.constant 0 : index
    %c0_3 = arith.constant 0 : index
    %4 = vector.load %arg2[%c0_2, %c0_3] : memref<8x512xbf16, #tpu.memory_space<vmem>>, vector<8x512xbf16>
    %c0_4 = arith.constant 0 : index
    %c0_5 = arith.constant 0 : index
    %5 = vector.load %arg3[%c0_4, %c0_5] : memref<512x256xbf16, #tpu.memory_space<vmem>>, vector<512x256xbf16>
    %cst = arith.constant dense<0.000000e+00> : vector<8x256xf32>
    %6 = tpu.matmul %4, %5, %cst {dimension_numbers = #tpu.dot_dimension_numbers<[1], [0], [0], [1], [0, 0, 1, 1], [], []>} : vector<8x512xbf16>, vector<512x256xbf16>, vector<8x256xf32> -> vector<8x256xf32>
    %7 = arith.addf %3, %6 : vector<8x256xf32>
    %c0_6 = arith.constant 0 : index
    %c0_7 = arith.constant 0 : index
    %8 = vector.load %arg7[%c0_6, %c0_7] : memref<8x256xf32, #tpu.memory_space<vmem>>, vector<8x256xf32>
    tpu.vector_store %arg7[%c0_6, %c0_7], %7 {strides = array<i32>} : memref<8x256xf32, #tpu.memory_space<vmem>>, vector<8x256xf32>,
    %c2_i32 = arith.constant 2 : i32
    %9 = arith.cmpi eq, %arg1, %c2_i32 : i32
    %10 = arith.extui %9 : i1 to i32
    %c0_i32_8 = arith.constant 0 : i32
    %11 = arith.cmpi ne, %10, %c0_i32_8 : i32
    scf.if %11 {
      %c0_9 = arith.constant 0 : index
      %c0_10 = arith.constant 0 : index
      %12 = vector.load %arg7[%c0_9, %c0_10] : memref<8x256xf32, #tpu.memory_space<vmem>>, vector<8x256xf32>
      %cst_11 = arith.constant dense<0.000000e+00> : vector<256xf32>
      %13 = vector.multi_reduction <add>, %12, %cst_11 [0] : vector<8x256xf32> to vector<256xf32>
      %14 = vector.shape_cast %13 : vector<256xf32> to vector<1x256xf32>
      %cst_12 = arith.constant 8.000000e+00 : f32
      %15 = vector.broadcast %cst_12 : f32 to vector<1x256xf32>
      %16 = arith.divf %14, %15 : vector<1x256xf32>
      %17 = vector.broadcast %16 : vector<1x256xf32> to vector<8x256xf32>
      %18 = arith.subf %12, %17 : vector<8x256xf32>
      %19 = arith.mulf %18, %18 : vector<8x256xf32>
      %cst_13 = arith.constant dense<0.000000e+00> : vector<256xf32>
      %20 = vector.multi_reduction <add>, %19, %cst_13 [0] : vector<8x256xf32> to vector<256xf32>
      %21 = vector.shape_cast %20 : vector<256xf32> to vector<1x256xf32>
      %cst_14 = arith.constant 8.000000e+00 : f32
      %22 = vector.broadcast %cst_14 : f32 to vector<1x256xf32>
      %23 = arith.divf %21, %22 : vector<1x256xf32>
      %c0_15 = arith.constant 0 : index
      %c0_16 = arith.constant 0 : index
      %24 = vector.load %arg4[%c0_15, %c0_16] : memref<1x256xf32, #tpu.memory_space<vmem>>, vector<1x256xf32>
      %cst_17 = arith.constant 9.99999974E-6 : f32
      %25 = vector.broadcast %cst_17 : f32 to vector<1x256xf32>
      %26 = arith.addf %23, %25 : vector<1x256xf32>
      %27 = math.rsqrt %26 : vector<1x256xf32>
      %28 = arith.mulf %24, %27 : vector<1x256xf32>
      %c0_18 = arith.constant 0 : index
      %c0_19 = arith.constant 0 : index
      %29 = vector.load %arg5[%c0_18, %c0_19] : memref<1x256xf32, #tpu.memory_space<vmem>>, vector<1x256xf32>
      %30 = arith.mulf %16, %28 : vector<1x256xf32>
      %31 = arith.subf %29, %30 : vector<1x256xf32>
      %32 = vector.broadcast %28 : vector<1x256xf32> to vector<8x256xf32>
      %33 = arith.mulf %12, %32 : vector<8x256xf32>
      %34 = vector.broadcast %31 : vector<1x256xf32> to vector<8x256xf32>
      %35 = arith.addf %33, %34 : vector<8x256xf32>
      %cst_20 = arith.constant 0.000000e+00 : f32
      %36 = vector.broadcast %cst_20 : f32 to vector<8x256xf32>
      %37 = arith.cmpf oge, %35, %36 : vector<8x256xf32>
      %cst_21 = arith.constant 1.000000e-01 : f32
      %38 = vector.broadcast %cst_21 : f32 to vector<8x256xf32>
      %39 = arith.mulf %38, %35 : vector<8x256xf32>
      %40 = arith.select %37, %35, %39 : vector<8x256xi1>, vector<8x256xf32>
      %c0_22 = arith.constant 0 : index
      %c0_23 = arith.constant 0 : index
      %41 = vector.load %arg6[%c0_22, %c0_23] : memref<8x256xf32, #tpu.memory_space<vmem>>, vector<8x256xf32>
      tpu.vector_store %arg6[%c0_22, %c0_23], %40 {strides = array<i32>} : memref<8x256xf32, #tpu.memory_space<vmem>>, vector<8x256xf32>,
    } else {
    }
    return
  }
  func.func @transform_0(%arg0: i32, %arg1: i32) -> (i32, i32) {
    %c0_i32 = arith.constant 0 : i32
    %c0_i32_0 = arith.constant 0 : i32
    return %c0_i32, %arg1 : i32, i32
  }
  func.func @transform_1(%arg0: i32, %arg1: i32) -> (i32, i32) {
    %c0_i32 = arith.constant 0 : i32
    return %arg1, %arg0 : i32, i32
  }
  func.func @transform_2(%arg0: i32, %arg1: i32) -> (i32, i32) {
    %c0_i32 = arith.constant 0 : i32
    %c0_i32_0 = arith.constant 0 : i32
    return %c0_i32, %arg0 : i32, i32
  }
  func.func @transform_3(%arg0: i32, %arg1: i32) -> (i32, i32) {
    %c0_i32 = arith.constant 0 : i32
    %c0_i32_0 = arith.constant 0 : i32
    return %c0_i32, %arg0 : i32, i32
  }
  func.func @transform_4(%arg0: i32, %arg1: i32) -> (i32, i32) {
    %c0_i32 = arith.constant 0 : i32
    %c0_i32_0 = arith.constant 0 : i32
    return %c0_i32, %arg0 : i32, i32
  }
}

module attributes {stable_mosaic.version = 11 : i64} {
  func.func @_conv_bn_lrelu_kernel(%arg0: i32, %arg1: i32, %arg2: memref<8x256xbf16, #tpu.memory_space<vmem>>, %arg3: memref<256x128xbf16, #tpu.memory_space<vmem>>, %arg4: memref<1x128xf32, #tpu.memory_space<vmem>>, %arg5: memref<1x128xf32, #tpu.memory_space<vmem>>, %arg6: memref<8x128xf32, #tpu.memory_space<vmem>>, %arg7: memref<8x128xf32, #tpu.memory_space<vmem>>) attributes {dimension_semantics = [#tpu.dimension_semantics<parallel>, #tpu.dimension_semantics<arbitrary>], iteration_bounds = array<i64: 1, 1>, scalar_prefetch = 0 : i64, scratch_operands = 1 : i64, tpu.core_type = #tpu.core_type<tc>, window_params = [{transform_indices = @transform_0, window_bounds = array<i64: 8, 256>}, {transform_indices = @transform_1, window_bounds = array<i64: 256, 128>}, {transform_indices = @transform_2, window_bounds = array<i64: 1, 128>}, {transform_indices = @transform_3, window_bounds = array<i64: 1, 128>}, {transform_indices = @transform_4, window_bounds = array<i64: 8, 128>}]} {
    %c0_i32 = arith.constant 0 : i32
    %0 = arith.cmpi eq, %arg1, %c0_i32 : i32
    %1 = arith.extui %0 : i1 to i32
    %c0_i32_0 = arith.constant 0 : i32
    %2 = arith.cmpi ne, %1, %c0_i32_0 : i32
    scf.if %2 {
      %cst_10 = arith.constant 0.000000e+00 : f32
      %12 = vector.broadcast %cst_10 : f32 to vector<8x128xf32>
      %c0_11 = arith.constant 0 : index
      %c0_12 = arith.constant 0 : index
      %13 = vector.load %arg7[%c0_11, %c0_12] : memref<8x128xf32, #tpu.memory_space<vmem>>, vector<8x128xf32>
      tpu.vector_store %arg7[%c0_11, %c0_12], %12 {strides = array<i32>} : memref<8x128xf32, #tpu.memory_space<vmem>>, vector<8x128xf32>,
    } else {
    }
    %c0 = arith.constant 0 : index
    %c0_1 = arith.constant 0 : index
    %3 = vector.load %arg7[%c0, %c0_1] : memref<8x128xf32, #tpu.memory_space<vmem>>, vector<8x128xf32>
    %c0_2 = arith.constant 0 : index
    %c0_3 = arith.constant 0 : index
    %4 = vector.load %arg2[%c0_2, %c0_3] : memref<8x256xbf16, #tpu.memory_space<vmem>>, vector<8x256xbf16>
    %c0_4 = arith.constant 0 : index
    %c0_5 = arith.constant 0 : index
    %5 = vector.load %arg3[%c0_4, %c0_5] : memref<256x128xbf16, #tpu.memory_space<vmem>>, vector<256x128xbf16>
    %cst = arith.constant dense<0.000000e+00> : vector<8x128xf32>
    %6 = tpu.matmul %4, %5, %cst {dimension_numbers = #tpu.dot_dimension_numbers<[1], [0], [0], [1], [0, 0, 1, 1], [], []>} : vector<8x256xbf16>, vector<256x128xbf16>, vector<8x128xf32> -> vector<8x128xf32>
    %7 = arith.addf %3, %6 : vector<8x128xf32>
    %c0_6 = arith.constant 0 : index
    %c0_7 = arith.constant 0 : index
    %8 = vector.load %arg7[%c0_6, %c0_7] : memref<8x128xf32, #tpu.memory_space<vmem>>, vector<8x128xf32>
    tpu.vector_store %arg7[%c0_6, %c0_7], %7 {strides = array<i32>} : memref<8x128xf32, #tpu.memory_space<vmem>>, vector<8x128xf32>,
    %c0_i32_8 = arith.constant 0 : i32
    %9 = arith.cmpi eq, %arg1, %c0_i32_8 : i32
    %10 = arith.extui %9 : i1 to i32
    %c0_i32_9 = arith.constant 0 : i32
    %11 = arith.cmpi ne, %10, %c0_i32_9 : i32
    scf.if %11 {
      %c0_10 = arith.constant 0 : index
      %c0_11 = arith.constant 0 : index
      %12 = vector.load %arg7[%c0_10, %c0_11] : memref<8x128xf32, #tpu.memory_space<vmem>>, vector<8x128xf32>
      %cst_12 = arith.constant dense<0.000000e+00> : vector<128xf32>
      %13 = vector.multi_reduction <add>, %12, %cst_12 [0] : vector<8x128xf32> to vector<128xf32>
      %14 = vector.shape_cast %13 : vector<128xf32> to vector<1x128xf32>
      %cst_13 = arith.constant 8.000000e+00 : f32
      %15 = vector.broadcast %cst_13 : f32 to vector<1x128xf32>
      %16 = arith.divf %14, %15 : vector<1x128xf32>
      %17 = vector.broadcast %16 : vector<1x128xf32> to vector<8x128xf32>
      %18 = arith.subf %12, %17 : vector<8x128xf32>
      %19 = arith.mulf %18, %18 : vector<8x128xf32>
      %cst_14 = arith.constant dense<0.000000e+00> : vector<128xf32>
      %20 = vector.multi_reduction <add>, %19, %cst_14 [0] : vector<8x128xf32> to vector<128xf32>
      %21 = vector.shape_cast %20 : vector<128xf32> to vector<1x128xf32>
      %cst_15 = arith.constant 8.000000e+00 : f32
      %22 = vector.broadcast %cst_15 : f32 to vector<1x128xf32>
      %23 = arith.divf %21, %22 : vector<1x128xf32>
      %c0_16 = arith.constant 0 : index
      %c0_17 = arith.constant 0 : index
      %24 = vector.load %arg4[%c0_16, %c0_17] : memref<1x128xf32, #tpu.memory_space<vmem>>, vector<1x128xf32>
      %cst_18 = arith.constant 9.99999974E-6 : f32
      %25 = vector.broadcast %cst_18 : f32 to vector<1x128xf32>
      %26 = arith.addf %23, %25 : vector<1x128xf32>
      %27 = math.rsqrt %26 : vector<1x128xf32>
      %28 = arith.mulf %24, %27 : vector<1x128xf32>
      %c0_19 = arith.constant 0 : index
      %c0_20 = arith.constant 0 : index
      %29 = vector.load %arg5[%c0_19, %c0_20] : memref<1x128xf32, #tpu.memory_space<vmem>>, vector<1x128xf32>
      %30 = arith.mulf %16, %28 : vector<1x128xf32>
      %31 = arith.subf %29, %30 : vector<1x128xf32>
      %32 = vector.broadcast %28 : vector<1x128xf32> to vector<8x128xf32>
      %33 = arith.mulf %12, %32 : vector<8x128xf32>
      %34 = vector.broadcast %31 : vector<1x128xf32> to vector<8x128xf32>
      %35 = arith.addf %33, %34 : vector<8x128xf32>
      %cst_21 = arith.constant 0.000000e+00 : f32
      %36 = vector.broadcast %cst_21 : f32 to vector<8x128xf32>
      %37 = arith.cmpf oge, %35, %36 : vector<8x128xf32>
      %cst_22 = arith.constant 1.000000e-01 : f32
      %38 = vector.broadcast %cst_22 : f32 to vector<8x128xf32>
      %39 = arith.mulf %38, %35 : vector<8x128xf32>
      %40 = arith.select %37, %35, %39 : vector<8x128xi1>, vector<8x128xf32>
      %c0_23 = arith.constant 0 : index
      %c0_24 = arith.constant 0 : index
      %41 = vector.load %arg6[%c0_23, %c0_24] : memref<8x128xf32, #tpu.memory_space<vmem>>, vector<8x128xf32>
      tpu.vector_store %arg6[%c0_23, %c0_24], %40 {strides = array<i32>} : memref<8x128xf32, #tpu.memory_space<vmem>>, vector<8x128xf32>,
    } else {
    }
    return
  }
  func.func @transform_0(%arg0: i32, %arg1: i32) -> (i32, i32) {
    %c0_i32 = arith.constant 0 : i32
    %c0_i32_0 = arith.constant 0 : i32
    return %c0_i32, %arg1 : i32, i32
  }
  func.func @transform_1(%arg0: i32, %arg1: i32) -> (i32, i32) {
    %c0_i32 = arith.constant 0 : i32
    return %arg1, %arg0 : i32, i32
  }
  func.func @transform_2(%arg0: i32, %arg1: i32) -> (i32, i32) {
    %c0_i32 = arith.constant 0 : i32
    %c0_i32_0 = arith.constant 0 : i32
    return %c0_i32, %arg0 : i32, i32
  }
  func.func @transform_3(%arg0: i32, %arg1: i32) -> (i32, i32) {
    %c0_i32 = arith.constant 0 : i32
    %c0_i32_0 = arith.constant 0 : i32
    return %c0_i32, %arg0 : i32, i32
  }
  func.func @transform_4(%arg0: i32, %arg1: i32) -> (i32, i32) {
    %c0_i32 = arith.constant 0 : i32
    %c0_i32_0 = arith.constant 0 : i32
    return %c0_i32, %arg0 : i32, i32
  }
}

module attributes {stable_mosaic.version = 11 : i64} {
  func.func @_conv_bn_lrelu_res_kernel(%arg0: i32, %arg1: i32, %arg2: memref<8x512xbf16, #tpu.memory_space<vmem>>, %arg3: memref<512x256xbf16, #tpu.memory_space<vmem>>, %arg4: memref<1x256xf32, #tpu.memory_space<vmem>>, %arg5: memref<1x256xf32, #tpu.memory_space<vmem>>, %arg6: memref<8x256xf32, #tpu.memory_space<vmem>>, %arg7: memref<8x256xf32, #tpu.memory_space<vmem>>, %arg8: memref<8x256xf32, #tpu.memory_space<vmem>>) attributes {dimension_semantics = [#tpu.dimension_semantics<parallel>, #tpu.dimension_semantics<arbitrary>], iteration_bounds = array<i64: 1, 3>, scalar_prefetch = 0 : i64, scratch_operands = 1 : i64, tpu.core_type = #tpu.core_type<tc>, window_params = [{transform_indices = @transform_0, window_bounds = array<i64: 8, 512>}, {transform_indices = @transform_1, window_bounds = array<i64: 512, 256>}, {transform_indices = @transform_2, window_bounds = array<i64: 1, 256>}, {transform_indices = @transform_3, window_bounds = array<i64: 1, 256>}, {transform_indices = @transform_4, window_bounds = array<i64: 8, 256>}, {transform_indices = @transform_5, window_bounds = array<i64: 8, 256>}]} {
    %c0_i32 = arith.constant 0 : i32
    %0 = arith.cmpi eq, %arg1, %c0_i32 : i32
    %1 = arith.extui %0 : i1 to i32
    %c0_i32_0 = arith.constant 0 : i32
    %2 = arith.cmpi ne, %1, %c0_i32_0 : i32
    scf.if %2 {
      %cst_9 = arith.constant 0.000000e+00 : f32
      %12 = vector.broadcast %cst_9 : f32 to vector<8x256xf32>
      %c0_10 = arith.constant 0 : index
      %c0_11 = arith.constant 0 : index
      %13 = vector.load %arg8[%c0_10, %c0_11] : memref<8x256xf32, #tpu.memory_space<vmem>>, vector<8x256xf32>
      tpu.vector_store %arg8[%c0_10, %c0_11], %12 {strides = array<i32>} : memref<8x256xf32, #tpu.memory_space<vmem>>, vector<8x256xf32>,
    } else {
    }
    %c0 = arith.constant 0 : index
    %c0_1 = arith.constant 0 : index
    %3 = vector.load %arg8[%c0, %c0_1] : memref<8x256xf32, #tpu.memory_space<vmem>>, vector<8x256xf32>
    %c0_2 = arith.constant 0 : index
    %c0_3 = arith.constant 0 : index
    %4 = vector.load %arg2[%c0_2, %c0_3] : memref<8x512xbf16, #tpu.memory_space<vmem>>, vector<8x512xbf16>
    %c0_4 = arith.constant 0 : index
    %c0_5 = arith.constant 0 : index
    %5 = vector.load %arg3[%c0_4, %c0_5] : memref<512x256xbf16, #tpu.memory_space<vmem>>, vector<512x256xbf16>
    %cst = arith.constant dense<0.000000e+00> : vector<8x256xf32>
    %6 = tpu.matmul %4, %5, %cst {dimension_numbers = #tpu.dot_dimension_numbers<[1], [0], [0], [1], [0, 0, 1, 1], [], []>} : vector<8x512xbf16>, vector<512x256xbf16>, vector<8x256xf32> -> vector<8x256xf32>
    %7 = arith.addf %3, %6 : vector<8x256xf32>
    %c0_6 = arith.constant 0 : index
    %c0_7 = arith.constant 0 : index
    %8 = vector.load %arg8[%c0_6, %c0_7] : memref<8x256xf32, #tpu.memory_space<vmem>>, vector<8x256xf32>
    tpu.vector_store %arg8[%c0_6, %c0_7], %7 {strides = array<i32>} : memref<8x256xf32, #tpu.memory_space<vmem>>, vector<8x256xf32>,
    %c2_i32 = arith.constant 2 : i32
    %9 = arith.cmpi eq, %arg1, %c2_i32 : i32
    %10 = arith.extui %9 : i1 to i32
    %c0_i32_8 = arith.constant 0 : i32
    %11 = arith.cmpi ne, %10, %c0_i32_8 : i32
    scf.if %11 {
      %c0_9 = arith.constant 0 : index
      %c0_10 = arith.constant 0 : index
      %12 = vector.load %arg8[%c0_9, %c0_10] : memref<8x256xf32, #tpu.memory_space<vmem>>, vector<8x256xf32>
      %cst_11 = arith.constant dense<0.000000e+00> : vector<256xf32>
      %13 = vector.multi_reduction <add>, %12, %cst_11 [0] : vector<8x256xf32> to vector<256xf32>
      %14 = vector.shape_cast %13 : vector<256xf32> to vector<1x256xf32>
      %cst_12 = arith.constant 8.000000e+00 : f32
      %15 = vector.broadcast %cst_12 : f32 to vector<1x256xf32>
      %16 = arith.divf %14, %15 : vector<1x256xf32>
      %17 = vector.broadcast %16 : vector<1x256xf32> to vector<8x256xf32>
      %18 = arith.subf %12, %17 : vector<8x256xf32>
      %19 = arith.mulf %18, %18 : vector<8x256xf32>
      %cst_13 = arith.constant dense<0.000000e+00> : vector<256xf32>
      %20 = vector.multi_reduction <add>, %19, %cst_13 [0] : vector<8x256xf32> to vector<256xf32>
      %21 = vector.shape_cast %20 : vector<256xf32> to vector<1x256xf32>
      %cst_14 = arith.constant 8.000000e+00 : f32
      %22 = vector.broadcast %cst_14 : f32 to vector<1x256xf32>
      %23 = arith.divf %21, %22 : vector<1x256xf32>
      %c0_15 = arith.constant 0 : index
      %c0_16 = arith.constant 0 : index
      %24 = vector.load %arg4[%c0_15, %c0_16] : memref<1x256xf32, #tpu.memory_space<vmem>>, vector<1x256xf32>
      %cst_17 = arith.constant 9.99999974E-6 : f32
      %25 = vector.broadcast %cst_17 : f32 to vector<1x256xf32>
      %26 = arith.addf %23, %25 : vector<1x256xf32>
      %27 = math.rsqrt %26 : vector<1x256xf32>
      %28 = arith.mulf %24, %27 : vector<1x256xf32>
      %c0_18 = arith.constant 0 : index
      %c0_19 = arith.constant 0 : index
      %29 = vector.load %arg5[%c0_18, %c0_19] : memref<1x256xf32, #tpu.memory_space<vmem>>, vector<1x256xf32>
      %30 = arith.mulf %16, %28 : vector<1x256xf32>
      %31 = arith.subf %29, %30 : vector<1x256xf32>
      %32 = vector.broadcast %28 : vector<1x256xf32> to vector<8x256xf32>
      %33 = arith.mulf %12, %32 : vector<8x256xf32>
      %34 = vector.broadcast %31 : vector<1x256xf32> to vector<8x256xf32>
      %35 = arith.addf %33, %34 : vector<8x256xf32>
      %c0_20 = arith.constant 0 : index
      %c0_21 = arith.constant 0 : index
      %36 = vector.load %arg6[%c0_20, %c0_21] : memref<8x256xf32, #tpu.memory_space<vmem>>, vector<8x256xf32>
      %cst_22 = arith.constant 0.000000e+00 : f32
      %37 = vector.broadcast %cst_22 : f32 to vector<8x256xf32>
      %38 = arith.cmpf oge, %35, %37 : vector<8x256xf32>
      %cst_23 = arith.constant 1.000000e-01 : f32
      %39 = vector.broadcast %cst_23 : f32 to vector<8x256xf32>
      %40 = arith.mulf %39, %35 : vector<8x256xf32>
      %41 = arith.select %38, %35, %40 : vector<8x256xi1>, vector<8x256xf32>
      %42 = arith.addf %36, %41 : vector<8x256xf32>
      %c0_24 = arith.constant 0 : index
      %c0_25 = arith.constant 0 : index
      %43 = vector.load %arg7[%c0_24, %c0_25] : memref<8x256xf32, #tpu.memory_space<vmem>>, vector<8x256xf32>
      tpu.vector_store %arg7[%c0_24, %c0_25], %42 {strides = array<i32>} : memref<8x256xf32, #tpu.memory_space<vmem>>, vector<8x256xf32>,
    } else {
    }
    return
  }
  func.func @transform_0(%arg0: i32, %arg1: i32) -> (i32, i32) {
    %c0_i32 = arith.constant 0 : i32
    %c0_i32_0 = arith.constant 0 : i32
    return %c0_i32, %arg1 : i32, i32
  }
  func.func @transform_1(%arg0: i32, %arg1: i32) -> (i32, i32) {
    %c0_i32 = arith.constant 0 : i32
    return %arg1, %arg0 : i32, i32
  }
  func.func @transform_2(%arg0: i32, %arg1: i32) -> (i32, i32) {
    %c0_i32 = arith.constant 0 : i32
    %c0_i32_0 = arith.constant 0 : i32
    return %c0_i32, %arg0 : i32, i32
  }
  func.func @transform_3(%arg0: i32, %arg1: i32) -> (i32, i32) {
    %c0_i32 = arith.constant 0 : i32
    %c0_i32_0 = arith.constant 0 : i32
    return %c0_i32, %arg0 : i32, i32
  }
  func.func @transform_4(%arg0: i32, %arg1: i32) -> (i32, i32) {
    %c0_i32 = arith.constant 0 : i32
    %c0_i32_0 = arith.constant 0 : i32
    return %c0_i32, %arg0 : i32, i32
  }
  func.func @transform_5(%arg0: i32, %arg1: i32) -> (i32, i32) {
    %c0_i32 = arith.constant 0 : i32
    %c0_i32_0 = arith.constant 0 : i32
    return %c0_i32, %arg0 : i32, i32
  }
}

module attributes {stable_mosaic.version = 11 : i64} {
  func.func @_conv_bn_lrelu_kernel(%arg0: i32, %arg1: i32, %arg2: memref<2x512xbf16, #tpu.memory_space<vmem>>, %arg3: memref<512x256xbf16, #tpu.memory_space<vmem>>, %arg4: memref<1x256xf32, #tpu.memory_space<vmem>>, %arg5: memref<1x256xf32, #tpu.memory_space<vmem>>, %arg6: memref<2x256xf32, #tpu.memory_space<vmem>>, %arg7: memref<2x256xf32, #tpu.memory_space<vmem>>) attributes {dimension_semantics = [#tpu.dimension_semantics<parallel>, #tpu.dimension_semantics<arbitrary>], iteration_bounds = array<i64: 2, 5>, scalar_prefetch = 0 : i64, scratch_operands = 1 : i64, tpu.core_type = #tpu.core_type<tc>, window_params = [{transform_indices = @transform_0, window_bounds = array<i64: 2, 512>}, {transform_indices = @transform_1, window_bounds = array<i64: 512, 256>}, {transform_indices = @transform_2, window_bounds = array<i64: 1, 256>}, {transform_indices = @transform_3, window_bounds = array<i64: 1, 256>}, {transform_indices = @transform_4, window_bounds = array<i64: 2, 256>}]} {
    %c0_i32 = arith.constant 0 : i32
    %0 = arith.cmpi eq, %arg1, %c0_i32 : i32
    %1 = arith.extui %0 : i1 to i32
    %c0_i32_0 = arith.constant 0 : i32
    %2 = arith.cmpi ne, %1, %c0_i32_0 : i32
    scf.if %2 {
      %cst_9 = arith.constant 0.000000e+00 : f32
      %12 = vector.broadcast %cst_9 : f32 to vector<2x256xf32>
      %c0_10 = arith.constant 0 : index
      %c0_11 = arith.constant 0 : index
      %13 = vector.load %arg7[%c0_10, %c0_11] : memref<2x256xf32, #tpu.memory_space<vmem>>, vector<2x256xf32>
      tpu.vector_store %arg7[%c0_10, %c0_11], %12 {strides = array<i32>} : memref<2x256xf32, #tpu.memory_space<vmem>>, vector<2x256xf32>,
    } else {
    }
    %c0 = arith.constant 0 : index
    %c0_1 = arith.constant 0 : index
    %3 = vector.load %arg7[%c0, %c0_1] : memref<2x256xf32, #tpu.memory_space<vmem>>, vector<2x256xf32>
    %c0_2 = arith.constant 0 : index
    %c0_3 = arith.constant 0 : index
    %4 = vector.load %arg2[%c0_2, %c0_3] : memref<2x512xbf16, #tpu.memory_space<vmem>>, vector<2x512xbf16>
    %c0_4 = arith.constant 0 : index
    %c0_5 = arith.constant 0 : index
    %5 = vector.load %arg3[%c0_4, %c0_5] : memref<512x256xbf16, #tpu.memory_space<vmem>>, vector<512x256xbf16>
    %cst = arith.constant dense<0.000000e+00> : vector<2x256xf32>
    %6 = tpu.matmul %4, %5, %cst {dimension_numbers = #tpu.dot_dimension_numbers<[1], [0], [0], [1], [0, 0, 1, 1], [], []>} : vector<2x512xbf16>, vector<512x256xbf16>, vector<2x256xf32> -> vector<2x256xf32>
    %7 = arith.addf %3, %6 : vector<2x256xf32>
    %c0_6 = arith.constant 0 : index
    %c0_7 = arith.constant 0 : index
    %8 = vector.load %arg7[%c0_6, %c0_7] : memref<2x256xf32, #tpu.memory_space<vmem>>, vector<2x256xf32>
    tpu.vector_store %arg7[%c0_6, %c0_7], %7 {strides = array<i32>} : memref<2x256xf32, #tpu.memory_space<vmem>>, vector<2x256xf32>,
    %c4_i32 = arith.constant 4 : i32
    %9 = arith.cmpi eq, %arg1, %c4_i32 : i32
    %10 = arith.extui %9 : i1 to i32
    %c0_i32_8 = arith.constant 0 : i32
    %11 = arith.cmpi ne, %10, %c0_i32_8 : i32
    scf.if %11 {
      %c0_9 = arith.constant 0 : index
      %c0_10 = arith.constant 0 : index
      %12 = vector.load %arg7[%c0_9, %c0_10] : memref<2x256xf32, #tpu.memory_space<vmem>>, vector<2x256xf32>
      %cst_11 = arith.constant dense<0.000000e+00> : vector<256xf32>
      %13 = vector.multi_reduction <add>, %12, %cst_11 [0] : vector<2x256xf32> to vector<256xf32>
      %14 = vector.shape_cast %13 : vector<256xf32> to vector<1x256xf32>
      %cst_12 = arith.constant 2.000000e+00 : f32
      %15 = vector.broadcast %cst_12 : f32 to vector<1x256xf32>
      %16 = arith.divf %14, %15 : vector<1x256xf32>
      %17 = vector.broadcast %16 : vector<1x256xf32> to vector<2x256xf32>
      %18 = arith.subf %12, %17 : vector<2x256xf32>
      %19 = arith.mulf %18, %18 : vector<2x256xf32>
      %cst_13 = arith.constant dense<0.000000e+00> : vector<256xf32>
      %20 = vector.multi_reduction <add>, %19, %cst_13 [0] : vector<2x256xf32> to vector<256xf32>
      %21 = vector.shape_cast %20 : vector<256xf32> to vector<1x256xf32>
      %cst_14 = arith.constant 2.000000e+00 : f32
      %22 = vector.broadcast %cst_14 : f32 to vector<1x256xf32>
      %23 = arith.divf %21, %22 : vector<1x256xf32>
      %c0_15 = arith.constant 0 : index
      %c0_16 = arith.constant 0 : index
      %24 = vector.load %arg4[%c0_15, %c0_16] : memref<1x256xf32, #tpu.memory_space<vmem>>, vector<1x256xf32>
      %cst_17 = arith.constant 9.99999974E-6 : f32
      %25 = vector.broadcast %cst_17 : f32 to vector<1x256xf32>
      %26 = arith.addf %23, %25 : vector<1x256xf32>
      %27 = math.rsqrt %26 : vector<1x256xf32>
      %28 = arith.mulf %24, %27 : vector<1x256xf32>
      %c0_18 = arith.constant 0 : index
      %c0_19 = arith.constant 0 : index
      %29 = vector.load %arg5[%c0_18, %c0_19] : memref<1x256xf32, #tpu.memory_space<vmem>>, vector<1x256xf32>
      %30 = arith.mulf %16, %28 : vector<1x256xf32>
      %31 = arith.subf %29, %30 : vector<1x256xf32>
      %32 = vector.broadcast %28 : vector<1x256xf32> to vector<2x256xf32>
      %33 = arith.mulf %12, %32 : vector<2x256xf32>
      %34 = vector.broadcast %31 : vector<1x256xf32> to vector<2x256xf32>
      %35 = arith.addf %33, %34 : vector<2x256xf32>
      %cst_20 = arith.constant 0.000000e+00 : f32
      %36 = vector.broadcast %cst_20 : f32 to vector<2x256xf32>
      %37 = arith.cmpf oge, %35, %36 : vector<2x256xf32>
      %cst_21 = arith.constant 1.000000e-01 : f32
      %38 = vector.broadcast %cst_21 : f32 to vector<2x256xf32>
      %39 = arith.mulf %38, %35 : vector<2x256xf32>
      %40 = arith.select %37, %35, %39 : vector<2x256xi1>, vector<2x256xf32>
      %c0_22 = arith.constant 0 : index
      %c0_23 = arith.constant 0 : index
      %41 = vector.load %arg6[%c0_22, %c0_23] : memref<2x256xf32, #tpu.memory_space<vmem>>, vector<2x256xf32>
      tpu.vector_store %arg6[%c0_22, %c0_23], %40 {strides = array<i32>} : memref<2x256xf32, #tpu.memory_space<vmem>>, vector<2x256xf32>,
    } else {
    }
    return
  }
  func.func @transform_0(%arg0: i32, %arg1: i32) -> (i32, i32) {
    %c0_i32 = arith.constant 0 : i32
    %c0_i32_0 = arith.constant 0 : i32
    return %c0_i32, %arg1 : i32, i32
  }
  func.func @transform_1(%arg0: i32, %arg1: i32) -> (i32, i32) {
    %c0_i32 = arith.constant 0 : i32
    return %arg1, %arg0 : i32, i32
  }
  func.func @transform_2(%arg0: i32, %arg1: i32) -> (i32, i32) {
    %c0_i32 = arith.constant 0 : i32
    %c0_i32_0 = arith.constant 0 : i32
    return %c0_i32, %arg0 : i32, i32
  }
  func.func @transform_3(%arg0: i32, %arg1: i32) -> (i32, i32) {
    %c0_i32 = arith.constant 0 : i32
    %c0_i32_0 = arith.constant 0 : i32
    return %c0_i32, %arg0 : i32, i32
  }
  func.func @transform_4(%arg0: i32, %arg1: i32) -> (i32, i32) {
    %c0_i32 = arith.constant 0 : i32
    %c0_i32_0 = arith.constant 0 : i32
    return %c0_i32, %arg0 : i32, i32
  }
}

module attributes {stable_mosaic.version = 11 : i64} {
  func.func @_conv_bn_lrelu_kernel(%arg0: i32, %arg1: i32, %arg2: memref<2x512xbf16, #tpu.memory_space<vmem>>, %arg3: memref<512x256xbf16, #tpu.memory_space<vmem>>, %arg4: memref<1x256xf32, #tpu.memory_space<vmem>>, %arg5: memref<1x256xf32, #tpu.memory_space<vmem>>, %arg6: memref<2x256xf32, #tpu.memory_space<vmem>>, %arg7: memref<2x256xf32, #tpu.memory_space<vmem>>) attributes {dimension_semantics = [#tpu.dimension_semantics<parallel>, #tpu.dimension_semantics<arbitrary>], iteration_bounds = array<i64: 1, 1>, scalar_prefetch = 0 : i64, scratch_operands = 1 : i64, tpu.core_type = #tpu.core_type<tc>, window_params = [{transform_indices = @transform_0, window_bounds = array<i64: 2, 512>}, {transform_indices = @transform_1, window_bounds = array<i64: 512, 256>}, {transform_indices = @transform_2, window_bounds = array<i64: 1, 256>}, {transform_indices = @transform_3, window_bounds = array<i64: 1, 256>}, {transform_indices = @transform_4, window_bounds = array<i64: 2, 256>}]} {
    %c0_i32 = arith.constant 0 : i32
    %0 = arith.cmpi eq, %arg1, %c0_i32 : i32
    %1 = arith.extui %0 : i1 to i32
    %c0_i32_0 = arith.constant 0 : i32
    %2 = arith.cmpi ne, %1, %c0_i32_0 : i32
    scf.if %2 {
      %cst_10 = arith.constant 0.000000e+00 : f32
      %12 = vector.broadcast %cst_10 : f32 to vector<2x256xf32>
      %c0_11 = arith.constant 0 : index
      %c0_12 = arith.constant 0 : index
      %13 = vector.load %arg7[%c0_11, %c0_12] : memref<2x256xf32, #tpu.memory_space<vmem>>, vector<2x256xf32>
      tpu.vector_store %arg7[%c0_11, %c0_12], %12 {strides = array<i32>} : memref<2x256xf32, #tpu.memory_space<vmem>>, vector<2x256xf32>,
    } else {
    }
    %c0 = arith.constant 0 : index
    %c0_1 = arith.constant 0 : index
    %3 = vector.load %arg7[%c0, %c0_1] : memref<2x256xf32, #tpu.memory_space<vmem>>, vector<2x256xf32>
    %c0_2 = arith.constant 0 : index
    %c0_3 = arith.constant 0 : index
    %4 = vector.load %arg2[%c0_2, %c0_3] : memref<2x512xbf16, #tpu.memory_space<vmem>>, vector<2x512xbf16>
    %c0_4 = arith.constant 0 : index
    %c0_5 = arith.constant 0 : index
    %5 = vector.load %arg3[%c0_4, %c0_5] : memref<512x256xbf16, #tpu.memory_space<vmem>>, vector<512x256xbf16>
    %cst = arith.constant dense<0.000000e+00> : vector<2x256xf32>
    %6 = tpu.matmul %4, %5, %cst {dimension_numbers = #tpu.dot_dimension_numbers<[1], [0], [0], [1], [0, 0, 1, 1], [], []>} : vector<2x512xbf16>, vector<512x256xbf16>, vector<2x256xf32> -> vector<2x256xf32>
    %7 = arith.addf %3, %6 : vector<2x256xf32>
    %c0_6 = arith.constant 0 : index
    %c0_7 = arith.constant 0 : index
    %8 = vector.load %arg7[%c0_6, %c0_7] : memref<2x256xf32, #tpu.memory_space<vmem>>, vector<2x256xf32>
    tpu.vector_store %arg7[%c0_6, %c0_7], %7 {strides = array<i32>} : memref<2x256xf32, #tpu.memory_space<vmem>>, vector<2x256xf32>,
    %c0_i32_8 = arith.constant 0 : i32
    %9 = arith.cmpi eq, %arg1, %c0_i32_8 : i32
    %10 = arith.extui %9 : i1 to i32
    %c0_i32_9 = arith.constant 0 : i32
    %11 = arith.cmpi ne, %10, %c0_i32_9 : i32
    scf.if %11 {
      %c0_10 = arith.constant 0 : index
      %c0_11 = arith.constant 0 : index
      %12 = vector.load %arg7[%c0_10, %c0_11] : memref<2x256xf32, #tpu.memory_space<vmem>>, vector<2x256xf32>
      %cst_12 = arith.constant dense<0.000000e+00> : vector<256xf32>
      %13 = vector.multi_reduction <add>, %12, %cst_12 [0] : vector<2x256xf32> to vector<256xf32>
      %14 = vector.shape_cast %13 : vector<256xf32> to vector<1x256xf32>
      %cst_13 = arith.constant 2.000000e+00 : f32
      %15 = vector.broadcast %cst_13 : f32 to vector<1x256xf32>
      %16 = arith.divf %14, %15 : vector<1x256xf32>
      %17 = vector.broadcast %16 : vector<1x256xf32> to vector<2x256xf32>
      %18 = arith.subf %12, %17 : vector<2x256xf32>
      %19 = arith.mulf %18, %18 : vector<2x256xf32>
      %cst_14 = arith.constant dense<0.000000e+00> : vector<256xf32>
      %20 = vector.multi_reduction <add>, %19, %cst_14 [0] : vector<2x256xf32> to vector<256xf32>
      %21 = vector.shape_cast %20 : vector<256xf32> to vector<1x256xf32>
      %cst_15 = arith.constant 2.000000e+00 : f32
      %22 = vector.broadcast %cst_15 : f32 to vector<1x256xf32>
      %23 = arith.divf %21, %22 : vector<1x256xf32>
      %c0_16 = arith.constant 0 : index
      %c0_17 = arith.constant 0 : index
      %24 = vector.load %arg4[%c0_16, %c0_17] : memref<1x256xf32, #tpu.memory_space<vmem>>, vector<1x256xf32>
      %cst_18 = arith.constant 9.99999974E-6 : f32
      %25 = vector.broadcast %cst_18 : f32 to vector<1x256xf32>
      %26 = arith.addf %23, %25 : vector<1x256xf32>
      %27 = math.rsqrt %26 : vector<1x256xf32>
      %28 = arith.mulf %24, %27 : vector<1x256xf32>
      %c0_19 = arith.constant 0 : index
      %c0_20 = arith.constant 0 : index
      %29 = vector.load %arg5[%c0_19, %c0_20] : memref<1x256xf32, #tpu.memory_space<vmem>>, vector<1x256xf32>
      %30 = arith.mulf %16, %28 : vector<1x256xf32>
      %31 = arith.subf %29, %30 : vector<1x256xf32>
      %32 = vector.broadcast %28 : vector<1x256xf32> to vector<2x256xf32>
      %33 = arith.mulf %12, %32 : vector<2x256xf32>
      %34 = vector.broadcast %31 : vector<1x256xf32> to vector<2x256xf32>
      %35 = arith.addf %33, %34 : vector<2x256xf32>
      %cst_21 = arith.constant 0.000000e+00 : f32
      %36 = vector.broadcast %cst_21 : f32 to vector<2x256xf32>
      %37 = arith.cmpf oge, %35, %36 : vector<2x256xf32>
      %cst_22 = arith.constant 1.000000e-01 : f32
      %38 = vector.broadcast %cst_22 : f32 to vector<2x256xf32>
      %39 = arith.mulf %38, %35 : vector<2x256xf32>
      %40 = arith.select %37, %35, %39 : vector<2x256xi1>, vector<2x256xf32>
      %c0_23 = arith.constant 0 : index
      %c0_24 = arith.constant 0 : index
      %41 = vector.load %arg6[%c0_23, %c0_24] : memref<2x256xf32, #tpu.memory_space<vmem>>, vector<2x256xf32>
      tpu.vector_store %arg6[%c0_23, %c0_24], %40 {strides = array<i32>} : memref<2x256xf32, #tpu.memory_space<vmem>>, vector<2x256xf32>,
    } else {
    }
    return
  }
  func.func @transform_0(%arg0: i32, %arg1: i32) -> (i32, i32) {
    %c0_i32 = arith.constant 0 : i32
    %c0_i32_0 = arith.constant 0 : i32
    return %c0_i32, %arg1 : i32, i32
  }
  func.func @transform_1(%arg0: i32, %arg1: i32) -> (i32, i32) {
    %c0_i32 = arith.constant 0 : i32
    return %arg1, %arg0 : i32, i32
  }
  func.func @transform_2(%arg0: i32, %arg1: i32) -> (i32, i32) {
    %c0_i32 = arith.constant 0 : i32
    %c0_i32_0 = arith.constant 0 : i32
    return %c0_i32, %arg0 : i32, i32
  }
  func.func @transform_3(%arg0: i32, %arg1: i32) -> (i32, i32) {
    %c0_i32 = arith.constant 0 : i32
    %c0_i32_0 = arith.constant 0 : i32
    return %c0_i32, %arg0 : i32, i32
  }
  func.func @transform_4(%arg0: i32, %arg1: i32) -> (i32, i32) {
    %c0_i32 = arith.constant 0 : i32
    %c0_i32_0 = arith.constant 0 : i32
    return %c0_i32, %arg0 : i32, i32
  }
}

module attributes {stable_mosaic.version = 11 : i64} {
  func.func @_conv_bn_lrelu_res_kernel(%arg0: i32, %arg1: i32, %arg2: memref<2x512xbf16, #tpu.memory_space<vmem>>, %arg3: memref<512x256xbf16, #tpu.memory_space<vmem>>, %arg4: memref<1x256xf32, #tpu.memory_space<vmem>>, %arg5: memref<1x256xf32, #tpu.memory_space<vmem>>, %arg6: memref<2x256xf32, #tpu.memory_space<vmem>>, %arg7: memref<2x256xf32, #tpu.memory_space<vmem>>, %arg8: memref<2x256xf32, #tpu.memory_space<vmem>>) attributes {dimension_semantics = [#tpu.dimension_semantics<parallel>, #tpu.dimension_semantics<arbitrary>], iteration_bounds = array<i64: 2, 5>, scalar_prefetch = 0 : i64, scratch_operands = 1 : i64, tpu.core_type = #tpu.core_type<tc>, window_params = [{transform_indices = @transform_0, window_bounds = array<i64: 2, 512>}, {transform_indices = @transform_1, window_bounds = array<i64: 512, 256>}, {transform_indices = @transform_2, window_bounds = array<i64: 1, 256>}, {transform_indices = @transform_3, window_bounds = array<i64: 1, 256>}, {transform_indices = @transform_4, window_bounds = array<i64: 2, 256>}, {transform_indices = @transform_5, window_bounds = array<i64: 2, 256>}]} {
    %c0_i32 = arith.constant 0 : i32
    %0 = arith.cmpi eq, %arg1, %c0_i32 : i32
    %1 = arith.extui %0 : i1 to i32
    %c0_i32_0 = arith.constant 0 : i32
    %2 = arith.cmpi ne, %1, %c0_i32_0 : i32
    scf.if %2 {
      %cst_9 = arith.constant 0.000000e+00 : f32
      %12 = vector.broadcast %cst_9 : f32 to vector<2x256xf32>
      %c0_10 = arith.constant 0 : index
      %c0_11 = arith.constant 0 : index
      %13 = vector.load %arg8[%c0_10, %c0_11] : memref<2x256xf32, #tpu.memory_space<vmem>>, vector<2x256xf32>
      tpu.vector_store %arg8[%c0_10, %c0_11], %12 {strides = array<i32>} : memref<2x256xf32, #tpu.memory_space<vmem>>, vector<2x256xf32>,
    } else {
    }
    %c0 = arith.constant 0 : index
    %c0_1 = arith.constant 0 : index
    %3 = vector.load %arg8[%c0, %c0_1] : memref<2x256xf32, #tpu.memory_space<vmem>>, vector<2x256xf32>
    %c0_2 = arith.constant 0 : index
    %c0_3 = arith.constant 0 : index
    %4 = vector.load %arg2[%c0_2, %c0_3] : memref<2x512xbf16, #tpu.memory_space<vmem>>, vector<2x512xbf16>
    %c0_4 = arith.constant 0 : index
    %c0_5 = arith.constant 0 : index
    %5 = vector.load %arg3[%c0_4, %c0_5] : memref<512x256xbf16, #tpu.memory_space<vmem>>, vector<512x256xbf16>
    %cst = arith.constant dense<0.000000e+00> : vector<2x256xf32>
    %6 = tpu.matmul %4, %5, %cst {dimension_numbers = #tpu.dot_dimension_numbers<[1], [0], [0], [1], [0, 0, 1, 1], [], []>} : vector<2x512xbf16>, vector<512x256xbf16>, vector<2x256xf32> -> vector<2x256xf32>
    %7 = arith.addf %3, %6 : vector<2x256xf32>
    %c0_6 = arith.constant 0 : index
    %c0_7 = arith.constant 0 : index
    %8 = vector.load %arg8[%c0_6, %c0_7] : memref<2x256xf32, #tpu.memory_space<vmem>>, vector<2x256xf32>
    tpu.vector_store %arg8[%c0_6, %c0_7], %7 {strides = array<i32>} : memref<2x256xf32, #tpu.memory_space<vmem>>, vector<2x256xf32>,
    %c4_i32 = arith.constant 4 : i32
    %9 = arith.cmpi eq, %arg1, %c4_i32 : i32
    %10 = arith.extui %9 : i1 to i32
    %c0_i32_8 = arith.constant 0 : i32
    %11 = arith.cmpi ne, %10, %c0_i32_8 : i32
    scf.if %11 {
      %c0_9 = arith.constant 0 : index
      %c0_10 = arith.constant 0 : index
      %12 = vector.load %arg8[%c0_9, %c0_10] : memref<2x256xf32, #tpu.memory_space<vmem>>, vector<2x256xf32>
      %cst_11 = arith.constant dense<0.000000e+00> : vector<256xf32>
      %13 = vector.multi_reduction <add>, %12, %cst_11 [0] : vector<2x256xf32> to vector<256xf32>
      %14 = vector.shape_cast %13 : vector<256xf32> to vector<1x256xf32>
      %cst_12 = arith.constant 2.000000e+00 : f32
      %15 = vector.broadcast %cst_12 : f32 to vector<1x256xf32>
      %16 = arith.divf %14, %15 : vector<1x256xf32>
      %17 = vector.broadcast %16 : vector<1x256xf32> to vector<2x256xf32>
      %18 = arith.subf %12, %17 : vector<2x256xf32>
      %19 = arith.mulf %18, %18 : vector<2x256xf32>
      %cst_13 = arith.constant dense<0.000000e+00> : vector<256xf32>
      %20 = vector.multi_reduction <add>, %19, %cst_13 [0] : vector<2x256xf32> to vector<256xf32>
      %21 = vector.shape_cast %20 : vector<256xf32> to vector<1x256xf32>
      %cst_14 = arith.constant 2.000000e+00 : f32
      %22 = vector.broadcast %cst_14 : f32 to vector<1x256xf32>
      %23 = arith.divf %21, %22 : vector<1x256xf32>
      %c0_15 = arith.constant 0 : index
      %c0_16 = arith.constant 0 : index
      %24 = vector.load %arg4[%c0_15, %c0_16] : memref<1x256xf32, #tpu.memory_space<vmem>>, vector<1x256xf32>
      %cst_17 = arith.constant 9.99999974E-6 : f32
      %25 = vector.broadcast %cst_17 : f32 to vector<1x256xf32>
      %26 = arith.addf %23, %25 : vector<1x256xf32>
      %27 = math.rsqrt %26 : vector<1x256xf32>
      %28 = arith.mulf %24, %27 : vector<1x256xf32>
      %c0_18 = arith.constant 0 : index
      %c0_19 = arith.constant 0 : index
      %29 = vector.load %arg5[%c0_18, %c0_19] : memref<1x256xf32, #tpu.memory_space<vmem>>, vector<1x256xf32>
      %30 = arith.mulf %16, %28 : vector<1x256xf32>
      %31 = arith.subf %29, %30 : vector<1x256xf32>
      %32 = vector.broadcast %28 : vector<1x256xf32> to vector<2x256xf32>
      %33 = arith.mulf %12, %32 : vector<2x256xf32>
      %34 = vector.broadcast %31 : vector<1x256xf32> to vector<2x256xf32>
      %35 = arith.addf %33, %34 : vector<2x256xf32>
      %c0_20 = arith.constant 0 : index
      %c0_21 = arith.constant 0 : index
      %36 = vector.load %arg6[%c0_20, %c0_21] : memref<2x256xf32, #tpu.memory_space<vmem>>, vector<2x256xf32>
      %cst_22 = arith.constant 0.000000e+00 : f32
      %37 = vector.broadcast %cst_22 : f32 to vector<2x256xf32>
      %38 = arith.cmpf oge, %35, %37 : vector<2x256xf32>
      %cst_23 = arith.constant 1.000000e-01 : f32
      %39 = vector.broadcast %cst_23 : f32 to vector<2x256xf32>
      %40 = arith.mulf %39, %35 : vector<2x256xf32>
      %41 = arith.select %38, %35, %40 : vector<2x256xi1>, vector<2x256xf32>
      %42 = arith.addf %36, %41 : vector<2x256xf32>
      %c0_24 = arith.constant 0 : index
      %c0_25 = arith.constant 0 : index
      %43 = vector.load %arg7[%c0_24, %c0_25] : memref<2x256xf32, #tpu.memory_space<vmem>>, vector<2x256xf32>
      tpu.vector_store %arg7[%c0_24, %c0_25], %42 {strides = array<i32>} : memref<2x256xf32, #tpu.memory_space<vmem>>, vector<2x256xf32>,
    } else {
    }
    return
  }
  func.func @transform_0(%arg0: i32, %arg1: i32) -> (i32, i32) {
    %c0_i32 = arith.constant 0 : i32
    %c0_i32_0 = arith.constant 0 : i32
    return %c0_i32, %arg1 : i32, i32
  }
  func.func @transform_1(%arg0: i32, %arg1: i32) -> (i32, i32) {
    %c0_i32 = arith.constant 0 : i32
    return %arg1, %arg0 : i32, i32
  }
  func.func @transform_2(%arg0: i32, %arg1: i32) -> (i32, i32) {
    %c0_i32 = arith.constant 0 : i32
    %c0_i32_0 = arith.constant 0 : i32
    return %c0_i32, %arg0 : i32, i32
  }
  func.func @transform_3(%arg0: i32, %arg1: i32) -> (i32, i32) {
    %c0_i32 = arith.constant 0 : i32
    %c0_i32_0 = arith.constant 0 : i32
    return %c0_i32, %arg0 : i32, i32
  }
  func.func @transform_4(%arg0: i32, %arg1: i32) -> (i32, i32) {
    %c0_i32 = arith.constant 0 : i32
    %c0_i32_0 = arith.constant 0 : i32
    return %c0_i32, %arg0 : i32, i32
  }
  func.func @transform_5(%arg0: i32, %arg1: i32) -> (i32, i32) {
    %c0_i32 = arith.constant 0 : i32
    %c0_i32_0 = arith.constant 0 : i32
    return %c0_i32, %arg0 : i32, i32
  }
}

module attributes {stable_mosaic.version = 11 : i64} {
  func.func @_conv_bn_lrelu_kernel(%arg0: i32, %arg1: i32, %arg2: memref<2x512xbf16, #tpu.memory_space<vmem>>, %arg3: memref<512x256xbf16, #tpu.memory_space<vmem>>, %arg4: memref<1x256xf32, #tpu.memory_space<vmem>>, %arg5: memref<1x256xf32, #tpu.memory_space<vmem>>, %arg6: memref<2x256xf32, #tpu.memory_space<vmem>>, %arg7: memref<2x256xf32, #tpu.memory_space<vmem>>) attributes {dimension_semantics = [#tpu.dimension_semantics<parallel>, #tpu.dimension_semantics<arbitrary>], iteration_bounds = array<i64: 2, 9>, scalar_prefetch = 0 : i64, scratch_operands = 1 : i64, tpu.core_type = #tpu.core_type<tc>, window_params = [{transform_indices = @transform_0, window_bounds = array<i64: 2, 512>}, {transform_indices = @transform_1, window_bounds = array<i64: 512, 256>}, {transform_indices = @transform_2, window_bounds = array<i64: 1, 256>}, {transform_indices = @transform_3, window_bounds = array<i64: 1, 256>}, {transform_indices = @transform_4, window_bounds = array<i64: 2, 256>}]} {
    %c0_i32 = arith.constant 0 : i32
    %0 = arith.cmpi eq, %arg1, %c0_i32 : i32
    %1 = arith.extui %0 : i1 to i32
    %c0_i32_0 = arith.constant 0 : i32
    %2 = arith.cmpi ne, %1, %c0_i32_0 : i32
    scf.if %2 {
      %cst_9 = arith.constant 0.000000e+00 : f32
      %12 = vector.broadcast %cst_9 : f32 to vector<2x256xf32>
      %c0_10 = arith.constant 0 : index
      %c0_11 = arith.constant 0 : index
      %13 = vector.load %arg7[%c0_10, %c0_11] : memref<2x256xf32, #tpu.memory_space<vmem>>, vector<2x256xf32>
      tpu.vector_store %arg7[%c0_10, %c0_11], %12 {strides = array<i32>} : memref<2x256xf32, #tpu.memory_space<vmem>>, vector<2x256xf32>,
    } else {
    }
    %c0 = arith.constant 0 : index
    %c0_1 = arith.constant 0 : index
    %3 = vector.load %arg7[%c0, %c0_1] : memref<2x256xf32, #tpu.memory_space<vmem>>, vector<2x256xf32>
    %c0_2 = arith.constant 0 : index
    %c0_3 = arith.constant 0 : index
    %4 = vector.load %arg2[%c0_2, %c0_3] : memref<2x512xbf16, #tpu.memory_space<vmem>>, vector<2x512xbf16>
    %c0_4 = arith.constant 0 : index
    %c0_5 = arith.constant 0 : index
    %5 = vector.load %arg3[%c0_4, %c0_5] : memref<512x256xbf16, #tpu.memory_space<vmem>>, vector<512x256xbf16>
    %cst = arith.constant dense<0.000000e+00> : vector<2x256xf32>
    %6 = tpu.matmul %4, %5, %cst {dimension_numbers = #tpu.dot_dimension_numbers<[1], [0], [0], [1], [0, 0, 1, 1], [], []>} : vector<2x512xbf16>, vector<512x256xbf16>, vector<2x256xf32> -> vector<2x256xf32>
    %7 = arith.addf %3, %6 : vector<2x256xf32>
    %c0_6 = arith.constant 0 : index
    %c0_7 = arith.constant 0 : index
    %8 = vector.load %arg7[%c0_6, %c0_7] : memref<2x256xf32, #tpu.memory_space<vmem>>, vector<2x256xf32>
    tpu.vector_store %arg7[%c0_6, %c0_7], %7 {strides = array<i32>} : memref<2x256xf32, #tpu.memory_space<vmem>>, vector<2x256xf32>,
    %c8_i32 = arith.constant 8 : i32
    %9 = arith.cmpi eq, %arg1, %c8_i32 : i32
    %10 = arith.extui %9 : i1 to i32
    %c0_i32_8 = arith.constant 0 : i32
    %11 = arith.cmpi ne, %10, %c0_i32_8 : i32
    scf.if %11 {
      %c0_9 = arith.constant 0 : index
      %c0_10 = arith.constant 0 : index
      %12 = vector.load %arg7[%c0_9, %c0_10] : memref<2x256xf32, #tpu.memory_space<vmem>>, vector<2x256xf32>
      %cst_11 = arith.constant dense<0.000000e+00> : vector<256xf32>
      %13 = vector.multi_reduction <add>, %12, %cst_11 [0] : vector<2x256xf32> to vector<256xf32>
      %14 = vector.shape_cast %13 : vector<256xf32> to vector<1x256xf32>
      %cst_12 = arith.constant 2.000000e+00 : f32
      %15 = vector.broadcast %cst_12 : f32 to vector<1x256xf32>
      %16 = arith.divf %14, %15 : vector<1x256xf32>
      %17 = vector.broadcast %16 : vector<1x256xf32> to vector<2x256xf32>
      %18 = arith.subf %12, %17 : vector<2x256xf32>
      %19 = arith.mulf %18, %18 : vector<2x256xf32>
      %cst_13 = arith.constant dense<0.000000e+00> : vector<256xf32>
      %20 = vector.multi_reduction <add>, %19, %cst_13 [0] : vector<2x256xf32> to vector<256xf32>
      %21 = vector.shape_cast %20 : vector<256xf32> to vector<1x256xf32>
      %cst_14 = arith.constant 2.000000e+00 : f32
      %22 = vector.broadcast %cst_14 : f32 to vector<1x256xf32>
      %23 = arith.divf %21, %22 : vector<1x256xf32>
      %c0_15 = arith.constant 0 : index
      %c0_16 = arith.constant 0 : index
      %24 = vector.load %arg4[%c0_15, %c0_16] : memref<1x256xf32, #tpu.memory_space<vmem>>, vector<1x256xf32>
      %cst_17 = arith.constant 9.99999974E-6 : f32
      %25 = vector.broadcast %cst_17 : f32 to vector<1x256xf32>
      %26 = arith.addf %23, %25 : vector<1x256xf32>
      %27 = math.rsqrt %26 : vector<1x256xf32>
      %28 = arith.mulf %24, %27 : vector<1x256xf32>
      %c0_18 = arith.constant 0 : index
      %c0_19 = arith.constant 0 : index
      %29 = vector.load %arg5[%c0_18, %c0_19] : memref<1x256xf32, #tpu.memory_space<vmem>>, vector<1x256xf32>
      %30 = arith.mulf %16, %28 : vector<1x256xf32>
      %31 = arith.subf %29, %30 : vector<1x256xf32>
      %32 = vector.broadcast %28 : vector<1x256xf32> to vector<2x256xf32>
      %33 = arith.mulf %12, %32 : vector<2x256xf32>
      %34 = vector.broadcast %31 : vector<1x256xf32> to vector<2x256xf32>
      %35 = arith.addf %33, %34 : vector<2x256xf32>
      %cst_20 = arith.constant 0.000000e+00 : f32
      %36 = vector.broadcast %cst_20 : f32 to vector<2x256xf32>
      %37 = arith.cmpf oge, %35, %36 : vector<2x256xf32>
      %cst_21 = arith.constant 1.000000e-01 : f32
      %38 = vector.broadcast %cst_21 : f32 to vector<2x256xf32>
      %39 = arith.mulf %38, %35 : vector<2x256xf32>
      %40 = arith.select %37, %35, %39 : vector<2x256xi1>, vector<2x256xf32>
      %c0_22 = arith.constant 0 : index
      %c0_23 = arith.constant 0 : index
      %41 = vector.load %arg6[%c0_22, %c0_23] : memref<2x256xf32, #tpu.memory_space<vmem>>, vector<2x256xf32>
      tpu.vector_store %arg6[%c0_22, %c0_23], %40 {strides = array<i32>} : memref<2x256xf32, #tpu.memory_space<vmem>>, vector<2x256xf32>,
    } else {
    }
    return
  }
  func.func @transform_0(%arg0: i32, %arg1: i32) -> (i32, i32) {
    %c0_i32 = arith.constant 0 : i32
    %c0_i32_0 = arith.constant 0 : i32
    return %c0_i32, %arg1 : i32, i32
  }
  func.func @transform_1(%arg0: i32, %arg1: i32) -> (i32, i32) {
    %c0_i32 = arith.constant 0 : i32
    return %arg1, %arg0 : i32, i32
  }
  func.func @transform_2(%arg0: i32, %arg1: i32) -> (i32, i32) {
    %c0_i32 = arith.constant 0 : i32
    %c0_i32_0 = arith.constant 0 : i32
    return %c0_i32, %arg0 : i32, i32
  }
  func.func @transform_3(%arg0: i32, %arg1: i32) -> (i32, i32) {
    %c0_i32 = arith.constant 0 : i32
    %c0_i32_0 = arith.constant 0 : i32
    return %c0_i32, %arg0 : i32, i32
  }
  func.func @transform_4(%arg0: i32, %arg1: i32) -> (i32, i32) {
    %c0_i32 = arith.constant 0 : i32
    %c0_i32_0 = arith.constant 0 : i32
    return %c0_i32, %arg0 : i32, i32
  }
}

</mosaic_0001>

<bundles_post_ra>
// kernel: net_forward.16
= control target key start
LH: loop header
LB: loop body
LE: loop exit
PB: predicated region body
PF: predicated region fallthrough
CT: control target
= control target key end

     0   :  { %s3528_s1 = inlined_call_operand.vmem [shape: bf16[128,128], index: 1, kind: input, shape index: {}]   ;;  %s3529_s0 = inlined_call_operand.vmem [shape: bf16[512,128], index: 0, kind: input, shape index: {}]   ;;  %s3530_s2 = inlined_call_operand.vmem [shape: f32[1,128], index: 2, kind: input, shape index: {}]   ;;  %s3531_s3 = inlined_call_operand.vmem [shape: f32[1,128], index: 3, kind: input, shape index: {}]   ;;  %s3532_s4 = inlined_call_operand.vmem [shape: f32[512,128], index: 4, kind: output, shape index: {}]  }
   0x1   :  { %v1806_v0 = vld [vmem:[%s3528_s1] sm:$0xff]   ;;  %v1807_v1 = vld [vmem:[%s3528_s1 + $0x8] sm:$0xff]   ;;  %v1808_v2 = vld [vmem:[%s3528_s1 + $0x10] sm:$0xff]  }
   0x2   :  { %1710 = vmatprep.subr.bf16.mxu0 %v1806_v0  ;;  %1790 = vmatprep.subr.bf16.mxu1 %v1806_v0  ;;  %v1809_v3 = vld [vmem:[%s3528_s1 + $0x18] sm:$0xff]   ;;  %v1814_v4 = vld [vmem:[%s3529_s0] sm:$0xff]   ;;  %v1811_v6 = vld [vmem:[%s3528_s1 + $0x28] sm:$0xff]  }
   0x3   :  { %1711 = vmatpush3.bf16.msra.mxu0 %v1806_v0  ;;  %1798 = vmatpush3.bf16.msra.mxu1 %v1806_v0  ;;  %v1810_v5 = vld [vmem:[%s3528_s1 + $0x20] sm:$0xff]   ;;  %v1812_v7 = vld [vmem:[%s3528_s1 + $0x30] sm:$0xff]   ;;  %v1813_v8 = vld [vmem:[%s3528_s1 + $0x38] sm:$0xff]  }
   0x4   :  { %1712 = vmatprep.subr.bf16.mxu0 %v1807_v1  ;;  %1791 = vmatprep.subr.bf16.mxu1 %v1807_v1  ;;  %v1830_v9 = vld [vmem:[%s3529_s0 + $0x80] sm:$0xff]   ;;  %v1815_v10 = vld [vmem:[%s3529_s0 + $0x8] sm:$0xff]   ;;  %v1816_v11 = vld [vmem:[%s3529_s0 + $0x10] sm:$0xff]  }
   0x5   :  { %1726 = vmatprep.mubr.bf16.mxu0 %v1814_v4  ;;  %1758 = vmatprep.mubr.bf16.mxu1 %v1830_v9  ;;  %v1831_v12 = vld [vmem:[%s3529_s0 + $0x88] sm:$0xff]   ;;  %v1832_v13 = vld [vmem:[%s3529_s0 + $0x90] sm:$0xff]   ;;  %v1817_v14 = vld [vmem:[%s3529_s0 + $0x18] sm:$0xff]  }
   0x6   :  { %v1818_v15 = vld [vmem:[%s3529_s0 + $0x20] sm:$0xff]   ;;  %v1833_v16 = vld [vmem:[%s3529_s0 + $0x98] sm:$0xff]   ;;  %v1819_v18 = vld [vmem:[%s3529_s0 + $0x28] sm:$0xff]  }
   0x7   :  { %1713 = vmatpush3.bf16.msra.mxu0 %v1807_v1  ;;  %1799 = vmatpush3.bf16.msra.mxu1 %v1807_v1  ;;  %v1834_v17 = vld [vmem:[%s3529_s0 + $0xa0] sm:$0xff]   ;;  %v1835_v19 = vld [vmem:[%s3529_s0 + $0xa8] sm:$0xff]   ;;  %v1820_v20 = vld [vmem:[%s3529_s0 + $0x30] sm:$0xff]  }
   0x8   :  { %1714 = vmatprep.subr.bf16.mxu0 %v1808_v2  ;;  %1792 = vmatprep.subr.bf16.mxu1 %v1808_v2  ;;  %v1836_v21 = vld [vmem:[%s3529_s0 + $0xb0] sm:$0xff]   ;;  %v1821_v22 = vld [vmem:[%s3529_s0 + $0x38] sm:$0xff]   ;;  %v1822_v24 = vld [vmem:[%s3529_s0 + $0x40] sm:$0xff]  }
   0x9   :  { %v1837_v23 = vld [vmem:[%s3529_s0 + $0xb8] sm:$0xff]   ;;  %v1838_v25 = vld [vmem:[%s3529_s0 + $0xc0] sm:$0xff]   ;;  %v1823_v26 = vld [vmem:[%s3529_s0 + $0x48] sm:$0xff]  }
   0xa   :  { %v1839_v27 = vld [vmem:[%s3529_s0 + $0xc8] sm:$0xff]   ;;  %v1824_v28 = vld [vmem:[%s3529_s0 + $0x50] sm:$0xff]   ;;  %v1825_v30 = vld [vmem:[%s3529_s0 + $0x58] sm:$0xff]  }
   0xb   :  { %1715 = vmatpush3.bf16.msra.mxu0 %v1808_v2  ;;  %1800 = vmatpush3.bf16.msra.mxu1 %v1808_v2  ;;  %v1840_v29 = vld [vmem:[%s3529_s0 + $0xd0] sm:$0xff]   ;;  %v1841_v31 = vld [vmem:[%s3529_s0 + $0xd8] sm:$0xff]   ;;  %v1826_v32 = vld [vmem:[%s3529_s0 + $0x60] sm:$0xff]  }
   0xc   :  { %1716 = vmatprep.subr.bf16.mxu0 %v1809_v3  ;;  %1793 = vmatprep.subr.bf16.mxu1 %v1809_v3  ;;  %v1842_v33 = vld [vmem:[%s3529_s0 + $0xe0] sm:$0xff]   ;;  %v1827_v34 = vld [vmem:[%s3529_s0 + $0x68] sm:$0xff]   ;;  %v1828_v36 = vld [vmem:[%s3529_s0 + $0x70] sm:$0xff]  }
   0xd   :  { %v1843_v35 = vld [vmem:[%s3529_s0 + $0xe8] sm:$0xff]   ;;  %v1844_v37 = vld [vmem:[%s3529_s0 + $0xf0] sm:$0xff]   ;;  %v1829_v38 = vld [vmem:[%s3529_s0 + $0x78] sm:$0xff]  }
   0xe   :  { %v1845_v39 = vld [vmem:[%s3529_s0 + $0xf8] sm:$0xff]  }
   0xf   :  { %1717 = vmatpush3.bf16.msra.mxu0 %v1809_v3  ;;  %1801 = vmatpush3.bf16.msra.mxu1 %v1809_v3 }
  0x10   :  { %1718 = vmatprep.subr.bf16.mxu0 %v1810_v5  ;;  %1794 = vmatprep.subr.bf16.mxu1 %v1810_v5 }
  0x13   :  { %1719 = vmatpush3.bf16.msra.mxu0 %v1810_v5  ;;  %1802 = vmatpush3.bf16.msra.mxu1 %v1810_v5 }
  0x14   :  { %1720 = vmatprep.subr.bf16.mxu0 %v1811_v6  ;;  %1795 = vmatprep.subr.bf16.mxu1 %v1811_v6 }
  0x17   :  { %1721 = vmatpush3.bf16.msra.mxu0 %v1811_v6  ;;  %1803 = vmatpush3.bf16.msra.mxu1 %v1811_v6 }
  0x18   :  { %1722 = vmatprep.subr.bf16.mxu0 %v1812_v7  ;;  %1796 = vmatprep.subr.bf16.mxu1 %v1812_v7 }
  0x1b   :  { %1723 = vmatpush3.bf16.msra.mxu0 %v1812_v7  ;;  %1804 = vmatpush3.bf16.msra.mxu1 %v1812_v7 }
  0x1c   :  { %1724 = vmatprep.subr.bf16.mxu0 %v1813_v8  ;;  %1797 = vmatprep.subr.bf16.mxu1 %v1813_v8 }
  0x1f   :  { %1725 = vmatpush3.bf16.msra.mxu0 %v1813_v8  ;;  %1805 = vmatpush3.bf16.msra.mxu1 %v1813_v8 }
  0x22   :  { %1727 = vmatmul.mubr.bf16.vlgmr.msra.gmra.mrb[0].mxu0 %v1815_v10  ;;  %1759 = vmatmul.mubr.bf16.vlgmr.msra.gmra.mrb[0].mxu1 %v1831_v12 }
  0x23   :  { %1730 = vmatprep.mubr.bf16.mxu0 %v1816_v11  ;;  %1762 = vmatprep.mubr.bf16.mxu1 %v1832_v13 }
  0x2a   :  { %1731 = vmatmul.mubr.bf16.gmra.mrb[4].mxu0 %v1817_v14  ;;  %1763 = vmatmul.mubr.bf16.gmra.mrb[4].mxu1 %v1833_v16 }
  0x2b   :  { %1734 = vmatprep.mubr.bf16.mxu0 %v1818_v15  ;;  %1766 = vmatprep.mubr.bf16.mxu1 %v1834_v17 }
  0x32   :  { %1735 = vmatmul.mubr.bf16.gmra.mrb[8].mxu0 %v1819_v18  ;;  %1767 = vmatmul.mubr.bf16.gmra.mrb[8].mxu1 %v1835_v19 }
  0x33   :  { %1738 = vmatprep.mubr.bf16.mxu0 %v1820_v20  ;;  %1770 = vmatprep.mubr.bf16.mxu1 %v1836_v21 }
  0x3a   :  { %1739 = vmatmul.mubr.bf16.gmra.mrb[12].mxu0 %v1821_v22  ;;  %1771 = vmatmul.mubr.bf16.gmra.mrb[12].mxu1 %v1837_v23 }
  0x3b   :  { %1742 = vmatprep.mubr.bf16.mxu0 %v1822_v24  ;;  %1774 = vmatprep.mubr.bf16.mxu1 %v1838_v25 }
  0x42   :  { %1743 = vmatmul.mubr.bf16.gmra.mrb[16].mxu0 %v1823_v26  ;;  %1775 = vmatmul.mubr.bf16.gmra.mrb[16].mxu1 %v1839_v27 }
  0x43   :  { %1746 = vmatprep.mubr.bf16.mxu0 %v1824_v28  ;;  %1778 = vmatprep.mubr.bf16.mxu1 %v1840_v29 }
  0x4a   :  { %1747 = vmatmul.mubr.bf16.gmra.mrb[20].mxu0 %v1825_v30  ;;  %1779 = vmatmul.mubr.bf16.gmra.mrb[20].mxu1 %v1841_v31 }
  0x4b   :  { %1750 = vmatprep.mubr.bf16.mxu0 %v1826_v32  ;;  %1782 = vmatprep.mubr.bf16.mxu1 %v1842_v33 }
  0x52   :  { %1751 = vmatmul.mubr.bf16.gmra.mrb[24].mxu0 %v1827_v34  ;;  %1783 = vmatmul.mubr.bf16.gmra.mrb[24].mxu1 %v1843_v35 }
  0x53   :  { %1754 = vmatprep.mubr.bf16.mxu0 %v1828_v36  ;;  %1786 = vmatprep.mubr.bf16.mxu1 %v1844_v37 }
  0x5a   :  { %1755 = vmatmul.mubr.bf16.gmra.mrb[28].mxu0 %v1829_v38  ;;  %1787 = vmatmul.mubr.bf16.gmra.mrb[28].mxu1 %v1845_v39 }
  0xf5   :  { %v1993_v40 = vpop.f32.mrb[0].mxu0  ;;  %v1995_v41 = vpop.f32.mrb[0].mxu1 }
  0xf6   :  { %3606 = vst [vmem:[#allocation3_spill] sm:$0xff] %v1993_v40  ;;  %v1997_v42 = vpop.f32.mrb[1].mxu0  ;;  %v1999_v43 = vpop.f32.mrb[1].mxu1 }
  0xf7   :  { %v2001_v44 = vpop.f32.mrb[2].mxu0  ;;  %v2003_v45 = vpop.f32.mrb[2].mxu1 }
  0xf8   :  { %3607 = vst [vmem:[#allocation4_spill] sm:$0xff] %v2001_v44  ;;  %v2005_v46 = vpop.f32.mrb[3].mxu0  ;;  %v2007_v47 = vpop.f32.mrb[3].mxu1 }
  0xf9   :  { %v954_v48 = vadd.f32 %v2005_v46, %v1997_v42 }
  0xfb   :  { %v955_v49 = vadd.f32 %v1993_v40, %v954_v48 }
  0xfd   :  { %v2012_v50 = vpop.f32.mrb[4].mxu0  ;;  %v956_v51 = vadd.f32 %v2001_v44, %v955_v49  ;;  %v2015_v52 = vpop.f32.mrb[4].mxu1 }
  0xfe   :  { %v2017_v53 = vpop.f32.mrb[5].mxu0  ;;  %v2019_v54 = vpop.f32.mrb[5].mxu1 }
  0xff   :  { %3608 = vst [vmem:[#allocation5_spill] sm:$0xff] %v2017_v53  ;;  %v957_v55 = vadd.f32 %v956_v51, %v2017_v53  ;;  %v2022_v56 = vpop.f32.mrb[6].mxu0  ;;  %v2024_v57 = vpop.f32.mrb[6].mxu1 }
 0x100   :  { %v2026_v58 = vpop.f32.mrb[7].mxu0  ;;  %v2028_v59 = vpop.f32.mrb[7].mxu1 }
 0x101   :  { %v958_v60 = vadd.f32 %v957_v55, %v2026_v58 }
 0x103   :  { %v959_v61 = vadd.f32 %v2012_v50, %v958_v60 }
 0x105   :  { %v2032_v62 = vpop.f32.mrb[8].mxu0  ;;  %v960_v63 = vadd.f32 %v2022_v56, %v959_v61  ;;  %v2035_v0 = vpop.f32.mrb[8].mxu1 }
 0x106   :  { %v2037_v1 = vpop.f32.mrb[9].mxu0  ;;  %v2039_v2 = vpop.f32.mrb[9].mxu1 }
 0x107   :  { %v961_v3 = vadd.f32 %v960_v63, %v2037_v1  ;;  %v2042_v4 = vpop.f32.mrb[10].mxu0  ;;  %v2044_v5 = vpop.f32.mrb[10].mxu1 }
 0x108   :  { %v2046_v6 = vpop.f32.mrb[11].mxu0  ;;  %v2048_v7 = vpop.f32.mrb[11].mxu1 }
 0x109   :  { %v962_v8 = vadd.f32 %v961_v3, %v2046_v6 }
 0x10b   :  { %v963_v9 = vadd.f32 %v2032_v62, %v962_v8 }
 0x10d   :  { %v2052_v10 = vpop.f32.mrb[12].mxu0  ;;  %v964_v11 = vadd.f32 %v2042_v4, %v963_v9  ;;  %v2055_v12 = vpop.f32.mrb[12].mxu1 }
 0x10e   :  { %3609 = vst [vmem:[#allocation6_spill] sm:$0xff] %v2052_v10  ;;  %v2057_v13 = vpop.f32.mrb[13].mxu0  ;;  %v2059_v14 = vpop.f32.mrb[13].mxu1 }
 0x10f   :  { %v965_v15 = vadd.f32 %v964_v11, %v2057_v13  ;;  %v2062_v16 = vpop.f32.mrb[14].mxu0  ;;  %v2064_v17 = vpop.f32.mrb[14].mxu1 }
 0x110   :  { %3610 = vst [vmem:[#allocation7_spill] sm:$0xff] %v2062_v16  ;;  %v2066_v18 = vpop.f32.mrb[15].mxu0  ;;  %v2068_v19 = vpop.f32.mrb[15].mxu1 }
 0x111   :  { %v966_v20 = vadd.f32 %v965_v15, %v2066_v18 }
 0x113   :  { %v967_v21 = vadd.f32 %v2052_v10, %v966_v20 }
 0x115   :  { %v2072_v22 = vpop.f32.mrb[16].mxu0  ;;  %v968_v23 = vadd.f32 %v2062_v16, %v967_v21  ;;  %v2075_v24 = vpop.f32.mrb[16].mxu1 }
 0x116   :  { %3611 = vst [vmem:[#allocation8_spill] sm:$0xff] %v2072_v22  ;;  %3612 = vst [vmem:[#allocation9_spill] sm:$0xff] %v2075_v24  ;;  %v2077_v25 = vpop.f32.mrb[17].mxu0  ;;  %v2079_v26 = vpop.f32.mrb[17].mxu1 }
 0x117   :  { %3613 = vst [vmem:[#allocation10_spill] sm:$0xff] %v2077_v25  ;;  %v969_v27 = vadd.f32 %v968_v23, %v2077_v25  ;;  %v2082_v28 = vpop.f32.mrb[18].mxu0  ;;  %v2084_v29 = vpop.f32.mrb[18].mxu1 }
 0x118   :  { %3614 = vst [vmem:[#allocation11_spill] sm:$0xff] %v2082_v28  ;;  %3615 = vst [vmem:[#allocation12_spill] sm:$0xff] %v2084_v29  ;;  %v2086_v30 = vpop.f32.mrb[19].mxu0  ;;  %v2088_v31 = vpop.f32.mrb[19].mxu1 }
 0x119   :  { %3616 = vst [vmem:[#allocation13_spill] sm:$0xff] %v2086_v30  ;;  %3617 = vst [vmem:[#allocation14_spill] sm:$0xff] %v2088_v31  ;;  %v970_v32 = vadd.f32 %v969_v27, %v2086_v30 }
 0x11b   :  { %v971_v33 = vadd.f32 %v2072_v22, %v970_v32 }
 0x11d   :  { %v2092_v34 = vpop.f32.mrb[20].mxu0  ;;  %v972_v35 = vadd.f32 %v2082_v28, %v971_v33  ;;  %v2095_v36 = vpop.f32.mrb[20].mxu1 }
 0x11e   :  { %3618 = vst [vmem:[#allocation15_spill] sm:$0xff] %v2092_v34  ;;  %3619 = vst [vmem:[#allocation16_spill] sm:$0xff] %v2095_v36  ;;  %v2097_v37 = vpop.f32.mrb[21].mxu0  ;;  %v2099_v38 = vpop.f32.mrb[21].mxu1 }
 0x11f   :  { %3620 = vst [vmem:[#allocation17_spill] sm:$0xff] %v2097_v37  ;;  %3621 = vst [vmem:[#allocation18_spill] sm:$0xff] %v2099_v38  ;;  %v973_v39 = vadd.f32 %v972_v35, %v2097_v37  ;;  %v2102_v48 = vpop.f32.mrb[22].mxu0  ;;  %v2104_v49 = vpop.f32.mrb[22].mxu1 }
 0x120   :  { %3622 = vst [vmem:[#allocation19_spill] sm:$0xff] %v2102_v48  ;;  %3623 = vst [vmem:[#allocation20_spill] sm:$0xff] %v2104_v49  ;;  %v2106_v51 = vpop.f32.mrb[23].mxu0  ;;  %v2108_v55 = vpop.f32.mrb[23].mxu1 }
 0x121   :  { %3624 = vst [vmem:[#allocation21_spill] sm:$0xff] %v2106_v51  ;;  %3625 = vst [vmem:[#allocation22_spill] sm:$0xff] %v2108_v55  ;;  %v974_v60 = vadd.f32 %v973_v39, %v2106_v51 }
 0x123   :  { %v975_v61 = vadd.f32 %v2092_v34, %v974_v60 }
 0x125   :  { %v2112_v63 = vpop.f32.mrb[24].mxu0  ;;  %v976_v3 = vadd.f32 %v2102_v48, %v975_v61  ;;  %v2115_v8 = vpop.f32.mrb[24].mxu1 }
 0x126   :  { %3626 = vst [vmem:[#allocation23_spill] sm:$0xff] %v2112_v63  ;;  %3627 = vst [vmem:[#allocation24_spill] sm:$0xff] %v2115_v8  ;;  %v2117_v9 = vpop.f32.mrb[25].mxu0  ;;  %v2119_v11 = vpop.f32.mrb[25].mxu1 }
 0x127   :  { %3628 = vst [vmem:[#allocation25_spill] sm:$0xff] %v2117_v9  ;;  %3629 = vst [vmem:[#allocation26_spill] sm:$0xff] %v2119_v11  ;;  %v977_v15 = vadd.f32 %v976_v3, %v2117_v9  ;;  %v2122_v20 = vpop.f32.mrb[26].mxu0  ;;  %v2124_v21 = vpop.f32.mrb[26].mxu1 }
 0x128   :  { %3630 = vst [vmem:[#allocation27_spill] sm:$0xff] %v2122_v20  ;;  %3631 = vst [vmem:[#allocation28_spill] sm:$0xff] %v2124_v21  ;;  %v2126_v23 = vpop.f32.mrb[27].mxu0  ;;  %v2128_v27 = vpop.f32.mrb[27].mxu1 }
 0x129   :  { %3632 = vst [vmem:[#allocation29_spill] sm:$0xff] %v2126_v23  ;;  %3633 = vst [vmem:[#allocation30_spill] sm:$0xff] %v2128_v27  ;;  %v978_v32 = vadd.f32 %v977_v15, %v2126_v23 }
 0x12b   :  { %v979_v33 = vadd.f32 %v2112_v63, %v978_v32 }
 0x12d   :  { %v2132_v35 = vpop.f32.mrb[28].mxu0  ;;  %v980_v39 = vadd.f32 %v2122_v20, %v979_v33  ;;  %v2135_v60 = vpop.f32.mrb[28].mxu1 }
 0x12e   :  { %3634 = vst [vmem:[#allocation31_spill] sm:$0xff] %v2135_v60  ;;  %v2137_v61 = vpop.f32.mrb[29].mxu0  ;;  %v2139_v3 = vpop.f32.mrb[29].mxu1 }
 0x12f   :  { %3635 = vst [vmem:[#allocation32_spill] sm:$0xff] %v2137_v61  ;;  %3636 = vst [vmem:[#allocation33_spill] sm:$0xff] %v2139_v3  ;;  %v981_v9 = vadd.f32 %v980_v39, %v2137_v61  ;;  %v2142_v48 = vpop.f32.mrb[30].mxu0  ;;  %v2144_v34 = vpop.f32.mrb[30].mxu1 }
 0x130   :  { %v2146_v51 = vpop.f32.mrb[31].mxu0  ;;  %v2148_v15 = vpop.f32.mrb[31].mxu1 }
 0x131   :  { %3637 = vst [vmem:[#allocation34_spill] sm:$0xff] %v2148_v15  ;;  %v982_v32 = vadd.f32 %v981_v9, %v2146_v51 }
 0x133   :  { %v983_v33 = vadd.f32 %v2132_v35, %v982_v32 }
 0x135   :  { %v984_v20 = vadd.f32 %v2142_v48, %v983_v33 }
 0x137   :  { %v985_v63 = vadd.f32 %v984_v20, %v1999_v43 }
 0x139   :  { %v986_v23 = vadd.f32 %v985_v63, %v2007_v47 }
 0x13b   :  { %v987_v39 = vadd.f32 %v1995_v41, %v986_v23 }
 0x13d   :  { %v988_v61 = vadd.f32 %v2003_v45, %v987_v39 }
 0x13f   :  { %v989_v37 = vadd.f32 %v988_v61, %v2019_v54 }
 0x141   :  { %v990_v28 = vadd.f32 %v989_v37, %v2028_v59 }
 0x143   :  { %v991_v22 = vadd.f32 %v2015_v52, %v990_v28 }
 0x145   :  { %v992_v9 = vadd.f32 %v2024_v57, %v991_v22 }
 0x147   :  { %v993_v32 = vadd.f32 %v992_v9, %v2039_v2 }
 0x149   :  { %v994_v33 = vadd.f32 %v993_v32, %v2048_v7 }
 0x14b   :  { %v995_v20 = vadd.f32 %v2035_v0, %v994_v33 }
 0x14d   :  { %v996_v63 = vadd.f32 %v2044_v5, %v995_v20 }
 0x14f   :  { %v997_v23 = vadd.f32 %v996_v63, %v2059_v14 }
 0x151   :  { %v998_v39 = vadd.f32 %v997_v23, %v2068_v19 }
 0x153   :  { %v999_v61 = vadd.f32 %v2055_v12, %v998_v39 }
 0x155   :  { %v1000_v37 = vadd.f32 %v2064_v17, %v999_v61 }
 0x157   :  { %v1001_v28 = vadd.f32 %v1000_v37, %v2079_v26 }
 0x159   :  { %v1002_v22 = vadd.f32 %v1001_v28, %v2088_v31 }
 0x15b   :  { %v1003_v9 = vadd.f32 %v2075_v24, %v1002_v22 }
 0x15d   :  { %v1004_v32 = vadd.f32 %v2084_v29, %v1003_v9 }
 0x15f   :  { %v1005_v33 = vadd.f32 %v1004_v32, %v2099_v38 }
 0x161   :  { %v1006_v20 = vadd.f32 %v1005_v33, %v2108_v55 }
 0x163   :  { %v1007_v63 = vadd.f32 %v2095_v36, %v1006_v20 }
 0x165   :  { %v1008_v23 = vadd.f32 %v2104_v49, %v1007_v63 }
 0x167   :  { %v1009_v39 = vadd.f32 %v1008_v23, %v2119_v11 }
 0x169   :  { %v1010_v61 = vadd.f32 %v1009_v39, %v2128_v27 }
 0x16b   :  { %v1011_v37 = vadd.f32 %v2115_v8, %v1010_v61 }
 0x16d   :  { %v1012_v28 = vadd.f32 %v2124_v21, %v1011_v37 }
 0x16f   :  { %v1013_v22 = vadd.f32 %v1012_v28, %v2139_v3 }
 0x171   :  { %v1014_v9 = vadd.f32 %v1013_v22, %v2148_v15 }
 0x173   :  { %v1015_v32 = vadd.f32 %v2135_v60, %v1014_v9 }
 0x175   :  { %v1016_v33 = vadd.f32 %v2144_v34, %v1015_v32 }
 0x177   :  { %v1017_v55 = vrot.slane %v1016_v33, 4 }
 0x179   :  { %v1018_v20 = vadd.f32 %v1017_v55, %v1016_v33 }
 0x17b   :  { %v1019_v36 = vrot.slane %v1018_v20, 2 }
 0x17d   :  { %v1020_v63 = vadd.f32 %v1019_v36, %v1018_v20 }
 0x17f   :  { %v1021_v49 = vrot.slane %v1020_v63, 1 }
 0x181   :  { %v1022_v23 = vadd.f32 %v1021_v49, %v1020_v63 }
 0x183   :  { %v2185_v11 = vmul.f32 0.001953125, %v1022_v23 }
 0x185   :  { %v1025_v39 = vsub.f32 %v1997_v42, %v2185_v11  ;;  %v1026_v61 = vsub.f32 %v2005_v46, %v2185_v11  ;;  %v1027_v37 = vsub.f32 %v1993_v40, %v2185_v11  ;;  %v1028_v55 = vsub.f32 %v2001_v44, %v2185_v11 }
 0x186   :  { %v1029_v36 = vsub.f32 %v2017_v53, %v2185_v11  ;;  %v1030_v32 = vsub.f32 %v2026_v58, %v2185_v11  ;;  %v1031_v63 = vsub.f32 %v2012_v50, %v2185_v11  ;;  %v1033_v53 = vsub.f32 %v2037_v1, %v2185_v11 }
 0x187   :  { %v1089_v28 = vmul.f32 %v1025_v39, %v1025_v39  ;;  %v1090_v22 = vmul.f32 %v1026_v61, %v1026_v61  ;;  %v1091_v49 = vmul.f32 %v1027_v37, %v1027_v37  ;;  %v1092_v33 = vmul.f32 %v1028_v55, %v1028_v55 }
 0x188   :  { %v1093_v23 = vmul.f32 %v1029_v36, %v1029_v36  ;;  %v1032_v39 = vsub.f32 %v2022_v56, %v2185_v11  ;;  %v1094_v61 = vmul.f32 %v1030_v32, %v1030_v32  ;;  %v1095_v37 = vmul.f32 %v1031_v63, %v1031_v63 }
 0x189   :  { %v1153_v9 = vadd.f32 %v1090_v22, %v1089_v28  ;;  %v1034_v22 = vsub.f32 %v2046_v6, %v2185_v11  ;;  %v1097_v36 = vmul.f32 %v1033_v53, %v1033_v53 }
 0x18a   :  { %v1096_v55 = vmul.f32 %v1032_v39, %v1032_v39 }
 0x18b   :  { %v1154_v20 = vadd.f32 %v1153_v9, %v1091_v49  ;;  %v1035_v9 = vsub.f32 %v2032_v62, %v2185_v11  ;;  %v1098_v32 = vmul.f32 %v1034_v22, %v1034_v22 }
 0x18d   :  { %v1155_v40 = vadd.f32 %v1154_v20, %v1092_v33  ;;  %v1036_v20 = vsub.f32 %v2042_v4, %v2185_v11  ;;  %v1099_v63 = vmul.f32 %v1035_v9, %v1035_v9 }
 0x18f   :  { %v1156_v44 = vadd.f32 %v1155_v40, %v1093_v23  ;;  %v1037_v23 = vsub.f32 %v2057_v13, %v2185_v11  ;;  %v1100_v39 = vmul.f32 %v1036_v20, %v1036_v20 }
 0x191   :  { %v1157_v28 = vadd.f32 %v1156_v44, %v1094_v61  ;;  %v1038_v61 = vsub.f32 %v2066_v18, %v2185_v11  ;;  %v1101_v53 = vmul.f32 %v1037_v23, %v1037_v23 }
 0x193   :  { %v1158_v49 = vadd.f32 %v1157_v28, %v1095_v37  ;;  %v1039_v28 = vsub.f32 %v2052_v10, %v2185_v11  ;;  %v1102_v22 = vmul.f32 %v1038_v61, %v1038_v61 }
 0x195   :  { %v1159_v33 = vadd.f32 %v1158_v49, %v1096_v55  ;;  %v1040_v49 = vsub.f32 %v2062_v16, %v2185_v11  ;;  %v1103_v9 = vmul.f32 %v1039_v28, %v1039_v28 }
 0x197   :  { %v1160_v40 = vadd.f32 %v1159_v33, %v1097_v36  ;;  %v1041_v33 = vsub.f32 %v2077_v25, %v2185_v11  ;;  %v1104_v20 = vmul.f32 %v1040_v49, %v1040_v49 }
 0x199   :  { %v1161_v44 = vadd.f32 %v1160_v40, %v1098_v32  ;;  %v1042_v40 = vsub.f32 %v2086_v30, %v2185_v11  ;;  %v1105_v23 = vmul.f32 %v1041_v33, %v1041_v33 }
 0x19b   :  { %v1162_v37 = vadd.f32 %v1161_v44, %v1099_v63  ;;  %v3638_v44 = vld [vmem:[#allocation8_spill] sm:$0xff]  ;;  %v1106_v61 = vmul.f32 %v1042_v40, %v1042_v40 }
 0x19c   :  { %v1043_v10 = vsub.f32 %v3638_v44, %v2185_v11 }
 0x19d   :  { %v1163_v55 = vadd.f32 %v1162_v37, %v1100_v39  ;;  %v3639_v37 = vld [vmem:[#allocation11_spill] sm:$0xff] }
 0x19e   :  { %v1044_v16 = vsub.f32 %v3639_v37, %v2185_v11  ;;  %v1107_v28 = vmul.f32 %v1043_v10, %v1043_v10 }
 0x19f   :  { %v1164_v36 = vadd.f32 %v1163_v55, %v1101_v53  ;;  %v3640_v55 = vld [vmem:[#allocation17_spill] sm:$0xff] }
 0x1a0   :  { %v1045_v25 = vsub.f32 %v3640_v55, %v2185_v11  ;;  %v1108_v49 = vmul.f32 %v1044_v16, %v1044_v16 }
 0x1a1   :  { %v1165_v32 = vadd.f32 %v1164_v36, %v1102_v22  ;;  %v3641_v36 = vld [vmem:[#allocation21_spill] sm:$0xff] }
 0x1a2   :  { %v1046_v30 = vsub.f32 %v3641_v36, %v2185_v11  ;;  %v1109_v33 = vmul.f32 %v1045_v25, %v1045_v25 }
 0x1a3   :  { %v1166_v63 = vadd.f32 %v1165_v32, %v1103_v9  ;;  %v3642_v32 = vld [vmem:[#allocation15_spill] sm:$0xff] }
 0x1a4   :  { %v1047_v44 = vsub.f32 %v3642_v32, %v2185_v11  ;;  %v1110_v40 = vmul.f32 %v1046_v30, %v1046_v30 }
 0x1a5   :  { %v1167_v39 = vadd.f32 %v1166_v63, %v1104_v20  ;;  %v3643_v63 = vld [vmem:[#allocation19_spill] sm:$0xff] }
 0x1a6   :  { %v1048_v37 = vsub.f32 %v3643_v63, %v2185_v11  ;;  %v1111_v10 = vmul.f32 %v1047_v44, %v1047_v44 }
 0x1a7   :  { %v1168_v53 = vadd.f32 %v1167_v39, %v1105_v23  ;;  %v3644_v39 = vld [vmem:[#allocation25_spill] sm:$0xff] }
 0x1a8   :  { %v1049_v55 = vsub.f32 %v3644_v39, %v2185_v11  ;;  %v1112_v16 = vmul.f32 %v1048_v37, %v1048_v37 }
 0x1a9   :  { %v1169_v22 = vadd.f32 %v1168_v53, %v1106_v61  ;;  %v3645_v53 = vld [vmem:[#allocation29_spill] sm:$0xff] }
 0x1aa   :  { %v1050_v36 = vsub.f32 %v3645_v53, %v2185_v11  ;;  %v1113_v25 = vmul.f32 %v1049_v55, %v1049_v55 }
 0x1ab   :  { %v1170_v9 = vadd.f32 %v1169_v22, %v1107_v28  ;;  %v3646_v22 = vld [vmem:[#allocation23_spill] sm:$0xff] }
 0x1ac   :  { %v1051_v32 = vsub.f32 %v3646_v22, %v2185_v11  ;;  %v1114_v30 = vmul.f32 %v1050_v36, %v1050_v36 }
 0x1ad   :  { %v1171_v20 = vadd.f32 %v1170_v9, %v1108_v49  ;;  %v3647_v9 = vld [vmem:[#allocation27_spill] sm:$0xff] }
 0x1ae   :  { %v1052_v63 = vsub.f32 %v3647_v9, %v2185_v11  ;;  %v1115_v44 = vmul.f32 %v1051_v32, %v1051_v32 }
 0x1af   :  { %v1172_v23 = vadd.f32 %v1171_v20, %v1109_v33  ;;  %v3648_v20 = vld [vmem:[#allocation32_spill] sm:$0xff] }
 0x1b0   :  { %v1053_v39 = vsub.f32 %v3648_v20, %v2185_v11  ;;  %v1116_v37 = vmul.f32 %v1052_v63, %v1052_v63 }
 0x1b1   :  { %v1173_v61 = vadd.f32 %v1172_v23, %v1110_v40  ;;  %v1054_v23 = vsub.f32 %v2146_v51, %v2185_v11 }
 0x1b2   :  { %v1117_v55 = vmul.f32 %v1053_v39, %v1053_v39 }
 0x1b3   :  { %v1174_v28 = vadd.f32 %v1173_v61, %v1111_v10  ;;  %v1055_v61 = vsub.f32 %v2132_v35, %v2185_v11  ;;  %v1118_v36 = vmul.f32 %v1054_v23, %v1054_v23 }
 0x1b5   :  { %v1175_v49 = vadd.f32 %v1174_v28, %v1112_v16  ;;  %v1056_v28 = vsub.f32 %v2142_v48, %v2185_v11  ;;  %v1119_v32 = vmul.f32 %v1055_v61, %v1055_v61 }
 0x1b7   :  { %v1176_v33 = vadd.f32 %v1175_v49, %v1113_v25  ;;  %v1057_v49 = vsub.f32 %v1999_v43, %v2185_v11  ;;  %v1120_v63 = vmul.f32 %v1056_v28, %v1056_v28 }
 0x1b9   :  { %v1177_v40 = vadd.f32 %v1176_v33, %v1114_v30  ;;  %v1058_v33 = vsub.f32 %v2007_v47, %v2185_v11  ;;  %v1121_v39 = vmul.f32 %v1057_v49, %v1057_v49 }
 0x1bb   :  { %v1178_v10 = vadd.f32 %v1177_v40, %v1115_v44  ;;  %v1059_v40 = vsub.f32 %v1995_v41, %v2185_v11  ;;  %v1122_v23 = vmul.f32 %v1058_v33, %v1058_v33 }
 0x1bd   :  { %v1179_v16 = vadd.f32 %v1178_v10, %v1116_v37  ;;  %v1060_v10 = vsub.f32 %v2003_v45, %v2185_v11  ;;  %v1123_v61 = vmul.f32 %v1059_v40, %v1059_v40 }
 0x1bf   :  { %v1180_v25 = vadd.f32 %v1179_v16, %v1117_v55  ;;  %v1061_v16 = vsub.f32 %v2019_v54, %v2185_v11  ;;  %v1124_v28 = vmul.f32 %v1060_v10, %v1060_v10 }
 0x1c1   :  { %v1181_v30 = vadd.f32 %v1180_v25, %v1118_v36  ;;  %v1062_v25 = vsub.f32 %v2028_v59, %v2185_v11  ;;  %v1125_v49 = vmul.f32 %v1061_v16, %v1061_v16 }
 0x1c3   :  { %v1182_v44 = vadd.f32 %v1181_v30, %v1119_v32  ;;  %v1063_v30 = vsub.f32 %v2015_v52, %v2185_v11  ;;  %v1126_v33 = vmul.f32 %v1062_v25, %v1062_v25 }
 0x1c5   :  { %v1183_v37 = vadd.f32 %v1182_v44, %v1120_v63  ;;  %v1064_v44 = vsub.f32 %v2024_v57, %v2185_v11  ;;  %v1127_v40 = vmul.f32 %v1063_v30, %v1063_v30 }
 0x1c7   :  { %v1184_v55 = vadd.f32 %v1183_v37, %v1121_v39  ;;  %v1065_v37 = vsub.f32 %v2039_v2, %v2185_v11  ;;  %v1128_v10 = vmul.f32 %v1064_v44, %v1064_v44 }
 0x1c9   :  { %v1185_v36 = vadd.f32 %v1184_v55, %v1122_v23  ;;  %v1066_v55 = vsub.f32 %v2048_v7, %v2185_v11  ;;  %v1129_v16 = vmul.f32 %v1065_v37, %v1065_v37 }
 0x1cb   :  { %v1186_v32 = vadd.f32 %v1185_v36, %v1123_v61  ;;  %v1067_v36 = vsub.f32 %v2035_v0, %v2185_v11  ;;  %v1130_v25 = vmul.f32 %v1066_v55, %v1066_v55 }
 0x1cd   :  { %v1187_v63 = vadd.f32 %v1186_v32, %v1124_v28  ;;  %v1068_v32 = vsub.f32 %v2044_v5, %v2185_v11  ;;  %v1131_v30 = vmul.f32 %v1067_v36, %v1067_v36 }
 0x1cf   :  { %v1188_v39 = vadd.f32 %v1187_v63, %v1125_v49  ;;  %v1069_v63 = vsub.f32 %v2059_v14, %v2185_v11  ;;  %v1132_v44 = vmul.f32 %v1068_v32, %v1068_v32 }
 0x1d1   :  { %v1189_v23 = vadd.f32 %v1188_v39, %v1126_v33  ;;  %v1070_v39 = vsub.f32 %v2068_v19, %v2185_v11  ;;  %v1133_v37 = vmul.f32 %v1069_v63, %v1069_v63 }
 0x1d3   :  { %v1190_v61 = vadd.f32 %v1189_v23, %v1127_v40  ;;  %v1071_v23 = vsub.f32 %v2055_v12, %v2185_v11  ;;  %v1134_v55 = vmul.f32 %v1070_v39, %v1070_v39 }
 0x1d5   :  { %v1191_v28 = vadd.f32 %v1190_v61, %v1128_v10  ;;  %v1072_v61 = vsub.f32 %v2064_v17, %v2185_v11  ;;  %v1135_v36 = vmul.f32 %v1071_v23, %v1071_v23 }
 0x1d7   :  { %v1192_v49 = vadd.f32 %v1191_v28, %v1129_v16  ;;  %v1073_v28 = vsub.f32 %v2079_v26, %v2185_v11  ;;  %v1136_v32 = vmul.f32 %v1072_v61, %v1072_v61 }
 0x1d9   :  { %v1193_v33 = vadd.f32 %v1192_v49, %v1130_v25  ;;  %v1074_v49 = vsub.f32 %v2088_v31, %v2185_v11  ;;  %v1137_v63 = vmul.f32 %v1073_v28, %v1073_v28 }
 0x1db   :  { %v1194_v40 = vadd.f32 %v1193_v33, %v1131_v30  ;;  %v1075_v33 = vsub.f32 %v2075_v24, %v2185_v11  ;;  %v1138_v39 = vmul.f32 %v1074_v49, %v1074_v49 }
 0x1dd   :  { %v1195_v10 = vadd.f32 %v1194_v40, %v1132_v44  ;;  %v1076_v40 = vsub.f32 %v2084_v29, %v2185_v11  ;;  %v1139_v23 = vmul.f32 %v1075_v33, %v1075_v33 }
 0x1df   :  { %v1196_v16 = vadd.f32 %v1195_v10, %v1133_v37  ;;  %v1077_v10 = vsub.f32 %v2099_v38, %v2185_v11  ;;  %v1140_v61 = vmul.f32 %v1076_v40, %v1076_v40 }
 0x1e1   :  { %v1197_v25 = vadd.f32 %v1196_v16, %v1134_v55  ;;  %v3649_v16 = vld [vmem:[#allocation22_spill] sm:$0xff]  ;;  %v1141_v28 = vmul.f32 %v1077_v10, %v1077_v10 }
 0x1e2   :  { %v1078_v31 = vsub.f32 %v3649_v16, %v2185_v11 }
 0x1e3   :  { %v1198_v30 = vadd.f32 %v1197_v25, %v1135_v36  ;;  %v3650_v25 = vld [vmem:[#allocation16_spill] sm:$0xff] }
 0x1e4   :  { %v1079_v24 = vsub.f32 %v3650_v25, %v2185_v11  ;;  %v1142_v49 = vmul.f32 %v1078_v31, %v1078_v31 }
 0x1e5   :  { %v1199_v44 = vadd.f32 %v1198_v30, %v1136_v32  ;;  %v3651_v30 = vld [vmem:[#allocation20_spill] sm:$0xff] }
 0x1e6   :  { %v1080_v29 = vsub.f32 %v3651_v30, %v2185_v11  ;;  %v1143_v33 = vmul.f32 %v1079_v24, %v1079_v24 }
 0x1e7   :  { %v1200_v37 = vadd.f32 %v1199_v44, %v1137_v63  ;;  %v3652_v44 = vld [vmem:[#allocation26_spill] sm:$0xff] }
 0x1e8   :  { %v1081_v38 = vsub.f32 %v3652_v44, %v2185_v11  ;;  %v1144_v40 = vmul.f32 %v1080_v29, %v1080_v29 }
 0x1e9   :  { %v1201_v55 = vadd.f32 %v1200_v37, %v1138_v39  ;;  %v1082_v37 = vsub.f32 %v2128_v27, %v2185_v11 }
 0x1ea   :  { %v1145_v10 = vmul.f32 %v1081_v38, %v1081_v38 }
 0x1eb   :  { %v1202_v36 = vadd.f32 %v1201_v55, %v1139_v23  ;;  %v1083_v55 = vsub.f32 %v2115_v8, %v2185_v11  ;;  %v1146_v31 = vmul.f32 %v1082_v37, %v1082_v37 }
 0x1ed   :  { %v1203_v32 = vadd.f32 %v1202_v36, %v1140_v61  ;;  %v1084_v36 = vsub.f32 %v2124_v21, %v2185_v11  ;;  %v1147_v24 = vmul.f32 %v1083_v55, %v1083_v55 }
 0x1ef   :  { %v1204_v63 = vadd.f32 %v1203_v32, %v1141_v28  ;;  %v1085_v32 = vsub.f32 %v2139_v3, %v2185_v11  ;;  %v1148_v29 = vmul.f32 %v1084_v36, %v1084_v36 }
 0x1f1   :  { %v1205_v39 = vadd.f32 %v1204_v63, %v1142_v49  ;;  %v1086_v63 = vsub.f32 %v2148_v15, %v2185_v11  ;;  %v1149_v38 = vmul.f32 %v1085_v32, %v1085_v32  ;;  %v1231_v32 = vlaneseq }
 0x1f3   :  { %v1206_v23 = vadd.f32 %v1205_v39, %v1143_v33  ;;  %v1087_v39 = vsub.f32 %v2135_v60, %v2185_v11  ;;  %v1150_v37 = vmul.f32 %v1086_v63, %v1086_v63  ;;  %v1223_v63 = vld [vmem:[%s3530_s2] sm:$0x1] }
 0x1f5   :  { %v1207_v61 = vadd.f32 %v1206_v23, %v1144_v40  ;;  %v1088_v23 = vsub.f32 %v2144_v34, %v2185_v11 }
 0x1f7   :  { %v1208_v28 = vadd.f32 %v1207_v61, %v1145_v10  ;;  %v1151_v61 = vmul.f32 %v1087_v39, %v1087_v39  ;;  %v1152_v3 = vmul.f32 %v1088_v23, %v1088_v23 }
 0x1f9   :  { %v1209_v49 = vadd.f32 %v1208_v28, %v1146_v31 }
 0x1fb   :  { %v1210_v33 = vadd.f32 %v1209_v49, %v1147_v24 }
 0x1fd   :  { %v1211_v40 = vadd.f32 %v1210_v33, %v1148_v29  ;;  %v2315_v29 = vshrl.u32 %v1231_v32, 7  ;;  %v3659_v32 = vld [vmem:[#allocation13_spill] sm:$0xff] }
 0x1ff   :  { %v1212_v10 = vadd.f32 %v1211_v40, %v1149_v38  ;;  %v3580_v33 = vsub.s32 0, %v2315_v29  ;;  %v3653_v40 = vld [vmem:[#allocation3_spill] sm:$0xff] }
 0x201   :  { %v1213_v21 = vadd.f32 %v1212_v10, %v1150_v37  ;;  %v3655_v10 = vld [vmem:[#allocation5_spill] sm:$0xff] }
 0x203   :  { %v1214_v55 = vadd.f32 %v1213_v21, %v1151_v61 }
 0x205   :  { %v1215_v31 = vadd.f32 %v1214_v55, %v1152_v3 }
 0x207   :  { %v1216_v28 = vrot.slane %v1215_v31, 4 }
 0x209   :  { %v1217_v8 = vadd.f32 %v1216_v28, %v1215_v31 }
 0x20b   :  { %v1218_v15 = vrot.slane %v1217_v8, 2 }
 0x20d   :  { %v1219_v36 = vadd.f32 %v1218_v15, %v1217_v8  ;;  %v2324_v8 = vld [vmem:[%s3531_s3] sm:$0x1] }
 0x20f   :  { %v1220_v24 = vrot.slane %v1219_v36, 1 }
 0x211   :  { %v1221_v49 = vadd.f32 %v1220_v24, %v1219_v36  ;;  %v3656_v36 = vld [vmem:[#allocation6_spill] sm:$0xff]  ;;  %v3657_v24 = vld [vmem:[#allocation7_spill] sm:$0xff] }
 0x213   :  { %v1222_v27 = vmul.f32 0.001953125, %v1221_v49  ;;  %v3658_v49 = vld [vmem:[#allocation10_spill] sm:$0xff] }
 0x215   :  { %v1224_v60 = vadd.f32 1e-05, %v1222_v27 }
 0x217   :  { %1846 = vrsqrt.f32 %v1224_v60  ;;  %v3666_v60 = vld [vmem:[#allocation25_spill] sm:$0xff] }
 0x221   :  { %v1847_v21 = vpop.eup %1846 }
 0x222   :  { %v1226_v3 = vmul.f32 %v1847_v21, %v1223_v63  ;;  %v3660_v63 = vld [vmem:[#allocation8_spill] sm:$0xff]  ;;  %v3661_v21 = vld [vmem:[#allocation11_spill] sm:$0xff] }
 0x224   :  { %v2327_v15 = vmul.f32 %v1226_v3, %v2185_v11  ;;  %v2331_v27 = vrot.slane %v1226_v3, %v3580_v33  ;;  %v3654_v11 = vld [vmem:[#allocation4_spill] sm:$0xff]  ;;  %v3670_v33 = vld [vmem:[#allocation14_spill] sm:$0xff] }
 0x226   :  { %v2337_v39 = vmul.f32 %v2331_v27, %v1997_v42  ;;  %v2341_v38 = vmul.f32 %v2331_v27, %v2005_v46  ;;  %v2345_v23 = vmul.f32 %v3653_v40, %v2331_v27  ;;  %v2349_v37 = vmul.f32 %v3654_v11, %v2331_v27  ;;  %v3662_v40 = vld [vmem:[#allocation17_spill] sm:$0xff] }
 0x227   :  { %v2353_v61 = vmul.f32 %v2331_v27, %v3655_v10  ;;  %v2357_v42 = vmul.f32 %v2331_v27, %v2026_v58  ;;  %v2361_v46 = vmul.f32 %v2012_v50, %v2331_v27  ;;  %v2365_v55 = vmul.f32 %v2022_v56, %v2331_v27  ;;  %v3663_v10 = vld [vmem:[#allocation21_spill] sm:$0xff] }
 0x228   :  { %v2369_v31 = vmul.f32 %v2331_v27, %v2037_v1  ;;  %v2373_v28 = vmul.f32 %v2331_v27, %v2046_v6  ;;  %v2377_v58 = vmul.f32 %v2032_v62, %v2331_v27  ;;  %v2381_v50 = vmul.f32 %v2042_v4, %v2331_v27 }
 0x229   :  { %v2385_v56 = vmul.f32 %v2331_v27, %v2057_v13  ;;  %v2389_v1 = vmul.f32 %v2331_v27, %v2066_v18  ;;  %v2393_v6 = vmul.f32 %v3656_v36, %v2331_v27  ;;  %v2397_v62 = vmul.f32 %v3657_v24, %v2331_v27  ;;  %v3664_v24 = vld [vmem:[#allocation15_spill] sm:$0xff] }
 0x22a   :  { %v2401_v4 = vmul.f32 %v2331_v27, %v3658_v49  ;;  %v2405_v13 = vmul.f32 %v2331_v27, %v3659_v32  ;;  %v2409_v18 = vmul.f32 %v3660_v63, %v2331_v27  ;;  %v2413_v3 = vmul.f32 %v3661_v21, %v2331_v27  ;;  %v3665_v32 = vld [vmem:[#allocation19_spill] sm:$0xff] }
 0x22b   :  { %v2417_v11 = vmul.f32 %v2331_v27, %v3662_v40  ;;  %v2421_v36 = vmul.f32 %v2331_v27, %v3663_v10  ;;  %v2425_v49 = vmul.f32 %v3664_v24, %v2331_v27  ;;  %v2429_v63 = vmul.f32 %v3665_v32, %v2331_v27 }
 0x22c   :  { %v2433_v21 = vmul.f32 %v2331_v27, %v3666_v60  ;;  %v2437_v40 = vmul.f32 %v2331_v27, %v3645_v53  ;;  %v2441_v10 = vmul.f32 %v3646_v22, %v2331_v27  ;;  %v2445_v24 = vmul.f32 %v3647_v9, %v2331_v27 }
 0x22d   :  { %v2449_v32 = vmul.f32 %v2331_v27, %v3648_v20  ;;  %v2453_v60 = vmul.f32 %v2331_v27, %v2146_v51  ;;  %v2457_v53 = vmul.f32 %v2132_v35, %v2331_v27  ;;  %v2461_v22 = vmul.f32 %v2142_v48, %v2331_v27 }
 0x22e   :  { %v2465_v9 = vmul.f32 %v2331_v27, %v1999_v43  ;;  %v2469_v20 = vmul.f32 %v2331_v27, %v2007_v47  ;;  %v2473_v51 = vmul.f32 %v1995_v41, %v2331_v27  ;;  %v2477_v35 = vmul.f32 %v2003_v45, %v2331_v27 }
 0x22f   :  { %v2481_v48 = vmul.f32 %v2331_v27, %v2019_v54  ;;  %v2485_v43 = vmul.f32 %v2331_v27, %v2028_v59  ;;  %v2489_v47 = vmul.f32 %v2015_v52, %v2331_v27  ;;  %v2493_v41 = vmul.f32 %v2024_v57, %v2331_v27 }
 0x230   :  { %v2497_v45 = vmul.f32 %v2331_v27, %v2039_v2  ;;  %v2501_v54 = vmul.f32 %v2331_v27, %v2048_v7  ;;  %v2505_v59 = vmul.f32 %v2035_v0, %v2331_v27  ;;  %v2509_v52 = vmul.f32 %v2044_v5, %v2331_v27 }
 0x231   :  { %v2513_v57 = vmul.f32 %v2331_v27, %v2059_v14  ;;  %v2517_v2 = vmul.f32 %v2331_v27, %v2068_v19  ;;  %v2521_v7 = vmul.f32 %v2055_v12, %v2331_v27  ;;  %v2525_v0 = vmul.f32 %v2064_v17, %v2331_v27 }
 0x232   :  { %v2529_v5 = vmul.f32 %v2331_v27, %v2079_v26  ;;  %v2533_v14 = vmul.f32 %v2331_v27, %v3670_v33  ;;  %v2549_v26 = vmul.f32 %v2331_v27, %v3649_v16  ;;  %v2553_v33 = vmul.f32 %v3650_v25, %v2331_v27 }
 0x233   :  { %3667 = vst [vmem:[#allocation29_spill] sm:$0xff] %v2513_v57  ;;  %3668 = vst [vmem:[#allocation23_spill] sm:$0xff] %v2517_v2  ;;  %v3671_v57 = vld [vmem:[#allocation9_spill] sm:$0xff]  ;;  %v3672_v2 = vld [vmem:[#allocation12_spill] sm:$0xff] }
 0x234   :  { %3669 = vst [vmem:[#allocation27_spill] sm:$0xff] %v2521_v7  ;;  %v2537_v19 = vmul.f32 %v3671_v57, %v2331_v27  ;;  %v2541_v12 = vmul.f32 %v3672_v2, %v2331_v27  ;;  %v3674_v7 = vld [vmem:[#allocation18_spill] sm:$0xff]  ;;  %3676 = vst [vmem:[#allocation16_spill] sm:$0xff] %v2549_v26  ;;  %v2557_v57 = vmul.f32 %v3651_v30, %v2331_v27  ;;  %v3683_v26 = vld [vmem:[#allocation28_spill] sm:$0xff] }
 0x235   :  { %v2545_v17 = vmul.f32 %v2331_v27, %v3674_v7  ;;  %3677 = vst [vmem:[#allocation20_spill] sm:$0xff] %v2553_v33  ;;  %v2561_v2 = vmul.f32 %v2331_v27, %v3652_v44  ;;  %v2573_v25 = vmul.f32 %v3683_v26, %v2331_v27  ;;  %v3685_v33 = vld [vmem:[#allocation33_spill] sm:$0xff]  ;;  %v3689_v26 = vsub.f32 %v2324_v8, %v2327_v15 }
 0x236   :  { %3673 = vst [vmem:[#allocation32_spill] sm:$0xff] %v2541_v12  ;;  %3678 = vst [vmem:[#allocation26_spill] sm:$0xff] %v2557_v57  ;;  %v3680_v12 = vld [vmem:[#allocation30_spill] sm:$0xff]  ;;  %v2577_v30 = vmul.f32 %v2331_v27, %v3685_v33 }
 0x237   :  { %3675 = vst [vmem:[#allocation22_spill] sm:$0xff] %v2545_v17  ;;  %3679 = vst [vmem:[#allocation3_spill] sm:$0xff] %v2561_v2  ;;  %v2565_v7 = vmul.f32 %v2331_v27, %v3680_v12  ;;  %v3681_v17 = vld [vmem:[#allocation24_spill] sm:$0xff]  ;;  %v3686_v57 = vld [vmem:[#allocation34_spill] sm:$0xff] }
 0x238   :  { %v2569_v16 = vmul.f32 %v3681_v17, %v2331_v27  ;;  %3684 = vst [vmem:[#allocation5_spill] sm:$0xff] %v2573_v25  ;;  %v2581_v44 = vmul.f32 %v2331_v27, %v3686_v57  ;;  %v3687_v2 = vld [vmem:[#allocation31_spill] sm:$0xff]  ;;  %v2589_v17 = vmul.f32 %v2144_v34, %v2331_v27 }
 0x239   :  { %v2585_v12 = vmul.f32 %v3687_v2, %v2331_v27 }
 0x23a   :  { %3682 = vst [vmem:[#allocation4_spill] sm:$0xff] %v2569_v16  ;;  %v3688_v16 = vsub.s32 0, %v2315_v29 }
 0x23c   :  { %v2596_v25 = vrot.slane %v3689_v26, %v3688_v16 }
 0x23e   :  { %v2600_v33 = vadd.f32 %v2596_v25, %v2337_v39  ;;  %v2604_v57 = vadd.f32 %v2596_v25, %v2341_v38  ;;  %v2608_v2 = vadd.f32 %v2596_v25, %v2345_v23  ;;  %v2612_v34 = vadd.f32 %v2596_v25, %v2349_v37 }
 0x23f   :  { %v2616_v29 = vadd.f32 %v2596_v25, %v2353_v61  ;;  %v2620_v8 = vadd.f32 %v2596_v25, %v2357_v42  ;;  %v2624_v15 = vadd.f32 %v2596_v25, %v2361_v46  ;;  %v2628_v27 = vadd.f32 %v2596_v25, %v2365_v55 }
 0x240   :  { %v2632_v39 = vadd.f32 %v2596_v25, %v2369_v31  ;;  %v2636_v38 = vadd.f32 %v2596_v25, %v2373_v28  ;;  %v2640_v23 = vadd.f32 %v2596_v25, %v2377_v58  ;;  %v2644_v37 = vadd.f32 %v2596_v25, %v2381_v50 }
 0x241   :  { %v2648_v61 = vadd.f32 %v2596_v25, %v2385_v56  ;;  %v2652_v42 = vadd.f32 %v2596_v25, %v2389_v1  ;;  %v2656_v46 = vadd.f32 %v2596_v25, %v2393_v6  ;;  %v2660_v55 = vadd.f32 %v2596_v25, %v2397_v62 }
 0x242   :  { %v2664_v31 = vadd.f32 %v2596_v25, %v2401_v4  ;;  %v2668_v28 = vadd.f32 %v2596_v25, %v2405_v13  ;;  %v2672_v58 = vadd.f32 %v2596_v25, %v2409_v18  ;;  %v2676_v50 = vadd.f32 %v2596_v25, %v2413_v3 }
 0x243   :  { %v2680_v56 = vadd.f32 %v2596_v25, %v2417_v11  ;;  %v2684_v1 = vadd.f32 %v2596_v25, %v2421_v36  ;;  %v2688_v6 = vadd.f32 %v2596_v25, %v2425_v49  ;;  %v2692_v62 = vadd.f32 %v2596_v25, %v2429_v63 }
 0x244   :  { %v2696_v4 = vadd.f32 %v2596_v25, %v2433_v21  ;;  %v2700_v13 = vadd.f32 %v2596_v25, %v2437_v40  ;;  %v2704_v18 = vadd.f32 %v2596_v25, %v2441_v10  ;;  %v2708_v3 = vadd.f32 %v2596_v25, %v2445_v24 }
 0x245   :  { %v2712_v11 = vadd.f32 %v2596_v25, %v2449_v32  ;;  %v2716_v36 = vadd.f32 %v2596_v25, %v2453_v60  ;;  %v2720_v49 = vadd.f32 %v2596_v25, %v2457_v53  ;;  %v2724_v63 = vadd.f32 %v2596_v25, %v2461_v22 }
 0x246   :  { %v2728_v21 = vadd.f32 %v2596_v25, %v2465_v9  ;;  %v2732_v40 = vadd.f32 %v2596_v25, %v2469_v20  ;;  %v2736_v10 = vadd.f32 %v2596_v25, %v2473_v51  ;;  %v2740_v24 = vadd.f32 %v2596_v25, %v2477_v35 }
 0x247   :  { %v2744_v32 = vadd.f32 %v2596_v25, %v2481_v48  ;;  %v2748_v60 = vadd.f32 %v2596_v25, %v2485_v43  ;;  %v2752_v53 = vadd.f32 %v2596_v25, %v2489_v47  ;;  %v2756_v22 = vadd.f32 %v2596_v25, %v2493_v41  ;;  %v3690_v48 = vld [vmem:[#allocation29_spill] sm:$0xff]  ;;  %v3691_v47 = vld [vmem:[#allocation23_spill] sm:$0xff] }
 0x248   :  { %v2760_v9 = vadd.f32 %v2596_v25, %v2497_v45  ;;  %v2764_v20 = vadd.f32 %v2596_v25, %v2501_v54  ;;  %v2768_v51 = vadd.f32 %v2596_v25, %v2505_v59  ;;  %v2772_v35 = vadd.f32 %v2596_v25, %v2509_v52  ;;  %v3693_v45 = vld [vmem:[#allocation27_spill] sm:$0xff] }
 0x249   :  { %v2776_v43 = vadd.f32 %v2596_v25, %v3690_v48  ;;  %v2780_v41 = vadd.f32 %v2596_v25, %v3691_v47  ;;  %v2784_v54 = vadd.f32 %v2596_v25, %v3693_v45  ;;  %v2788_v59 = vadd.f32 %v2596_v25, %v2525_v0  ;;  %v3698_v48 = vld [vmem:[#allocation32_spill] sm:$0xff]  ;;  %v3700_v45 = vld [vmem:[#allocation22_spill] sm:$0xff] }
 0x24a   :  { %v2792_v52 = vadd.f32 %v2596_v25, %v2529_v5  ;;  %v2796_v16 = vadd.f32 %v2596_v25, %v2533_v14  ;;  %v2800_v26 = vadd.f32 %v2596_v25, %v2537_v19  ;;  %v2804_v47 = vadd.f32 %v2596_v25, %v3698_v48 }
 0x24b   :  { %3692 = vst [vmem:[#allocation6_spill] sm:$0xff] %v2780_v41  ;;  %3694 = vst [vmem:[#allocation7_spill] sm:$0xff] %v2788_v59  ;;  %v2808_v0 = vadd.f32 %v2596_v25, %v3700_v45  ;;  %v3702_v59 = vld [vmem:[#allocation16_spill] sm:$0xff]  ;;  %v2828_v45 = vadd.f32 %v2596_v25, %v2565_v7  ;;  %v2848_v7 = vadd.f32 %v2596_v25, %v2585_v12  ;;  %vm1370_vm0 = vcmp.ge.f32.partialorder %v2600_v33, 0.0 }
 0x24c   :  { %3695 = vst [vmem:[#allocation10_spill] sm:$0xff] %v2792_v52  ;;  %3696 = vst [vmem:[#allocation13_spill] sm:$0xff] %v2796_v16  ;;  %v2812_v5 = vadd.f32 %v2596_v25, %v3702_v59  ;;  %v3704_v52 = vld [vmem:[#allocation20_spill] sm:$0xff]  ;;  %v3706_v16 = vld [vmem:[#allocation26_spill] sm:$0xff]  ;;  %vm1371_vm1 = vcmp.ge.f32.partialorder %v2604_v57, 0.0  ;;  %vm1372_vm2 = vcmp.ge.f32.partialorder %v2608_v2, 0.0 }
 0x24d   :  { %3697 = vst [vmem:[#allocation8_spill] sm:$0xff] %v2800_v26  ;;  %3699 = vst [vmem:[#allocation11_spill] sm:$0xff] %v2804_v47  ;;  %v2816_v14 = vadd.f32 %v2596_v25, %v3704_v52  ;;  %v2820_v19 = vadd.f32 %v2596_v25, %v3706_v16  ;;  %v3708_v26 = vld [vmem:[#allocation3_spill] sm:$0xff]  ;;  %v2840_v16 = vadd.f32 %v2596_v25, %v2577_v30  ;;  %vm1373_vm3 = vcmp.ge.f32.partialorder %v2612_v34, 0.0 }
 0x24e   :  { %3701 = vst [vmem:[#allocation17_spill] sm:$0xff] %v2808_v0  ;;  %3703 = vst [vmem:[#allocation21_spill] sm:$0xff] %v2812_v5  ;;  %v2824_v48 = vadd.f32 %v2596_v25, %v3708_v26  ;;  %v3711_v0 = vld [vmem:[#allocation4_spill] sm:$0xff]  ;;  %v3713_v5 = vld [vmem:[#allocation5_spill] sm:$0xff]  ;;  %v2844_v26 = vadd.f32 %v2596_v25, %v2581_v44  ;;  %vm1374_vm4 = vcmp.ge.f32.partialorder %v2616_v29, 0.0  ;;  %vm1375_vm5 = vcmp.ge.f32.partialorder %v2620_v8, 0.0 }
 0x24f   :  { %3705 = vst [vmem:[#allocation15_spill] sm:$0xff] %v2816_v14  ;;  %3707 = vst [vmem:[#allocation19_spill] sm:$0xff] %v2820_v19  ;;  %v2832_v59 = vadd.f32 %v2596_v25, %v3711_v0  ;;  %v2836_v52 = vadd.f32 %v2596_v25, %v3713_v5  ;;  %v2852_v0 = vadd.f32 %v2596_v25, %v2589_v17  ;;  %vm1376_vm6 = vcmp.ge.f32.partialorder %v2624_v15, 0.0 }
 0x250   :  { %3709 = vst [vmem:[#allocation25_spill] sm:$0xff] %v2824_v48  ;;  %3710 = vst [vmem:[#allocation14_spill] sm:$0xff] %v2828_v45  ;;  %vm1377_vm7 = vcmp.ge.f32.partialorder %v2628_v27, 0.0  ;;  %vm1378_vm8 = vcmp.ge.f32.partialorder %v2632_v39, 0.0  ;;  %vm1379_vm9 = vcmp.ge.f32.partialorder %v2636_v38, 0.0  ;;  %vm1380_vm10 = vcmp.ge.f32.partialorder %v2640_v23, 0.0 }
 0x251   :  { %3712 = vst [vmem:[#allocation9_spill] sm:$0xff] %v2832_v59  ;;  %3714 = vst [vmem:[#allocation12_spill] sm:$0xff] %v2836_v52  ;;  %v1434_v25 = vmul.f32 0.1, %v2600_v33  ;;  %v1435_v30 = vmul.f32 0.1, %v2604_v57 }
 0x252   :  { %3715 = vst [vmem:[#allocation18_spill] sm:$0xff] %v2840_v16  ;;  %3716 = vst [vmem:[#allocation30_spill] sm:$0xff] %v2844_v26  ;;  %v1436_v44 = vmul.f32 0.1, %v2608_v2  ;;  %v1437_v12 = vmul.f32 0.1, %v2612_v34 }
 0x253   :  { %3717 = vst [vmem:[#allocation24_spill] sm:$0xff] %v2848_v7  ;;  %3718 = vst [vmem:[#allocation28_spill] sm:$0xff] %v2852_v0  ;;  %v1438_v17 = vmul.f32 0.1, %v2616_v29  ;;  %v1439_v5 = vmul.f32 0.1, %v2620_v8  ;;  %v1498_v16 = vsel %vm1370_vm0, %v2600_v33, %v1434_v25  ;;  %v1499_v48 = vsel %vm1371_vm1, %v2604_v57, %v1435_v30 }
 0x254   :  { %vm1381_vm11 = vcmp.ge.f32.partialorder %v2644_v37, 0.0  ;;  %v1440_v0 = vmul.f32 0.1, %v2624_v15  ;;  %v1441_v7 = vmul.f32 0.1, %v2628_v27  ;;  %vm1382_vm12 = vcmp.ge.f32.partialorder %v2648_v61, 0.0  ;;  %1562 = vst [vmem:[%s3532_s4] sm:$0xff] %v1498_v16 }
 0x255   :  { %v1442_v26 = vmul.f32 0.1, %v2632_v39  ;;  %v1443_v52 = vmul.f32 0.1, %v2636_v38  ;;  %v2881_v59 = vmul.f32 0.1, %v2640_v23  ;;  %v1500_v14 = vsel %vm1372_vm2, %v2608_v2, %v1436_v44 }
 0x256   :  { %v2884_v45 = vmul.f32 0.1, %v2644_v37  ;;  %vm1383_vm13 = vcmp.ge.f32.partialorder %v2652_v42, 0.0  ;;  %v2894_v33 = vmul.f32 0.1, %v2648_v61  ;;  %1563 = vst [vmem:[%s3532_s4 + $0x8] sm:$0xff] %v1499_v48  ;;  %v1501_v47 = vsel %vm1373_vm3, %v2612_v34, %v1437_v12 }
 0x257   :  { %v2897_v25 = vmul.f32 0.1, %v2652_v42  ;;  %v2900_v19 = vmul.f32 0.1, %v2656_v46  ;;  %vm1384_vm14 = vcmp.ge.f32.partialorder %v2656_v46, 0.0  ;;  %1564 = vst [vmem:[%s3532_s4 + $0x10] sm:$0xff] %v1500_v14 }
 0x258   :  { %v2910_v57 = vmul.f32 0.1, %v2660_v55  ;;  %v2913_v16 = vmul.f32 0.1, %v2664_v31  ;;  %v2916_v30 = vmul.f32 0.1, %v2668_v28 }
 0x259   :  { %vm1385_vm15 = vcmp.ge.f32.partialorder %v2660_v55, 0.0  ;;  %v2926_v2 = vmul.f32 0.1, %v2672_v58  ;;  %v2929_v48 = vmul.f32 0.1, %v2676_v50  ;;  %1565 = vst [vmem:[%s3532_s4 + $0x18] sm:$0xff] %v1501_v47 }
 0x25a   :  { %3719 = vst [vmem:[#allocation33_spill] sm:$0xff] %v2916_v30  ;;  %v2932_v44 = vmul.f32 0.1, %v2680_v56  ;;  %v1502_v30 = vsel %vm1374_vm4, %v2616_v29, %v1438_v17  ;;  %vm1386_vm0 = vcmp.ge.f32.partialorder %v2664_v31, 0.0  ;;  %v2942_v34 = vmul.f32 0.1, %v2684_v1 }
 0x25b   :  { %v2945_v14 = vmul.f32 0.1, %v2688_v6  ;;  %v2948_v12 = vmul.f32 0.1, %v2692_v62  ;;  %1566 = vst [vmem:[%s3532_s4 + $0x20] sm:$0xff] %v1502_v30  ;;  %vm1387_vm1 = vcmp.ge.f32.partialorder %v2668_v28, 0.0 }
 0x25c   :  { %3720 = vst [vmem:[#allocation34_spill] sm:$0xff] %v2932_v44  ;;  %v1503_v44 = vsel %vm1375_vm5, %v2620_v8, %v1439_v5  ;;  %v2958_v29 = vmul.f32 0.1, %v2696_v4  ;;  %v2961_v47 = vmul.f32 0.1, %v2700_v13  ;;  %vm1388_vm2 = vcmp.ge.f32.partialorder %v2672_v58, 0.0 }
 0x25d   :  { %3721 = vst [vmem:[#allocation31_spill] sm:$0xff] %v2948_v12  ;;  %v2964_v17 = vmul.f32 0.1, %v2704_v18  ;;  %v1504_v12 = vsel %vm1376_vm6, %v2624_v15, %v1440_v0  ;;  %1567 = vst [vmem:[%s3532_s4 + $0x28] sm:$0xff] %v1503_v44  ;;  %v2974_v8 = vmul.f32 0.1, %v2708_v3 }
 0x25e   :  { %v2977_v5 = vmul.f32 0.1, %v2712_v11  ;;  %v2980_v30 = vmul.f32 0.1, %v2716_v36  ;;  %1568 = vst [vmem:[%s3532_s4 + $0x30] sm:$0xff] %v1504_v12  ;;  %vm1389_vm3 = vcmp.ge.f32.partialorder %v2676_v50, 0.0 }
 0x25f   :  { %3722 = vst [vmem:[#allocation29_spill] sm:$0xff] %v2964_v17  ;;  %v1505_v17 = vsel %vm1377_vm7, %v2628_v27, %v1441_v7  ;;  %v2992_v15 = vmul.f32 0.1, %v2720_v49  ;;  %v2995_v0 = vmul.f32 0.1, %v2724_v63  ;;  %v1506_v27 = vsel %vm1378_vm8, %v2632_v39, %v1442_v26 }
 0x260   :  { %v2998_v44 = vmul.f32 0.1, %v2728_v21  ;;  %1569 = vst [vmem:[%s3532_s4 + $0x38] sm:$0xff] %v1505_v17  ;;  %vm1392_vm6 = vcmp.ge.f32.partialorder %v2688_v6, 0.0  ;;  %v3011_v7 = vmul.f32 0.1, %v2732_v40  ;;  %v1507_v26 = vsel %vm1379_vm9, %v2636_v38, %v1443_v52 }
 0x261   :  { %v3014_v12 = vmul.f32 0.1, %v2736_v10  ;;  %v3017_v39 = vmul.f32 0.1, %v2740_v24  ;;  %1570 = vst [vmem:[%s3532_s4 + $0x40] sm:$0xff] %v1506_v27  ;;  %vm1396_vm8 = vcmp.ge.f32.partialorder %v2704_v18, 0.0  ;;  %v1508_v52 = vsel %vm1380_vm10, %v2640_v23, %v2881_v59 }
 0x262   :  { %v3030_v17 = vmul.f32 0.1, %v2744_v32  ;;  %v3036_v38 = vmul.f32 0.1, %v2752_v53  ;;  %1571 = vst [vmem:[%s3532_s4 + $0x48] sm:$0xff] %v1507_v26  ;;  %vm1400_vm9 = vcmp.ge.f32.partialorder %v2720_v49, 0.0  ;;  %v1509_v59 = vsel %vm1381_vm11, %v2644_v37, %v2884_v45 }
 0x263   :  { %3723 = vst [vmem:[#allocation23_spill] sm:$0xff] %v3017_v39  ;;  %v3033_v39 = vmul.f32 0.1, %v2748_v60  ;;  %v3050_v27 = vmul.f32 0.1, %v2756_v22  ;;  %1572 = vst [vmem:[%s3532_s4 + $0x50] sm:$0xff] %v1508_v52  ;;  %v1510_v45 = vsel %vm1382_vm12, %v2648_v61, %v2894_v33  ;;  %v1511_v33 = vsel %vm1383_vm13, %v2652_v42, %v2897_v25 }
 0x264   :  { %3724 = vst [vmem:[#allocation27_spill] sm:$0xff] %v3036_v38  ;;  %v3053_v38 = vmul.f32 0.1, %v2760_v9  ;;  %v3056_v23 = vmul.f32 0.1, %v2764_v20  ;;  %vm1404_vm10 = vcmp.ge.f32.partialorder %v2736_v10, 0.0  ;;  %v1512_v25 = vsel %vm1384_vm14, %v2656_v46, %v2900_v19 }
 0x265   :  { %v3070_v26 = vmul.f32 0.1, %v2768_v51  ;;  %v3076_v37 = vmul.f32 0.1, %v2776_v43  ;;  %1573 = vst [vmem:[%s3532_s4 + $0x58] sm:$0xff] %v1509_v59  ;;  %vm1408_vm11 = vcmp.ge.f32.partialorder %v2752_v53, 0.0  ;;  %v1513_v19 = vsel %vm1385_vm15, %v2660_v55, %v2910_v57 }
 0x266   :  { %3725 = vst [vmem:[#allocation32_spill] sm:$0xff] %v3056_v23  ;;  %v3073_v23 = vmul.f32 0.1, %v2772_v35  ;;  %v3090_v52 = vmul.f32 0.1, %v2780_v41  ;;  %1574 = vst [vmem:[%s3532_s4 + $0x60] sm:$0xff] %v1510_v45  ;;  %v1514_v57 = vsel %vm1386_vm0, %v2664_v31, %v2913_v16 }
 0x267   :  { %3726 = vst [vmem:[#allocation22_spill] sm:$0xff] %v3070_v26  ;;  %3728 = vst [vmem:[#allocation20_spill] sm:$0xff] %v3076_v37  ;;  %v3093_v37 = vmul.f32 0.1, %v2784_v54  ;;  %vm1412_vm12 = vcmp.ge.f32.partialorder %v2768_v51, 0.0  ;;  %v3733_v59 = vld [vmem:[#allocation10_spill] sm:$0xff] }
 0x268   :  { %3727 = vst [vmem:[#allocation16_spill] sm:$0xff] %v3073_v23  ;;  %3729 = vst [vmem:[#allocation26_spill] sm:$0xff] %v3090_v52  ;;  %v3731_v23 = vld [vmem:[#allocation7_spill] sm:$0xff]  ;;  %v3737_v26 = vld [vmem:[#allocation8_spill] sm:$0xff]  ;;  %vm1416_vm13 = vcmp.ge.f32.partialorder %v2784_v54, 0.0  ;;  %vm3765_vm5 = vcmp.ge.f32.partialorder %v2684_v1, 0.0 }
 0x269   :  { %3730 = vst [vmem:[#allocation3_spill] sm:$0xff] %v3093_v37  ;;  %v3096_v61 = vmul.f32 0.1, %v3731_v23  ;;  %v3110_v37 = vmul.f32 0.1, %v3733_v59  ;;  %1575 = vst [vmem:[%s3532_s4 + $0x68] sm:$0xff] %v1511_v33 }
 0x26a   :  { %v3116_v42 = vmul.f32 0.1, %v3737_v26  ;;  %v3739_v45 = vld [vmem:[#allocation11_spill] sm:$0xff]  ;;  %v3743_v41 = vld [vmem:[#allocation21_spill] sm:$0xff]  ;;  %1576 = vst [vmem:[%s3532_s4 + $0x70] sm:$0xff] %v1512_v25  ;;  %vm1420_vm14 = vcmp.ge.f32.partialorder %v3737_v26, 0.0 }
 0x26b   :  { %3732 = vst [vmem:[#allocation4_spill] sm:$0xff] %v3096_v61  ;;  %3734 = vst [vmem:[#allocation5_spill] sm:$0xff] %v3110_v37  ;;  %v3735_v61 = vld [vmem:[#allocation13_spill] sm:$0xff]  ;;  %v3136_v46 = vmul.f32 0.1, %v3743_v41  ;;  %v3745_v33 = vld [vmem:[#allocation15_spill] sm:$0xff] }
 0x26c   :  { %v3113_v52 = vmul.f32 0.1, %v3735_v61  ;;  %3738 = vst [vmem:[#allocation10_spill] sm:$0xff] %v3116_v42  ;;  %v3741_v42 = vld [vmem:[#allocation17_spill] sm:$0xff]  ;;  %1577 = vst [vmem:[%s3532_s4 + $0x78] sm:$0xff] %v1513_v19  ;;  %vm1424_vm15 = vcmp.ge.f32.partialorder %v3745_v33, 0.0 }
 0x26d   :  { %v3133_v37 = vmul.f32 0.1, %v3741_v42  ;;  %3744 = vst [vmem:[#allocation17_spill] sm:$0xff] %v3136_v46  ;;  %v3747_v46 = vld [vmem:[#allocation19_spill] sm:$0xff]  ;;  %v3749_v61 = vld [vmem:[#allocation25_spill] sm:$0xff]  ;;  %v3751_v25 = vld [vmem:[#allocation14_spill] sm:$0xff] }
 0x26e   :  { %3736 = vst [vmem:[#allocation7_spill] sm:$0xff] %v3113_v52  ;;  %v3130_v52 = vmul.f32 0.1, %v3739_v45  ;;  %v3156_v55 = vmul.f32 0.1, %v3749_v61  ;;  %v3755_v41 = vld [vmem:[#allocation12_spill] sm:$0xff] }
 0x26f   :  { %3742 = vst [vmem:[#allocation11_spill] sm:$0xff] %v3133_v37  ;;  %v3150_v37 = vmul.f32 0.1, %v3745_v33  ;;  %v3176_v31 = vmul.f32 0.1, %v3755_v41  ;;  %v3757_v16 = vld [vmem:[#allocation33_spill] sm:$0xff] }
 0x270   :  { %3740 = vst [vmem:[#allocation8_spill] sm:$0xff] %v3130_v52  ;;  %v3153_v52 = vmul.f32 0.1, %v3747_v46  ;;  %3750 = vst [vmem:[#allocation35_spill] sm:$0xff] %v3156_v55  ;;  %v3753_v55 = vld [vmem:[#allocation9_spill] sm:$0xff]  ;;  %v1515_v19 = vsel %vm1387_vm1, %v2668_v28, %v3757_v16  ;;  %vm1429_vm4 = vcmp.ge.f32.partialorder %v3755_v41, 0.0 }
 0x271   :  { %3746 = vst [vmem:[#allocation15_spill] sm:$0xff] %v3150_v37  ;;  %v3173_v37 = vmul.f32 0.1, %v3753_v55  ;;  %3756 = vst [vmem:[#allocation12_spill] sm:$0xff] %v3176_v31  ;;  %vm1428_vm0 = vcmp.ge.f32.partialorder %v3753_v55, 0.0  ;;  %v3760_v61 = vld [vmem:[#allocation24_spill] sm:$0xff] }
 0x272   :  { %3748 = vst [vmem:[#allocation19_spill] sm:$0xff] %v3153_v52  ;;  %v3170_v52 = vmul.f32 0.1, %v3751_v25  ;;  %1578 = vst [vmem:[%s3532_s4 + $0x80] sm:$0xff] %v1514_v57  ;;  %v3758_v25 = vld [vmem:[#allocation18_spill] sm:$0xff]  ;;  %v1516_v57 = vsel %vm1388_vm2, %v2672_v58, %v2926_v2  ;;  %vm1432_vm1 = vcmp.ge.f32.partialorder %v3760_v61, 0.0  ;;  %v1519_v2 = vsel %vm3765_vm5, %v2684_v1, %v2942_v34 }
 0x273   :  { %3754 = vst [vmem:[#allocation9_spill] sm:$0xff] %v3173_v37  ;;  %v3190_v37 = vmul.f32 0.1, %v3758_v25  ;;  %v3196_v28 = vmul.f32 0.1, %v3760_v61  ;;  %1579 = vst [vmem:[%s3532_s4 + $0x88] sm:$0xff] %v1515_v19  ;;  %v1520_v19 = vsel %vm1392_vm6, %v2688_v6, %v2945_v14 }
 0x274   :  { %3752 = vst [vmem:[#allocation36_spill] sm:$0xff] %v3170_v52  ;;  %v3759_v52 = vld [vmem:[#allocation30_spill] sm:$0xff]  ;;  %v3762_v16 = vld [vmem:[#allocation28_spill] sm:$0xff]  ;;  %vm3764_vm2 = vcmp.ge.f32.partialorder %v2680_v56, 0.0  ;;  %1580 = vst [vmem:[%s3532_s4 + $0x90] sm:$0xff] %v1516_v57  ;;  %vm3769_vm5 = vcmp.ge.f32.partialorder %v2700_v13, 0.0 }
 0x275   :  { %v3193_v31 = vmul.f32 0.1, %v3759_v52  ;;  %3761 = vst [vmem:[#allocation33_spill] sm:$0xff] %v3196_v28  ;;  %vm1433_vm7 = vcmp.ge.f32.partialorder %v3762_v16, 0.0  ;;  %v3208_v25 = vmul.f32 0.1, %v3762_v16  ;;  %v1517_v28 = vsel %vm1389_vm3, %v2676_v50, %v2929_v48 }
 0x276   :  { %v3763_v52 = vld [vmem:[#allocation34_spill] sm:$0xff]  ;;  %v3766_v50 = vld [vmem:[#allocation31_spill] sm:$0xff]  ;;  %vm3767_vm3 = vcmp.ge.f32.partialorder %v2692_v62, 0.0  ;;  %v1523_v1 = vsel %vm3769_vm5, %v2700_v13, %v2961_v47  ;;  %1581 = vst [vmem:[%s3532_s4 + $0x98] sm:$0xff] %v1517_v28  ;;  %1583 = vst [vmem:[%s3532_s4 + $0xa8] sm:$0xff] %v1519_v2  ;;  %vm3771_vm6 = vcmp.ge.f32.partialorder %v2708_v3, 0.0 }
 0x277   :  { %v1518_v58 = vsel %vm3764_vm2, %v2680_v56, %v3763_v52  ;;  %v1521_v48 = vsel %vm3767_vm3, %v2692_v62, %v3766_v50  ;;  %vm3768_vm2 = vcmp.ge.f32.partialorder %v2696_v4, 0.0  ;;  %v3770_v6 = vld [vmem:[#allocation29_spill] sm:$0xff]  ;;  %vm3772_vm3 = vcmp.ge.f32.partialorder %v2712_v11, 0.0  ;;  %1584 = vst [vmem:[%s3532_s4 + $0xb0] sm:$0xff] %v1520_v19  ;;  %1587 = vst [vmem:[%s3532_s4 + $0xc8] sm:$0xff] %v1523_v1  ;;  %v3813_v50 = vld [vmem:[#allocation35_spill] sm:$0xff] }
 0x278   :  { %v1522_v56 = vsel %vm3768_vm2, %v2696_v4, %v2958_v29  ;;  %1582 = vst [vmem:[%s3532_s4 + $0xa0] sm:$0xff] %v1518_v58  ;;  %v1524_v62 = vsel %vm1396_vm8, %v2704_v18, %v3770_v6  ;;  %v1525_v4 = vsel %vm3771_vm6, %v2708_v3, %v2974_v8  ;;  %v1526_v13 = vsel %vm3772_vm3, %v2712_v11, %v2977_v5  ;;  %v3784_v29 = vld [vmem:[#allocation32_spill] sm:$0xff]  ;;  %v3807_v57 = vld [vmem:[#allocation17_spill] sm:$0xff]  ;;  %v3817_v6 = vld [vmem:[#allocation14_spill] sm:$0xff] }
 0x279   :  { %vm3773_vm2 = vcmp.ge.f32.partialorder %v2716_v36, 0.0  ;;  %1585 = vst [vmem:[%s3532_s4 + $0xb8] sm:$0xff] %v1521_v48  ;;  %1586 = vst [vmem:[%s3532_s4 + $0xc0] sm:$0xff] %v1522_v56  ;;  %v1528_v18 = vsel %vm1400_vm9, %v2720_v49, %v2992_v15  ;;  %vm3774_vm8 = vcmp.ge.f32.partialorder %v2724_v63, 0.0  ;;  %vm3775_vm5 = vcmp.ge.f32.partialorder %v2728_v21, 0.0  ;;  %v3789_v8 = vld [vmem:[#allocation20_spill] sm:$0xff] }
 0x27a   :  { %v1527_v34 = vsel %vm3773_vm2, %v2716_v36, %v2980_v30  ;;  %v1529_v3 = vsel %vm3774_vm8, %v2724_v63, %v2995_v0  ;;  %v1530_v11 = vsel %vm3775_vm5, %v2728_v21, %v2998_v44  ;;  %vm3776_vm6 = vcmp.ge.f32.partialorder %v2732_v40, 0.0  ;;  %1588 = vst [vmem:[%s3532_s4 + $0xd0] sm:$0xff] %v1524_v62  ;;  %1589 = vst [vmem:[%s3532_s4 + $0xd8] sm:$0xff] %v1525_v4  ;;  %v3777_v63 = vld [vmem:[#allocation23_spill] sm:$0xff]  ;;  %v3791_v30 = vld [vmem:[#allocation26_spill] sm:$0xff] }
 0x27b   :  { %v1531_v36 = vsel %vm3776_vm6, %v2732_v40, %v3011_v7  ;;  %1590 = vst [vmem:[%s3532_s4 + $0xe0] sm:$0xff] %v1526_v13  ;;  %1591 = vst [vmem:[%s3532_s4 + $0xe8] sm:$0xff] %v1527_v34  ;;  %v1532_v49 = vsel %vm1404_vm10, %v2736_v10, %v3014_v12  ;;  %vm3778_vm9 = vcmp.ge.f32.partialorder %v2740_v24, 0.0  ;;  %vm3779_vm3 = vcmp.ge.f32.partialorder %v2744_v32, 0.0  ;;  %v3781_v10 = vld [vmem:[#allocation27_spill] sm:$0xff]  ;;  %v3792_v15 = vld [vmem:[#allocation6_spill] sm:$0xff] }
 0x27c   :  { %v1533_v21 = vsel %vm3778_vm9, %v2740_v24, %v3777_v63  ;;  %v1534_v40 = vsel %vm3779_vm3, %v2744_v32, %v3030_v17  ;;  %vm3780_vm2 = vcmp.ge.f32.partialorder %v2748_v60, 0.0  ;;  %1592 = vst [vmem:[%s3532_s4 + $0xf0] sm:$0xff] %v1528_v18  ;;  %1593 = vst [vmem:[%s3532_s4 + $0xf8] sm:$0xff] %v1529_v3  ;;  %v1536_v24 = vsel %vm1408_vm11, %v2752_v53, %v3781_v10  ;;  %v3786_v53 = vld [vmem:[#allocation22_spill] sm:$0xff]  ;;  %v3797_v7 = vld [vmem:[#allocation5_spill] sm:$0xff] }
 0x27d   :  { %v1535_v14 = vsel %vm3780_vm2, %v2748_v60, %v3033_v39  ;;  %1594 = vst [vmem:[%s3532_s4 + $0x100] sm:$0xff] %v1530_v11  ;;  %1595 = vst [vmem:[%s3532_s4 + $0x108] sm:$0xff] %v1531_v36  ;;  %vm3782_vm10 = vcmp.ge.f32.partialorder %v2756_v22, 0.0  ;;  %vm3783_vm8 = vcmp.ge.f32.partialorder %v2760_v9, 0.0  ;;  %vm3785_vm5 = vcmp.ge.f32.partialorder %v2764_v20, 0.0  ;;  %v3799_v39 = vld [vmem:[#allocation7_spill] sm:$0xff] }
 0x27e   :  { %v1537_v32 = vsel %vm3782_vm10, %v2756_v22, %v3050_v27  ;;  %v1538_v60 = vsel %vm3783_vm8, %v2760_v9, %v3053_v38  ;;  %v1539_v47 = vsel %vm3785_vm5, %v2764_v20, %v3784_v29  ;;  %1596 = vst [vmem:[%s3532_s4 + $0x110] sm:$0xff] %v1532_v49  ;;  %1597 = vst [vmem:[%s3532_s4 + $0x118] sm:$0xff] %v1533_v21  ;;  %v3787_v9 = vld [vmem:[#allocation16_spill] sm:$0xff]  ;;  %vm3788_vm11 = vcmp.ge.f32.partialorder %v2772_v35, 0.0  ;;  %v3800_v17 = vld [vmem:[#allocation13_spill] sm:$0xff] }
 0x27f   :  { %1598 = vst [vmem:[%s3532_s4 + $0x120] sm:$0xff] %v1534_v40  ;;  %1599 = vst [vmem:[%s3532_s4 + $0x128] sm:$0xff] %v1535_v14  ;;  %v1540_v22 = vsel %vm1412_vm12, %v2768_v51, %v3786_v53  ;;  %v1541_v20 = vsel %vm3788_vm11, %v2772_v35, %v3787_v9  ;;  %vm3790_vm6 = vcmp.ge.f32.partialorder %v2776_v43, 0.0  ;;  %vm3793_vm9 = vcmp.ge.f32.partialorder %v3792_v15, 0.0  ;;  %v3794_v51 = vld [vmem:[#allocation3_spill] sm:$0xff]  ;;  %v3808_v58 = vld [vmem:[#allocation21_spill] sm:$0xff] }
 0x280   :  { %v1542_v5 = vsel %vm3790_vm6, %v2776_v43, %v3789_v8  ;;  %v1543_v0 = vsel %vm3793_vm9, %v3792_v15, %v3791_v30  ;;  %1600 = vst [vmem:[%s3532_s4 + $0x130] sm:$0xff] %v1536_v24  ;;  %1601 = vst [vmem:[%s3532_s4 + $0x138] sm:$0xff] %v1537_v32  ;;  %v1544_v35 = vsel %vm1416_vm13, %v2784_v54, %v3794_v51  ;;  %v3795_v43 = vld [vmem:[#allocation4_spill] sm:$0xff]  ;;  %vm3796_vm12 = vcmp.ge.f32.partialorder %v3731_v23, 0.0  ;;  %v3802_v54 = vld [vmem:[#allocation10_spill] sm:$0xff] }
 0x281   :  { %1602 = vst [vmem:[%s3532_s4 + $0x140] sm:$0xff] %v1538_v60  ;;  %1603 = vst [vmem:[%s3532_s4 + $0x148] sm:$0xff] %v1539_v47  ;;  %v1545_v44 = vsel %vm3796_vm12, %v3731_v23, %v3795_v43  ;;  %vm3798_vm3 = vcmp.ge.f32.partialorder %v3733_v59, 0.0  ;;  %vm3801_vm2 = vcmp.ge.f32.partialorder %v3800_v17, 0.0  ;;  %v1548_v27 = vsel %vm1420_vm14, %v3737_v26, %v3802_v54  ;;  %v3803_v23 = vld [vmem:[#allocation8_spill] sm:$0xff]  ;;  %v3810_v26 = vld [vmem:[#allocation15_spill] sm:$0xff] }
 0x282   :  { %v1546_v12 = vsel %vm3798_vm3, %v3733_v59, %v3797_v7  ;;  %v1547_v38 = vsel %vm3801_vm2, %v3800_v17, %v3799_v39  ;;  %1604 = vst [vmem:[%s3532_s4 + $0x150] sm:$0xff] %v1540_v22  ;;  %1605 = vst [vmem:[%s3532_s4 + $0x158] sm:$0xff] %v1541_v20  ;;  %vm3804_vm13 = vcmp.ge.f32.partialorder %v3739_v45, 0.0  ;;  %v3805_v59 = vld [vmem:[#allocation11_spill] sm:$0xff]  ;;  %vm3806_vm10 = vcmp.ge.f32.partialorder %v3741_v42, 0.0  ;;  %v3814_v48 = vld [vmem:[#allocation25_spill] sm:$0xff] }
 0x283   :  { %1606 = vst [vmem:[%s3532_s4 + $0x160] sm:$0xff] %v1542_v5  ;;  %1607 = vst [vmem:[%s3532_s4 + $0x168] sm:$0xff] %v1543_v0  ;;  %v1549_v52 = vsel %vm3804_vm13, %v3739_v45, %v3803_v23  ;;  %v1550_v28 = vsel %vm3806_vm10, %v3741_v42, %v3805_v59  ;;  %vm3809_vm8 = vcmp.ge.f32.partialorder %v3808_v58, 0.0  ;;  %v1552_v42 = vsel %vm1424_vm15, %v3745_v33, %v3810_v26  ;;  %v3811_v45 = vld [vmem:[#allocation19_spill] sm:$0xff]  ;;  %v3816_v1 = vld [vmem:[#allocation36_spill] sm:$0xff] }
 0x284   :  { %v1551_v2 = vsel %vm3809_vm8, %v3808_v58, %v3807_v57  ;;  %1608 = vst [vmem:[%s3532_s4 + $0x170] sm:$0xff] %v1544_v35  ;;  %1609 = vst [vmem:[%s3532_s4 + $0x178] sm:$0xff] %v1545_v44  ;;  %vm3812_vm14 = vcmp.ge.f32.partialorder %v3747_v46, 0.0  ;;  %vm3815_vm5 = vcmp.ge.f32.partialorder %v3814_v48, 0.0  ;;  %vm3818_vm11 = vcmp.ge.f32.partialorder %v3817_v6, 0.0  ;;  %v3820_v4 = vld [vmem:[#allocation12_spill] sm:$0xff] }
 0x285   :  { %1610 = vst [vmem:[%s3532_s4 + $0x180] sm:$0xff] %v1546_v12  ;;  %1611 = vst [vmem:[%s3532_s4 + $0x188] sm:$0xff] %v1547_v38  ;;  %v1553_v19 = vsel %vm3812_vm14, %v3747_v46, %v3811_v45  ;;  %v1554_v56 = vsel %vm3815_vm5, %v3814_v48, %v3813_v50  ;;  %v1555_v62 = vsel %vm3818_vm11, %v3817_v6, %v3816_v1  ;;  %v3819_v46 = vld [vmem:[#allocation9_spill] sm:$0xff]  ;;  %v3821_v34 = vld [vmem:[#allocation18_spill] sm:$0xff] }
 0x286   :  { %1612 = vst [vmem:[%s3532_s4 + $0x190] sm:$0xff] %v1548_v27  ;;  %1613 = vst [vmem:[%s3532_s4 + $0x198] sm:$0xff] %v1549_v52  ;;  %v1556_v33 = vsel %vm1428_vm0, %v3753_v55, %v3819_v46  ;;  %v1557_v13 = vsel %vm1429_vm4, %v3755_v41, %v3820_v4  ;;  %vm3822_vm15 = vcmp.ge.f32.partialorder %v3821_v34, 0.0  ;;  %v3823_v3 = vld [vmem:[#allocation30_spill] sm:$0xff]  ;;  %v3825_v41 = vld [vmem:[#allocation33_spill] sm:$0xff]  ;;  %v1561_v55 = vsel %vm1433_vm7, %v3762_v16, %v3208_v25 }
 0x287   :  { %1614 = vst [vmem:[%s3532_s4 + $0x1a0] sm:$0xff] %v1550_v28  ;;  %1615 = vst [vmem:[%s3532_s4 + $0x1a8] sm:$0xff] %v1551_v2  ;;  %v1558_v18 = vsel %vm3822_vm15, %v3821_v34, %v3190_v37  ;;  %vm3824_vm6 = vcmp.ge.f32.partialorder %v3823_v3, 0.0  ;;  %v1560_v37 = vsel %vm1432_vm1, %v3760_v61, %v3825_v41 }
 0x288   :  { %v1559_v11 = vsel %vm3824_vm6, %v3823_v3, %v3193_v31  ;;  %1616 = vst [vmem:[%s3532_s4 + $0x1b0] sm:$0xff] %v1552_v42  ;;  %1617 = vst [vmem:[%s3532_s4 + $0x1b8] sm:$0xff] %v1553_v19 }
 0x289   :  { %1618 = vst [vmem:[%s3532_s4 + $0x1c0] sm:$0xff] %v1554_v56  ;;  %1619 = vst [vmem:[%s3532_s4 + $0x1c8] sm:$0xff] %v1555_v62 }
 0x28a   :  { %1620 = vst [vmem:[%s3532_s4 + $0x1d0] sm:$0xff] %v1556_v33  ;;  %1621 = vst [vmem:[%s3532_s4 + $0x1d8] sm:$0xff] %v1557_v13 }
 0x28b   :  { %1622 = vst [vmem:[%s3532_s4 + $0x1e0] sm:$0xff] %v1558_v18  ;;  %1623 = vst [vmem:[%s3532_s4 + $0x1e8] sm:$0xff] %v1559_v11 }
 0x28c   :  { %1624 = vst [vmem:[%s3532_s4 + $0x1f0] sm:$0xff] %v1560_v37  ;;  %1625 = vst [vmem:[%s3532_s4 + $0x1f8] sm:$0xff] %v1561_v55 }

// kernel: net_forward.17
= control target key start
LH: loop header
LB: loop body
LE: loop exit
PB: predicated region body
PF: predicated region fallthrough
CT: control target
= control target key end

     0   :  { %s1403_s1 = inlined_call_operand.vmem [shape: bf16[384,128], index: 1, kind: input, shape index: {}]   ;;  %s1404_s0 = inlined_call_operand.vmem [shape: bf16[128,384], index: 0, kind: input, shape index: {}]   ;;  %s1405_s2 = inlined_call_operand.vmem [shape: f32[1,128], index: 2, kind: input, shape index: {}]   ;;  %s1406_s3 = inlined_call_operand.vmem [shape: f32[1,128], index: 3, kind: input, shape index: {}]   ;;  %s1407_s4 = inlined_call_operand.vmem [shape: f32[128,128], index: 4, kind: output, shape index: {}]  }
   0x1   :  { %v1007_v0 = vld [vmem:[%s1403_s1 + $0x40] sm:$0xff]   ;;  %v1010_v3 = vld [vmem:[%s1403_s1 + $0x48] sm:$0xff]   ;;  %v1013_v6 = vld [vmem:[%s1403_s1 + $0x50] sm:$0xff]  }
   0x2   :  { %v1008_v1 = vld [vmem:[%s1403_s1] sm:$0xff]   ;;  %895 = vmatprep.subr.bf16.mxu0 %v1007_v0  ;;  %v1011_v4 = vld [vmem:[%s1403_s1 + $0x8] sm:$0xff]   ;;  %v1014_v7 = vld [vmem:[%s1403_s1 + $0x10] sm:$0xff]  }
   0x3   :  { %v1009_v2 = vld [vmem:[%s1403_s1 + $0x80] sm:$0xff]   ;;  %896 = vmatpush3.bf16.msra.mxu0 %v1008_v1  ;;  %v1012_v5 = vld [vmem:[%s1403_s1 + $0x88] sm:$0xff]   ;;  %v1015_v8 = vld [vmem:[%s1403_s1 + $0x90] sm:$0xff]  }
   0x4   :  { %975 = vmatprep.subr.bf16.mxu1 %v1009_v2  ;;  %897 = vmatprep.subr.bf16.mxu0 %v1010_v3  ;;  %v1016_v9 = vld [vmem:[%s1403_s1 + $0x58] sm:$0xff]   ;;  %v1019_v12 = vld [vmem:[%s1403_s1 + $0x60] sm:$0xff]   ;;  %v1022_v15 = vld [vmem:[%s1403_s1 + $0x68] sm:$0xff]  }
   0x5   :  { %976 = vmatpush3.bf16.msra.mxu1 %v1009_v2  ;;  %v1017_v10 = vld [vmem:[%s1403_s1 + $0x18] sm:$0xff]   ;;  %v1021_v13 = vld [vmem:[%s1403_s1 + $0xa0] sm:$0xff]   ;;  %v1024_v16 = vld [vmem:[%s1403_s1 + $0xa8] sm:$0xff]  }
   0x6   :  { %977 = vmatprep.subr.bf16.mxu1 %v1012_v5  ;;  %v1018_v11 = vld [vmem:[%s1403_s1 + $0x98] sm:$0xff]   ;;  %v1020_v14 = vld [vmem:[%s1403_s1 + $0x20] sm:$0xff]   ;;  %v1023_v17 = vld [vmem:[%s1403_s1 + $0x28] sm:$0xff]  }
   0x7   :  { %898 = vmatpush3.bf16.msra.mxu0 %v1011_v4  ;;  %v1025_v18 = vld [vmem:[%s1403_s1 + $0x70] sm:$0xff]   ;;  %v1028_v21 = vld [vmem:[%s1403_s1 + $0x78] sm:$0xff]   ;;  %v1031_v26 = vld [vmem:[%s1404_s0] ss:$12 sps:$4 sm:$0xff]  }
   0x8   :  { %899 = vmatprep.subr.bf16.mxu0 %v1013_v6  ;;  %v1026_v19 = vld [vmem:[%s1403_s1 + $0x30] sm:$0xff]   ;;  %v1030_v22 = vld [vmem:[%s1403_s1 + $0xb8] sm:$0xff]   ;;  %v1035_v28 = vld [vmem:[%s1404_s0 + $0x20] ss:$12 sps:$4 sm:$0xff]  }
   0x9   :  { %978 = vmatpush3.bf16.msra.mxu1 %v1012_v5  ;;  %v1027_v20 = vld [vmem:[%s1403_s1 + $0xb0] sm:$0xff]   ;;  %v1029_v25 = vld [vmem:[%s1403_s1 + $0x38] sm:$0xff]   ;;  %v1051_v36 = vld [vmem:[%s1404_s0 + $0x80] ss:$12 sps:$4 sm:$0xff]  }
   0xa   :  { %979 = vmatprep.subr.bf16.mxu1 %v1015_v8  ;;  %v1033_v23 = vld [vmem:[%s1404_s0 + $0x4] ss:$12 sps:$4 sm:$0xff]   ;;  %v1034_v24 = vld [vmem:[%s1404_s0 + $0x8] ss:$12 sps:$4 sm:$0xff]   ;;  %v1044_v35 = vld [vmem:[%s1404_s0 + $0x4c] ss:$12 sps:$4 sm:$0xff]  }
   0xb   :  { %900 = vmatpush3.bf16.msra.mxu0 %v1014_v7  ;;  %438 = vmatprep.mubr.bf16.mxu0 %v1033_v23  ;;  %v1036_v27 = vld [vmem:[%s1404_s0 + $0x1c] ss:$12 sps:$4 sm:$0xff]   ;;  %v1042_v29 = vld [vmem:[%s1404_s0 + $0x38] ss:$12 sps:$4 sm:$0xff]   ;;  %v1039_v31 = vld [vmem:[%s1404_s0 + $0x34] ss:$12 sps:$4 sm:$0xff]  }
   0xc   :  { %901 = vmatprep.subr.bf16.mxu0 %v1016_v9  ;;  %991 = vmatprep.mubr.bf16.mxu1 %v1034_v24  ;;  %v1038_v30 = vld [vmem:[%s1404_s0 + $0x18] ss:$12 sps:$4 sm:$0xff]   ;;  %v1043_v32 = vld [vmem:[%s1404_s0 + $0x50] ss:$12 sps:$4 sm:$0xff]   ;;  %v1050_v33 = vld [vmem:[%s1404_s0 + $0x68] ss:$12 sps:$4 sm:$0xff]  }
   0xd   :  { %980 = vmatpush3.bf16.msra.mxu1 %v1015_v8  ;;  %v1041_v34 = vld [vmem:[%s1404_s0 + $0x30] ss:$12 sps:$4 sm:$0xff]   ;;  %v1058_v37 = vld [vmem:[%s1404_s0 + $0x98] ss:$12 sps:$4 sm:$0xff]   ;;  %v1046_v38 = vld [vmem:[%s1404_s0 + $0x48] ss:$12 sps:$4 sm:$0xff]  }
   0xe   :  { %981 = vmatprep.subr.bf16.mxu1 %v1018_v11  ;;  %v1047_v39 = vld [vmem:[%s1404_s0 + $0x64] ss:$12 sps:$4 sm:$0xff]   ;;  %v1049_v41 = vld [vmem:[%s1404_s0 + $0x60] ss:$12 sps:$4 sm:$0xff]   ;;  %v1052_v42 = vld [vmem:[%s1404_s0 + $0x7c] ss:$12 sps:$4 sm:$0xff]  }
   0xf   :  { %902 = vmatpush3.bf16.msra.mxu0 %v1017_v10  ;;  %v1059_v40 = vld [vmem:[%s1404_s0 + $0xb0] ss:$12 sps:$4 sm:$0xff]   ;;  %v1054_v43 = vld [vmem:[%s1404_s0 + $0x78] ss:$12 sps:$4 sm:$0xff]   ;;  %v1055_v44 = vld [vmem:[%s1404_s0 + $0x94] ss:$12 sps:$4 sm:$0xff]  }
  0x10   :  { %903 = vmatprep.subr.bf16.mxu0 %v1019_v12  ;;  %v1057_v45 = vld [vmem:[%s1404_s0 + $0x90] ss:$12 sps:$4 sm:$0xff]   ;;  %v1060_v46 = vld [vmem:[%s1404_s0 + $0xac] ss:$12 sps:$4 sm:$0xff]   ;;  %v1062_v47 = vld [vmem:[%s1404_s0 + $0xa8] ss:$12 sps:$4 sm:$0xff]  }
  0x11   :  { %982 = vmatpush3.bf16.msra.mxu1 %v1018_v11 }
  0x12   :  { %983 = vmatprep.subr.bf16.mxu1 %v1021_v13 }
  0x13   :  { %904 = vmatpush3.bf16.msra.mxu0 %v1020_v14 }
  0x14   :  { %905 = vmatprep.subr.bf16.mxu0 %v1022_v15 }
  0x15   :  { %984 = vmatpush3.bf16.msra.mxu1 %v1021_v13 }
  0x16   :  { %985 = vmatprep.subr.bf16.mxu1 %v1024_v16 }
  0x17   :  { %906 = vmatpush3.bf16.msra.mxu0 %v1023_v17 }
  0x18   :  { %907 = vmatprep.subr.bf16.mxu0 %v1025_v18 }
  0x19   :  { %986 = vmatpush3.bf16.msra.mxu1 %v1024_v16 }
  0x1a   :  { %987 = vmatprep.subr.bf16.mxu1 %v1027_v20 }
  0x1b   :  { %908 = vmatpush3.bf16.msra.mxu0 %v1026_v19 }
  0x1c   :  { %909 = vmatprep.subr.bf16.mxu0 %v1028_v21 }
  0x1d   :  { %988 = vmatpush3.bf16.msra.mxu1 %v1027_v20 }
  0x1e   :  { %989 = vmatprep.subr.bf16.mxu1 %v1030_v22 }
  0x1f   :  { %910 = vmatpush3.bf16.msra.mxu0 %v1029_v25 }
  0x21   :  { %990 = vmatpush3.bf16.msra.mxu1 %v1030_v22 }
  0x22   :  { %439 = vmatmul.mubr.bf16.vlgmr.msra.gmra.mrb[0].mxu0 %v1031_v26 }
  0x23   :  { %446 = vmatprep.mubr.bf16.mxu0 %v1036_v27 }
  0x24   :  { %992 = vmatmul.mubr.bf16.vlgmr.msra.gmra.mrb[0].mxu1 %v1035_v28 }
  0x25   :  { %995 = vmatprep.mubr.bf16.mxu1 %v1042_v29 }
  0x2a   :  { %447 = vmatmul.mubr.bf16.gmra.mrb[4].mxu0 %v1038_v30 }
  0x2b   :  { %454 = vmatprep.mubr.bf16.mxu0 %v1039_v31 }
  0x2c   :  { %996 = vmatmul.mubr.bf16.gmra.mrb[4].mxu1 %v1043_v32 }
  0x2d   :  { %999 = vmatprep.mubr.bf16.mxu1 %v1050_v33 }
  0x32   :  { %455 = vmatmul.mubr.bf16.gmra.mrb[8].mxu0 %v1041_v34 }
  0x33   :  { %462 = vmatprep.mubr.bf16.mxu0 %v1044_v35 }
  0x34   :  { %1000 = vmatmul.mubr.bf16.gmra.mrb[8].mxu1 %v1051_v36 }
  0x35   :  { %1003 = vmatprep.mubr.bf16.mxu1 %v1058_v37 }
  0x3a   :  { %463 = vmatmul.mubr.bf16.gmra.mrb[12].mxu0 %v1046_v38 }
  0x3b   :  { %470 = vmatprep.mubr.bf16.mxu0 %v1047_v39 }
  0x3c   :  { %1004 = vmatmul.mubr.bf16.gmra.mrb[12].mxu1 %v1059_v40 }
  0x42   :  { %471 = vmatmul.mubr.bf16.gmra.mrb[16].mxu0 %v1049_v41 }
  0x43   :  { %478 = vmatprep.mubr.bf16.mxu0 %v1052_v42 }
  0x4a   :  { %479 = vmatmul.mubr.bf16.gmra.mrb[20].mxu0 %v1054_v43 }
  0x4b   :  { %486 = vmatprep.mubr.bf16.mxu0 %v1055_v44 }
  0x52   :  { %487 = vmatmul.mubr.bf16.gmra.mrb[24].mxu0 %v1057_v45 }
  0x53   :  { %494 = vmatprep.mubr.bf16.mxu0 %v1060_v46 }
  0x5a   :  { %495 = vmatmul.mubr.bf16.gmra.mrb[28].mxu0 %v1062_v47 }
  0xf5   :  { %v911_v48 = vpop.f32.mrb[0].mxu0 }
  0xf6   :  { %v912_v49 = vpop.f32.mrb[1].mxu0 }
  0xf7   :  { %v913_v50 = vadd.f32 %v912_v49, %v911_v48  ;;  %v914_v51 = vpop.f32.mrb[2].mxu0  ;;  %v993_v52 = vpop.f32.mrb[0].mxu1 }
  0xf8   :  { %v915_v53 = vpop.f32.mrb[3].mxu0  ;;  %v537_v54 = vpop.f32.mrb[1].mxu1 }
  0xf9   :  { %v916_v55 = vadd.f32 %v915_v53, %v914_v51  ;;  %v1234_v56 = vadd.f32 %v913_v50, %v537_v54  ;;  %v994_v57 = vpop.f32.mrb[2].mxu1 }
  0xfa   :  { %v540_v58 = vpop.f32.mrb[3].mxu1 }
  0xfb   :  { %v1236_v59 = vadd.f32 %v916_v55, %v540_v58 }
  0xfd   :  { %v917_v60 = vpop.f32.mrb[4].mxu0  ;;  %v651_v20 = vadd.f32 %v1236_v59, %v1234_v56 }
  0xfe   :  { %v918_v61 = vpop.f32.mrb[5].mxu0 }
  0xff   :  { %v919_v62 = vadd.f32 %v918_v61, %v917_v60  ;;  %v920_v63 = vpop.f32.mrb[6].mxu0  ;;  %v997_v0 = vpop.f32.mrb[4].mxu1 }
 0x100   :  { %v921_v1 = vpop.f32.mrb[7].mxu0  ;;  %v553_v2 = vpop.f32.mrb[5].mxu1 }
 0x101   :  { %v1238_v3 = vadd.f32 %v993_v52, %v919_v62  ;;  %v922_v4 = vadd.f32 %v921_v1, %v920_v63  ;;  %v998_v5 = vpop.f32.mrb[6].mxu1 }
 0x102   :  { %v556_v6 = vpop.f32.mrb[7].mxu1 }
 0x103   :  { %v1240_v7 = vadd.f32 %v994_v57, %v922_v4  ;;  %v652_v23 = vadd.f32 %v651_v20, %v1238_v3 }
 0x105   :  { %v923_v8 = vpop.f32.mrb[8].mxu0  ;;  %v653_v33 = vadd.f32 %v652_v23, %v1240_v7 }
 0x106   :  { %v924_v9 = vpop.f32.mrb[9].mxu0 }
 0x107   :  { %v925_v10 = vadd.f32 %v924_v9, %v923_v8  ;;  %v926_v11 = vpop.f32.mrb[10].mxu0  ;;  %v1001_v12 = vpop.f32.mrb[8].mxu1 }
 0x108   :  { %v927_v13 = vpop.f32.mrb[11].mxu0  ;;  %v569_v14 = vpop.f32.mrb[9].mxu1 }
 0x109   :  { %v928_v15 = vadd.f32 %v927_v13, %v926_v11  ;;  %v1242_v16 = vadd.f32 %v925_v10, %v553_v2  ;;  %v1002_v17 = vpop.f32.mrb[10].mxu1 }
 0x10a   :  { %v572_v18 = vpop.f32.mrb[11].mxu1 }
 0x10b   :  { %v1244_v19 = vadd.f32 %v928_v15, %v556_v6  ;;  %v654_v35 = vadd.f32 %v653_v33, %v1242_v16 }
 0x10d   :  { %v929_v21 = vpop.f32.mrb[12].mxu0  ;;  %v655_v41 = vadd.f32 %v654_v35, %v1244_v19 }
 0x10e   :  { %v930_v22 = vpop.f32.mrb[13].mxu0 }
 0x10f   :  { %v931_v24 = vadd.f32 %v930_v22, %v929_v21  ;;  %v932_v25 = vpop.f32.mrb[14].mxu0  ;;  %v1005_v26 = vpop.f32.mrb[12].mxu1 }
 0x110   :  { %v933_v27 = vpop.f32.mrb[15].mxu0  ;;  %v585_v28 = vpop.f32.mrb[13].mxu1 }
 0x111   :  { %v1249_v29 = vadd.f32 %v997_v0, %v931_v24  ;;  %v934_v30 = vadd.f32 %v933_v27, %v932_v25  ;;  %v1006_v31 = vpop.f32.mrb[14].mxu1 }
 0x112   :  { %v588_v32 = vpop.f32.mrb[15].mxu1 }
 0x113   :  { %v1252_v34 = vadd.f32 %v998_v5, %v934_v30  ;;  %v656_v44 = vadd.f32 %v655_v41, %v1249_v29 }
 0x115   :  { %v935_v36 = vpop.f32.mrb[16].mxu0  ;;  %v657_v48 = vadd.f32 %v656_v44, %v1252_v34 }
 0x116   :  { %v936_v37 = vpop.f32.mrb[17].mxu0 }
 0x117   :  { %v937_v38 = vadd.f32 %v936_v37, %v935_v36  ;;  %v938_v39 = vpop.f32.mrb[18].mxu0 }
 0x118   :  { %v939_v40 = vpop.f32.mrb[19].mxu0 }
 0x119   :  { %v940_v42 = vadd.f32 %v939_v40, %v938_v39  ;;  %v1256_v43 = vadd.f32 %v937_v38, %v569_v14 }
 0x11b   :  { %v1259_v45 = vadd.f32 %v940_v42, %v572_v18  ;;  %v658_v52 = vadd.f32 %v657_v48, %v1256_v43 }
 0x11d   :  { %v941_v46 = vpop.f32.mrb[20].mxu0  ;;  %v659_v57 = vadd.f32 %v658_v52, %v1259_v45 }
 0x11e   :  { %v942_v47 = vpop.f32.mrb[21].mxu0 }
 0x11f   :  { %v943_v49 = vadd.f32 %v942_v47, %v941_v46  ;;  %v944_v50 = vpop.f32.mrb[22].mxu0 }
 0x120   :  { %v945_v51 = vpop.f32.mrb[23].mxu0 }
 0x121   :  { %v1263_v53 = vadd.f32 %v1001_v12, %v943_v49  ;;  %v946_v54 = vadd.f32 %v945_v51, %v944_v50 }
 0x123   :  { %v1265_v55 = vadd.f32 %v1002_v17, %v946_v54  ;;  %v660_v61 = vadd.f32 %v659_v57, %v1263_v53 }
 0x125   :  { %v947_v58 = vpop.f32.mrb[24].mxu0  ;;  %v661_v4 = vadd.f32 %v660_v61, %v1265_v55 }
 0x126   :  { %v948_v60 = vpop.f32.mrb[25].mxu0 }
 0x127   :  { %v949_v62 = vadd.f32 %v948_v60, %v947_v58  ;;  %v950_v63 = vpop.f32.mrb[26].mxu0 }
 0x128   :  { %v951_v0 = vpop.f32.mrb[27].mxu0 }
 0x129   :  { %v952_v1 = vadd.f32 %v951_v0, %v950_v63  ;;  %v1269_v2 = vadd.f32 %v949_v62, %v585_v28 }
 0x12b   :  { %v1272_v5 = vadd.f32 %v952_v1, %v588_v32  ;;  %v662_v6 = vadd.f32 %v661_v4, %v1269_v2 }
 0x12d   :  { %v953_v8 = vpop.f32.mrb[28].mxu0  ;;  %v663_v13 = vadd.f32 %v662_v6, %v1272_v5 }
 0x12e   :  { %v954_v9 = vpop.f32.mrb[29].mxu0 }
 0x12f   :  { %v955_v10 = vadd.f32 %v954_v9, %v953_v8  ;;  %v956_v11 = vpop.f32.mrb[30].mxu0 }
 0x130   :  { %v957_v12 = vpop.f32.mrb[31].mxu0 }
 0x131   :  { %v1276_v14 = vadd.f32 %v1005_v26, %v955_v10  ;;  %v958_v15 = vadd.f32 %v957_v12, %v956_v11 }
 0x133   :  { %v664_v17 = vadd.f32 %v663_v13, %v1276_v14  ;;  %v1279_v18 = vadd.f32 %v1006_v31, %v958_v15 }
 0x135   :  { %v665_v20 = vadd.f32 %v664_v17, %v1279_v18 }
 0x137   :  { %v666_v21 = vrot.slane %v665_v20, 4 }
 0x139   :  { %v667_v22 = vadd.f32 %v666_v21, %v665_v20 }
 0x13b   :  { %v668_v23 = vrot.slane %v667_v22, 2 }
 0x13d   :  { %v669_v24 = vadd.f32 %v668_v23, %v667_v22 }
 0x13f   :  { %v670_v25 = vrot.slane %v669_v24, 1 }
 0x141   :  { %v671_v27 = vadd.f32 %v670_v25, %v669_v24 }
 0x143   :  { %v1282_v28 = vmul.f32 0.0078125, %v671_v27 }
 0x145   :  { %v674_v30 = vsub.f32 %v1234_v56, %v1282_v28  ;;  %v675_v26 = vsub.f32 %v1236_v59, %v1282_v28  ;;  %v676_v31 = vsub.f32 %v1238_v3, %v1282_v28  ;;  %v677_v35 = vsub.f32 %v1240_v7, %v1282_v28 }
 0x146   :  { %v678_v36 = vsub.f32 %v1242_v16, %v1282_v28  ;;  %v679_v39 = vsub.f32 %v1244_v19, %v1282_v28  ;;  %v680_v42 = vsub.f32 %v1249_v29, %v1282_v28  ;;  %v681_v47 = vsub.f32 %v1252_v34, %v1282_v28 }
 0x147   :  { %v690_v32 = vmul.f32 %v674_v30, %v674_v30  ;;  %v691_v33 = vmul.f32 %v675_v26, %v675_v26  ;;  %v692_v37 = vmul.f32 %v676_v31, %v676_v31  ;;  %v693_v40 = vmul.f32 %v677_v35, %v677_v35 }
 0x148   :  { %v694_v44 = vmul.f32 %v678_v36, %v678_v36  ;;  %v695_v48 = vmul.f32 %v679_v39, %v679_v39  ;;  %v682_v50 = vsub.f32 %v1256_v43, %v1282_v28  ;;  %v696_v51 = vmul.f32 %v680_v42, %v680_v42 }
 0x149   :  { %v706_v38 = vadd.f32 %v691_v33, %v690_v32  ;;  %v683_v54 = vsub.f32 %v1259_v45, %v1282_v28  ;;  %v697_v57 = vmul.f32 %v681_v47, %v681_v47  ;;  %v684_v60 = vsub.f32 %v1263_v53, %v1282_v28 }
 0x14a   :  { %v698_v61 = vmul.f32 %v682_v50, %v682_v50  ;;  %v685_v63 = vsub.f32 %v1265_v55, %v1282_v28  ;;  %v686_v4 = vsub.f32 %v1269_v2, %v1282_v28  ;;  %v687_v9 = vsub.f32 %v1272_v5, %v1282_v28 }
 0x14b   :  { %v707_v41 = vadd.f32 %v706_v38, %v692_v37  ;;  %v699_v0 = vmul.f32 %v683_v54, %v683_v54  ;;  %v700_v6 = vmul.f32 %v684_v60, %v684_v60  ;;  %v688_v12 = vsub.f32 %v1276_v14, %v1282_v28 }
 0x14c   :  { %v701_v10 = vmul.f32 %v685_v63, %v685_v63  ;;  %v702_v13 = vmul.f32 %v686_v4, %v686_v4  ;;  %v689_v17 = vsub.f32 %v1279_v18, %v1282_v28  ;;  %v703_v20 = vmul.f32 %v687_v9, %v687_v9 }
 0x14d   :  { %v708_v46 = vadd.f32 %v707_v41, %v693_v40  ;;  %v704_v22 = vmul.f32 %v688_v12, %v688_v12  ;;  %v736_v38 = vlaneseq  ;;  %v728_v40 = vld [vmem:[%s1405_s2] sm:$0x1] }
 0x14e   :  { %v705_v24 = vmul.f32 %v689_v17, %v689_v17 }
 0x14f   :  { %v709_v49 = vadd.f32 %v708_v46, %v694_v44  ;;  %v737_v39 = vshrl.u32 %v736_v38, 7  ;;  %v732_v46 = vld [vmem:[%s1406_s3] sm:$0x1] }
 0x151   :  { %v710_v52 = vadd.f32 %v709_v49, %v695_v48  ;;  %v738_v41 = vsub.s32 0, %v737_v39 }
 0x153   :  { %v711_v58 = vadd.f32 %v710_v52, %v696_v51 }
 0x155   :  { %v712_v62 = vadd.f32 %v711_v58, %v697_v57 }
 0x157   :  { %v713_v1 = vadd.f32 %v712_v62, %v698_v61 }
 0x159   :  { %v714_v8 = vadd.f32 %v713_v1, %v699_v0 }
 0x15b   :  { %v715_v11 = vadd.f32 %v714_v8, %v700_v6 }
 0x15d   :  { %v716_v15 = vadd.f32 %v715_v11, %v701_v10 }
 0x15f   :  { %v717_v21 = vadd.f32 %v716_v15, %v702_v13 }
 0x161   :  { %v718_v23 = vadd.f32 %v717_v21, %v703_v20 }
 0x163   :  { %v719_v25 = vadd.f32 %v718_v23, %v704_v22 }
 0x165   :  { %v720_v27 = vadd.f32 %v719_v25, %v705_v24 }
 0x167   :  { %v721_v30 = vrot.slane %v720_v27, 4 }
 0x169   :  { %v722_v26 = vadd.f32 %v721_v30, %v720_v27 }
 0x16b   :  { %v723_v31 = vrot.slane %v722_v26, 2 }
 0x16d   :  { %v724_v32 = vadd.f32 %v723_v31, %v722_v26 }
 0x16f   :  { %v725_v33 = vrot.slane %v724_v32, 1 }
 0x171   :  { %v726_v35 = vadd.f32 %v725_v33, %v724_v32 }
 0x173   :  { %v727_v36 = vmul.f32 0.0078125, %v726_v35 }
 0x175   :  { %v729_v37 = vadd.f32 1e-05, %v727_v36 }
 0x177   :  { %1063 = vrsqrt.f32 %v729_v37 }
 0x181   :  { %v1064_v42 = vpop.eup %1063 }
 0x182   :  { %v731_v44 = vmul.f32 %v1064_v42, %v728_v40 }
 0x184   :  { %v733_v47 = vmul.f32 %v731_v44, %v1282_v28  ;;  %v739_v48 = vrot.slane %v731_v44, %v738_v41 }
 0x186   :  { %v734_v49 = vsub.f32 %v732_v46, %v733_v47  ;;  %v741_v50 = vmul.f32 %v739_v48, %v1234_v56  ;;  %v742_v51 = vmul.f32 %v739_v48, %v1236_v59  ;;  %v743_v52 = vmul.f32 %v739_v48, %v1238_v3 }
 0x187   :  { %v744_v54 = vmul.f32 %v739_v48, %v1240_v7  ;;  %v745_v57 = vmul.f32 %v739_v48, %v1242_v16  ;;  %v746_v58 = vmul.f32 %v739_v48, %v1244_v19  ;;  %v747_v60 = vmul.f32 %v739_v48, %v1249_v29 }
 0x188   :  { %v748_v61 = vmul.f32 %v739_v48, %v1252_v34  ;;  %v749_v28 = vmul.f32 %v739_v48, %v1256_v43  ;;  %v750_v62 = vmul.f32 %v739_v48, %v1259_v45  ;;  %v751_v56 = vmul.f32 %v739_v48, %v1263_v53 }
 0x189   :  { %v752_v59 = vmul.f32 %v739_v48, %v1265_v55  ;;  %v761_v63 = vrot.slane %v734_v49, %v738_v41  ;;  %v753_v3 = vmul.f32 %v739_v48, %v1269_v2  ;;  %v754_v7 = vmul.f32 %v739_v48, %v1272_v5 }
 0x18a   :  { %v755_v16 = vmul.f32 %v739_v48, %v1276_v14  ;;  %v756_v19 = vmul.f32 %v739_v48, %v1279_v18 }
 0x18b   :  { %v763_v29 = vadd.f32 %v761_v63, %v741_v50  ;;  %v764_v0 = vadd.f32 %v761_v63, %v742_v51  ;;  %v765_v34 = vadd.f32 %v761_v63, %v743_v52  ;;  %v766_v1 = vadd.f32 %v761_v63, %v744_v54 }
 0x18c   :  { %v767_v43 = vadd.f32 %v761_v63, %v745_v57  ;;  %v768_v4 = vadd.f32 %v761_v63, %v746_v58  ;;  %v769_v45 = vadd.f32 %v761_v63, %v747_v60  ;;  %v770_v6 = vadd.f32 %v761_v63, %v748_v61 }
 0x18d   :  { %v771_v53 = vadd.f32 %v761_v63, %v749_v28  ;;  %v772_v8 = vadd.f32 %v761_v63, %v750_v62  ;;  %v773_v55 = vadd.f32 %v761_v63, %v751_v56  ;;  %v774_v9 = vadd.f32 %v761_v63, %v752_v59 }
 0x18e   :  { %v775_v10 = vadd.f32 %v761_v63, %v753_v3  ;;  %v776_v2 = vadd.f32 %v761_v63, %v754_v7  ;;  %v777_v11 = vadd.f32 %v761_v63, %v755_v16  ;;  %v778_v5 = vadd.f32 %v761_v63, %v756_v19 }
 0x18f   :  { %vm779_vm0 = vcmp.ge.f32.partialorder %v763_v29, 0.0  ;;  %vm780_vm1 = vcmp.ge.f32.partialorder %v764_v0, 0.0  ;;  %vm781_vm2 = vcmp.ge.f32.partialorder %v765_v34, 0.0  ;;  %vm782_vm3 = vcmp.ge.f32.partialorder %v766_v1, 0.0 }
 0x190   :  { %vm783_vm4 = vcmp.ge.f32.partialorder %v767_v43, 0.0  ;;  %vm784_vm5 = vcmp.ge.f32.partialorder %v768_v4, 0.0  ;;  %vm785_vm6 = vcmp.ge.f32.partialorder %v769_v45, 0.0  ;;  %vm786_vm7 = vcmp.ge.f32.partialorder %v770_v6, 0.0 }
 0x191   :  { %vm787_vm8 = vcmp.ge.f32.partialorder %v771_v53, 0.0  ;;  %vm788_vm9 = vcmp.ge.f32.partialorder %v772_v8, 0.0  ;;  %vm789_vm10 = vcmp.ge.f32.partialorder %v773_v55, 0.0  ;;  %vm790_vm11 = vcmp.ge.f32.partialorder %v774_v9, 0.0 }
 0x192   :  { %vm791_vm12 = vcmp.ge.f32.partialorder %v775_v10, 0.0  ;;  %vm792_vm13 = vcmp.ge.f32.partialorder %v776_v2, 0.0  ;;  %vm793_vm14 = vcmp.ge.f32.partialorder %v777_v11, 0.0  ;;  %vm794_vm15 = vcmp.ge.f32.partialorder %v778_v5, 0.0 }
 0x193   :  { %v795_v14 = vmul.f32 0.1, %v763_v29  ;;  %v796_v18 = vmul.f32 0.1, %v764_v0  ;;  %v797_v12 = vmul.f32 0.1, %v765_v34 }
 0x194   :  { %v798_v13 = vmul.f32 0.1, %v766_v1  ;;  %v799_v15 = vmul.f32 0.1, %v767_v43  ;;  %v800_v17 = vmul.f32 0.1, %v768_v4 }
 0x195   :  { %v801_v20 = vmul.f32 0.1, %v769_v45  ;;  %v802_v21 = vmul.f32 0.1, %v770_v6  ;;  %v803_v22 = vmul.f32 0.1, %v771_v53  ;;  %v811_v23 = vsel %vm779_vm0, %v763_v29, %v795_v14 }
 0x196   :  { %v804_v24 = vmul.f32 0.1, %v772_v8  ;;  %v805_v25 = vmul.f32 0.1, %v773_v55  ;;  %v806_v27 = vmul.f32 0.1, %v774_v9  ;;  %v812_v30 = vsel %vm780_vm1, %v764_v0, %v796_v18  ;;  %827 = vst [vmem:[%s1407_s4] sm:$0xff] %v811_v23 }
 0x197   :  { %v807_v26 = vmul.f32 0.1, %v775_v10  ;;  %v808_v31 = vmul.f32 0.1, %v776_v2  ;;  %v809_v32 = vmul.f32 0.1, %v777_v11  ;;  %v813_v33 = vsel %vm781_vm2, %v765_v34, %v797_v12 }
 0x198   :  { %828 = vst [vmem:[%s1407_s4 + $0x8] sm:$0xff] %v812_v30  ;;  %v810_v35 = vmul.f32 0.1, %v778_v5  ;;  %v814_v36 = vsel %vm782_vm3, %v766_v1, %v798_v13  ;;  %v815_v37 = vsel %vm783_vm4, %v767_v43, %v799_v15  ;;  %v816_v38 = vsel %vm784_vm5, %v768_v4, %v800_v17  ;;  %829 = vst [vmem:[%s1407_s4 + $0x10] sm:$0xff] %v813_v33 }
 0x199   :  { %v817_v39 = vsel %vm785_vm6, %v769_v45, %v801_v20  ;;  %v818_v40 = vsel %vm786_vm7, %v770_v6, %v802_v21  ;;  %v819_v41 = vsel %vm787_vm8, %v771_v53, %v803_v22  ;;  %v820_v42 = vsel %vm788_vm9, %v772_v8, %v804_v24  ;;  %830 = vst [vmem:[%s1407_s4 + $0x18] sm:$0xff] %v814_v36 }
 0x19a   :  { %831 = vst [vmem:[%s1407_s4 + $0x20] sm:$0xff] %v815_v37  ;;  %832 = vst [vmem:[%s1407_s4 + $0x28] sm:$0xff] %v816_v38  ;;  %v821_v44 = vsel %vm789_vm10, %v773_v55, %v805_v25  ;;  %v822_v46 = vsel %vm790_vm11, %v774_v9, %v806_v27  ;;  %v823_v47 = vsel %vm791_vm12, %v775_v10, %v807_v26 }
 0x19b   :  { %v824_v48 = vsel %vm792_vm13, %v776_v2, %v808_v31  ;;  %833 = vst [vmem:[%s1407_s4 + $0x30] sm:$0xff] %v817_v39  ;;  %834 = vst [vmem:[%s1407_s4 + $0x38] sm:$0xff] %v818_v40  ;;  %v825_v49 = vsel %vm793_vm14, %v777_v11, %v809_v32  ;;  %v826_v50 = vsel %vm794_vm15, %v778_v5, %v810_v35 }
 0x19c   :  { %835 = vst [vmem:[%s1407_s4 + $0x40] sm:$0xff] %v819_v41  ;;  %836 = vst [vmem:[%s1407_s4 + $0x48] sm:$0xff] %v820_v42 }
 0x19d   :  { %837 = vst [vmem:[%s1407_s4 + $0x50] sm:$0xff] %v821_v44  ;;  %838 = vst [vmem:[%s1407_s4 + $0x58] sm:$0xff] %v822_v46 }
 0x19e   :  { %839 = vst [vmem:[%s1407_s4 + $0x60] sm:$0xff] %v823_v47  ;;  %840 = vst [vmem:[%s1407_s4 + $0x68] sm:$0xff] %v824_v48 }
 0x19f   :  { %841 = vst [vmem:[%s1407_s4 + $0x70] sm:$0xff] %v825_v49  ;;  %842 = vst [vmem:[%s1407_s4 + $0x78] sm:$0xff] %v826_v50 }

// kernel: net_forward.18
= control target key start
LH: loop header
LB: loop body
LE: loop exit
PB: predicated region body
PF: predicated region fallthrough
CT: control target
= control target key end

     0   :  { %s866_s1 = inlined_call_operand.vmem [shape: bf16[128,128], index: 1, kind: input, shape index: {}]   ;;  %s867_s0 = inlined_call_operand.vmem [shape: bf16[128,128], index: 0, kind: input, shape index: {}]   ;;  %s868_s2 = inlined_call_operand.vmem [shape: f32[1,128], index: 2, kind: input, shape index: {}]   ;;  %s869_s3 = inlined_call_operand.vmem [shape: f32[1,128], index: 3, kind: input, shape index: {}]   ;;  %s870_s4 = inlined_call_operand.vmem [shape: f32[128,128], index: 4, kind: output, shape index: {}]  }
   0x1   :  { %v606_v0 = vld [vmem:[%s866_s1] sm:$0xff]   ;;  %v607_v1 = vld [vmem:[%s866_s1 + $0x8] sm:$0xff]   ;;  %v608_v2 = vld [vmem:[%s866_s1 + $0x10] sm:$0xff]  }
   0x2   :  { %558 = vmatprep.subr.bf16.mxu0 %v606_v0  ;;  %590 = vmatprep.subr.bf16.mxu1 %v606_v0  ;;  %v609_v3 = vld [vmem:[%s866_s1 + $0x18] sm:$0xff]   ;;  %v614_v4 = vld [vmem:[%s867_s0] sm:$0xff]   ;;  %v611_v7 = vld [vmem:[%s866_s1 + $0x28] sm:$0xff]  }
   0x3   :  { %559 = vmatpush3.bf16.msra.mxu0 %v606_v0  ;;  %598 = vmatpush3.bf16.msra.mxu1 %v606_v0  ;;  %v610_v5 = vld [vmem:[%s866_s1 + $0x20] sm:$0xff]   ;;  %v612_v8 = vld [vmem:[%s866_s1 + $0x30] sm:$0xff]   ;;  %v613_v9 = vld [vmem:[%s866_s1 + $0x38] sm:$0xff]  }
   0x4   :  { %560 = vmatprep.subr.bf16.mxu0 %v607_v1  ;;  %591 = vmatprep.subr.bf16.mxu1 %v607_v1  ;;  %v618_v6 = vld [vmem:[%s867_s0 + $0x20] sm:$0xff]   ;;  %v615_v10 = vld [vmem:[%s867_s0 + $0x8] sm:$0xff]   ;;  %v616_v12 = vld [vmem:[%s867_s0 + $0x10] sm:$0xff]  }
   0x5   :  { %574 = vmatprep.mubr.bf16.mxu0 %v614_v4  ;;  %582 = vmatprep.mubr.bf16.mxu1 %v618_v6  ;;  %v619_v11 = vld [vmem:[%s867_s0 + $0x28] sm:$0xff]   ;;  %v620_v13 = vld [vmem:[%s867_s0 + $0x30] sm:$0xff]   ;;  %v617_v14 = vld [vmem:[%s867_s0 + $0x18] sm:$0xff]  }
   0x6   :  { %v621_v15 = vld [vmem:[%s867_s0 + $0x38] sm:$0xff]  }
   0x7   :  { %561 = vmatpush3.bf16.msra.mxu0 %v607_v1  ;;  %599 = vmatpush3.bf16.msra.mxu1 %v607_v1 }
   0x8   :  { %562 = vmatprep.subr.bf16.mxu0 %v608_v2  ;;  %592 = vmatprep.subr.bf16.mxu1 %v608_v2 }
   0xb   :  { %563 = vmatpush3.bf16.msra.mxu0 %v608_v2  ;;  %600 = vmatpush3.bf16.msra.mxu1 %v608_v2 }
   0xc   :  { %564 = vmatprep.subr.bf16.mxu0 %v609_v3  ;;  %593 = vmatprep.subr.bf16.mxu1 %v609_v3 }
   0xf   :  { %565 = vmatpush3.bf16.msra.mxu0 %v609_v3  ;;  %601 = vmatpush3.bf16.msra.mxu1 %v609_v3 }
  0x10   :  { %566 = vmatprep.subr.bf16.mxu0 %v610_v5  ;;  %594 = vmatprep.subr.bf16.mxu1 %v610_v5 }
  0x13   :  { %567 = vmatpush3.bf16.msra.mxu0 %v610_v5  ;;  %602 = vmatpush3.bf16.msra.mxu1 %v610_v5 }
  0x14   :  { %568 = vmatprep.subr.bf16.mxu0 %v611_v7  ;;  %595 = vmatprep.subr.bf16.mxu1 %v611_v7 }
  0x17   :  { %569 = vmatpush3.bf16.msra.mxu0 %v611_v7  ;;  %603 = vmatpush3.bf16.msra.mxu1 %v611_v7 }
  0x18   :  { %570 = vmatprep.subr.bf16.mxu0 %v612_v8  ;;  %596 = vmatprep.subr.bf16.mxu1 %v612_v8 }
  0x1b   :  { %571 = vmatpush3.bf16.msra.mxu0 %v612_v8  ;;  %604 = vmatpush3.bf16.msra.mxu1 %v612_v8 }
  0x1c   :  { %572 = vmatprep.subr.bf16.mxu0 %v613_v9  ;;  %597 = vmatprep.subr.bf16.mxu1 %v613_v9 }
  0x1f   :  { %573 = vmatpush3.bf16.msra.mxu0 %v613_v9  ;;  %605 = vmatpush3.bf16.msra.mxu1 %v613_v9 }
  0x22   :  { %575 = vmatmul.mubr.bf16.vlgmr.msra.gmra.mrb[0].mxu0 %v615_v10  ;;  %583 = vmatmul.mubr.bf16.vlgmr.msra.gmra.mrb[0].mxu1 %v619_v11 }
  0x23   :  { %578 = vmatprep.mubr.bf16.mxu0 %v616_v12  ;;  %586 = vmatprep.mubr.bf16.mxu1 %v620_v13 }
  0x2a   :  { %579 = vmatmul.mubr.bf16.gmra.mrb[4].mxu0 %v617_v14  ;;  %587 = vmatmul.mubr.bf16.gmra.mrb[4].mxu1 %v621_v15 }
  0xf5   :  { %v697_v16 = vpop.f32.mrb[0].mxu0  ;;  %v699_v17 = vpop.f32.mrb[0].mxu1 }
  0xf6   :  { %v701_v18 = vpop.f32.mrb[1].mxu0  ;;  %v703_v19 = vpop.f32.mrb[1].mxu1 }
  0xf7   :  { %v705_v20 = vpop.f32.mrb[2].mxu0  ;;  %v707_v21 = vpop.f32.mrb[2].mxu1 }
  0xf8   :  { %v709_v22 = vpop.f32.mrb[3].mxu0  ;;  %v711_v23 = vpop.f32.mrb[3].mxu1 }
  0xf9   :  { %v330_v24 = vadd.f32 %v709_v22, %v701_v18 }
  0xfb   :  { %v331_v25 = vadd.f32 %v697_v16, %v330_v24 }
  0xfd   :  { %v716_v26 = vpop.f32.mrb[4].mxu0  ;;  %v332_v27 = vadd.f32 %v705_v20, %v331_v25  ;;  %v719_v28 = vpop.f32.mrb[4].mxu1 }
  0xfe   :  { %v721_v29 = vpop.f32.mrb[5].mxu0  ;;  %v723_v30 = vpop.f32.mrb[5].mxu1 }
  0xff   :  { %v333_v31 = vadd.f32 %v332_v27, %v721_v29  ;;  %v726_v32 = vpop.f32.mrb[6].mxu0  ;;  %v728_v33 = vpop.f32.mrb[6].mxu1 }
 0x100   :  { %v730_v34 = vpop.f32.mrb[7].mxu0  ;;  %v732_v35 = vpop.f32.mrb[7].mxu1 }
 0x101   :  { %v334_v36 = vadd.f32 %v333_v31, %v730_v34 }
 0x103   :  { %v335_v37 = vadd.f32 %v716_v26, %v334_v36 }
 0x105   :  { %v336_v38 = vadd.f32 %v726_v32, %v335_v37 }
 0x107   :  { %v337_v39 = vadd.f32 %v336_v38, %v703_v19 }
 0x109   :  { %v338_v40 = vadd.f32 %v337_v39, %v711_v23 }
 0x10b   :  { %v339_v41 = vadd.f32 %v699_v17, %v338_v40 }
 0x10d   :  { %v340_v42 = vadd.f32 %v707_v21, %v339_v41 }
 0x10f   :  { %v341_v43 = vadd.f32 %v340_v42, %v723_v30 }
 0x111   :  { %v342_v44 = vadd.f32 %v341_v43, %v732_v35 }
 0x113   :  { %v343_v45 = vadd.f32 %v719_v28, %v342_v44 }
 0x115   :  { %v344_v46 = vadd.f32 %v728_v33, %v343_v45 }
 0x117   :  { %v345_v47 = vrot.slane %v344_v46, 4 }
 0x119   :  { %v346_v48 = vadd.f32 %v345_v47, %v344_v46 }
 0x11b   :  { %v347_v49 = vrot.slane %v346_v48, 2 }
 0x11d   :  { %v348_v50 = vadd.f32 %v347_v49, %v346_v48 }
 0x11f   :  { %v349_v51 = vrot.slane %v348_v50, 1 }
 0x121   :  { %v350_v52 = vadd.f32 %v349_v51, %v348_v50 }
 0x123   :  { %v745_v53 = vmul.f32 0.0078125, %v350_v52 }
 0x125   :  { %v353_v54 = vsub.f32 %v701_v18, %v745_v53  ;;  %v354_v55 = vsub.f32 %v709_v22, %v745_v53  ;;  %v355_v56 = vsub.f32 %v697_v16, %v745_v53  ;;  %v356_v57 = vsub.f32 %v705_v20, %v745_v53 }
 0x126   :  { %v357_v58 = vsub.f32 %v721_v29, %v745_v53  ;;  %v358_v59 = vsub.f32 %v730_v34, %v745_v53  ;;  %v359_v60 = vsub.f32 %v716_v26, %v745_v53  ;;  %v360_v61 = vsub.f32 %v726_v32, %v745_v53 }
 0x127   :  { %v361_v62 = vsub.f32 %v703_v19, %v745_v53  ;;  %v362_v63 = vsub.f32 %v711_v23, %v745_v53  ;;  %v363_v0 = vsub.f32 %v699_v17, %v745_v53  ;;  %v364_v1 = vsub.f32 %v707_v21, %v745_v53 }
 0x128   :  { %v365_v2 = vsub.f32 %v723_v30, %v745_v53  ;;  %v366_v3 = vsub.f32 %v732_v35, %v745_v53  ;;  %v367_v4 = vsub.f32 %v719_v28, %v745_v53  ;;  %v368_v5 = vsub.f32 %v728_v33, %v745_v53 }
 0x129   :  { %v369_v6 = vmul.f32 %v353_v54, %v353_v54  ;;  %v370_v7 = vmul.f32 %v354_v55, %v354_v55  ;;  %v371_v8 = vmul.f32 %v355_v56, %v355_v56  ;;  %v372_v10 = vmul.f32 %v356_v57, %v356_v57 }
 0x12a   :  { %v373_v12 = vmul.f32 %v357_v58, %v357_v58  ;;  %v374_v14 = vmul.f32 %v358_v59, %v358_v59  ;;  %v375_v24 = vmul.f32 %v359_v60, %v359_v60  ;;  %v376_v27 = vmul.f32 %v360_v61, %v360_v61 }
 0x12b   :  { %v385_v9 = vadd.f32 %v370_v7, %v369_v6  ;;  %v377_v36 = vmul.f32 %v361_v62, %v361_v62  ;;  %v378_v38 = vmul.f32 %v362_v63, %v362_v63  ;;  %v379_v40 = vmul.f32 %v363_v0, %v363_v0  ;;  %v407_v0 = vld [vmem:[%s868_s2] sm:$0x1] }
 0x12c   :  { %v380_v42 = vmul.f32 %v364_v1, %v364_v1  ;;  %v381_v44 = vmul.f32 %v365_v2, %v365_v2  ;;  %v382_v46 = vmul.f32 %v366_v3, %v366_v3  ;;  %v383_v48 = vmul.f32 %v367_v4, %v367_v4  ;;  %v411_v4 = vld [vmem:[%s869_s3] sm:$0x1] }
 0x12d   :  { %v386_v11 = vadd.f32 %v385_v9, %v371_v8  ;;  %v384_v50 = vmul.f32 %v368_v5, %v368_v5  ;;  %v415_v62 = vlaneseq }
 0x12f   :  { %v387_v13 = vadd.f32 %v386_v11, %v372_v10  ;;  %v416_v63 = vshrl.u32 %v415_v62, 7 }
 0x131   :  { %v388_v15 = vadd.f32 %v387_v13, %v373_v12  ;;  %v417_v1 = vsub.s32 0, %v416_v63 }
 0x133   :  { %v389_v25 = vadd.f32 %v388_v15, %v374_v14 }
 0x135   :  { %v390_v31 = vadd.f32 %v389_v25, %v375_v24 }
 0x137   :  { %v391_v37 = vadd.f32 %v390_v31, %v376_v27 }
 0x139   :  { %v392_v39 = vadd.f32 %v391_v37, %v377_v36 }
 0x13b   :  { %v393_v41 = vadd.f32 %v392_v39, %v378_v38 }
 0x13d   :  { %v394_v43 = vadd.f32 %v393_v41, %v379_v40 }
 0x13f   :  { %v395_v45 = vadd.f32 %v394_v43, %v380_v42 }
 0x141   :  { %v396_v47 = vadd.f32 %v395_v45, %v381_v44 }
 0x143   :  { %v397_v49 = vadd.f32 %v396_v47, %v382_v46 }
 0x145   :  { %v398_v51 = vadd.f32 %v397_v49, %v383_v48 }
 0x147   :  { %v399_v52 = vadd.f32 %v398_v51, %v384_v50 }
 0x149   :  { %v400_v54 = vrot.slane %v399_v52, 4 }
 0x14b   :  { %v401_v55 = vadd.f32 %v400_v54, %v399_v52 }
 0x14d   :  { %v402_v56 = vrot.slane %v401_v55, 2 }
 0x14f   :  { %v403_v57 = vadd.f32 %v402_v56, %v401_v55 }
 0x151   :  { %v404_v58 = vrot.slane %v403_v57, 1 }
 0x153   :  { %v405_v59 = vadd.f32 %v404_v58, %v403_v57 }
 0x155   :  { %v406_v60 = vmul.f32 0.0078125, %v405_v59 }
 0x157   :  { %v408_v61 = vadd.f32 1e-05, %v406_v60 }
 0x159   :  { %622 = vrsqrt.f32 %v408_v61 }
 0x163   :  { %v623_v2 = vpop.eup %622 }
 0x164   :  { %v410_v3 = vmul.f32 %v623_v2, %v407_v0 }
 0x166   :  { %v412_v5 = vmul.f32 %v410_v3, %v745_v53  ;;  %v418_v6 = vrot.slane %v410_v3, %v417_v1 }
 0x168   :  { %v413_v7 = vsub.f32 %v411_v4, %v412_v5  ;;  %v420_v8 = vmul.f32 %v418_v6, %v701_v18  ;;  %v421_v9 = vmul.f32 %v418_v6, %v709_v22  ;;  %v422_v10 = vmul.f32 %v697_v16, %v418_v6 }
 0x169   :  { %v423_v11 = vmul.f32 %v705_v20, %v418_v6  ;;  %v424_v12 = vmul.f32 %v418_v6, %v721_v29  ;;  %v425_v13 = vmul.f32 %v418_v6, %v730_v34  ;;  %v426_v14 = vmul.f32 %v716_v26, %v418_v6 }
 0x16a   :  { %v427_v15 = vmul.f32 %v726_v32, %v418_v6  ;;  %v428_v53 = vmul.f32 %v418_v6, %v703_v19  ;;  %v429_v24 = vmul.f32 %v418_v6, %v711_v23  ;;  %v430_v18 = vmul.f32 %v699_v17, %v418_v6 }
 0x16b   :  { %v431_v22 = vmul.f32 %v707_v21, %v418_v6  ;;  %v432_v16 = vmul.f32 %v418_v6, %v723_v30  ;;  %v433_v20 = vmul.f32 %v418_v6, %v732_v35  ;;  %v434_v29 = vmul.f32 %v719_v28, %v418_v6 }
 0x16c   :  { %v435_v34 = vmul.f32 %v728_v33, %v418_v6  ;;  %v440_v25 = vrot.slane %v413_v7, %v417_v1 }
 0x16e   :  { %v442_v26 = vadd.f32 %v440_v25, %v420_v8  ;;  %v443_v27 = vadd.f32 %v440_v25, %v421_v9  ;;  %v444_v32 = vadd.f32 %v440_v25, %v422_v10  ;;  %v445_v31 = vadd.f32 %v440_v25, %v423_v11 }
 0x16f   :  { %v446_v19 = vadd.f32 %v440_v25, %v424_v12  ;;  %v447_v36 = vadd.f32 %v440_v25, %v425_v13  ;;  %v448_v23 = vadd.f32 %v440_v25, %v426_v14  ;;  %v449_v37 = vadd.f32 %v440_v25, %v427_v15 }
 0x170   :  { %v450_v17 = vadd.f32 %v440_v25, %v428_v53  ;;  %v451_v38 = vadd.f32 %v440_v25, %v429_v24  ;;  %v452_v21 = vadd.f32 %v440_v25, %v430_v18  ;;  %v453_v39 = vadd.f32 %v440_v25, %v431_v22 }
 0x171   :  { %v454_v30 = vadd.f32 %v440_v25, %v432_v16  ;;  %v455_v40 = vadd.f32 %v440_v25, %v433_v20  ;;  %v456_v35 = vadd.f32 %v440_v25, %v434_v29  ;;  %v457_v41 = vadd.f32 %v440_v25, %v435_v34 }
 0x172   :  { %vm458_vm0 = vcmp.ge.f32.partialorder %v442_v26, 0.0  ;;  %vm459_vm1 = vcmp.ge.f32.partialorder %v443_v27, 0.0  ;;  %vm460_vm2 = vcmp.ge.f32.partialorder %v444_v32, 0.0  ;;  %vm461_vm3 = vcmp.ge.f32.partialorder %v445_v31, 0.0 }
 0x173   :  { %vm462_vm4 = vcmp.ge.f32.partialorder %v446_v19, 0.0  ;;  %vm463_vm5 = vcmp.ge.f32.partialorder %v447_v36, 0.0  ;;  %vm464_vm6 = vcmp.ge.f32.partialorder %v448_v23, 0.0  ;;  %vm465_vm7 = vcmp.ge.f32.partialorder %v449_v37, 0.0 }
 0x174   :  { %vm466_vm8 = vcmp.ge.f32.partialorder %v450_v17, 0.0  ;;  %vm467_vm9 = vcmp.ge.f32.partialorder %v451_v38, 0.0  ;;  %vm468_vm10 = vcmp.ge.f32.partialorder %v452_v21, 0.0  ;;  %vm469_vm11 = vcmp.ge.f32.partialorder %v453_v39, 0.0 }
 0x175   :  { %vm470_vm12 = vcmp.ge.f32.partialorder %v454_v30, 0.0  ;;  %vm471_vm13 = vcmp.ge.f32.partialorder %v455_v40, 0.0  ;;  %vm472_vm14 = vcmp.ge.f32.partialorder %v456_v35, 0.0  ;;  %vm473_vm15 = vcmp.ge.f32.partialorder %v457_v41, 0.0 }
 0x176   :  { %v474_v28 = vmul.f32 0.1, %v442_v26  ;;  %v475_v33 = vmul.f32 0.1, %v443_v27  ;;  %v476_v42 = vmul.f32 0.1, %v444_v32 }
 0x177   :  { %v477_v43 = vmul.f32 0.1, %v445_v31  ;;  %v478_v44 = vmul.f32 0.1, %v446_v19  ;;  %v479_v45 = vmul.f32 0.1, %v447_v36 }
 0x178   :  { %v480_v46 = vmul.f32 0.1, %v448_v23  ;;  %v481_v47 = vmul.f32 0.1, %v449_v37  ;;  %v482_v48 = vmul.f32 0.1, %v450_v17  ;;  %v490_v49 = vsel %vm458_vm0, %v442_v26, %v474_v28 }
 0x179   :  { %v483_v50 = vmul.f32 0.1, %v451_v38  ;;  %v484_v51 = vmul.f32 0.1, %v452_v21  ;;  %v485_v52 = vmul.f32 0.1, %v453_v39  ;;  %v491_v54 = vsel %vm459_vm1, %v443_v27, %v475_v33  ;;  %506 = vst [vmem:[%s870_s4] sm:$0xff] %v490_v49 }
 0x17a   :  { %v486_v55 = vmul.f32 0.1, %v454_v30  ;;  %v487_v56 = vmul.f32 0.1, %v455_v40  ;;  %v488_v57 = vmul.f32 0.1, %v456_v35  ;;  %v492_v58 = vsel %vm460_vm2, %v444_v32, %v476_v42 }
 0x17b   :  { %507 = vst [vmem:[%s870_s4 + $0x8] sm:$0xff] %v491_v54  ;;  %v489_v59 = vmul.f32 0.1, %v457_v41  ;;  %v493_v60 = vsel %vm461_vm3, %v445_v31, %v477_v43  ;;  %v494_v61 = vsel %vm462_vm4, %v446_v19, %v478_v44  ;;  %v495_v62 = vsel %vm463_vm5, %v447_v36, %v479_v45  ;;  %508 = vst [vmem:[%s870_s4 + $0x10] sm:$0xff] %v492_v58 }
 0x17c   :  { %v496_v63 = vsel %vm464_vm6, %v448_v23, %v480_v46  ;;  %v497_v0 = vsel %vm465_vm7, %v449_v37, %v481_v47  ;;  %v498_v1 = vsel %vm466_vm8, %v450_v17, %v482_v48  ;;  %v499_v2 = vsel %vm467_vm9, %v451_v38, %v483_v50  ;;  %509 = vst [vmem:[%s870_s4 + $0x18] sm:$0xff] %v493_v60 }
 0x17d   :  { %510 = vst [vmem:[%s870_s4 + $0x20] sm:$0xff] %v494_v61  ;;  %511 = vst [vmem:[%s870_s4 + $0x28] sm:$0xff] %v495_v62  ;;  %v500_v3 = vsel %vm468_vm10, %v452_v21, %v484_v51  ;;  %v501_v4 = vsel %vm469_vm11, %v453_v39, %v485_v52  ;;  %v502_v5 = vsel %vm470_vm12, %v454_v30, %v486_v55 }
 0x17e   :  { %v503_v6 = vsel %vm471_vm13, %v455_v40, %v487_v56  ;;  %512 = vst [vmem:[%s870_s4 + $0x30] sm:$0xff] %v496_v63  ;;  %513 = vst [vmem:[%s870_s4 + $0x38] sm:$0xff] %v497_v0  ;;  %v504_v7 = vsel %vm472_vm14, %v456_v35, %v488_v57  ;;  %v505_v8 = vsel %vm473_vm15, %v457_v41, %v489_v59 }
 0x17f   :  { %514 = vst [vmem:[%s870_s4 + $0x40] sm:$0xff] %v498_v1  ;;  %515 = vst [vmem:[%s870_s4 + $0x48] sm:$0xff] %v499_v2 }
 0x180   :  { %516 = vst [vmem:[%s870_s4 + $0x50] sm:$0xff] %v500_v3  ;;  %517 = vst [vmem:[%s870_s4 + $0x58] sm:$0xff] %v501_v4 }
 0x181   :  { %518 = vst [vmem:[%s870_s4 + $0x60] sm:$0xff] %v502_v5  ;;  %519 = vst [vmem:[%s870_s4 + $0x68] sm:$0xff] %v503_v6 }
 0x182   :  { %520 = vst [vmem:[%s870_s4 + $0x70] sm:$0xff] %v504_v7  ;;  %521 = vst [vmem:[%s870_s4 + $0x78] sm:$0xff] %v505_v8 }

// kernel: net_forward.19
= control target key start
LH: loop header
LB: loop body
LE: loop exit
PB: predicated region body
PF: predicated region fallthrough
CT: control target
= control target key end

     0   :  { %s1503_s1 = inlined_call_operand.vmem [shape: bf16[384,128], index: 1, kind: input, shape index: {}]   ;;  %s1504_s0 = inlined_call_operand.vmem [shape: bf16[128,384], index: 0, kind: input, shape index: {}]   ;;  %s1505_s2 = inlined_call_operand.vmem [shape: f32[1,128], index: 2, kind: input, shape index: {}]   ;;  %s1506_s3 = inlined_call_operand.vmem [shape: f32[1,128], index: 3, kind: input, shape index: {}]   ;;  %s1507_s4 = inlined_call_operand.vmem [shape: f32[128,128], index: 4, kind: input, shape index: {}, may-alias: {4,5}]   ;;  %s1508_s5 = inlined_call_operand.vmem [shape: f32[128,128], index: 5, kind: output, shape index: {}, may-alias: {4,5}]  }
   0x1   :  { %v1042_v0 = vld [vmem:[%s1503_s1 + $0x40] sm:$0xff]   ;;  %v1045_v3 = vld [vmem:[%s1503_s1 + $0x48] sm:$0xff]   ;;  %v1048_v6 = vld [vmem:[%s1503_s1 + $0x50] sm:$0xff]  }
   0x2   :  { %v1043_v1 = vld [vmem:[%s1503_s1] sm:$0xff]   ;;  %930 = vmatprep.subr.bf16.mxu0 %v1042_v0  ;;  %v1046_v4 = vld [vmem:[%s1503_s1 + $0x8] sm:$0xff]   ;;  %v1049_v7 = vld [vmem:[%s1503_s1 + $0x10] sm:$0xff]  }
   0x3   :  { %v1044_v2 = vld [vmem:[%s1503_s1 + $0x80] sm:$0xff]   ;;  %931 = vmatpush3.bf16.msra.mxu0 %v1043_v1  ;;  %v1047_v5 = vld [vmem:[%s1503_s1 + $0x88] sm:$0xff]   ;;  %v1050_v8 = vld [vmem:[%s1503_s1 + $0x90] sm:$0xff]  }
   0x4   :  { %1010 = vmatprep.subr.bf16.mxu1 %v1044_v2  ;;  %932 = vmatprep.subr.bf16.mxu0 %v1045_v3  ;;  %v1051_v9 = vld [vmem:[%s1503_s1 + $0x58] sm:$0xff]   ;;  %v1054_v12 = vld [vmem:[%s1503_s1 + $0x60] sm:$0xff]   ;;  %v1057_v15 = vld [vmem:[%s1503_s1 + $0x68] sm:$0xff]  }
   0x5   :  { %1011 = vmatpush3.bf16.msra.mxu1 %v1044_v2  ;;  %v1052_v10 = vld [vmem:[%s1503_s1 + $0x18] sm:$0xff]   ;;  %v1056_v13 = vld [vmem:[%s1503_s1 + $0xa0] sm:$0xff]   ;;  %v1059_v16 = vld [vmem:[%s1503_s1 + $0xa8] sm:$0xff]  }
   0x6   :  { %1012 = vmatprep.subr.bf16.mxu1 %v1047_v5  ;;  %v1053_v11 = vld [vmem:[%s1503_s1 + $0x98] sm:$0xff]   ;;  %v1055_v14 = vld [vmem:[%s1503_s1 + $0x20] sm:$0xff]   ;;  %v1058_v17 = vld [vmem:[%s1503_s1 + $0x28] sm:$0xff]  }
   0x7   :  { %933 = vmatpush3.bf16.msra.mxu0 %v1046_v4  ;;  %v1060_v18 = vld [vmem:[%s1503_s1 + $0x70] sm:$0xff]   ;;  %v1063_v21 = vld [vmem:[%s1503_s1 + $0x78] sm:$0xff]   ;;  %v1066_v26 = vld [vmem:[%s1504_s0] ss:$12 sps:$4 sm:$0xff]  }
   0x8   :  { %934 = vmatprep.subr.bf16.mxu0 %v1048_v6  ;;  %v1061_v19 = vld [vmem:[%s1503_s1 + $0x30] sm:$0xff]   ;;  %v1065_v22 = vld [vmem:[%s1503_s1 + $0xb8] sm:$0xff]   ;;  %v1070_v28 = vld [vmem:[%s1504_s0 + $0x20] ss:$12 sps:$4 sm:$0xff]  }
   0x9   :  { %1013 = vmatpush3.bf16.msra.mxu1 %v1047_v5  ;;  %v1062_v20 = vld [vmem:[%s1503_s1 + $0xb0] sm:$0xff]   ;;  %v1064_v25 = vld [vmem:[%s1503_s1 + $0x38] sm:$0xff]   ;;  %v1086_v36 = vld [vmem:[%s1504_s0 + $0x80] ss:$12 sps:$4 sm:$0xff]  }
   0xa   :  { %1014 = vmatprep.subr.bf16.mxu1 %v1050_v8  ;;  %v1068_v23 = vld [vmem:[%s1504_s0 + $0x4] ss:$12 sps:$4 sm:$0xff]   ;;  %v1069_v24 = vld [vmem:[%s1504_s0 + $0x8] ss:$12 sps:$4 sm:$0xff]   ;;  %v1079_v35 = vld [vmem:[%s1504_s0 + $0x4c] ss:$12 sps:$4 sm:$0xff]  }
   0xb   :  { %935 = vmatpush3.bf16.msra.mxu0 %v1049_v7  ;;  %441 = vmatprep.mubr.bf16.mxu0 %v1068_v23  ;;  %v1071_v27 = vld [vmem:[%s1504_s0 + $0x1c] ss:$12 sps:$4 sm:$0xff]   ;;  %v1077_v29 = vld [vmem:[%s1504_s0 + $0x38] ss:$12 sps:$4 sm:$0xff]   ;;  %v1074_v31 = vld [vmem:[%s1504_s0 + $0x34] ss:$12 sps:$4 sm:$0xff]  }
   0xc   :  { %936 = vmatprep.subr.bf16.mxu0 %v1051_v9  ;;  %1026 = vmatprep.mubr.bf16.mxu1 %v1069_v24  ;;  %v1073_v30 = vld [vmem:[%s1504_s0 + $0x18] ss:$12 sps:$4 sm:$0xff]   ;;  %v1078_v32 = vld [vmem:[%s1504_s0 + $0x50] ss:$12 sps:$4 sm:$0xff]   ;;  %v1085_v33 = vld [vmem:[%s1504_s0 + $0x68] ss:$12 sps:$4 sm:$0xff]  }
   0xd   :  { %1015 = vmatpush3.bf16.msra.mxu1 %v1050_v8  ;;  %v1076_v34 = vld [vmem:[%s1504_s0 + $0x30] ss:$12 sps:$4 sm:$0xff]   ;;  %v1093_v37 = vld [vmem:[%s1504_s0 + $0x98] ss:$12 sps:$4 sm:$0xff]   ;;  %v1081_v38 = vld [vmem:[%s1504_s0 + $0x48] ss:$12 sps:$4 sm:$0xff]  }
   0xe   :  { %1016 = vmatprep.subr.bf16.mxu1 %v1053_v11  ;;  %v1082_v39 = vld [vmem:[%s1504_s0 + $0x64] ss:$12 sps:$4 sm:$0xff]   ;;  %v1084_v41 = vld [vmem:[%s1504_s0 + $0x60] ss:$12 sps:$4 sm:$0xff]   ;;  %v1087_v42 = vld [vmem:[%s1504_s0 + $0x7c] ss:$12 sps:$4 sm:$0xff]  }
   0xf   :  { %937 = vmatpush3.bf16.msra.mxu0 %v1052_v10  ;;  %v1094_v40 = vld [vmem:[%s1504_s0 + $0xb0] ss:$12 sps:$4 sm:$0xff]   ;;  %v1089_v43 = vld [vmem:[%s1504_s0 + $0x78] ss:$12 sps:$4 sm:$0xff]   ;;  %v1090_v44 = vld [vmem:[%s1504_s0 + $0x94] ss:$12 sps:$4 sm:$0xff]  }
  0x10   :  { %938 = vmatprep.subr.bf16.mxu0 %v1054_v12  ;;  %v1092_v45 = vld [vmem:[%s1504_s0 + $0x90] ss:$12 sps:$4 sm:$0xff]   ;;  %v1095_v46 = vld [vmem:[%s1504_s0 + $0xac] ss:$12 sps:$4 sm:$0xff]   ;;  %v1097_v47 = vld [vmem:[%s1504_s0 + $0xa8] ss:$12 sps:$4 sm:$0xff]  }
  0x11   :  { %1017 = vmatpush3.bf16.msra.mxu1 %v1053_v11 }
  0x12   :  { %1018 = vmatprep.subr.bf16.mxu1 %v1056_v13 }
  0x13   :  { %939 = vmatpush3.bf16.msra.mxu0 %v1055_v14 }
  0x14   :  { %940 = vmatprep.subr.bf16.mxu0 %v1057_v15 }
  0x15   :  { %1019 = vmatpush3.bf16.msra.mxu1 %v1056_v13 }
  0x16   :  { %1020 = vmatprep.subr.bf16.mxu1 %v1059_v16 }
  0x17   :  { %941 = vmatpush3.bf16.msra.mxu0 %v1058_v17 }
  0x18   :  { %942 = vmatprep.subr.bf16.mxu0 %v1060_v18 }
  0x19   :  { %1021 = vmatpush3.bf16.msra.mxu1 %v1059_v16 }
  0x1a   :  { %1022 = vmatprep.subr.bf16.mxu1 %v1062_v20 }
  0x1b   :  { %943 = vmatpush3.bf16.msra.mxu0 %v1061_v19 }
  0x1c   :  { %944 = vmatprep.subr.bf16.mxu0 %v1063_v21 }
  0x1d   :  { %1023 = vmatpush3.bf16.msra.mxu1 %v1062_v20 }
  0x1e   :  { %1024 = vmatprep.subr.bf16.mxu1 %v1065_v22 }
  0x1f   :  { %945 = vmatpush3.bf16.msra.mxu0 %v1064_v25 }
  0x21   :  { %1025 = vmatpush3.bf16.msra.mxu1 %v1065_v22 }
  0x22   :  { %442 = vmatmul.mubr.bf16.vlgmr.msra.gmra.mrb[0].mxu0 %v1066_v26 }
  0x23   :  { %449 = vmatprep.mubr.bf16.mxu0 %v1071_v27 }
  0x24   :  { %1027 = vmatmul.mubr.bf16.vlgmr.msra.gmra.mrb[0].mxu1 %v1070_v28 }
  0x25   :  { %1030 = vmatprep.mubr.bf16.mxu1 %v1077_v29 }
  0x2a   :  { %450 = vmatmul.mubr.bf16.gmra.mrb[4].mxu0 %v1073_v30 }
  0x2b   :  { %457 = vmatprep.mubr.bf16.mxu0 %v1074_v31 }
  0x2c   :  { %1031 = vmatmul.mubr.bf16.gmra.mrb[4].mxu1 %v1078_v32 }
  0x2d   :  { %1034 = vmatprep.mubr.bf16.mxu1 %v1085_v33 }
  0x32   :  { %458 = vmatmul.mubr.bf16.gmra.mrb[8].mxu0 %v1076_v34 }
  0x33   :  { %465 = vmatprep.mubr.bf16.mxu0 %v1079_v35 }
  0x34   :  { %1035 = vmatmul.mubr.bf16.gmra.mrb[8].mxu1 %v1086_v36 }
  0x35   :  { %1038 = vmatprep.mubr.bf16.mxu1 %v1093_v37 }
  0x3a   :  { %466 = vmatmul.mubr.bf16.gmra.mrb[12].mxu0 %v1081_v38 }
  0x3b   :  { %473 = vmatprep.mubr.bf16.mxu0 %v1082_v39 }
  0x3c   :  { %1039 = vmatmul.mubr.bf16.gmra.mrb[12].mxu1 %v1094_v40 }
  0x42   :  { %474 = vmatmul.mubr.bf16.gmra.mrb[16].mxu0 %v1084_v41 }
  0x43   :  { %481 = vmatprep.mubr.bf16.mxu0 %v1087_v42 }
  0x4a   :  { %482 = vmatmul.mubr.bf16.gmra.mrb[20].mxu0 %v1089_v43 }
  0x4b   :  { %489 = vmatprep.mubr.bf16.mxu0 %v1090_v44 }
  0x52   :  { %490 = vmatmul.mubr.bf16.gmra.mrb[24].mxu0 %v1092_v45 }
  0x53   :  { %497 = vmatprep.mubr.bf16.mxu0 %v1095_v46 }
  0x5a   :  { %498 = vmatmul.mubr.bf16.gmra.mrb[28].mxu0 %v1097_v47 }
  0xf5   :  { %v946_v48 = vpop.f32.mrb[0].mxu0 }
  0xf6   :  { %v947_v49 = vpop.f32.mrb[1].mxu0 }
  0xf7   :  { %v948_v50 = vadd.f32 %v947_v49, %v946_v48  ;;  %v949_v51 = vpop.f32.mrb[2].mxu0  ;;  %v1028_v52 = vpop.f32.mrb[0].mxu1 }
  0xf8   :  { %v950_v53 = vpop.f32.mrb[3].mxu0  ;;  %v540_v54 = vpop.f32.mrb[1].mxu1 }
  0xf9   :  { %v951_v55 = vadd.f32 %v950_v53, %v949_v51  ;;  %v1274_v56 = vadd.f32 %v948_v50, %v540_v54  ;;  %v1029_v57 = vpop.f32.mrb[2].mxu1 }
  0xfa   :  { %v543_v58 = vpop.f32.mrb[3].mxu1 }
  0xfb   :  { %v1276_v59 = vadd.f32 %v951_v55, %v543_v58 }
  0xfd   :  { %v952_v60 = vpop.f32.mrb[4].mxu0  ;;  %v654_v20 = vadd.f32 %v1276_v59, %v1274_v56 }
  0xfe   :  { %v953_v61 = vpop.f32.mrb[5].mxu0 }
  0xff   :  { %v954_v62 = vadd.f32 %v953_v61, %v952_v60  ;;  %v955_v63 = vpop.f32.mrb[6].mxu0  ;;  %v1032_v0 = vpop.f32.mrb[4].mxu1 }
 0x100   :  { %v956_v1 = vpop.f32.mrb[7].mxu0  ;;  %v556_v2 = vpop.f32.mrb[5].mxu1 }
 0x101   :  { %v1278_v3 = vadd.f32 %v1028_v52, %v954_v62  ;;  %v957_v4 = vadd.f32 %v956_v1, %v955_v63  ;;  %v1033_v5 = vpop.f32.mrb[6].mxu1 }
 0x102   :  { %v559_v6 = vpop.f32.mrb[7].mxu1 }
 0x103   :  { %v1280_v7 = vadd.f32 %v1029_v57, %v957_v4  ;;  %v655_v23 = vadd.f32 %v654_v20, %v1278_v3 }
 0x105   :  { %v958_v8 = vpop.f32.mrb[8].mxu0  ;;  %v656_v33 = vadd.f32 %v655_v23, %v1280_v7 }
 0x106   :  { %v959_v9 = vpop.f32.mrb[9].mxu0 }
 0x107   :  { %v960_v10 = vadd.f32 %v959_v9, %v958_v8  ;;  %v961_v11 = vpop.f32.mrb[10].mxu0  ;;  %v1036_v12 = vpop.f32.mrb[8].mxu1 }
 0x108   :  { %v962_v13 = vpop.f32.mrb[11].mxu0  ;;  %v572_v14 = vpop.f32.mrb[9].mxu1 }
 0x109   :  { %v963_v15 = vadd.f32 %v962_v13, %v961_v11  ;;  %v1282_v16 = vadd.f32 %v960_v10, %v556_v2  ;;  %v1037_v17 = vpop.f32.mrb[10].mxu1 }
 0x10a   :  { %v575_v18 = vpop.f32.mrb[11].mxu1 }
 0x10b   :  { %v1284_v19 = vadd.f32 %v963_v15, %v559_v6  ;;  %v657_v35 = vadd.f32 %v656_v33, %v1282_v16 }
 0x10d   :  { %v964_v21 = vpop.f32.mrb[12].mxu0  ;;  %v658_v41 = vadd.f32 %v657_v35, %v1284_v19 }
 0x10e   :  { %v965_v22 = vpop.f32.mrb[13].mxu0 }
 0x10f   :  { %v966_v24 = vadd.f32 %v965_v22, %v964_v21  ;;  %v967_v25 = vpop.f32.mrb[14].mxu0  ;;  %v1040_v26 = vpop.f32.mrb[12].mxu1 }
 0x110   :  { %v968_v27 = vpop.f32.mrb[15].mxu0  ;;  %v588_v28 = vpop.f32.mrb[13].mxu1 }
 0x111   :  { %v1289_v29 = vadd.f32 %v1032_v0, %v966_v24  ;;  %v969_v30 = vadd.f32 %v968_v27, %v967_v25  ;;  %v1041_v31 = vpop.f32.mrb[14].mxu1 }
 0x112   :  { %v591_v32 = vpop.f32.mrb[15].mxu1 }
 0x113   :  { %v1292_v34 = vadd.f32 %v1033_v5, %v969_v30  ;;  %v659_v44 = vadd.f32 %v658_v41, %v1289_v29 }
 0x115   :  { %v970_v36 = vpop.f32.mrb[16].mxu0  ;;  %v660_v48 = vadd.f32 %v659_v44, %v1292_v34 }
 0x116   :  { %v971_v37 = vpop.f32.mrb[17].mxu0 }
 0x117   :  { %v972_v38 = vadd.f32 %v971_v37, %v970_v36  ;;  %v973_v39 = vpop.f32.mrb[18].mxu0 }
 0x118   :  { %v974_v40 = vpop.f32.mrb[19].mxu0 }
 0x119   :  { %v975_v42 = vadd.f32 %v974_v40, %v973_v39  ;;  %v1296_v43 = vadd.f32 %v972_v38, %v572_v14 }
 0x11b   :  { %v1299_v45 = vadd.f32 %v975_v42, %v575_v18  ;;  %v661_v52 = vadd.f32 %v660_v48, %v1296_v43 }
 0x11d   :  { %v976_v46 = vpop.f32.mrb[20].mxu0  ;;  %v662_v57 = vadd.f32 %v661_v52, %v1299_v45 }
 0x11e   :  { %v977_v47 = vpop.f32.mrb[21].mxu0 }
 0x11f   :  { %v978_v49 = vadd.f32 %v977_v47, %v976_v46  ;;  %v979_v50 = vpop.f32.mrb[22].mxu0 }
 0x120   :  { %v980_v51 = vpop.f32.mrb[23].mxu0 }
 0x121   :  { %v1303_v53 = vadd.f32 %v1036_v12, %v978_v49  ;;  %v981_v54 = vadd.f32 %v980_v51, %v979_v50 }
 0x123   :  { %v1305_v55 = vadd.f32 %v1037_v17, %v981_v54  ;;  %v663_v61 = vadd.f32 %v662_v57, %v1303_v53 }
 0x125   :  { %v982_v58 = vpop.f32.mrb[24].mxu0  ;;  %v664_v4 = vadd.f32 %v663_v61, %v1305_v55 }
 0x126   :  { %v983_v60 = vpop.f32.mrb[25].mxu0 }
 0x127   :  { %v984_v62 = vadd.f32 %v983_v60, %v982_v58  ;;  %v985_v63 = vpop.f32.mrb[26].mxu0 }
 0x128   :  { %v986_v0 = vpop.f32.mrb[27].mxu0 }
 0x129   :  { %v987_v1 = vadd.f32 %v986_v0, %v985_v63  ;;  %v1309_v2 = vadd.f32 %v984_v62, %v588_v28 }
 0x12b   :  { %v1312_v5 = vadd.f32 %v987_v1, %v591_v32  ;;  %v665_v6 = vadd.f32 %v664_v4, %v1309_v2 }
 0x12d   :  { %v988_v8 = vpop.f32.mrb[28].mxu0  ;;  %v666_v13 = vadd.f32 %v665_v6, %v1312_v5 }
 0x12e   :  { %v989_v9 = vpop.f32.mrb[29].mxu0 }
 0x12f   :  { %v990_v10 = vadd.f32 %v989_v9, %v988_v8  ;;  %v991_v11 = vpop.f32.mrb[30].mxu0 }
 0x130   :  { %v992_v12 = vpop.f32.mrb[31].mxu0 }
 0x131   :  { %v1316_v14 = vadd.f32 %v1040_v26, %v990_v10  ;;  %v993_v15 = vadd.f32 %v992_v12, %v991_v11 }
 0x133   :  { %v667_v17 = vadd.f32 %v666_v13, %v1316_v14  ;;  %v1319_v18 = vadd.f32 %v1041_v31, %v993_v15 }
 0x135   :  { %v668_v20 = vadd.f32 %v667_v17, %v1319_v18 }
 0x137   :  { %v669_v21 = vrot.slane %v668_v20, 4 }
 0x139   :  { %v670_v22 = vadd.f32 %v669_v21, %v668_v20 }
 0x13b   :  { %v671_v23 = vrot.slane %v670_v22, 2 }
 0x13d   :  { %v672_v24 = vadd.f32 %v671_v23, %v670_v22 }
 0x13f   :  { %v673_v25 = vrot.slane %v672_v24, 1 }
 0x141   :  { %v674_v27 = vadd.f32 %v673_v25, %v672_v24 }
 0x143   :  { %v1322_v28 = vmul.f32 0.0078125, %v674_v27 }
 0x145   :  { %v677_v30 = vsub.f32 %v1274_v56, %v1322_v28  ;;  %v678_v26 = vsub.f32 %v1276_v59, %v1322_v28  ;;  %v679_v31 = vsub.f32 %v1278_v3, %v1322_v28  ;;  %v680_v35 = vsub.f32 %v1280_v7, %v1322_v28 }
 0x146   :  { %v681_v36 = vsub.f32 %v1282_v16, %v1322_v28  ;;  %v682_v39 = vsub.f32 %v1284_v19, %v1322_v28  ;;  %v683_v42 = vsub.f32 %v1289_v29, %v1322_v28  ;;  %v684_v47 = vsub.f32 %v1292_v34, %v1322_v28 }
 0x147   :  { %v693_v32 = vmul.f32 %v677_v30, %v677_v30  ;;  %v694_v33 = vmul.f32 %v678_v26, %v678_v26  ;;  %v695_v37 = vmul.f32 %v679_v31, %v679_v31  ;;  %v696_v40 = vmul.f32 %v680_v35, %v680_v35 }
 0x148   :  { %v697_v44 = vmul.f32 %v681_v36, %v681_v36  ;;  %v698_v48 = vmul.f32 %v682_v39, %v682_v39  ;;  %v685_v50 = vsub.f32 %v1296_v43, %v1322_v28  ;;  %v699_v51 = vmul.f32 %v683_v42, %v683_v42 }
 0x149   :  { %v709_v38 = vadd.f32 %v694_v33, %v693_v32  ;;  %v686_v54 = vsub.f32 %v1299_v45, %v1322_v28  ;;  %v700_v57 = vmul.f32 %v684_v47, %v684_v47  ;;  %v687_v60 = vsub.f32 %v1303_v53, %v1322_v28 }
 0x14a   :  { %v701_v61 = vmul.f32 %v685_v50, %v685_v50  ;;  %v688_v63 = vsub.f32 %v1305_v55, %v1322_v28  ;;  %v689_v4 = vsub.f32 %v1309_v2, %v1322_v28  ;;  %v690_v9 = vsub.f32 %v1312_v5, %v1322_v28 }
 0x14b   :  { %v710_v41 = vadd.f32 %v709_v38, %v695_v37  ;;  %v702_v0 = vmul.f32 %v686_v54, %v686_v54  ;;  %v703_v6 = vmul.f32 %v687_v60, %v687_v60  ;;  %v691_v12 = vsub.f32 %v1316_v14, %v1322_v28 }
 0x14c   :  { %v704_v10 = vmul.f32 %v688_v63, %v688_v63  ;;  %v705_v13 = vmul.f32 %v689_v4, %v689_v4  ;;  %v692_v17 = vsub.f32 %v1319_v18, %v1322_v28  ;;  %v706_v20 = vmul.f32 %v690_v9, %v690_v9 }
 0x14d   :  { %v711_v46 = vadd.f32 %v710_v41, %v696_v40  ;;  %v707_v22 = vmul.f32 %v691_v12, %v691_v12  ;;  %v739_v38 = vlaneseq  ;;  %v731_v40 = vld [vmem:[%s1505_s2] sm:$0x1] }
 0x14e   :  { %v708_v24 = vmul.f32 %v692_v17, %v692_v17 }
 0x14f   :  { %v712_v49 = vadd.f32 %v711_v46, %v697_v44  ;;  %v740_v39 = vshrl.u32 %v739_v38, 7  ;;  %v735_v46 = vld [vmem:[%s1506_s3] sm:$0x1]  ;;  %v785_v38 = vld [vmem:[%s1507_s4 + $0x18] sm:$0xff] }
 0x151   :  { %v713_v52 = vadd.f32 %v712_v49, %v698_v48  ;;  %v741_v41 = vsub.s32 0, %v740_v39  ;;  %v786_v39 = vld [vmem:[%s1507_s4 + $0x20] sm:$0xff] }
 0x153   :  { %v714_v58 = vadd.f32 %v713_v52, %v699_v51 }
 0x155   :  { %v715_v62 = vadd.f32 %v714_v58, %v700_v57 }
 0x157   :  { %v716_v1 = vadd.f32 %v715_v62, %v701_v61 }
 0x159   :  { %v717_v8 = vadd.f32 %v716_v1, %v702_v0 }
 0x15b   :  { %v718_v11 = vadd.f32 %v717_v8, %v703_v6 }
 0x15d   :  { %v719_v15 = vadd.f32 %v718_v11, %v704_v10 }
 0x15f   :  { %v720_v21 = vadd.f32 %v719_v15, %v705_v13 }
 0x161   :  { %v721_v23 = vadd.f32 %v720_v21, %v706_v20 }
 0x163   :  { %v722_v25 = vadd.f32 %v721_v23, %v707_v22 }
 0x165   :  { %v723_v27 = vadd.f32 %v722_v25, %v708_v24  ;;  %v782_v24 = vld [vmem:[%s1507_s4] sm:$0xff]  ;;  %v783_v25 = vld [vmem:[%s1507_s4 + $0x8] sm:$0xff] }
 0x167   :  { %v724_v30 = vrot.slane %v723_v27, 4 }
 0x169   :  { %v725_v26 = vadd.f32 %v724_v30, %v723_v27 }
 0x16b   :  { %v726_v31 = vrot.slane %v725_v26, 2 }
 0x16d   :  { %v727_v32 = vadd.f32 %v726_v31, %v725_v26 }
 0x16f   :  { %v728_v33 = vrot.slane %v727_v32, 1 }
 0x171   :  { %v729_v35 = vadd.f32 %v728_v33, %v727_v32 }
 0x173   :  { %v730_v36 = vmul.f32 0.0078125, %v729_v35 }
 0x175   :  { %v732_v37 = vadd.f32 1e-05, %v730_v36 }
 0x177   :  { %1098 = vrsqrt.f32 %v732_v37  ;;  %v784_v37 = vld [vmem:[%s1507_s4 + $0x10] sm:$0xff] }
 0x181   :  { %v1099_v42 = vpop.eup %1098 }
 0x182   :  { %v734_v44 = vmul.f32 %v1099_v42, %v731_v40 }
 0x184   :  { %v736_v47 = vmul.f32 %v734_v44, %v1322_v28  ;;  %v742_v48 = vrot.slane %v734_v44, %v741_v41 }
 0x186   :  { %v737_v49 = vsub.f32 %v735_v46, %v736_v47  ;;  %v744_v50 = vmul.f32 %v742_v48, %v1274_v56  ;;  %v745_v51 = vmul.f32 %v742_v48, %v1276_v59  ;;  %v746_v52 = vmul.f32 %v742_v48, %v1278_v3  ;;  %v787_v46 = vld [vmem:[%s1507_s4 + $0x28] sm:$0xff]  ;;  %v788_v47 = vld [vmem:[%s1507_s4 + $0x30] sm:$0xff] }
 0x187   :  { %v747_v54 = vmul.f32 %v742_v48, %v1280_v7  ;;  %v748_v57 = vmul.f32 %v742_v48, %v1282_v16  ;;  %v749_v58 = vmul.f32 %v742_v48, %v1284_v19  ;;  %v750_v60 = vmul.f32 %v742_v48, %v1289_v29 }
 0x188   :  { %v751_v61 = vmul.f32 %v742_v48, %v1292_v34  ;;  %v752_v28 = vmul.f32 %v742_v48, %v1296_v43  ;;  %v753_v62 = vmul.f32 %v742_v48, %v1299_v45  ;;  %v754_v56 = vmul.f32 %v742_v48, %v1303_v53 }
 0x189   :  { %v755_v59 = vmul.f32 %v742_v48, %v1305_v55  ;;  %v764_v63 = vrot.slane %v737_v49, %v741_v41  ;;  %v756_v3 = vmul.f32 %v742_v48, %v1309_v2  ;;  %v757_v7 = vmul.f32 %v742_v48, %v1312_v5 }
 0x18a   :  { %v758_v16 = vmul.f32 %v742_v48, %v1316_v14  ;;  %v759_v19 = vmul.f32 %v742_v48, %v1319_v18  ;;  %v789_v48 = vld [vmem:[%s1507_s4 + $0x38] sm:$0xff] }
 0x18b   :  { %v766_v29 = vadd.f32 %v764_v63, %v744_v50  ;;  %v767_v0 = vadd.f32 %v764_v63, %v745_v51  ;;  %v768_v34 = vadd.f32 %v764_v63, %v746_v52  ;;  %v769_v1 = vadd.f32 %v764_v63, %v747_v54  ;;  %v790_v54 = vld [vmem:[%s1507_s4 + $0x40] sm:$0xff] }
 0x18c   :  { %v770_v43 = vadd.f32 %v764_v63, %v748_v57  ;;  %v771_v4 = vadd.f32 %v764_v63, %v749_v58  ;;  %v772_v45 = vadd.f32 %v764_v63, %v750_v60  ;;  %v773_v6 = vadd.f32 %v764_v63, %v751_v61  ;;  %v791_v57 = vld [vmem:[%s1507_s4 + $0x48] sm:$0xff]  ;;  %v792_v58 = vld [vmem:[%s1507_s4 + $0x50] sm:$0xff] }
 0x18d   :  { %v774_v53 = vadd.f32 %v764_v63, %v752_v28  ;;  %v775_v8 = vadd.f32 %v764_v63, %v753_v62  ;;  %v776_v55 = vadd.f32 %v764_v63, %v754_v56  ;;  %v777_v9 = vadd.f32 %v764_v63, %v755_v59  ;;  %v793_v56 = vld [vmem:[%s1507_s4 + $0x58] sm:$0xff]  ;;  %v794_v59 = vld [vmem:[%s1507_s4 + $0x60] sm:$0xff] }
 0x18e   :  { %v778_v10 = vadd.f32 %v764_v63, %v756_v3  ;;  %v779_v2 = vadd.f32 %v764_v63, %v757_v7  ;;  %v1379_v11 = vadd.f32 %v764_v63, %v758_v16  ;;  %v1381_v5 = vadd.f32 %v764_v63, %v759_v19  ;;  %v795_v63 = vld [vmem:[%s1507_s4 + $0x68] sm:$0xff] }
 0x18f   :  { %vm798_vm0 = vcmp.ge.f32.partialorder %v766_v29, 0.0  ;;  %vm799_vm1 = vcmp.ge.f32.partialorder %v767_v0, 0.0  ;;  %vm800_vm2 = vcmp.ge.f32.partialorder %v768_v34, 0.0  ;;  %vm801_vm3 = vcmp.ge.f32.partialorder %v769_v1, 0.0 }
 0x190   :  { %vm802_vm4 = vcmp.ge.f32.partialorder %v770_v43, 0.0  ;;  %vm803_vm5 = vcmp.ge.f32.partialorder %v771_v4, 0.0  ;;  %vm804_vm6 = vcmp.ge.f32.partialorder %v772_v45, 0.0  ;;  %vm805_vm7 = vcmp.ge.f32.partialorder %v773_v6, 0.0 }
 0x191   :  { %vm806_vm8 = vcmp.ge.f32.partialorder %v774_v53, 0.0  ;;  %vm807_vm9 = vcmp.ge.f32.partialorder %v775_v8, 0.0  ;;  %vm808_vm10 = vcmp.ge.f32.partialorder %v776_v55, 0.0  ;;  %vm809_vm11 = vcmp.ge.f32.partialorder %v777_v9, 0.0 }
 0x192   :  { %vm810_vm12 = vcmp.ge.f32.partialorder %v778_v10, 0.0  ;;  %vm811_vm13 = vcmp.ge.f32.partialorder %v779_v2, 0.0  ;;  %vm812_vm14 = vcmp.ge.f32.partialorder %v1379_v11, 0.0  ;;  %vm813_vm15 = vcmp.ge.f32.partialorder %v1381_v5, 0.0 }
 0x193   :  { %v814_v14 = vmul.f32 0.1, %v766_v29  ;;  %v815_v18 = vmul.f32 0.1, %v767_v0  ;;  %v816_v12 = vmul.f32 0.1, %v768_v34 }
 0x194   :  { %v817_v13 = vmul.f32 0.1, %v769_v1  ;;  %v818_v15 = vmul.f32 0.1, %v770_v43  ;;  %v819_v17 = vmul.f32 0.1, %v771_v4 }
 0x195   :  { %v820_v20 = vmul.f32 0.1, %v772_v45  ;;  %v821_v21 = vmul.f32 0.1, %v773_v6  ;;  %v822_v22 = vmul.f32 0.1, %v774_v53  ;;  %v830_v23 = vsel %vm798_vm0, %v766_v29, %v814_v14 }
 0x196   :  { %v823_v27 = vmul.f32 0.1, %v775_v8  ;;  %v824_v30 = vmul.f32 0.1, %v776_v55  ;;  %v825_v26 = vmul.f32 0.1, %v777_v9  ;;  %v831_v31 = vsel %vm799_vm1, %v767_v0, %v815_v18 }
 0x197   :  { %v826_v32 = vmul.f32 0.1, %v778_v10  ;;  %v827_v33 = vmul.f32 0.1, %v779_v2  ;;  %v828_v35 = vmul.f32 0.1, %v1379_v11  ;;  %v832_v36 = vsel %vm800_vm2, %v768_v34, %v816_v12 }
 0x198   :  { %v829_v40 = vmul.f32 0.1, %v1381_v5  ;;  %v833_v41 = vsel %vm801_vm3, %v769_v1, %v817_v13  ;;  %v834_v42 = vsel %vm802_vm4, %v770_v43, %v818_v15  ;;  %v835_v44 = vsel %vm803_vm5, %v771_v4, %v819_v17  ;;  %v796_v29 = vld [vmem:[%s1507_s4 + $0x70] sm:$0xff]  ;;  %v797_v0 = vld [vmem:[%s1507_s4 + $0x78] sm:$0xff] }
 0x199   :  { %v836_v49 = vsel %vm804_vm6, %v772_v45, %v820_v20  ;;  %v837_v50 = vsel %vm805_vm7, %v773_v6, %v821_v21  ;;  %v838_v51 = vsel %vm806_vm8, %v774_v53, %v822_v22  ;;  %v839_v52 = vsel %vm807_vm9, %v775_v8, %v823_v27 }
 0x19a   :  { %v840_v60 = vsel %vm808_vm10, %v776_v55, %v824_v30  ;;  %v841_v61 = vsel %vm809_vm11, %v777_v9, %v825_v26  ;;  %v842_v28 = vsel %vm810_vm12, %v778_v10, %v826_v32  ;;  %v843_v62 = vsel %vm811_vm13, %v779_v2, %v827_v33 }
 0x19b   :  { %v844_v3 = vsel %vm812_vm14, %v1379_v11, %v828_v35  ;;  %v845_v7 = vsel %vm813_vm15, %v1381_v5, %v829_v40  ;;  %v846_v16 = vadd.f32 %v830_v23, %v782_v24  ;;  %v847_v19 = vadd.f32 %v831_v31, %v783_v25 }
 0x19c   :  { %v848_v34 = vadd.f32 %v832_v36, %v784_v37  ;;  %v849_v1 = vadd.f32 %v833_v41, %v785_v38  ;;  %v850_v43 = vadd.f32 %v834_v42, %v786_v39  ;;  %v851_v4 = vadd.f32 %v835_v44, %v787_v46 }
 0x19d   :  { %v852_v45 = vadd.f32 %v836_v49, %v788_v47  ;;  %v853_v6 = vadd.f32 %v837_v50, %v789_v48  ;;  %v854_v53 = vadd.f32 %v838_v51, %v790_v54  ;;  %v855_v8 = vadd.f32 %v839_v52, %v791_v57  ;;  %862 = vst [vmem:[%s1508_s5] sm:$0xff] %v846_v16 }
 0x19e   :  { %863 = vst [vmem:[%s1508_s5 + $0x8] sm:$0xff] %v847_v19  ;;  %v856_v55 = vadd.f32 %v840_v60, %v792_v58  ;;  %v857_v9 = vadd.f32 %v841_v61, %v793_v56  ;;  %v858_v10 = vadd.f32 %v842_v28, %v794_v59  ;;  %v859_v2 = vadd.f32 %v843_v62, %v795_v63 }
 0x19f   :  { %864 = vst [vmem:[%s1508_s5 + $0x10] sm:$0xff] %v848_v34  ;;  %865 = vst [vmem:[%s1508_s5 + $0x18] sm:$0xff] %v849_v1  ;;  %v860_v11 = vadd.f32 %v844_v3, %v796_v29  ;;  %v861_v5 = vadd.f32 %v845_v7, %v797_v0 }
 0x1a0   :  { %866 = vst [vmem:[%s1508_s5 + $0x20] sm:$0xff] %v850_v43  ;;  %867 = vst [vmem:[%s1508_s5 + $0x28] sm:$0xff] %v851_v4 }
 0x1a1   :  { %868 = vst [vmem:[%s1508_s5 + $0x30] sm:$0xff] %v852_v45  ;;  %869 = vst [vmem:[%s1508_s5 + $0x38] sm:$0xff] %v853_v6 }
 0x1a2   :  { %870 = vst [vmem:[%s1508_s5 + $0x40] sm:$0xff] %v854_v53  ;;  %871 = vst [vmem:[%s1508_s5 + $0x48] sm:$0xff] %v855_v8 }
 0x1a3   :  { %872 = vst [vmem:[%s1508_s5 + $0x50] sm:$0xff] %v856_v55  ;;  %873 = vst [vmem:[%s1508_s5 + $0x58] sm:$0xff] %v857_v9 }
 0x1a4   :  { %874 = vst [vmem:[%s1508_s5 + $0x60] sm:$0xff] %v858_v10  ;;  %875 = vst [vmem:[%s1508_s5 + $0x68] sm:$0xff] %v859_v2 }
 0x1a5   :  { %876 = vst [vmem:[%s1508_s5 + $0x70] sm:$0xff] %v860_v11  ;;  %877 = vst [vmem:[%s1508_s5 + $0x78] sm:$0xff] %v861_v5 }

// kernel: net_forward.21
= control target key start
LH: loop header
LB: loop body
LE: loop exit
PB: predicated region body
PF: predicated region fallthrough
CT: control target
= control target key end

     0   :  { %v211_v43 = vlaneseq  ;;  %s375_s1 = inlined_call_operand.vmem [shape: bf16[128,128], index: 1, kind: input, shape index: {}]   ;;  %s376_s0 = inlined_call_operand.vmem [shape: bf16[32,128], index: 0, kind: input, shape index: {}]   ;;  %s377_s2 = inlined_call_operand.vmem [shape: f32[1,128], index: 2, kind: input, shape index: {}]   ;;  %s378_s3 = inlined_call_operand.vmem [shape: f32[1,128], index: 3, kind: input, shape index: {}]   ;;  %s379_s4 = inlined_call_operand.vmem [shape: f32[32,128], index: 4, kind: output, shape index: {}]  }
   0x1   :  { %v290_v0 = vld [vmem:[%s375_s1] sm:$0xff]   ;;  %v291_v1 = vld [vmem:[%s375_s1 + $0x8] sm:$0xff]   ;;  %v292_v2 = vld [vmem:[%s375_s1 + $0x10] sm:$0xff]  }
   0x2   :  { %270 = vmatprep.subr.bf16.mxu0 %v290_v0  ;;  %v293_v3 = vld [vmem:[%s375_s1 + $0x18] sm:$0xff]   ;;  %v298_v4 = vld [vmem:[%s376_s0] sm:$0xff]   ;;  %v295_v6 = vld [vmem:[%s375_s1 + $0x28] sm:$0xff]   ;;  %v212_v44 = vshrl.u32 %v211_v43, 7 }
   0x3   :  { %271 = vmatpush3.bf16.msra.mxu0 %v290_v0  ;;  %286 = vmatprep.mubr.bf16.mxu0 %v298_v4  ;;  %v294_v5 = vld [vmem:[%s375_s1 + $0x20] sm:$0xff]   ;;  %v296_v7 = vld [vmem:[%s375_s1 + $0x30] sm:$0xff]   ;;  %v297_v8 = vld [vmem:[%s375_s1 + $0x38] sm:$0xff]  }
   0x4   :  { %272 = vmatprep.subr.bf16.mxu0 %v291_v1  ;;  %v299_v9 = vld [vmem:[%s376_s0 + $0x8] sm:$0xff]   ;;  %v203_v45 = vld [vmem:[%s377_s2] sm:$0x1]  ;;  %v213_v46 = vsub.s32 0, %v212_v44 }
   0x5   :  { %v207_v49 = vld [vmem:[%s378_s3] sm:$0x1] }
   0x7   :  { %273 = vmatpush3.bf16.msra.mxu0 %v291_v1 }
   0x8   :  { %274 = vmatprep.subr.bf16.mxu0 %v292_v2 }
   0xb   :  { %275 = vmatpush3.bf16.msra.mxu0 %v292_v2 }
   0xc   :  { %276 = vmatprep.subr.bf16.mxu0 %v293_v3 }
   0xf   :  { %277 = vmatpush3.bf16.msra.mxu0 %v293_v3 }
  0x10   :  { %278 = vmatprep.subr.bf16.mxu0 %v294_v5 }
  0x13   :  { %279 = vmatpush3.bf16.msra.mxu0 %v294_v5 }
  0x14   :  { %280 = vmatprep.subr.bf16.mxu0 %v295_v6 }
  0x17   :  { %281 = vmatpush3.bf16.msra.mxu0 %v295_v6 }
  0x18   :  { %282 = vmatprep.subr.bf16.mxu0 %v296_v7 }
  0x1b   :  { %283 = vmatpush3.bf16.msra.mxu0 %v296_v7 }
  0x1c   :  { %284 = vmatprep.subr.bf16.mxu0 %v297_v8 }
  0x1f   :  { %285 = vmatpush3.bf16.msra.mxu0 %v297_v8 }
  0x22   :  { %287 = vmatmul.mubr.bf16.vlgmr.msra.gmra.mrb[0].mxu0 %v299_v9 }
  0xf5   :  { %v288_v10 = vpop.f32.mrb[0].mxu0 }
  0xf6   :  { %v144_v11 = vpop.f32.mrb[1].mxu0 }
  0xf7   :  { %v289_v12 = vpop.f32.mrb[2].mxu0 }
  0xf8   :  { %v147_v13 = vpop.f32.mrb[3].mxu0 }
  0xf9   :  { %v174_v14 = vadd.f32 %v147_v13, %v144_v11 }
  0xfb   :  { %v175_v15 = vadd.f32 %v288_v10, %v174_v14 }
  0xfd   :  { %v176_v16 = vadd.f32 %v289_v12, %v175_v15 }
  0xff   :  { %v177_v17 = vrot.slane %v176_v16, 4 }
 0x101   :  { %v178_v18 = vadd.f32 %v177_v17, %v176_v16 }
 0x103   :  { %v179_v19 = vrot.slane %v178_v18, 2 }
 0x105   :  { %v180_v20 = vadd.f32 %v179_v19, %v178_v18 }
 0x107   :  { %v181_v21 = vrot.slane %v180_v20, 1 }
 0x109   :  { %v182_v22 = vadd.f32 %v181_v21, %v180_v20 }
 0x10b   :  { %v184_v23 = vmul.f32 0.03125, %v182_v22 }
 0x10d   :  { %v185_v24 = vsub.f32 %v144_v11, %v184_v23  ;;  %v186_v25 = vsub.f32 %v147_v13, %v184_v23  ;;  %v187_v26 = vsub.f32 %v288_v10, %v184_v23  ;;  %v188_v27 = vsub.f32 %v289_v12, %v184_v23 }
 0x10f   :  { %v189_v28 = vmul.f32 %v185_v24, %v185_v24  ;;  %v190_v29 = vmul.f32 %v186_v25, %v186_v25  ;;  %v191_v30 = vmul.f32 %v187_v26, %v187_v26  ;;  %v192_v32 = vmul.f32 %v188_v27, %v188_v27 }
 0x111   :  { %v193_v31 = vadd.f32 %v190_v29, %v189_v28 }
 0x113   :  { %v194_v33 = vadd.f32 %v193_v31, %v191_v30 }
 0x115   :  { %v195_v34 = vadd.f32 %v194_v33, %v192_v32 }
 0x117   :  { %v196_v35 = vrot.slane %v195_v34, 4 }
 0x119   :  { %v197_v36 = vadd.f32 %v196_v35, %v195_v34 }
 0x11b   :  { %v198_v37 = vrot.slane %v197_v36, 2 }
 0x11d   :  { %v199_v38 = vadd.f32 %v198_v37, %v197_v36 }
 0x11f   :  { %v200_v39 = vrot.slane %v199_v38, 1 }
 0x121   :  { %v201_v40 = vadd.f32 %v200_v39, %v199_v38 }
 0x123   :  { %v202_v41 = vmul.f32 0.03125, %v201_v40 }
 0x125   :  { %v204_v42 = vadd.f32 1e-05, %v202_v41 }
 0x127   :  { %300 = vrsqrt.f32 %v204_v42 }
 0x131   :  { %v301_v47 = vpop.eup %300 }
 0x132   :  { %v206_v48 = vmul.f32 %v301_v47, %v203_v45 }
 0x134   :  { %v208_v50 = vmul.f32 %v206_v48, %v184_v23  ;;  %v214_v51 = vrot.slane %v206_v48, %v213_v46 }
 0x136   :  { %v209_v52 = vsub.f32 %v207_v49, %v208_v50  ;;  %v216_v53 = vmul.f32 %v214_v51, %v144_v11  ;;  %v217_v54 = vmul.f32 %v214_v51, %v147_v13  ;;  %v218_v55 = vmul.f32 %v288_v10, %v214_v51 }
 0x137   :  { %v219_v56 = vmul.f32 %v289_v12, %v214_v51 }
 0x138   :  { %v224_v57 = vrot.slane %v209_v52, %v213_v46 }
 0x13a   :  { %v226_v58 = vadd.f32 %v224_v57, %v216_v53  ;;  %v227_v59 = vadd.f32 %v224_v57, %v217_v54  ;;  %v228_v60 = vadd.f32 %v224_v57, %v218_v55  ;;  %v229_v61 = vadd.f32 %v224_v57, %v219_v56 }
 0x13c   :  { %vm230_vm0 = vcmp.ge.f32.partialorder %v226_v58, 0.0  ;;  %vm231_vm1 = vcmp.ge.f32.partialorder %v227_v59, 0.0  ;;  %vm232_vm2 = vcmp.ge.f32.partialorder %v228_v60, 0.0  ;;  %vm233_vm3 = vcmp.ge.f32.partialorder %v229_v61, 0.0 }
 0x13d   :  { %v234_v62 = vmul.f32 0.1, %v226_v58  ;;  %v235_v63 = vmul.f32 0.1, %v227_v59  ;;  %v236_v0 = vmul.f32 0.1, %v228_v60 }
 0x13e   :  { %v237_v1 = vmul.f32 0.1, %v229_v61 }
 0x13f   :  { %v238_v2 = vsel %vm230_vm0, %v226_v58, %v234_v62  ;;  %v239_v3 = vsel %vm231_vm1, %v227_v59, %v235_v63  ;;  %v240_v4 = vsel %vm232_vm2, %v228_v60, %v236_v0 }
 0x140   :  { %v241_v5 = vsel %vm233_vm3, %v229_v61, %v237_v1  ;;  %242 = vst [vmem:[%s379_s4] sm:$0xff] %v238_v2  ;;  %243 = vst [vmem:[%s379_s4 + $0x8] sm:$0xff] %v239_v3 }
 0x141   :  { %244 = vst [vmem:[%s379_s4 + $0x10] sm:$0xff] %v240_v4  ;;  %245 = vst [vmem:[%s379_s4 + $0x18] sm:$0xff] %v241_v5 }

// kernel: net_forward.20
= control target key start
LH: loop header
LB: loop body
LE: loop exit
PB: predicated region body
PF: predicated region fallthrough
CT: control target
= control target key end

     0   :  { %s1178_s15 = smov 0   ;;  %s1180_s16 = smov 0   ;;  %s1307_s0 = inlined_call_operand.vmem [shape: bf16[32,1024], index: 0, kind: input, shape index: {}]   ;;  %s1308_s1 = inlined_call_operand.vmem [shape: bf16[1024,128], index: 1, kind: input, shape index: {}]   ;;  %s1309_s2 = inlined_call_operand.vmem [shape: f32[1,128], index: 2, kind: input, shape index: {}]   ;;  %s1310_s3 = inlined_call_operand.vmem [shape: f32[1,128], index: 3, kind: input, shape index: {}]   ;;  %s1311_s4 = inlined_call_operand.vmem [shape: f32[32,128], index: 4, kind: output, shape index: {}]  }
   0x1   :  { %s1182_s17 = smov 0   ;;  %s1184_s18 = smov 0  }
   0x2   :  { %s1186_s19 = smov 0  }
   0x3 LB: > { %s23_s20 = sadd.s32 1, %s1146_s18  ;;  %p40_p1 = scmp.ne.s32.totalorder %s1138_s16, %s1134_s15  ;;  %s1150_s19 = sphi %s1186_s19, %s14_s19   ;;  %s1146_s18 = sphi %s1184_s18, %s1315_s18   ;;  %s1142_s17 = sphi %s1182_s17, %s1314_s17   ;;  %s1138_s16 = sphi %s1180_s16, %s1313_s16   ;;  %s1134_s15 = sphi %s1178_s15, %s1312_s15  }
   0x4   : > { %p24_p0 = scmp.ge.s32.totalorder %s23_s20, 2  ;;  %p41_p2 = scmp.eq.s32.totalorder %s1150_s19, 0 }
   0x5   : > { %s33_s22 = sadd.s32 1, %s1138_s16  ;;  %p915_p5 = scmp.ge.s32.totalorder %s1150_s19, 2 }
   0x6   : > { %s1317_s20 = smov (%p24_p0, %s23_s20), 0  ;;  %p42_p3 = por %p41_p2, %p40_p1 }
   0x7   : > { %s30_s21 = ssub.s32 %s1146_s18, %s1317_s20  ;;  %184 = sbr.rel (%p915_p5) target bundleno = 22 (0x16), region = 24 }
   0x8   : > { %p31_p4 = scmp.eq.s32.totalorder %s30_s21, 0 }
   0xa   : > { %s1213_s23 = scalar_select %p31_p4, %s1138_s16, %s33_s22  }
   0xe   : > { %187 = sbr.rel (!%p42_p3) target bundleno = 22 (0x16), region = 28  ;;  %s189_s24 = sand.u32 (%p42_p3), 1, %s1138_s16  }
   0xf   : > { %s968_s25 = sshll.u32 (%p42_p3), %s1146_s18, 4  ;;  %s916_s26 = sshll.u32 (%p42_p3), %s189_s24, 6 }
  0x10   : > { %s194_s29 = scalar_lea.vmem (%p42_p3), %s1307_s0, %s968_s25  ;;  %s191_s30 = scalar_lea.vmem (%p42_p3), [#allocation3], %s916_s26 }
  0x11   : > { %v207_v0 = vld [vmem:[%s194_s29] sm:$0xff] (%p42_p3)  ;;  %v209_v1 = vld [vmem:[%s194_s29 + $0x8] sm:$0xff] (%p42_p3) }
  0x12   : > { %v211_v2 = vld [vmem:[%s194_s29 + $0x20] sm:$0xff] (%p42_p3)  ;;  %208 = vst [vmem:[%s191_s30] sm:$0xff] (%p42_p3), %v207_v0  ;;  %210 = vst [vmem:[%s191_s30 + $0x8] sm:$0xff] (%p42_p3), %v209_v1  ;;  %v213_v3 = vld [vmem:[%s194_s29 + $0x28] sm:$0xff] (%p42_p3) }
  0x13   : > { %212 = vst [vmem:[%s191_s30 + $0x10] sm:$0xff] (%p42_p3), %v211_v2  ;;  %v215_v4 = vld [vmem:[%s194_s29 + $0x40] sm:$0xff] (%p42_p3)  ;;  %v217_v5 = vld [vmem:[%s194_s29 + $0x48] sm:$0xff] (%p42_p3)  ;;  %214 = vst [vmem:[%s191_s30 + $0x18] sm:$0xff] (%p42_p3), %v213_v3 }
  0x14   : > { %216 = vst [vmem:[%s191_s30 + $0x20] sm:$0xff] (%p42_p3), %v215_v4  ;;  %218 = vst [vmem:[%s191_s30 + $0x28] sm:$0xff] (%p42_p3), %v217_v5  ;;  %v219_v6 = vld [vmem:[%s194_s29 + $0x60] sm:$0xff] (%p42_p3)  ;;  %v221_v7 = vld [vmem:[%s194_s29 + $0x68] sm:$0xff] (%p42_p3) }
  0x15   : > { %220 = vst [vmem:[%s191_s30 + $0x30] sm:$0xff] %v219_v6  ;;  %222 = vst [vmem:[%s191_s30 + $0x38] sm:$0xff] %v221_v7 }
  0x16 PF: > { %p919_p6 = scmp.ge.s32.totalorder %s1150_s19, 1  ;;  %p239_p7 = scmp.lt.s32.totalorder %s1150_s19, 3 }
  0x18   : > { %p240_p8 = pnand %p919_p6, %p239_p7 }
  0x19   : > { %s246_s5 = sand.u32 (!%p240_p8), 1, %s1134_s15   ;;  %s921_s6 = sshll.u32 (!%p240_p8), %s1142_s17, 6 }
  0x1a   : > { %243 = sbr.rel (%p240_p8) target bundleno = 380 (0x17c), region = 55  ;;  %s920_s7 = sshll.u32 (!%p240_p8), %s246_s5, 6 }
  0x1b   : > { %p286_p9 = scmp.lt.s32.totalorder (!%p240_p8), %s921_s6, 127  ;;  %s1230_s12 = scalar_lea.vmem (!%p240_p8), [#allocation3], %s920_s7 }
  0x1c   : > { %p923_p10 = scmp.ne.s32.totalorder (!%p240_p8), %s1142_s17, 0 }
  0x21   : > { %s1319_s6 = smov (!%p286_p9, %s921_s6), 127  ;;  %308 = sbr.rel (%p923_p10) target bundleno = 40 (0x28), region = 63 }
  0x22   : > { %s922_s8 = sshll.u32 %s1319_s6, 2  ;;  %v1152_v8 = vmov (!%p923_p10), 0.0  }
  0x23   : > { %s1228_s11 = scalar_lea.vmem %s1308_s1, %s922_s8  ;;  %309 = vst [vmem:[#allocation2] sm:$0xff] (!%p923_p10), %v1152_v8  ;;  %310 = vst [vmem:[#allocation2 + $0x8] sm:$0xff] (!%p923_p10), %v1152_v8 }
  0x24   : > { %311 = vst [vmem:[#allocation2 + $0x10] sm:$0xff] (!%p923_p10), %v1152_v8  ;;  %312 = vst [vmem:[#allocation2 + $0x18] sm:$0xff] (!%p923_p10), %v1152_v8 }
  0x28 PF: > { %v1066_v9 = vld [vmem:[%s1228_s11 + $0x40] sm:$0xff]   ;;  %v1070_v13 = vld [vmem:[%s1228_s11 + $0x48] sm:$0xff]   ;;  %v1074_v17 = vld [vmem:[%s1228_s11 + $0x50] sm:$0xff]   ;;  %p964_p11 = scmp.ne.s32.totalorder %s1142_s17, 1 }
  0x29   : > { %v1067_v10 = vld [vmem:[%s1228_s11 + $0xc0] sm:$0xff]   ;;  %969 = vmatprep.subr.bf16.mxu0 %v1066_v9  ;;  %v1071_v14 = vld [vmem:[%s1228_s11 + $0xc8] sm:$0xff]   ;;  %v1075_v18 = vld [vmem:[%s1228_s11 + $0xd0] sm:$0xff]  }
  0x2a   : > { %v1068_v11 = vld [vmem:[%s1228_s11] sm:$0xff]   ;;  %997 = vmatprep.subr.bf16.mxu1 %v1067_v10  ;;  %v1072_v15 = vld [vmem:[%s1228_s11 + $0x8] sm:$0xff]   ;;  %v1076_v19 = vld [vmem:[%s1228_s11 + $0x10] sm:$0xff]  }
  0x2b   : > { %v1069_v12 = vld [vmem:[%s1228_s11 + $0x80] sm:$0xff]   ;;  %970 = vmatpush3.bf16.msra.mxu0 %v1068_v11  ;;  %v1073_v16 = vld [vmem:[%s1228_s11 + $0x88] sm:$0xff]   ;;  %v1077_v20 = vld [vmem:[%s1228_s11 + $0x90] sm:$0xff]  }
  0x2c   : > { %998 = vmatpush3.bf16.msra.mxu1 %v1069_v12  ;;  %971 = vmatprep.subr.bf16.mxu0 %v1070_v13  ;;  %v1078_v21 = vld [vmem:[%s1228_s11 + $0x58] sm:$0xff]   ;;  %v1082_v25 = vld [vmem:[%s1228_s11 + $0x60] sm:$0xff]   ;;  %v1086_v29 = vld [vmem:[%s1228_s11 + $0x68] sm:$0xff]  }
  0x2d   : > { %999 = vmatprep.subr.bf16.mxu1 %v1071_v14  ;;  %v1079_v22 = vld [vmem:[%s1228_s11 + $0xd8] sm:$0xff]   ;;  %v1083_v26 = vld [vmem:[%s1228_s11 + $0xe0] sm:$0xff]   ;;  %v1087_v30 = vld [vmem:[%s1228_s11 + $0xe8] sm:$0xff]  }
  0x2e   : > { %v1080_v23 = vld [vmem:[%s1228_s11 + $0x18] sm:$0xff]   ;;  %v1084_v27 = vld [vmem:[%s1228_s11 + $0x20] sm:$0xff]   ;;  %v1088_v31 = vld [vmem:[%s1228_s11 + $0x28] sm:$0xff]  }
  0x2f   : > { %972 = vmatpush3.bf16.msra.mxu0 %v1072_v15  ;;  %v1081_v24 = vld [vmem:[%s1228_s11 + $0x98] sm:$0xff]   ;;  %v1085_v28 = vld [vmem:[%s1228_s11 + $0xa0] sm:$0xff]   ;;  %v1089_v32 = vld [vmem:[%s1228_s11 + $0xa8] sm:$0xff]  }
  0x30   : > { %1000 = vmatpush3.bf16.msra.mxu1 %v1073_v16  ;;  %973 = vmatprep.subr.bf16.mxu0 %v1074_v17  ;;  %v1090_v33 = vld [vmem:[%s1228_s11 + $0x70] sm:$0xff]   ;;  %v1094_v37 = vld [vmem:[%s1228_s11 + $0x78] sm:$0xff]   ;;  %v313_v58 = vld [vmem:[#allocation2] sm:$0xff] }
  0x31   : > { %1001 = vmatprep.subr.bf16.mxu1 %v1075_v18  ;;  %v1091_v34 = vld [vmem:[%s1228_s11 + $0xf0] sm:$0xff]   ;;  %v1095_v38 = vld [vmem:[%s1228_s11 + $0xf8] sm:$0xff]   ;;  %v314_v63 = vld [vmem:[#allocation2 + $0x8] sm:$0xff] }
  0x32   : > { %v1092_v35 = vld [vmem:[%s1228_s11 + $0x30] sm:$0xff]   ;;  %v1096_v39 = vld [vmem:[%s1228_s11 + $0x38] sm:$0xff]  }
  0x33   : > { %974 = vmatpush3.bf16.msra.mxu0 %v1076_v19  ;;  %v1093_v36 = vld [vmem:[%s1228_s11 + $0xb0] sm:$0xff]   ;;  %v1097_v40 = vld [vmem:[%s1228_s11 + $0xb8] sm:$0xff]  }
  0x34   : > { %1002 = vmatpush3.bf16.msra.mxu1 %v1077_v20  ;;  %975 = vmatprep.subr.bf16.mxu0 %v1078_v21  ;;  %v1098_v41 = vld [vmem:[%s1230_s12] ss:$16 sps:$4 sm:$0xff]   ;;  %v1100_v42 = vld [vmem:[%s1230_s12 + $0x4] ss:$16 sps:$4 sm:$0xff]   ;;  %v1101_v43 = vld [vmem:[%s1230_s12 + $0x8] ss:$16 sps:$4 sm:$0xff]  }
  0x35   : > { %1003 = vmatprep.subr.bf16.mxu1 %v1079_v22  ;;  %v1103_v44 = vld [vmem:[%s1230_s12 + $0xc] ss:$16 sps:$4 sm:$0xff]   ;;  %653 = vmatprep.mubr.bf16.mxu0 %v1100_v42  ;;  %v1104_v45 = vld [vmem:[%s1230_s12 + $0x24] ss:$16 sps:$4 sm:$0xff]   ;;  %v1108_v47 = vld [vmem:[%s1230_s12 + $0x20] ss:$16 sps:$4 sm:$0xff]  }
  0x36   : > { %702 = vmatprep.mubr.bf16.mxu1 %v1103_v44  ;;  %v1106_v46 = vld [vmem:[%s1230_s12 + $0x2c] ss:$16 sps:$4 sm:$0xff]   ;;  %v1109_v48 = vld [vmem:[%s1230_s12 + $0x28] ss:$16 sps:$4 sm:$0xff]   ;;  %v315_v12 = vld [vmem:[#allocation2 + $0x10] sm:$0xff] }
  0x37   : > { %976 = vmatpush3.bf16.msra.mxu0 %v1080_v23  ;;  %v316_v17 = vld [vmem:[#allocation2 + $0x18] sm:$0xff] }
  0x38   : > { %1004 = vmatpush3.bf16.msra.mxu1 %v1081_v24  ;;  %977 = vmatprep.subr.bf16.mxu0 %v1082_v25 }
  0x39   : > { %1005 = vmatprep.subr.bf16.mxu1 %v1083_v26 }
  0x3b   : > { %978 = vmatpush3.bf16.msra.mxu0 %v1084_v27 }
  0x3c   : > { %1006 = vmatpush3.bf16.msra.mxu1 %v1085_v28  ;;  %979 = vmatprep.subr.bf16.mxu0 %v1086_v29 }
  0x3d   : > { %1007 = vmatprep.subr.bf16.mxu1 %v1087_v30 }
  0x3f   : > { %980 = vmatpush3.bf16.msra.mxu0 %v1088_v31 }
  0x40   : > { %1008 = vmatpush3.bf16.msra.mxu1 %v1089_v32  ;;  %981 = vmatprep.subr.bf16.mxu0 %v1090_v33 }
  0x41   : > { %1009 = vmatprep.subr.bf16.mxu1 %v1091_v34 }
  0x43   : > { %982 = vmatpush3.bf16.msra.mxu0 %v1092_v35 }
  0x44   : > { %1010 = vmatpush3.bf16.msra.mxu1 %v1093_v36  ;;  %983 = vmatprep.subr.bf16.mxu0 %v1094_v37 }
  0x45   : > { %1011 = vmatprep.subr.bf16.mxu1 %v1095_v38 }
  0x47   : > { %984 = vmatpush3.bf16.msra.mxu0 %v1096_v39 }
  0x48   : > { %1012 = vmatpush3.bf16.msra.mxu1 %v1097_v40 }
  0x4a   : > { %654 = vmatmul.mubr.bf16.vlgmr.msra.gmra.mrb[0].mxu0 %v1098_v41 }
  0x4b   : > { %703 = vmatmul.mubr.bf16.vlgmr.msra.gmra.mrb[0].mxu1 %v1101_v43  ;;  %661 = vmatprep.mubr.bf16.mxu0 %v1104_v45 }
  0x4c   : > { %710 = vmatprep.mubr.bf16.mxu1 %v1106_v46 }
  0x52   : > { %662 = vmatmul.mubr.bf16.gmra.mrb[4].mxu0 %v1108_v47 }
  0x53   : > { %711 = vmatmul.mubr.bf16.gmra.mrb[4].mxu1 %v1109_v48 }
 0x11d   : > { %v985_v49 = vpop.f32.mrb[0].mxu0 }
 0x11e   : > { %v1013_v50 = vpop.f32.mrb[0].mxu1  ;;  %v986_v51 = vpop.f32.mrb[1].mxu0 }
 0x11f   : > { %v987_v52 = vadd.f32 %v986_v51, %v985_v49  ;;  %v1014_v53 = vpop.f32.mrb[1].mxu1  ;;  %v988_v54 = vpop.f32.mrb[2].mxu0 }
 0x120   : > { %v1015_v55 = vadd.f32 %v1014_v53, %v1013_v50  ;;  %v1016_v56 = vpop.f32.mrb[2].mxu1  ;;  %v989_v57 = vpop.f32.mrb[3].mxu0 }
 0x121   : > { %v990_v59 = vadd.f32 %v989_v57, %v988_v54  ;;  %v1017_v60 = vpop.f32.mrb[3].mxu1  ;;  %v772_v54 = vlaneseq (!%p964_p11) }
 0x122   : > { %v705_v61 = vadd.f32 %v1015_v55, %v987_v52  ;;  %v1018_v62 = vadd.f32 %v1017_v60, %v1016_v56  ;;  %v764_v56 = vld [vmem:[%s1309_s2] sm:$0x1] (!%p964_p11) }
 0x123   : > { %v773_v55 = vshrl.u32 (!%p964_p11), %v772_v54, 7  ;;  %v768_v60 = vld [vmem:[%s1310_s3] sm:$0x1] (!%p964_p11) }
 0x124   : > { %v719_v0 = vadd.f32 %v705_v61, %v313_v58  ;;  %v708_v1 = vadd.f32 %v1018_v62, %v990_v59 }
 0x125   : > { %v991_v2 = vpop.f32.mrb[4].mxu0  ;;  %v774_v57 = vsub.s32 (!%p964_p11), 0, %v773_v55 }
 0x126   : > { %723 = vst [vmem:[#allocation2] sm:$0xff] %v719_v0  ;;  %v720_v3 = vadd.f32 %v708_v1, %v314_v63  ;;  %v1019_v4 = vpop.f32.mrb[4].mxu1  ;;  %v992_v5 = vpop.f32.mrb[5].mxu0 }
 0x127   : > { %v993_v6 = vadd.f32 %v992_v5, %v991_v2  ;;  %v1020_v7 = vpop.f32.mrb[5].mxu1  ;;  %v994_v8 = vpop.f32.mrb[6].mxu0 }
 0x128   : > { %724 = vst [vmem:[#allocation2 + $0x8] sm:$0xff] %v720_v3  ;;  %v1021_v9 = vadd.f32 %v1020_v7, %v1019_v4  ;;  %v1022_v10 = vpop.f32.mrb[6].mxu1  ;;  %v995_v11 = vpop.f32.mrb[7].mxu0 }
 0x129   : > { %v996_v13 = vadd.f32 %v995_v11, %v994_v8  ;;  %v1023_v14 = vpop.f32.mrb[7].mxu1 }
 0x12a   : > { %v713_v15 = vadd.f32 %v1021_v9, %v993_v6  ;;  %v1024_v16 = vadd.f32 %v1023_v14, %v1022_v10  ;;  %730 = sbr.rel (%p964_p11) target bundleno = 380 (0x17c), region = 67 }
 0x12c   : > { %v721_v18 = vadd.f32 %v713_v15, %v315_v12  ;;  %v716_v19 = vadd.f32 %v1024_v16, %v996_v13 }
 0x12d   : > { %v731_v21 = vld [vmem:[#allocation2] sm:$0xff] (!%p964_p11) }
 0x12e   : > { %725 = vst [vmem:[#allocation2 + $0x10] sm:$0xff] %v721_v18  ;;  %v722_v20 = vadd.f32 %v716_v19, %v316_v17 }
 0x12f   : > { %v732_v22 = vld [vmem:[#allocation2 + $0x8] sm:$0xff] (!%p964_p11) }
 0x130   : > { %726 = vst [vmem:[#allocation2 + $0x18] sm:$0xff] %v722_v20  ;;  %v735_v24 = vadd.f32 (!%p964_p11), %v732_v22, %v731_v21 }
 0x135   : > { %v733_v23 = vld [vmem:[#allocation2 + $0x10] sm:$0xff] }
 0x136   : > { %v736_v26 = vadd.f32 %v735_v24, %v733_v23 }
 0x137   : > { %v734_v25 = vld [vmem:[#allocation2 + $0x18] sm:$0xff] }
 0x138   : > { %v737_v27 = vadd.f32 %v736_v26, %v734_v25 }
 0x13a   : > { %v738_v28 = vrot.slane %v737_v27, 4 }
 0x13c   : > { %v739_v29 = vadd.f32 %v738_v28, %v737_v27 }
 0x13e   : > { %v740_v30 = vrot.slane %v739_v29, 2 }
 0x140   : > { %v741_v31 = vadd.f32 %v740_v30, %v739_v29 }
 0x142   : > { %v742_v32 = vrot.slane %v741_v31, 1 }
 0x144   : > { %v743_v33 = vadd.f32 %v742_v32, %v741_v31 }
 0x146   : > { %v745_v34 = vmul.f32 0.03125, %v743_v33 }
 0x148   : > { %v746_v35 = vsub.f32 %v731_v21, %v745_v34  ;;  %v747_v36 = vsub.f32 %v732_v22, %v745_v34  ;;  %v748_v37 = vsub.f32 %v733_v23, %v745_v34  ;;  %v749_v38 = vsub.f32 %v734_v25, %v745_v34 }
 0x14a   : > { %v750_v39 = vmul.f32 %v746_v35, %v746_v35  ;;  %v751_v40 = vmul.f32 %v747_v36, %v747_v36  ;;  %v752_v41 = vmul.f32 %v748_v37, %v748_v37  ;;  %v753_v42 = vmul.f32 %v749_v38, %v749_v38 }
 0x14c   : > { %v754_v43 = vadd.f32 %v751_v40, %v750_v39 }
 0x14e   : > { %v755_v44 = vadd.f32 %v754_v43, %v752_v41 }
 0x150   : > { %v756_v45 = vadd.f32 %v755_v44, %v753_v42 }
 0x152   : > { %v757_v46 = vrot.slane %v756_v45, 4 }
 0x154   : > { %v758_v47 = vadd.f32 %v757_v46, %v756_v45 }
 0x156   : > { %v759_v48 = vrot.slane %v758_v47, 2 }
 0x158   : > { %v760_v49 = vadd.f32 %v759_v48, %v758_v47 }
 0x15a   : > { %v761_v50 = vrot.slane %v760_v49, 1 }
 0x15c   : > { %v762_v51 = vadd.f32 %v761_v50, %v760_v49 }
 0x15e   : > { %v763_v52 = vmul.f32 0.03125, %v762_v51 }
 0x160   : > { %v765_v53 = vadd.f32 1e-05, %v763_v52 }
 0x162   : > { %1110 = vrsqrt.f32 %v765_v53 }
 0x16c   : > { %v1111_v58 = vpop.eup %1110 }
 0x16d   : > { %v767_v59 = vmul.f32 %v1111_v58, %v764_v56 }
 0x16f   : > { %v769_v61 = vmul.f32 %v767_v59, %v745_v34  ;;  %v775_v62 = vrot.slane %v767_v59, %v774_v57 }
 0x171   : > { %v770_v63 = vsub.f32 %v768_v60, %v769_v61  ;;  %v777_v0 = vmul.f32 %v775_v62, %v731_v21  ;;  %v778_v1 = vmul.f32 %v775_v62, %v732_v22  ;;  %v779_v2 = vmul.f32 %v775_v62, %v733_v23 }
 0x172   : > { %v780_v3 = vmul.f32 %v775_v62, %v734_v25 }
 0x173   : > { %v785_v4 = vrot.slane %v770_v63, %v774_v57 }
 0x175   : > { %v787_v5 = vadd.f32 %v785_v4, %v777_v0  ;;  %v788_v6 = vadd.f32 %v785_v4, %v778_v1  ;;  %v789_v7 = vadd.f32 %v785_v4, %v779_v2  ;;  %v790_v8 = vadd.f32 %v785_v4, %v780_v3 }
 0x177   : > { %vm791_vm0 = vcmp.ge.f32.partialorder %v787_v5, 0.0  ;;  %v795_v9 = vmul.f32 0.1, %v787_v5  ;;  %vm792_vm1 = vcmp.ge.f32.partialorder %v788_v6, 0.0  ;;  %v796_v10 = vmul.f32 0.1, %v788_v6 }
 0x178   : > { %vm793_vm2 = vcmp.ge.f32.partialorder %v789_v7, 0.0  ;;  %v797_v11 = vmul.f32 0.1, %v789_v7  ;;  %vm794_vm3 = vcmp.ge.f32.partialorder %v790_v8, 0.0  ;;  %v798_v12 = vmul.f32 0.1, %v790_v8 }
 0x179   : > { %v799_v13 = vsel %vm791_vm0, %v787_v5, %v795_v9  ;;  %v800_v14 = vsel %vm792_vm1, %v788_v6, %v796_v10 }
 0x17a   : > { %803 = vst [vmem:[%s1311_s4] sm:$0xff] %v799_v13  ;;  %804 = vst [vmem:[%s1311_s4 + $0x8] sm:$0xff] %v800_v14  ;;  %v801_v15 = vsel %vm793_vm2, %v789_v7, %v797_v11  ;;  %v802_v16 = vsel %vm794_vm3, %v790_v8, %v798_v12 }
 0x17b   : > { %805 = vst [vmem:[%s1311_s4 + $0x10] sm:$0xff] %v801_v15  ;;  %806 = vst [vmem:[%s1311_s4 + $0x18] sm:$0xff] %v802_v16 }
 0x17c PF: > { %s14_s19 = sadd.s32 1, %s1150_s19   ;;  %s1312_s15 = smov %s1138_s16 }
 0x17d   : > { %p11_p12 = scmp.ge.s32.totalorder %s14_s19, 4   ;;  %s1313_s16 = smov %s1213_s23 }
 0x17e   : > { %s1314_s17 = smov %s1146_s18  ;;  %s1315_s18 = smov %s1317_s20 }
 0x17f   :  { %13 = sbr.rel (!%p11_p12) target bundleno = 3 (0x3), region = 111 }

// kernel: net_forward.22
= control target key start
LH: loop header
LB: loop body
LE: loop exit
PB: predicated region body
PF: predicated region fallthrough
CT: control target
= control target key end

     0   :  { %s1251_s18 = smov 0   ;;  %s1253_s19 = smov 0   ;;  %s1392_s0 = inlined_call_operand.vmem [shape: bf16[32,1024], index: 0, kind: input, shape index: {}]   ;;  %s1393_s1 = inlined_call_operand.vmem [shape: bf16[1024,128], index: 1, kind: input, shape index: {}]   ;;  %s1394_s2 = inlined_call_operand.vmem [shape: f32[1,128], index: 2, kind: input, shape index: {}]   ;;  %s1395_s3 = inlined_call_operand.vmem [shape: f32[1,128], index: 3, kind: input, shape index: {}]   ;;  %s1396_s4 = inlined_call_operand.vmem [shape: f32[32,128], index: 4, kind: input, shape index: {}, may-alias: {4,5}]   ;;  %s1397_s5 = inlined_call_operand.vmem [shape: f32[32,128], index: 5, kind: output, shape index: {}, may-alias: {4,5}]  }
   0x1   :  { %s1255_s20 = smov 0   ;;  %s1257_s21 = smov 0  }
   0x2   :  { %s1259_s22 = smov 0  }
   0x3 LB: > { %s24_s23 = sadd.s32 1, %s1214_s21  ;;  %p41_p1 = scmp.ne.s32.totalorder %s1206_s19, %s1202_s18  ;;  %s1218_s22 = sphi %s1259_s22, %s15_s22   ;;  %s1214_s21 = sphi %s1257_s21, %s1401_s21   ;;  %s1210_s20 = sphi %s1255_s20, %s1400_s20   ;;  %s1206_s19 = sphi %s1253_s19, %s1399_s19   ;;  %s1202_s18 = sphi %s1251_s18, %s1398_s18  }
   0x4   : > { %p25_p0 = scmp.ge.s32.totalorder %s24_s23, 2  ;;  %p42_p2 = scmp.eq.s32.totalorder %s1218_s22, 0 }
   0x5   : > { %s34_s25 = sadd.s32 1, %s1206_s19  ;;  %p983_p5 = scmp.ge.s32.totalorder %s1218_s22, 2 }
   0x6   : > { %s1403_s23 = smov (%p25_p0, %s24_s23), 0  ;;  %p43_p3 = por %p42_p2, %p41_p1 }
   0x7   : > { %s31_s24 = ssub.s32 %s1214_s21, %s1403_s23  ;;  %218 = sbr.rel (%p983_p5) target bundleno = 22 (0x16), region = 28 }
   0x8   : > { %p32_p4 = scmp.eq.s32.totalorder %s31_s24, 0 }
   0xa   : > { %s1286_s26 = scalar_select %p32_p4, %s1206_s19, %s34_s25  }
   0xe   : > { %221 = sbr.rel (!%p43_p3) target bundleno = 22 (0x16), region = 32  ;;  %s223_s27 = sand.u32 (%p43_p3), 1, %s1206_s19  }
   0xf   : > { %s1036_s28 = sshll.u32 (%p43_p3), %s1214_s21, 4  ;;  %s984_s29 = sshll.u32 (%p43_p3), %s223_s27, 6 }
  0x10   : > { %s228_s7 = scalar_lea.vmem (%p43_p3), %s1392_s0, %s1036_s28  ;;  %s225_s8 = scalar_lea.vmem (%p43_p3), [#allocation3], %s984_s29 }
  0x11   : > { %v241_v0 = vld [vmem:[%s228_s7] sm:$0xff] (%p43_p3)  ;;  %v243_v1 = vld [vmem:[%s228_s7 + $0x8] sm:$0xff] (%p43_p3) }
  0x12   : > { %v245_v2 = vld [vmem:[%s228_s7 + $0x20] sm:$0xff] (%p43_p3)  ;;  %242 = vst [vmem:[%s225_s8] sm:$0xff] (%p43_p3), %v241_v0  ;;  %244 = vst [vmem:[%s225_s8 + $0x8] sm:$0xff] (%p43_p3), %v243_v1  ;;  %v247_v3 = vld [vmem:[%s228_s7 + $0x28] sm:$0xff] (%p43_p3) }
  0x13   : > { %246 = vst [vmem:[%s225_s8 + $0x10] sm:$0xff] (%p43_p3), %v245_v2  ;;  %v249_v4 = vld [vmem:[%s228_s7 + $0x40] sm:$0xff] (%p43_p3)  ;;  %v251_v5 = vld [vmem:[%s228_s7 + $0x48] sm:$0xff] (%p43_p3)  ;;  %248 = vst [vmem:[%s225_s8 + $0x18] sm:$0xff] (%p43_p3), %v247_v3 }
  0x14   : > { %250 = vst [vmem:[%s225_s8 + $0x20] sm:$0xff] (%p43_p3), %v249_v4  ;;  %252 = vst [vmem:[%s225_s8 + $0x28] sm:$0xff] (%p43_p3), %v251_v5  ;;  %v253_v6 = vld [vmem:[%s228_s7 + $0x60] sm:$0xff] (%p43_p3)  ;;  %v255_v7 = vld [vmem:[%s228_s7 + $0x68] sm:$0xff] (%p43_p3) }
  0x15   : > { %254 = vst [vmem:[%s225_s8 + $0x30] sm:$0xff] %v253_v6  ;;  %256 = vst [vmem:[%s225_s8 + $0x38] sm:$0xff] %v255_v7 }
  0x16 PF: > { %p987_p6 = scmp.ge.s32.totalorder %s1218_s22, 1  ;;  %p273_p7 = scmp.lt.s32.totalorder %s1218_s22, 3 }
  0x18   : > { %p274_p8 = pnand %p987_p6, %p273_p7 }
  0x19   : > { %s280_s9 = sand.u32 (!%p274_p8), 1, %s1202_s18   ;;  %s989_s10 = sshll.u32 (!%p274_p8), %s1210_s20, 6 }
  0x1a   : > { %277 = sbr.rel (%p274_p8) target bundleno = 382 (0x17e), region = 59  ;;  %s988_s11 = sshll.u32 (!%p274_p8), %s280_s9, 6 }
  0x1b   : > { %p326_p9 = scmp.lt.s32.totalorder (!%p274_p8), %s989_s10, 127  ;;  %s1303_s16 = scalar_lea.vmem (!%p274_p8), [#allocation3], %s988_s11 }
  0x1c   : > { %p991_p10 = scmp.ne.s32.totalorder (!%p274_p8), %s1210_s20, 0 }
  0x21   : > { %s1405_s10 = smov (!%p326_p9, %s989_s10), 127  ;;  %352 = sbr.rel (%p991_p10) target bundleno = 40 (0x28), region = 67 }
  0x22   : > { %s990_s12 = sshll.u32 %s1405_s10, 2  ;;  %v1220_v8 = vmov (!%p991_p10), 0.0  }
  0x23   : > { %s1301_s15 = scalar_lea.vmem %s1393_s1, %s990_s12  ;;  %353 = vst [vmem:[#allocation2] sm:$0xff] (!%p991_p10), %v1220_v8  ;;  %354 = vst [vmem:[#allocation2 + $0x8] sm:$0xff] (!%p991_p10), %v1220_v8 }
  0x24   : > { %355 = vst [vmem:[#allocation2 + $0x10] sm:$0xff] (!%p991_p10), %v1220_v8  ;;  %356 = vst [vmem:[#allocation2 + $0x18] sm:$0xff] (!%p991_p10), %v1220_v8 }
  0x28 PF: > { %v1134_v9 = vld [vmem:[%s1301_s15 + $0x40] sm:$0xff]   ;;  %v1138_v13 = vld [vmem:[%s1301_s15 + $0x48] sm:$0xff]   ;;  %v1142_v17 = vld [vmem:[%s1301_s15 + $0x50] sm:$0xff]   ;;  %p1032_p11 = scmp.ne.s32.totalorder %s1210_s20, 1 }
  0x29   : > { %v1135_v10 = vld [vmem:[%s1301_s15 + $0xc0] sm:$0xff]   ;;  %1037 = vmatprep.subr.bf16.mxu0 %v1134_v9  ;;  %v1139_v14 = vld [vmem:[%s1301_s15 + $0xc8] sm:$0xff]   ;;  %v1143_v18 = vld [vmem:[%s1301_s15 + $0xd0] sm:$0xff]  }
  0x2a   : > { %v1136_v11 = vld [vmem:[%s1301_s15] sm:$0xff]   ;;  %1065 = vmatprep.subr.bf16.mxu1 %v1135_v10  ;;  %v1140_v15 = vld [vmem:[%s1301_s15 + $0x8] sm:$0xff]   ;;  %v1144_v19 = vld [vmem:[%s1301_s15 + $0x10] sm:$0xff]  }
  0x2b   : > { %v1137_v12 = vld [vmem:[%s1301_s15 + $0x80] sm:$0xff]   ;;  %1038 = vmatpush3.bf16.msra.mxu0 %v1136_v11  ;;  %v1141_v16 = vld [vmem:[%s1301_s15 + $0x88] sm:$0xff]   ;;  %v1145_v20 = vld [vmem:[%s1301_s15 + $0x90] sm:$0xff]  }
  0x2c   : > { %1066 = vmatpush3.bf16.msra.mxu1 %v1137_v12  ;;  %1039 = vmatprep.subr.bf16.mxu0 %v1138_v13  ;;  %v1146_v21 = vld [vmem:[%s1301_s15 + $0x58] sm:$0xff]   ;;  %v1150_v25 = vld [vmem:[%s1301_s15 + $0x60] sm:$0xff]   ;;  %v1154_v29 = vld [vmem:[%s1301_s15 + $0x68] sm:$0xff]  }
  0x2d   : > { %1067 = vmatprep.subr.bf16.mxu1 %v1139_v14  ;;  %v1147_v22 = vld [vmem:[%s1301_s15 + $0xd8] sm:$0xff]   ;;  %v1151_v26 = vld [vmem:[%s1301_s15 + $0xe0] sm:$0xff]   ;;  %v1155_v30 = vld [vmem:[%s1301_s15 + $0xe8] sm:$0xff]  }
  0x2e   : > { %v1148_v23 = vld [vmem:[%s1301_s15 + $0x18] sm:$0xff]   ;;  %v1152_v27 = vld [vmem:[%s1301_s15 + $0x20] sm:$0xff]   ;;  %v1156_v31 = vld [vmem:[%s1301_s15 + $0x28] sm:$0xff]  }
  0x2f   : > { %1040 = vmatpush3.bf16.msra.mxu0 %v1140_v15  ;;  %v1149_v24 = vld [vmem:[%s1301_s15 + $0x98] sm:$0xff]   ;;  %v1153_v28 = vld [vmem:[%s1301_s15 + $0xa0] sm:$0xff]   ;;  %v1157_v32 = vld [vmem:[%s1301_s15 + $0xa8] sm:$0xff]  }
  0x30   : > { %1068 = vmatpush3.bf16.msra.mxu1 %v1141_v16  ;;  %1041 = vmatprep.subr.bf16.mxu0 %v1142_v17  ;;  %v1158_v33 = vld [vmem:[%s1301_s15 + $0x70] sm:$0xff]   ;;  %v1162_v37 = vld [vmem:[%s1301_s15 + $0x78] sm:$0xff]   ;;  %v357_v58 = vld [vmem:[#allocation2] sm:$0xff] }
  0x31   : > { %1069 = vmatprep.subr.bf16.mxu1 %v1143_v18  ;;  %v1159_v34 = vld [vmem:[%s1301_s15 + $0xf0] sm:$0xff]   ;;  %v1163_v38 = vld [vmem:[%s1301_s15 + $0xf8] sm:$0xff]   ;;  %v358_v63 = vld [vmem:[#allocation2 + $0x8] sm:$0xff] }
  0x32   : > { %v1160_v35 = vld [vmem:[%s1301_s15 + $0x30] sm:$0xff]   ;;  %v1164_v39 = vld [vmem:[%s1301_s15 + $0x38] sm:$0xff]  }
  0x33   : > { %1042 = vmatpush3.bf16.msra.mxu0 %v1144_v19  ;;  %v1161_v36 = vld [vmem:[%s1301_s15 + $0xb0] sm:$0xff]   ;;  %v1165_v40 = vld [vmem:[%s1301_s15 + $0xb8] sm:$0xff]  }
  0x34   : > { %1070 = vmatpush3.bf16.msra.mxu1 %v1145_v20  ;;  %1043 = vmatprep.subr.bf16.mxu0 %v1146_v21  ;;  %v1166_v41 = vld [vmem:[%s1303_s16] ss:$16 sps:$4 sm:$0xff]   ;;  %v1168_v42 = vld [vmem:[%s1303_s16 + $0x4] ss:$16 sps:$4 sm:$0xff]   ;;  %v1169_v43 = vld [vmem:[%s1303_s16 + $0x8] ss:$16 sps:$4 sm:$0xff]  }
  0x35   : > { %1071 = vmatprep.subr.bf16.mxu1 %v1147_v22  ;;  %v1171_v44 = vld [vmem:[%s1303_s16 + $0xc] ss:$16 sps:$4 sm:$0xff]   ;;  %697 = vmatprep.mubr.bf16.mxu0 %v1168_v42  ;;  %v1172_v45 = vld [vmem:[%s1303_s16 + $0x24] ss:$16 sps:$4 sm:$0xff]   ;;  %v1176_v47 = vld [vmem:[%s1303_s16 + $0x20] ss:$16 sps:$4 sm:$0xff]  }
  0x36   : > { %746 = vmatprep.mubr.bf16.mxu1 %v1171_v44  ;;  %v1174_v46 = vld [vmem:[%s1303_s16 + $0x2c] ss:$16 sps:$4 sm:$0xff]   ;;  %v1177_v48 = vld [vmem:[%s1303_s16 + $0x28] ss:$16 sps:$4 sm:$0xff]   ;;  %v359_v12 = vld [vmem:[#allocation2 + $0x10] sm:$0xff] }
  0x37   : > { %1044 = vmatpush3.bf16.msra.mxu0 %v1148_v23  ;;  %v360_v17 = vld [vmem:[#allocation2 + $0x18] sm:$0xff] }
  0x38   : > { %1072 = vmatpush3.bf16.msra.mxu1 %v1149_v24  ;;  %1045 = vmatprep.subr.bf16.mxu0 %v1150_v25 }
  0x39   : > { %1073 = vmatprep.subr.bf16.mxu1 %v1151_v26 }
  0x3b   : > { %1046 = vmatpush3.bf16.msra.mxu0 %v1152_v27 }
  0x3c   : > { %1074 = vmatpush3.bf16.msra.mxu1 %v1153_v28  ;;  %1047 = vmatprep.subr.bf16.mxu0 %v1154_v29 }
  0x3d   : > { %1075 = vmatprep.subr.bf16.mxu1 %v1155_v30 }
  0x3f   : > { %1048 = vmatpush3.bf16.msra.mxu0 %v1156_v31 }
  0x40   : > { %1076 = vmatpush3.bf16.msra.mxu1 %v1157_v32  ;;  %1049 = vmatprep.subr.bf16.mxu0 %v1158_v33 }
  0x41   : > { %1077 = vmatprep.subr.bf16.mxu1 %v1159_v34 }
  0x43   : > { %1050 = vmatpush3.bf16.msra.mxu0 %v1160_v35 }
  0x44   : > { %1078 = vmatpush3.bf16.msra.mxu1 %v1161_v36  ;;  %1051 = vmatprep.subr.bf16.mxu0 %v1162_v37 }
  0x45   : > { %1079 = vmatprep.subr.bf16.mxu1 %v1163_v38 }
  0x47   : > { %1052 = vmatpush3.bf16.msra.mxu0 %v1164_v39 }
  0x48   : > { %1080 = vmatpush3.bf16.msra.mxu1 %v1165_v40 }
  0x4a   : > { %698 = vmatmul.mubr.bf16.vlgmr.msra.gmra.mrb[0].mxu0 %v1166_v41 }
  0x4b   : > { %747 = vmatmul.mubr.bf16.vlgmr.msra.gmra.mrb[0].mxu1 %v1169_v43  ;;  %705 = vmatprep.mubr.bf16.mxu0 %v1172_v45 }
  0x4c   : > { %754 = vmatprep.mubr.bf16.mxu1 %v1174_v46 }
  0x52   : > { %706 = vmatmul.mubr.bf16.gmra.mrb[4].mxu0 %v1176_v47 }
  0x53   : > { %755 = vmatmul.mubr.bf16.gmra.mrb[4].mxu1 %v1177_v48 }
 0x11d   : > { %v1053_v49 = vpop.f32.mrb[0].mxu0 }
 0x11e   : > { %v1081_v50 = vpop.f32.mrb[0].mxu1  ;;  %v1054_v51 = vpop.f32.mrb[1].mxu0 }
 0x11f   : > { %v1055_v52 = vadd.f32 %v1054_v51, %v1053_v49  ;;  %v1082_v53 = vpop.f32.mrb[1].mxu1  ;;  %v1056_v54 = vpop.f32.mrb[2].mxu0 }
 0x120   : > { %v1083_v55 = vadd.f32 %v1082_v53, %v1081_v50  ;;  %v1084_v56 = vpop.f32.mrb[2].mxu1  ;;  %v1057_v57 = vpop.f32.mrb[3].mxu0 }
 0x121   : > { %v1058_v59 = vadd.f32 %v1057_v57, %v1056_v54  ;;  %v1085_v60 = vpop.f32.mrb[3].mxu1  ;;  %v816_v54 = vlaneseq (!%p1032_p11) }
 0x122   : > { %v749_v61 = vadd.f32 %v1083_v55, %v1055_v52  ;;  %v1086_v62 = vadd.f32 %v1085_v60, %v1084_v56  ;;  %v808_v56 = vld [vmem:[%s1394_s2] sm:$0x1] (!%p1032_p11) }
 0x123   : > { %v817_v55 = vshrl.u32 (!%p1032_p11), %v816_v54, 7  ;;  %v812_v60 = vld [vmem:[%s1395_s3] sm:$0x1] (!%p1032_p11) }
 0x124   : > { %v763_v0 = vadd.f32 %v749_v61, %v357_v58  ;;  %v752_v1 = vadd.f32 %v1086_v62, %v1058_v59 }
 0x125   : > { %v1059_v2 = vpop.f32.mrb[4].mxu0  ;;  %v818_v57 = vsub.s32 (!%p1032_p11), 0, %v817_v55 }
 0x126   : > { %767 = vst [vmem:[#allocation2] sm:$0xff] %v763_v0  ;;  %v764_v3 = vadd.f32 %v752_v1, %v358_v63  ;;  %v1087_v4 = vpop.f32.mrb[4].mxu1  ;;  %v1060_v5 = vpop.f32.mrb[5].mxu0 }
 0x127   : > { %v1061_v6 = vadd.f32 %v1060_v5, %v1059_v2  ;;  %v1088_v7 = vpop.f32.mrb[5].mxu1  ;;  %v1062_v8 = vpop.f32.mrb[6].mxu0 }
 0x128   : > { %768 = vst [vmem:[#allocation2 + $0x8] sm:$0xff] %v764_v3  ;;  %v1089_v9 = vadd.f32 %v1088_v7, %v1087_v4  ;;  %v1090_v10 = vpop.f32.mrb[6].mxu1  ;;  %v1063_v11 = vpop.f32.mrb[7].mxu0 }
 0x129   : > { %v1064_v13 = vadd.f32 %v1063_v11, %v1062_v8  ;;  %v1091_v14 = vpop.f32.mrb[7].mxu1  ;;  %v837_v11 = vld [vmem:[%s1396_s4 + $0x10] sm:$0xff] (!%p1032_p11) }
 0x12a   : > { %v757_v15 = vadd.f32 %v1089_v9, %v1061_v6  ;;  %v1092_v16 = vadd.f32 %v1091_v14, %v1090_v10  ;;  %774 = sbr.rel (%p1032_p11) target bundleno = 382 (0x17e), region = 71  ;;  %v835_v6 = vld [vmem:[%s1396_s4] sm:$0xff] (!%p1032_p11)  ;;  %v836_v10 = vld [vmem:[%s1396_s4 + $0x8] sm:$0xff] (!%p1032_p11) }
 0x12c   : > { %v765_v18 = vadd.f32 %v757_v15, %v359_v12  ;;  %v760_v19 = vadd.f32 %v1092_v16, %v1064_v13  ;;  %v838_v12 = vld [vmem:[%s1396_s4 + $0x18] sm:$0xff] (!%p1032_p11) }
 0x12d   : > { %v775_v21 = vld [vmem:[#allocation2] sm:$0xff] (!%p1032_p11) }
 0x12e   : > { %769 = vst [vmem:[#allocation2 + $0x10] sm:$0xff] %v765_v18  ;;  %v766_v20 = vadd.f32 %v760_v19, %v360_v17 }
 0x12f   : > { %v776_v22 = vld [vmem:[#allocation2 + $0x8] sm:$0xff] (!%p1032_p11) }
 0x130   : > { %770 = vst [vmem:[#allocation2 + $0x18] sm:$0xff] %v766_v20  ;;  %v779_v24 = vadd.f32 (!%p1032_p11), %v776_v22, %v775_v21 }
 0x135   : > { %v777_v23 = vld [vmem:[#allocation2 + $0x10] sm:$0xff] }
 0x136   : > { %v780_v26 = vadd.f32 %v779_v24, %v777_v23 }
 0x137   : > { %v778_v25 = vld [vmem:[#allocation2 + $0x18] sm:$0xff] }
 0x138   : > { %v781_v27 = vadd.f32 %v780_v26, %v778_v25 }
 0x13a   : > { %v782_v28 = vrot.slane %v781_v27, 4 }
 0x13c   : > { %v783_v29 = vadd.f32 %v782_v28, %v781_v27 }
 0x13e   : > { %v784_v30 = vrot.slane %v783_v29, 2 }
 0x140   : > { %v785_v31 = vadd.f32 %v784_v30, %v783_v29 }
 0x142   : > { %v786_v32 = vrot.slane %v785_v31, 1 }
 0x144   : > { %v787_v33 = vadd.f32 %v786_v32, %v785_v31 }
 0x146   : > { %v789_v34 = vmul.f32 0.03125, %v787_v33 }
 0x148   : > { %v790_v35 = vsub.f32 %v775_v21, %v789_v34  ;;  %v791_v36 = vsub.f32 %v776_v22, %v789_v34  ;;  %v792_v37 = vsub.f32 %v777_v23, %v789_v34  ;;  %v793_v38 = vsub.f32 %v778_v25, %v789_v34 }
 0x14a   : > { %v794_v39 = vmul.f32 %v790_v35, %v790_v35  ;;  %v795_v40 = vmul.f32 %v791_v36, %v791_v36  ;;  %v796_v41 = vmul.f32 %v792_v37, %v792_v37  ;;  %v797_v42 = vmul.f32 %v793_v38, %v793_v38 }
 0x14c   : > { %v798_v43 = vadd.f32 %v795_v40, %v794_v39 }
 0x14e   : > { %v799_v44 = vadd.f32 %v798_v43, %v796_v41 }
 0x150   : > { %v800_v45 = vadd.f32 %v799_v44, %v797_v42 }
 0x152   : > { %v801_v46 = vrot.slane %v800_v45, 4 }
 0x154   : > { %v802_v47 = vadd.f32 %v801_v46, %v800_v45 }
 0x156   : > { %v803_v48 = vrot.slane %v802_v47, 2 }
 0x158   : > { %v804_v49 = vadd.f32 %v803_v48, %v802_v47 }
 0x15a   : > { %v805_v50 = vrot.slane %v804_v49, 1 }
 0x15c   : > { %v806_v51 = vadd.f32 %v805_v50, %v804_v49 }
 0x15e   : > { %v807_v52 = vmul.f32 0.03125, %v806_v51 }
 0x160   : > { %v809_v53 = vadd.f32 1e-05, %v807_v52 }
 0x162   : > { %1178 = vrsqrt.f32 %v809_v53 }
 0x16c   : > { %v1179_v58 = vpop.eup %1178 }
 0x16d   : > { %v811_v59 = vmul.f32 %v1179_v58, %v808_v56 }
 0x16f   : > { %v813_v61 = vmul.f32 %v811_v59, %v789_v34  ;;  %v819_v62 = vrot.slane %v811_v59, %v818_v57 }
 0x171   : > { %v814_v63 = vsub.f32 %v812_v60, %v813_v61  ;;  %v821_v0 = vmul.f32 %v819_v62, %v775_v21  ;;  %v822_v1 = vmul.f32 %v819_v62, %v776_v22  ;;  %v823_v2 = vmul.f32 %v819_v62, %v777_v23 }
 0x172   : > { %v824_v3 = vmul.f32 %v819_v62, %v778_v25 }
 0x173   : > { %v829_v4 = vrot.slane %v814_v63, %v818_v57 }
 0x175   : > { %v831_v5 = vadd.f32 %v829_v4, %v821_v0  ;;  %v832_v7 = vadd.f32 %v829_v4, %v822_v1  ;;  %v833_v8 = vadd.f32 %v829_v4, %v823_v2  ;;  %v834_v9 = vadd.f32 %v829_v4, %v824_v3 }
 0x177   : > { %vm839_vm0 = vcmp.ge.f32.partialorder %v831_v5, 0.0  ;;  %v843_v13 = vmul.f32 0.1, %v831_v5  ;;  %vm840_vm1 = vcmp.ge.f32.partialorder %v832_v7, 0.0  ;;  %v844_v14 = vmul.f32 0.1, %v832_v7 }
 0x178   : > { %vm841_vm2 = vcmp.ge.f32.partialorder %v833_v8, 0.0  ;;  %v845_v15 = vmul.f32 0.1, %v833_v8  ;;  %vm842_vm3 = vcmp.ge.f32.partialorder %v834_v9, 0.0  ;;  %v846_v16 = vmul.f32 0.1, %v834_v9 }
 0x179   : > { %v847_v17 = vsel %vm839_vm0, %v831_v5, %v843_v13  ;;  %v848_v18 = vsel %vm840_vm1, %v832_v7, %v844_v14 }
 0x17a   : > { %v851_v19 = vadd.f32 %v847_v17, %v835_v6  ;;  %v852_v20 = vadd.f32 %v848_v18, %v836_v10  ;;  %v849_v21 = vsel %vm841_vm2, %v833_v8, %v845_v15  ;;  %v850_v22 = vsel %vm842_vm3, %v834_v9, %v846_v16 }
 0x17b   : > { %v853_v23 = vadd.f32 %v849_v21, %v837_v11  ;;  %v854_v24 = vadd.f32 %v850_v22, %v838_v12 }
 0x17c   : > { %855 = vst [vmem:[%s1397_s5] sm:$0xff] %v851_v19  ;;  %856 = vst [vmem:[%s1397_s5 + $0x8] sm:$0xff] %v852_v20 }
 0x17d   : > { %857 = vst [vmem:[%s1397_s5 + $0x10] sm:$0xff] %v853_v23  ;;  %858 = vst [vmem:[%s1397_s5 + $0x18] sm:$0xff] %v854_v24 }
 0x17e PF: > { %s15_s22 = sadd.s32 1, %s1218_s22   ;;  %s1398_s18 = smov %s1206_s19 }
 0x17f   : > { %p12_p12 = scmp.ge.s32.totalorder %s15_s22, 4   ;;  %s1399_s19 = smov %s1286_s26 }
 0x180   : > { %s1400_s20 = smov %s1214_s21  ;;  %s1401_s21 = smov %s1403_s23 }
 0x181   :  { %14 = sbr.rel (!%p12_p12) target bundleno = 3 (0x3), region = 118 }

// kernel: net_forward.23
= control target key start
LH: loop header
LB: loop body
LE: loop exit
PB: predicated region body
PF: predicated region fallthrough
CT: control target
= control target key end

     0   :  { %s1276_s15 = smov 0   ;;  %s1278_s16 = smov 0   ;;  %s1397_s0 = inlined_call_operand.vmem [shape: bf16[8,1536], index: 0, kind: input, shape index: {}]   ;;  %s1398_s1 = inlined_call_operand.vmem [shape: bf16[1536,256], index: 1, kind: input, shape index: {}]   ;;  %s1399_s2 = inlined_call_operand.vmem [shape: f32[1,256], index: 2, kind: input, shape index: {}]   ;;  %s1400_s3 = inlined_call_operand.vmem [shape: f32[1,256], index: 3, kind: input, shape index: {}]   ;;  %s1401_s4 = inlined_call_operand.vmem [shape: f32[8,256], index: 4, kind: output, shape index: {}]  }
   0x1   :  { %s1280_s17 = smov 0  }
   0x2 LB: > { %s23_s18 = sadd.s32 1, %s1243_s16  ;;  %p1014_p0 = scmp.ge.s32.totalorder %s1247_s17, 1  ;;  %s1247_s17 = sphi %s1280_s17, %s14_s17   ;;  %s1243_s16 = sphi %s1278_s16, %s1403_s16   ;;  %s1239_s15 = sphi %s1276_s15, %s1402_s15  }
   0x3   : > { %p24_p1 = scmp.ge.s32.totalorder %s23_s18, 3  ;;  %p214_p2 = scmp.lt.s32.totalorder %s1247_s17, 4 }
   0x5   : > { %s1405_s18 = smov (%p24_p1, %s23_s18), 0  ;;  %p215_p3 = pnand %p1014_p0, %p214_p2 }
   0x6   : > { %s1015_s19 = sshll.u32 (!%p215_p3), %s1239_s15, 2  ;;  %s1017_s20 = sshll.u32 (!%p215_p3), %s1239_s15, 6 }
   0x7   : > { %218 = sbr.rel (%p215_p3) target bundleno = 388 (0x184), region = 36  ;;  %p259_p4 = scmp.lt.s32.totalorder (!%p215_p3), %s1015_s19, 11 }
   0x8   : > { %p266_p5 = scmp.lt.s32.totalorder (!%p215_p3), %s1017_s20, 191  ;;  %p1020_p6 = scmp.ne.s32.totalorder (!%p215_p3), %s1239_s15, 0 }
   0xe   : > { %s1407_s19 = smov (!%p259_p4, %s1015_s19), 11  ;;  %s1409_s20 = smov (!%p266_p5, %s1017_s20), 191 }
   0xf   : > { %s1016_s21 = sshll.u32 %s1407_s19, 2  ;;  %s1094_s25 = sshll.u32 %s1409_s20, 3  ;;  %v1249_v0 = vmov (!%p1020_p6), 0.0  }
  0x10   : > { %s1301_s24 = scalar_lea.vmem %s1397_s0, %s1016_s21  ;;  %s1306_s28 = scalar_lea.vmem %s1398_s1, %s1094_s25  ;;  %296 = vst [vmem:[#allocation2] sm:$0xff] (!%p1020_p6), %v1249_v0  ;;  %297 = vst [vmem:[#allocation2 + $0x8] sm:$0xff] (!%p1020_p6), %v1249_v0 }
  0x11   : > { %295 = sbr.rel (%p1020_p6) target bundleno = 24 (0x18), region = 40 }
  0x18 PF: > { %v1121_v1 = vld [vmem:[%s1306_s28 + $0x4] ss:$8 sps:$4 sm:$0xff]   ;;  %v1125_v3 = vld [vmem:[%s1306_s28] ss:$8 sps:$4 sm:$0xff]   ;;  %v1127_v5 = vld [vmem:[%s1306_s28 + $0x14] ss:$8 sps:$4 sm:$0xff]  }
  0x19   : > { %v1123_v2 = vld [vmem:[%s1306_s28 + $0x104] ss:$8 sps:$4 sm:$0xff]   ;;  %700 = vmatprep.subr.bf16.mxu0 %v1121_v1  ;;  %v1126_v4 = vld [vmem:[%s1306_s28 + $0x100] ss:$8 sps:$4 sm:$0xff]   ;;  %v1129_v6 = vld [vmem:[%s1306_s28 + $0x114] ss:$8 sps:$4 sm:$0xff]  }
  0x1a   : > { %741 = vmatprep.subr.bf16.mxu1 %v1123_v2  ;;  %701 = vmatpush1.bf16.msra.mxu0 %v1125_v3  ;;  %v1131_v7 = vld [vmem:[%s1306_s28 + $0x10] ss:$8 sps:$4 sm:$0xff]   ;;  %v1133_v9 = vld [vmem:[%s1306_s28 + $0x24] ss:$8 sps:$4 sm:$0xff]   ;;  %v1137_v11 = vld [vmem:[%s1306_s28 + $0x20] ss:$8 sps:$4 sm:$0xff]  }
  0x1b   : > { %742 = vmatpush1.bf16.msra.mxu1 %v1126_v4  ;;  %702 = vmatprep.subr.bf16.mxu0 %v1127_v5  ;;  %v1132_v8 = vld [vmem:[%s1306_s28 + $0x110] ss:$8 sps:$4 sm:$0xff]   ;;  %v1135_v10 = vld [vmem:[%s1306_s28 + $0x124] ss:$8 sps:$4 sm:$0xff]   ;;  %v1138_v12 = vld [vmem:[%s1306_s28 + $0x120] ss:$8 sps:$4 sm:$0xff]  }
  0x1c   : > { %743 = vmatprep.subr.bf16.mxu1 %v1129_v6  ;;  %v1139_v13 = vld [vmem:[%s1306_s28 + $0x34] ss:$8 sps:$4 sm:$0xff]   ;;  %v1143_v15 = vld [vmem:[%s1306_s28 + $0x30] ss:$8 sps:$4 sm:$0xff]   ;;  %v1145_v17 = vld [vmem:[%s1306_s28 + $0x44] ss:$8 sps:$4 sm:$0xff]  }
  0x1d   : > { %v1141_v14 = vld [vmem:[%s1306_s28 + $0x134] ss:$8 sps:$4 sm:$0xff]   ;;  %v1144_v16 = vld [vmem:[%s1306_s28 + $0x130] ss:$8 sps:$4 sm:$0xff]   ;;  %v1147_v18 = vld [vmem:[%s1306_s28 + $0x144] ss:$8 sps:$4 sm:$0xff]  }
  0x1e   : > { %703 = vmatpush1.bf16.msra.mxu0 %v1131_v7  ;;  %v1149_v19 = vld [vmem:[%s1306_s28 + $0x40] ss:$8 sps:$4 sm:$0xff]   ;;  %v1151_v21 = vld [vmem:[%s1306_s28 + $0x54] ss:$8 sps:$4 sm:$0xff]   ;;  %v1155_v23 = vld [vmem:[%s1306_s28 + $0x50] ss:$8 sps:$4 sm:$0xff]  }
  0x1f   : > { %744 = vmatpush1.bf16.msra.mxu1 %v1132_v8  ;;  %704 = vmatprep.subr.bf16.mxu0 %v1133_v9  ;;  %v1150_v20 = vld [vmem:[%s1306_s28 + $0x140] ss:$8 sps:$4 sm:$0xff]   ;;  %v1153_v22 = vld [vmem:[%s1306_s28 + $0x154] ss:$8 sps:$4 sm:$0xff]   ;;  %v1156_v24 = vld [vmem:[%s1306_s28 + $0x150] ss:$8 sps:$4 sm:$0xff]  }
  0x20   : > { %745 = vmatprep.subr.bf16.mxu1 %v1135_v10  ;;  %v1157_v25 = vld [vmem:[%s1306_s28 + $0x64] ss:$8 sps:$4 sm:$0xff]   ;;  %v1161_v27 = vld [vmem:[%s1306_s28 + $0x60] ss:$8 sps:$4 sm:$0xff]   ;;  %v1163_v29 = vld [vmem:[%s1306_s28 + $0x74] ss:$8 sps:$4 sm:$0xff]  }
  0x21   : > { %v1159_v26 = vld [vmem:[%s1306_s28 + $0x164] ss:$8 sps:$4 sm:$0xff]   ;;  %v1162_v28 = vld [vmem:[%s1306_s28 + $0x160] ss:$8 sps:$4 sm:$0xff]   ;;  %v1165_v30 = vld [vmem:[%s1306_s28 + $0x174] ss:$8 sps:$4 sm:$0xff]  }
  0x22   : > { %705 = vmatpush1.bf16.msra.mxu0 %v1137_v11  ;;  %v1167_v31 = vld [vmem:[%s1306_s28 + $0x70] ss:$8 sps:$4 sm:$0xff]   ;;  %v1169_v33 = vld [vmem:[%s1306_s28 + $0x84] ss:$8 sps:$4 sm:$0xff]   ;;  %v1173_v35 = vld [vmem:[%s1306_s28 + $0x80] ss:$8 sps:$4 sm:$0xff]  }
  0x23   : > { %746 = vmatpush1.bf16.msra.mxu1 %v1138_v12  ;;  %706 = vmatprep.subr.bf16.mxu0 %v1139_v13  ;;  %v1168_v32 = vld [vmem:[%s1306_s28 + $0x170] ss:$8 sps:$4 sm:$0xff]   ;;  %v1171_v34 = vld [vmem:[%s1306_s28 + $0x184] ss:$8 sps:$4 sm:$0xff]   ;;  %v1174_v36 = vld [vmem:[%s1306_s28 + $0x180] ss:$8 sps:$4 sm:$0xff]  }
  0x24   : > { %747 = vmatprep.subr.bf16.mxu1 %v1141_v14  ;;  %v1175_v37 = vld [vmem:[%s1306_s28 + $0x94] ss:$8 sps:$4 sm:$0xff]   ;;  %v1179_v39 = vld [vmem:[%s1306_s28 + $0x90] ss:$8 sps:$4 sm:$0xff]   ;;  %v1181_v41 = vld [vmem:[%s1306_s28 + $0xa4] ss:$8 sps:$4 sm:$0xff]  }
  0x25   : > { %v1177_v38 = vld [vmem:[%s1306_s28 + $0x194] ss:$8 sps:$4 sm:$0xff]   ;;  %v1180_v40 = vld [vmem:[%s1306_s28 + $0x190] ss:$8 sps:$4 sm:$0xff]   ;;  %v1183_v42 = vld [vmem:[%s1306_s28 + $0x1a4] ss:$8 sps:$4 sm:$0xff]  }
  0x26   : > { %707 = vmatpush1.bf16.msra.mxu0 %v1143_v15  ;;  %v1185_v43 = vld [vmem:[%s1306_s28 + $0xa0] ss:$8 sps:$4 sm:$0xff]   ;;  %v1187_v45 = vld [vmem:[%s1306_s28 + $0xb4] ss:$8 sps:$4 sm:$0xff]   ;;  %v1191_v50 = vld [vmem:[%s1306_s28 + $0xb0] ss:$8 sps:$4 sm:$0xff]  }
  0x27   : > { %748 = vmatpush1.bf16.msra.mxu1 %v1144_v16  ;;  %708 = vmatprep.subr.bf16.mxu0 %v1145_v17  ;;  %v1186_v44 = vld [vmem:[%s1306_s28 + $0x1a0] ss:$8 sps:$4 sm:$0xff]   ;;  %v1189_v46 = vld [vmem:[%s1306_s28 + $0x1b4] ss:$8 sps:$4 sm:$0xff]   ;;  %v1192_v51 = vld [vmem:[%s1306_s28 + $0x1b0] ss:$8 sps:$4 sm:$0xff]  }
  0x28   : > { %749 = vmatprep.subr.bf16.mxu1 %v1147_v18  ;;  %v300_v47 = vld [vmem:[%s1301_s24] sm:$0xff]  ;;  %v301_v49 = vld [vmem:[%s1301_s24 + $0x8] sm:$0xff]  ;;  %v1199_v57 = vld [vmem:[%s1306_s28 + $0xd4] ss:$8 sps:$4 sm:$0xff]   ;;  %p1089_p7 = scmp.ne.s32.totalorder %s1239_s15, 2 }
  0x29   : > { %v1022_v48 = vcombine.high %v300_v47, %v300_v47  ;;  %v1024_v52 = vcombine.high %v301_v49, %v301_v49  ;;  %v1193_v53 = vld [vmem:[%s1306_s28 + $0xc4] ss:$8 sps:$4 sm:$0xff]   ;;  %v1197_v55 = vld [vmem:[%s1306_s28 + $0xc0] ss:$8 sps:$4 sm:$0xff]   ;;  %v1201_v58 = vld [vmem:[%s1306_s28 + $0x1d4] ss:$8 sps:$4 sm:$0xff]   ;;  %v1021_v5 = vcombine.low %v300_v47, %v300_v47  ;;  %v1023_v6 = vcombine.low %v301_v49, %v301_v49 }
  0x2a   : > { %709 = vmatpush1.bf16.msra.mxu0 %v1149_v19  ;;  %v1195_v54 = vld [vmem:[%s1306_s28 + $0x1c4] ss:$8 sps:$4 sm:$0xff]   ;;  %v1198_v56 = vld [vmem:[%s1306_s28 + $0x1c0] ss:$8 sps:$4 sm:$0xff]   ;;  %v1203_v59 = vld [vmem:[%s1306_s28 + $0xd0] ss:$8 sps:$4 sm:$0xff]  }
  0x2b   : > { %750 = vmatpush1.bf16.msra.mxu1 %v1150_v20  ;;  %710 = vmatprep.subr.bf16.mxu0 %v1151_v21  ;;  %v1204_v60 = vld [vmem:[%s1306_s28 + $0x1d0] ss:$8 sps:$4 sm:$0xff]   ;;  %v1205_v61 = vld [vmem:[%s1306_s28 + $0xe4] ss:$8 sps:$4 sm:$0xff]   ;;  %v1209_v63 = vld [vmem:[%s1306_s28 + $0xe0] ss:$8 sps:$4 sm:$0xff]  }
  0x2c   : > { %751 = vmatprep.subr.bf16.mxu1 %v1153_v22  ;;  %732 = vmatprep.mubr.bf16.mxu0 %v1022_v48  ;;  %v1207_v62 = vld [vmem:[%s1306_s28 + $0x1e4] ss:$8 sps:$4 sm:$0xff]   ;;  %v1210_v0 = vld [vmem:[%s1306_s28 + $0x1e0] ss:$8 sps:$4 sm:$0xff]   ;;  %v1211_v1 = vld [vmem:[%s1306_s28 + $0xf4] ss:$8 sps:$4 sm:$0xff]  }
  0x2d   : > { %773 = vmatprep.mubr.bf16.mxu1 %v1024_v52  ;;  %v1213_v2 = vld [vmem:[%s1306_s28 + $0x1f4] ss:$8 sps:$4 sm:$0xff]   ;;  %v1215_v3 = vld [vmem:[%s1306_s28 + $0xf0] ss:$8 sps:$4 sm:$0xff]   ;;  %v298_v8 = vld [vmem:[#allocation2] sm:$0xff] }
  0x2e   : > { %711 = vmatpush1.bf16.msra.mxu0 %v1155_v23  ;;  %v1216_v4 = vld [vmem:[%s1306_s28 + $0x1f0] ss:$8 sps:$4 sm:$0xff]   ;;  %v299_v12 = vld [vmem:[#allocation2 + $0x8] sm:$0xff] }
  0x2f   : > { %752 = vmatpush1.bf16.msra.mxu1 %v1156_v24  ;;  %712 = vmatprep.subr.bf16.mxu0 %v1157_v25 }
  0x30   : > { %753 = vmatprep.subr.bf16.mxu1 %v1159_v26 }
  0x32   : > { %713 = vmatpush1.bf16.msra.mxu0 %v1161_v27 }
  0x33   : > { %754 = vmatpush1.bf16.msra.mxu1 %v1162_v28  ;;  %714 = vmatprep.subr.bf16.mxu0 %v1163_v29 }
  0x34   : > { %755 = vmatprep.subr.bf16.mxu1 %v1165_v30 }
  0x36   : > { %715 = vmatpush1.bf16.msra.mxu0 %v1167_v31 }
  0x37   : > { %756 = vmatpush1.bf16.msra.mxu1 %v1168_v32  ;;  %716 = vmatprep.subr.bf16.mxu0 %v1169_v33 }
  0x38   : > { %757 = vmatprep.subr.bf16.mxu1 %v1171_v34 }
  0x3a   : > { %717 = vmatpush1.bf16.msra.mxu0 %v1173_v35 }
  0x3b   : > { %758 = vmatpush1.bf16.msra.mxu1 %v1174_v36  ;;  %718 = vmatprep.subr.bf16.mxu0 %v1175_v37 }
  0x3c   : > { %759 = vmatprep.subr.bf16.mxu1 %v1177_v38 }
  0x3e   : > { %719 = vmatpush1.bf16.msra.mxu0 %v1179_v39 }
  0x3f   : > { %760 = vmatpush1.bf16.msra.mxu1 %v1180_v40  ;;  %720 = vmatprep.subr.bf16.mxu0 %v1181_v41 }
  0x40   : > { %761 = vmatprep.subr.bf16.mxu1 %v1183_v42 }
  0x42   : > { %721 = vmatpush1.bf16.msra.mxu0 %v1185_v43 }
  0x43   : > { %762 = vmatpush1.bf16.msra.mxu1 %v1186_v44  ;;  %722 = vmatprep.subr.bf16.mxu0 %v1187_v45 }
  0x44   : > { %763 = vmatprep.subr.bf16.mxu1 %v1189_v46 }
  0x46   : > { %723 = vmatpush1.bf16.msra.mxu0 %v1191_v50 }
  0x47   : > { %764 = vmatpush1.bf16.msra.mxu1 %v1192_v51  ;;  %724 = vmatprep.subr.bf16.mxu0 %v1193_v53 }
  0x48   : > { %765 = vmatprep.subr.bf16.mxu1 %v1195_v54 }
  0x4a   : > { %725 = vmatpush1.bf16.msra.mxu0 %v1197_v55 }
  0x4b   : > { %766 = vmatpush1.bf16.msra.mxu1 %v1198_v56  ;;  %726 = vmatprep.subr.bf16.mxu0 %v1199_v57  ;;  %v1250_v57 = vmov (!%p1089_p7), 1966171168  }
  0x4c   : > { %767 = vmatprep.subr.bf16.mxu1 %v1201_v58  ;;  %v834_v58 = vunpack.c.l.s4 (!%p1089_p7), %v1250_v57 }
  0x4e   : > { %727 = vmatpush1.bf16.msra.mxu0 %v1203_v59  ;;  %v836_v59 = vlaneseq (!%p1089_p7) }
  0x4f   : > { %768 = vmatpush1.bf16.msra.mxu1 %v1204_v60  ;;  %728 = vmatprep.subr.bf16.mxu0 %v1205_v61  ;;  %v835_v60 = vunpack.c.0.s8 (!%p1089_p7), %v834_v58 }
  0x50   : > { %769 = vmatprep.subr.bf16.mxu1 %v1207_v62  ;;  %v837_v61 = vshrl.u32 (!%p1089_p7), %v836_v59, 7 }
  0x52   : > { %729 = vmatpush1.bf16.msra.mxu0 %v1209_v63  ;;  %v838_v63 = vsub.s32 (!%p1089_p7), %v835_v60, %v837_v61 }
  0x53   : > { %770 = vmatpush1.bf16.msra.mxu1 %v1210_v0  ;;  %730 = vmatprep.subr.bf16.mxu0 %v1211_v1 }
  0x54   : > { %771 = vmatprep.subr.bf16.mxu1 %v1213_v2 }
  0x56   : > { %731 = vmatpush1.bf16.msra.mxu0 %v1215_v3  ;;  %v825_v3 = vld [vmem:[%s1399_s2] sm:$0x3] (!%p1089_p7) }
  0x57   : > { %772 = vmatpush1.bf16.msra.mxu1 %v1216_v4 }
  0x59   : > { %733 = vmatmul.mubr.bf16.vlgmr.msra.gmra.mrb[0].mxu0 %v1021_v5  ;;  %v853_v5 = vsub.s32 (!%p1089_p7), 0, %v837_v61 }
  0x5a   : > { %774 = vmatmul.mubr.bf16.vlgmr.msra.gmra.mrb[0].mxu1 %v1023_v6  ;;  %v857_v6 = vsub.s32 (!%p1089_p7), 1, %v837_v61 }
 0x12c   : > { %v734_v7 = vpop.f32.mrb[0].mxu0 }
 0x12d   : > { %v775_v9 = vpop.f32.mrb[0].mxu1  ;;  %v736_v11 = vpop.f32.mrb[1].mxu0  ;;  %789 = sbr.rel (%p1089_p7) target bundleno = 388 (0x184), region = 44 }
 0x12e   : > { %v776_v10 = vadd.f32 %v775_v9, %v734_v7  ;;  %v777_v13 = vpop.f32.mrb[1].mxu1  ;;  %v738_v15 = vpop.f32.mrb[2].mxu0 }
 0x12f   : > { %v778_v14 = vadd.f32 %v777_v13, %v736_v11  ;;  %v779_v16 = vpop.f32.mrb[2].mxu1  ;;  %v739_v18 = vpop.f32.mrb[3].mxu0 }
 0x130   : > { %v782_v17 = vadd.f32 %v776_v10, %v298_v8  ;;  %v780_v19 = vpop.f32.mrb[3].mxu1 }
 0x131   : > { %v783_v20 = vadd.f32 %v778_v14, %v299_v12  ;;  %v849_v14 = vld [vmem:[%s1400_s3] sm:$0x3] (!%p1089_p7) }
 0x132   : > { %784 = vst [vmem:[#allocation2] sm:$0xff] %v782_v17 }
 0x133   : > { %785 = vst [vmem:[#allocation2 + $0x8] sm:$0xff] %v783_v20 }
 0x139   : > { %v790_v21 = vld [vmem:[#allocation2] sm:$0xff] }
 0x13a   : > { %v791_v22 = vld [vmem:[#allocation2 + $0x8] sm:$0xff]  ;;  %v792_v23 = vrot.slane %v790_v21, 4 }
 0x13b   : > { %v798_v24 = vrot.slane %v791_v22, 4 }
 0x13c   : > { %v793_v25 = vadd.f32 %v792_v23, %v790_v21 }
 0x13d   : > { %v799_v26 = vadd.f32 %v798_v24, %v791_v22 }
 0x13e   : > { %v794_v27 = vrot.slane %v793_v25, 2 }
 0x13f   : > { %v800_v28 = vrot.slane %v799_v26, 2 }
 0x140   : > { %v795_v29 = vadd.f32 %v794_v27, %v793_v25 }
 0x141   : > { %v801_v30 = vadd.f32 %v800_v28, %v799_v26 }
 0x142   : > { %v796_v31 = vrot.slane %v795_v29, 1 }
 0x143   : > { %v802_v32 = vrot.slane %v801_v30, 1 }
 0x144   : > { %v797_v33 = vadd.f32 %v796_v31, %v795_v29 }
 0x145   : > { %v803_v34 = vadd.f32 %v802_v32, %v801_v30 }
 0x146   : > { %v805_v35 = vmul.f32 0.125, %v797_v33 }
 0x147   : > { %v806_v36 = vmul.f32 0.125, %v803_v34 }
 0x148   : > { %v807_v37 = vsub.f32 %v790_v21, %v805_v35 }
 0x149   : > { %v808_v38 = vsub.f32 %v791_v22, %v806_v36 }
 0x14a   : > { %v809_v39 = vmul.f32 %v807_v37, %v807_v37 }
 0x14b   : > { %v810_v40 = vmul.f32 %v808_v38, %v808_v38 }
 0x14c   : > { %v811_v41 = vrot.slane %v809_v39, 4 }
 0x14d   : > { %v817_v42 = vrot.slane %v810_v40, 4 }
 0x14e   : > { %v812_v43 = vadd.f32 %v811_v41, %v809_v39 }
 0x14f   : > { %v818_v44 = vadd.f32 %v817_v42, %v810_v40 }
 0x150   : > { %v813_v45 = vrot.slane %v812_v43, 2 }
 0x151   : > { %v819_v46 = vrot.slane %v818_v44, 2 }
 0x152   : > { %v814_v47 = vadd.f32 %v813_v45, %v812_v43 }
 0x153   : > { %v820_v48 = vadd.f32 %v819_v46, %v818_v44 }
 0x154   : > { %v815_v49 = vrot.slane %v814_v47, 1 }
 0x155   : > { %v821_v50 = vrot.slane %v820_v48, 1 }
 0x156   : > { %v816_v51 = vadd.f32 %v815_v49, %v814_v47 }
 0x157   : > { %v822_v52 = vadd.f32 %v821_v50, %v820_v48 }
 0x158   : > { %v823_v53 = vmul.f32 0.125, %v816_v51 }
 0x159   : > { %v824_v54 = vmul.f32 0.125, %v822_v52 }
 0x15a   : > { %v826_v55 = vadd.f32 1e-05, %v823_v53 }
 0x15b   : > { %v827_v56 = vadd.f32 1e-05, %v824_v54 }
 0x15c   : > { %1221 = vrsqrt.f32 %v826_v55 }
 0x15d   : > { %1223 = vrsqrt.f32 %v827_v56 }
 0x166   : > { %v1222_v62 = vpop.eup %1221 }
 0x167   : > { %v1224_v0 = vpop.eup %1223 }
 0x168   : > { %v832_v1 = vcombine.low %v1222_v62, %v1224_v0 }
 0x16a   : > { %v839_v2 = vrot.slane %v832_v1, %v838_v63 }
 0x16c   : > { %v846_v4 = vrot.slane %v839_v2, %v838_v63 }
 0x16e   : > { %v848_v7 = vmul.f32 %v846_v4, %v825_v3 }
 0x170   : > { %v854_v8 = vrot.slane %v848_v7, %v853_v5  ;;  %v858_v9 = vrot.slane %v848_v7, %v857_v6 }
 0x172   : > { %v861_v10 = vmul.f32 %v854_v8, %v805_v35  ;;  %v862_v11 = vmul.f32 %v858_v9, %v806_v36  ;;  %v882_v17 = vmul.f32 %v854_v8, %v790_v21  ;;  %v883_v18 = vmul.f32 %v858_v9, %v791_v22 }
 0x174   : > { %v865_v12 = vcombine.low %v861_v10, %v862_v11 }
 0x176   : > { %v872_v13 = vrot.slane %v865_v12, %v838_v63 }
 0x178   : > { %v879_v15 = vrot.slane %v872_v13, %v838_v63 }
 0x17a   : > { %v881_v16 = vsub.f32 %v849_v14, %v879_v15 }
 0x17c   : > { %v888_v19 = vrot.slane %v881_v16, %v853_v5  ;;  %v892_v20 = vrot.slane %v881_v16, %v857_v6 }
 0x17e   : > { %v895_v23 = vadd.f32 %v888_v19, %v882_v17  ;;  %v896_v24 = vadd.f32 %v892_v20, %v883_v18 }
 0x180   : > { %vm897_vm0 = vcmp.ge.f32.partialorder %v895_v23, 0.0  ;;  %v899_v25 = vmul.f32 0.1, %v895_v23  ;;  %vm898_vm1 = vcmp.ge.f32.partialorder %v896_v24, 0.0  ;;  %v900_v26 = vmul.f32 0.1, %v896_v24 }
 0x182   : > { %v901_v27 = vsel %vm897_vm0, %v895_v23, %v899_v25  ;;  %v902_v28 = vsel %vm898_vm1, %v896_v24, %v900_v26 }
 0x183   : > { %903 = vst [vmem:[%s1401_s4] sm:$0xff] %v901_v27  ;;  %904 = vst [vmem:[%s1401_s4 + $0x8] sm:$0xff] %v902_v28 }
 0x184 PF: > { %s14_s17 = sadd.s32 1, %s1247_s17   ;;  %s1402_s15 = smov %s1243_s16 }
 0x185   : > { %p11_p8 = scmp.ge.s32.totalorder %s14_s17, 5   ;;  %s1403_s16 = smov %s1405_s18 }
 0x187   :  { %13 = sbr.rel (!%p11_p8) target bundleno = 2 (0x2), region = 83 }

// kernel: net_forward.24
= control target key start
LH: loop header
LB: loop body
LE: loop exit
PB: predicated region body
PF: predicated region fallthrough
CT: control target
= control target key end

     0   :  { %v231_v41 = vlaneseq  ;;  %s397_s1 = inlined_call_operand.vmem [shape: bf16[256,128], index: 1, kind: input, shape index: {}]   ;;  %s398_s0 = inlined_call_operand.vmem [shape: bf16[8,256], index: 0, kind: input, shape index: {}]   ;;  %s399_s2 = inlined_call_operand.vmem [shape: f32[1,128], index: 2, kind: input, shape index: {}]   ;;  %s400_s3 = inlined_call_operand.vmem [shape: f32[1,128], index: 3, kind: input, shape index: {}]   ;;  %s401_s4 = inlined_call_operand.vmem [shape: f32[8,128], index: 4, kind: output, shape index: {}]  }
   0x1   :  { %v292_v0 = vld [vmem:[%s397_s1 + $0x40] sm:$0xff]   ;;  %v294_v2 = vld [vmem:[%s397_s1 + $0x48] sm:$0xff]   ;;  %v296_v4 = vld [vmem:[%s397_s1 + $0x50] sm:$0xff]  }
   0x2   :  { %v293_v1 = vld [vmem:[%s397_s1] sm:$0xff]   ;;  %270 = vmatprep.subr.bf16.mxu0 %v292_v0  ;;  %v295_v3 = vld [vmem:[%s397_s1 + $0x8] sm:$0xff]   ;;  %v297_v5 = vld [vmem:[%s397_s1 + $0x10] sm:$0xff]   ;;  %v232_v42 = vshrl.u32 %v231_v41, 7 }
   0x3   :  { %271 = vmatpush3.bf16.msra.mxu0 %v293_v1  ;;  %v298_v6 = vld [vmem:[%s397_s1 + $0x58] sm:$0xff]   ;;  %v300_v8 = vld [vmem:[%s397_s1 + $0x60] sm:$0xff]   ;;  %v302_v10 = vld [vmem:[%s397_s1 + $0x68] sm:$0xff]  }
   0x4   :  { %272 = vmatprep.subr.bf16.mxu0 %v294_v2  ;;  %v299_v7 = vld [vmem:[%s397_s1 + $0x18] sm:$0xff]   ;;  %v301_v9 = vld [vmem:[%s397_s1 + $0x20] sm:$0xff]   ;;  %v303_v13 = vld [vmem:[%s397_s1 + $0x28] sm:$0xff]   ;;  %v233_v44 = vsub.s32 0, %v232_v42 }
   0x5   :  { %v24_v11 = vld [vmem:[%s398_s0] sm:$0xff]  ;;  %v304_v14 = vld [vmem:[%s397_s1 + $0x70] sm:$0xff]   ;;  %v306_v16 = vld [vmem:[%s397_s1 + $0x78] sm:$0xff]  }
   0x6   :  { %v253_v12 = vcombine.high %v24_v11, %v24_v11  ;;  %v305_v15 = vld [vmem:[%s397_s1 + $0x30] sm:$0xff]   ;;  %v307_v17 = vld [vmem:[%s397_s1 + $0x38] sm:$0xff]   ;;  %v252_v18 = vcombine.low %v24_v11, %v24_v11  ;;  %v223_v43 = vld [vmem:[%s399_s2] sm:$0x1] }
   0x7   :  { %273 = vmatpush3.bf16.msra.mxu0 %v295_v3  ;;  %v227_v47 = vld [vmem:[%s400_s3] sm:$0x1] }
   0x8   :  { %274 = vmatprep.subr.bf16.mxu0 %v296_v4  ;;  %192 = vmatprep.mubr.bf16.mxu0 %v253_v12 }
   0xb   :  { %275 = vmatpush3.bf16.msra.mxu0 %v297_v5 }
   0xc   :  { %276 = vmatprep.subr.bf16.mxu0 %v298_v6 }
   0xf   :  { %277 = vmatpush3.bf16.msra.mxu0 %v299_v7 }
  0x10   :  { %278 = vmatprep.subr.bf16.mxu0 %v300_v8 }
  0x13   :  { %279 = vmatpush3.bf16.msra.mxu0 %v301_v9 }
  0x14   :  { %280 = vmatprep.subr.bf16.mxu0 %v302_v10 }
  0x17   :  { %281 = vmatpush3.bf16.msra.mxu0 %v303_v13 }
  0x18   :  { %282 = vmatprep.subr.bf16.mxu0 %v304_v14 }
  0x1b   :  { %283 = vmatpush3.bf16.msra.mxu0 %v305_v15 }
  0x1c   :  { %284 = vmatprep.subr.bf16.mxu0 %v306_v16 }
  0x1f   :  { %285 = vmatpush3.bf16.msra.mxu0 %v307_v17 }
  0x22   :  { %193 = vmatmul.mubr.bf16.vlgmr.msra.gmra.mrb[0].mxu0 %v252_v18 }
  0xf5   :  { %v286_v19 = vpop.f32.mrb[0].mxu0 }
  0xf6   :  { %v287_v20 = vpop.f32.mrb[1].mxu0 }
  0xf7   :  { %v288_v21 = vadd.f32 %v287_v20, %v286_v19  ;;  %v289_v22 = vpop.f32.mrb[2].mxu0 }
  0xf8   :  { %v290_v23 = vpop.f32.mrb[3].mxu0 }
  0xf9   :  { %v206_v24 = vrot.slane %v288_v21, 4 }
  0xfb   :  { %v207_v25 = vadd.f32 %v288_v21, %v206_v24 }
  0xfd   :  { %v208_v26 = vrot.slane %v207_v25, 2 }
  0xff   :  { %v209_v27 = vadd.f32 %v208_v26, %v207_v25 }
 0x101   :  { %v210_v28 = vrot.slane %v209_v27, 1 }
 0x103   :  { %v211_v29 = vadd.f32 %v210_v28, %v209_v27 }
 0x105   :  { %v213_v30 = vmul.f32 0.125, %v211_v29 }
 0x107   :  { %v214_v31 = vsub.f32 %v288_v21, %v213_v30 }
 0x109   :  { %v215_v32 = vmul.f32 %v214_v31, %v214_v31 }
 0x10b   :  { %v216_v33 = vrot.slane %v215_v32, 4 }
 0x10d   :  { %v217_v34 = vadd.f32 %v216_v33, %v215_v32 }
 0x10f   :  { %v218_v35 = vrot.slane %v217_v34, 2 }
 0x111   :  { %v219_v36 = vadd.f32 %v218_v35, %v217_v34 }
 0x113   :  { %v220_v37 = vrot.slane %v219_v36, 1 }
 0x115   :  { %v221_v38 = vadd.f32 %v220_v37, %v219_v36 }
 0x117   :  { %v222_v39 = vmul.f32 0.125, %v221_v38 }
 0x119   :  { %v224_v40 = vadd.f32 1e-05, %v222_v39 }
 0x11b   :  { %310 = vrsqrt.f32 %v224_v40 }
 0x125   :  { %v311_v45 = vpop.eup %310 }
 0x126   :  { %v226_v46 = vmul.f32 %v311_v45, %v223_v43 }
 0x128   :  { %v228_v48 = vmul.f32 %v226_v46, %v213_v30  ;;  %v234_v49 = vrot.slane %v226_v46, %v233_v44 }
 0x12a   :  { %v229_v50 = vsub.f32 %v227_v47, %v228_v48  ;;  %v236_v51 = vmul.f32 %v288_v21, %v234_v49 }
 0x12c   :  { %v241_v52 = vrot.slane %v229_v50, %v233_v44 }
 0x12e   :  { %v243_v53 = vadd.f32 %v241_v52, %v236_v51 }
 0x130   :  { %vm244_vm0 = vcmp.ge.f32.partialorder %v243_v53, 0.0  ;;  %v245_v54 = vmul.f32 0.1, %v243_v53 }
 0x132   :  { %v246_v55 = vsel %vm244_vm0, %v243_v53, %v245_v54 }
 0x133   :  { %247 = vst [vmem:[%s401_s4] sm:$0xff] %v246_v55 }

// kernel: net_forward.25
= control target key start
LH: loop header
LB: loop body
LE: loop exit
PB: predicated region body
PF: predicated region fallthrough
CT: control target
= control target key end

     0   :  { %s1350_s18 = smov 0   ;;  %s1352_s19 = smov 0   ;;  %s1477_s0 = inlined_call_operand.vmem [shape: bf16[8,1536], index: 0, kind: input, shape index: {}]   ;;  %s1478_s1 = inlined_call_operand.vmem [shape: bf16[1536,256], index: 1, kind: input, shape index: {}]   ;;  %s1479_s2 = inlined_call_operand.vmem [shape: f32[1,256], index: 2, kind: input, shape index: {}]   ;;  %s1480_s3 = inlined_call_operand.vmem [shape: f32[1,256], index: 3, kind: input, shape index: {}]   ;;  %s1481_s4 = inlined_call_operand.vmem [shape: f32[8,256], index: 4, kind: input, shape index: {}, may-alias: {4,5}]   ;;  %s1482_s5 = inlined_call_operand.vmem [shape: f32[8,256], index: 5, kind: output, shape index: {}, may-alias: {4,5}]  }
   0x1   :  { %s1354_s20 = smov 0  }
   0x2 LB: > { %s24_s21 = sadd.s32 1, %s1312_s19  ;;  %p1083_p0 = scmp.ge.s32.totalorder %s1316_s20, 1  ;;  %s1316_s20 = sphi %s1354_s20, %s15_s20   ;;  %s1312_s19 = sphi %s1352_s19, %s1484_s19   ;;  %s1308_s18 = sphi %s1350_s18, %s1483_s18  }
   0x3   : > { %p25_p1 = scmp.ge.s32.totalorder %s24_s21, 3  ;;  %p250_p2 = scmp.lt.s32.totalorder %s1316_s20, 4 }
   0x5   : > { %s1486_s21 = smov (%p25_p1, %s24_s21), 0  ;;  %p251_p3 = pnand %p1083_p0, %p250_p2 }
   0x6   : > { %s1084_s22 = sshll.u32 (!%p251_p3), %s1308_s18, 2  ;;  %s1086_s23 = sshll.u32 (!%p251_p3), %s1308_s18, 6 }
   0x7   : > { %254 = sbr.rel (%p251_p3) target bundleno = 390 (0x186), region = 40  ;;  %p302_p4 = scmp.lt.s32.totalorder (!%p251_p3), %s1084_s22, 11 }
   0x8   : > { %p309_p5 = scmp.lt.s32.totalorder (!%p251_p3), %s1086_s23, 191  ;;  %p1089_p6 = scmp.ne.s32.totalorder (!%p251_p3), %s1308_s18, 0 }
   0xe   : > { %s1488_s22 = smov (!%p302_p4, %s1084_s22), 11  ;;  %s1490_s23 = smov (!%p309_p5, %s1086_s23), 191 }
   0xf   : > { %s1085_s24 = sshll.u32 %s1488_s22, 2  ;;  %s1163_s28 = sshll.u32 %s1490_s23, 3  ;;  %v1318_v0 = vmov (!%p1089_p6), 0.0  }
  0x10   : > { %s1375_s27 = scalar_lea.vmem %s1477_s0, %s1085_s24  ;;  %s1380_s6 = scalar_lea.vmem %s1478_s1, %s1163_s28  ;;  %345 = vst [vmem:[#allocation2] sm:$0xff] (!%p1089_p6), %v1318_v0  ;;  %346 = vst [vmem:[#allocation2 + $0x8] sm:$0xff] (!%p1089_p6), %v1318_v0 }
  0x11   : > { %344 = sbr.rel (%p1089_p6) target bundleno = 24 (0x18), region = 44 }
  0x18 PF: > { %v1190_v1 = vld [vmem:[%s1380_s6 + $0x4] ss:$8 sps:$4 sm:$0xff]   ;;  %v1194_v3 = vld [vmem:[%s1380_s6] ss:$8 sps:$4 sm:$0xff]   ;;  %v1196_v5 = vld [vmem:[%s1380_s6 + $0x14] ss:$8 sps:$4 sm:$0xff]  }
  0x19   : > { %v1192_v2 = vld [vmem:[%s1380_s6 + $0x104] ss:$8 sps:$4 sm:$0xff]   ;;  %749 = vmatprep.subr.bf16.mxu0 %v1190_v1  ;;  %v1195_v4 = vld [vmem:[%s1380_s6 + $0x100] ss:$8 sps:$4 sm:$0xff]   ;;  %v1198_v6 = vld [vmem:[%s1380_s6 + $0x114] ss:$8 sps:$4 sm:$0xff]  }
  0x1a   : > { %790 = vmatprep.subr.bf16.mxu1 %v1192_v2  ;;  %750 = vmatpush1.bf16.msra.mxu0 %v1194_v3  ;;  %v1200_v7 = vld [vmem:[%s1380_s6 + $0x10] ss:$8 sps:$4 sm:$0xff]   ;;  %v1202_v9 = vld [vmem:[%s1380_s6 + $0x24] ss:$8 sps:$4 sm:$0xff]   ;;  %v1206_v11 = vld [vmem:[%s1380_s6 + $0x20] ss:$8 sps:$4 sm:$0xff]  }
  0x1b   : > { %791 = vmatpush1.bf16.msra.mxu1 %v1195_v4  ;;  %751 = vmatprep.subr.bf16.mxu0 %v1196_v5  ;;  %v1201_v8 = vld [vmem:[%s1380_s6 + $0x110] ss:$8 sps:$4 sm:$0xff]   ;;  %v1204_v10 = vld [vmem:[%s1380_s6 + $0x124] ss:$8 sps:$4 sm:$0xff]   ;;  %v1207_v12 = vld [vmem:[%s1380_s6 + $0x120] ss:$8 sps:$4 sm:$0xff]  }
  0x1c   : > { %792 = vmatprep.subr.bf16.mxu1 %v1198_v6  ;;  %v1208_v13 = vld [vmem:[%s1380_s6 + $0x34] ss:$8 sps:$4 sm:$0xff]   ;;  %v1212_v15 = vld [vmem:[%s1380_s6 + $0x30] ss:$8 sps:$4 sm:$0xff]   ;;  %v1214_v17 = vld [vmem:[%s1380_s6 + $0x44] ss:$8 sps:$4 sm:$0xff]  }
  0x1d   : > { %v1210_v14 = vld [vmem:[%s1380_s6 + $0x134] ss:$8 sps:$4 sm:$0xff]   ;;  %v1213_v16 = vld [vmem:[%s1380_s6 + $0x130] ss:$8 sps:$4 sm:$0xff]   ;;  %v1216_v18 = vld [vmem:[%s1380_s6 + $0x144] ss:$8 sps:$4 sm:$0xff]  }
  0x1e   : > { %752 = vmatpush1.bf16.msra.mxu0 %v1200_v7  ;;  %v1218_v19 = vld [vmem:[%s1380_s6 + $0x40] ss:$8 sps:$4 sm:$0xff]   ;;  %v1220_v21 = vld [vmem:[%s1380_s6 + $0x54] ss:$8 sps:$4 sm:$0xff]   ;;  %v1224_v23 = vld [vmem:[%s1380_s6 + $0x50] ss:$8 sps:$4 sm:$0xff]  }
  0x1f   : > { %793 = vmatpush1.bf16.msra.mxu1 %v1201_v8  ;;  %753 = vmatprep.subr.bf16.mxu0 %v1202_v9  ;;  %v1219_v20 = vld [vmem:[%s1380_s6 + $0x140] ss:$8 sps:$4 sm:$0xff]   ;;  %v1222_v22 = vld [vmem:[%s1380_s6 + $0x154] ss:$8 sps:$4 sm:$0xff]   ;;  %v1225_v24 = vld [vmem:[%s1380_s6 + $0x150] ss:$8 sps:$4 sm:$0xff]  }
  0x20   : > { %794 = vmatprep.subr.bf16.mxu1 %v1204_v10  ;;  %v1226_v25 = vld [vmem:[%s1380_s6 + $0x64] ss:$8 sps:$4 sm:$0xff]   ;;  %v1230_v27 = vld [vmem:[%s1380_s6 + $0x60] ss:$8 sps:$4 sm:$0xff]   ;;  %v1232_v29 = vld [vmem:[%s1380_s6 + $0x74] ss:$8 sps:$4 sm:$0xff]  }
  0x21   : > { %v1228_v26 = vld [vmem:[%s1380_s6 + $0x164] ss:$8 sps:$4 sm:$0xff]   ;;  %v1231_v28 = vld [vmem:[%s1380_s6 + $0x160] ss:$8 sps:$4 sm:$0xff]   ;;  %v1234_v30 = vld [vmem:[%s1380_s6 + $0x174] ss:$8 sps:$4 sm:$0xff]  }
  0x22   : > { %754 = vmatpush1.bf16.msra.mxu0 %v1206_v11  ;;  %v1236_v31 = vld [vmem:[%s1380_s6 + $0x70] ss:$8 sps:$4 sm:$0xff]   ;;  %v1238_v33 = vld [vmem:[%s1380_s6 + $0x84] ss:$8 sps:$4 sm:$0xff]   ;;  %v1242_v35 = vld [vmem:[%s1380_s6 + $0x80] ss:$8 sps:$4 sm:$0xff]  }
  0x23   : > { %795 = vmatpush1.bf16.msra.mxu1 %v1207_v12  ;;  %755 = vmatprep.subr.bf16.mxu0 %v1208_v13  ;;  %v1237_v32 = vld [vmem:[%s1380_s6 + $0x170] ss:$8 sps:$4 sm:$0xff]   ;;  %v1240_v34 = vld [vmem:[%s1380_s6 + $0x184] ss:$8 sps:$4 sm:$0xff]   ;;  %v1243_v36 = vld [vmem:[%s1380_s6 + $0x180] ss:$8 sps:$4 sm:$0xff]  }
  0x24   : > { %796 = vmatprep.subr.bf16.mxu1 %v1210_v14  ;;  %v1244_v37 = vld [vmem:[%s1380_s6 + $0x94] ss:$8 sps:$4 sm:$0xff]   ;;  %v1248_v39 = vld [vmem:[%s1380_s6 + $0x90] ss:$8 sps:$4 sm:$0xff]   ;;  %v1250_v41 = vld [vmem:[%s1380_s6 + $0xa4] ss:$8 sps:$4 sm:$0xff]  }
  0x25   : > { %v1246_v38 = vld [vmem:[%s1380_s6 + $0x194] ss:$8 sps:$4 sm:$0xff]   ;;  %v1249_v40 = vld [vmem:[%s1380_s6 + $0x190] ss:$8 sps:$4 sm:$0xff]   ;;  %v1252_v42 = vld [vmem:[%s1380_s6 + $0x1a4] ss:$8 sps:$4 sm:$0xff]  }
  0x26   : > { %756 = vmatpush1.bf16.msra.mxu0 %v1212_v15  ;;  %v1254_v43 = vld [vmem:[%s1380_s6 + $0xa0] ss:$8 sps:$4 sm:$0xff]   ;;  %v1256_v45 = vld [vmem:[%s1380_s6 + $0xb4] ss:$8 sps:$4 sm:$0xff]   ;;  %v1260_v50 = vld [vmem:[%s1380_s6 + $0xb0] ss:$8 sps:$4 sm:$0xff]  }
  0x27   : > { %797 = vmatpush1.bf16.msra.mxu1 %v1213_v16  ;;  %757 = vmatprep.subr.bf16.mxu0 %v1214_v17  ;;  %v1255_v44 = vld [vmem:[%s1380_s6 + $0x1a0] ss:$8 sps:$4 sm:$0xff]   ;;  %v1258_v46 = vld [vmem:[%s1380_s6 + $0x1b4] ss:$8 sps:$4 sm:$0xff]   ;;  %v1261_v51 = vld [vmem:[%s1380_s6 + $0x1b0] ss:$8 sps:$4 sm:$0xff]  }
  0x28   : > { %798 = vmatprep.subr.bf16.mxu1 %v1216_v18  ;;  %v349_v47 = vld [vmem:[%s1375_s27] sm:$0xff]  ;;  %v350_v49 = vld [vmem:[%s1375_s27 + $0x8] sm:$0xff]  ;;  %v1268_v57 = vld [vmem:[%s1380_s6 + $0xd4] ss:$8 sps:$4 sm:$0xff]   ;;  %p1158_p7 = scmp.ne.s32.totalorder %s1308_s18, 2 }
  0x29   : > { %v1091_v48 = vcombine.high %v349_v47, %v349_v47  ;;  %v1093_v52 = vcombine.high %v350_v49, %v350_v49  ;;  %v1262_v53 = vld [vmem:[%s1380_s6 + $0xc4] ss:$8 sps:$4 sm:$0xff]   ;;  %v1266_v55 = vld [vmem:[%s1380_s6 + $0xc0] ss:$8 sps:$4 sm:$0xff]   ;;  %v1270_v58 = vld [vmem:[%s1380_s6 + $0x1d4] ss:$8 sps:$4 sm:$0xff]   ;;  %v1090_v5 = vcombine.low %v349_v47, %v349_v47  ;;  %v1092_v6 = vcombine.low %v350_v49, %v350_v49 }
  0x2a   : > { %758 = vmatpush1.bf16.msra.mxu0 %v1218_v19  ;;  %v1264_v54 = vld [vmem:[%s1380_s6 + $0x1c4] ss:$8 sps:$4 sm:$0xff]   ;;  %v1267_v56 = vld [vmem:[%s1380_s6 + $0x1c0] ss:$8 sps:$4 sm:$0xff]   ;;  %v1272_v59 = vld [vmem:[%s1380_s6 + $0xd0] ss:$8 sps:$4 sm:$0xff]  }
  0x2b   : > { %799 = vmatpush1.bf16.msra.mxu1 %v1219_v20  ;;  %759 = vmatprep.subr.bf16.mxu0 %v1220_v21  ;;  %v1273_v60 = vld [vmem:[%s1380_s6 + $0x1d0] ss:$8 sps:$4 sm:$0xff]   ;;  %v1274_v61 = vld [vmem:[%s1380_s6 + $0xe4] ss:$8 sps:$4 sm:$0xff]   ;;  %v1278_v63 = vld [vmem:[%s1380_s6 + $0xe0] ss:$8 sps:$4 sm:$0xff]  }
  0x2c   : > { %800 = vmatprep.subr.bf16.mxu1 %v1222_v22  ;;  %781 = vmatprep.mubr.bf16.mxu0 %v1091_v48  ;;  %v1276_v62 = vld [vmem:[%s1380_s6 + $0x1e4] ss:$8 sps:$4 sm:$0xff]   ;;  %v1279_v0 = vld [vmem:[%s1380_s6 + $0x1e0] ss:$8 sps:$4 sm:$0xff]   ;;  %v1280_v1 = vld [vmem:[%s1380_s6 + $0xf4] ss:$8 sps:$4 sm:$0xff]  }
  0x2d   : > { %822 = vmatprep.mubr.bf16.mxu1 %v1093_v52  ;;  %v1282_v2 = vld [vmem:[%s1380_s6 + $0x1f4] ss:$8 sps:$4 sm:$0xff]   ;;  %v1284_v3 = vld [vmem:[%s1380_s6 + $0xf0] ss:$8 sps:$4 sm:$0xff]   ;;  %v347_v8 = vld [vmem:[#allocation2] sm:$0xff] }
  0x2e   : > { %760 = vmatpush1.bf16.msra.mxu0 %v1224_v23  ;;  %v1285_v4 = vld [vmem:[%s1380_s6 + $0x1f0] ss:$8 sps:$4 sm:$0xff]   ;;  %v348_v12 = vld [vmem:[#allocation2 + $0x8] sm:$0xff] }
  0x2f   : > { %801 = vmatpush1.bf16.msra.mxu1 %v1225_v24  ;;  %761 = vmatprep.subr.bf16.mxu0 %v1226_v25 }
  0x30   : > { %802 = vmatprep.subr.bf16.mxu1 %v1228_v26 }
  0x32   : > { %762 = vmatpush1.bf16.msra.mxu0 %v1230_v27 }
  0x33   : > { %803 = vmatpush1.bf16.msra.mxu1 %v1231_v28  ;;  %763 = vmatprep.subr.bf16.mxu0 %v1232_v29 }
  0x34   : > { %804 = vmatprep.subr.bf16.mxu1 %v1234_v30 }
  0x36   : > { %764 = vmatpush1.bf16.msra.mxu0 %v1236_v31 }
  0x37   : > { %805 = vmatpush1.bf16.msra.mxu1 %v1237_v32  ;;  %765 = vmatprep.subr.bf16.mxu0 %v1238_v33 }
  0x38   : > { %806 = vmatprep.subr.bf16.mxu1 %v1240_v34 }
  0x3a   : > { %766 = vmatpush1.bf16.msra.mxu0 %v1242_v35 }
  0x3b   : > { %807 = vmatpush1.bf16.msra.mxu1 %v1243_v36  ;;  %767 = vmatprep.subr.bf16.mxu0 %v1244_v37 }
  0x3c   : > { %808 = vmatprep.subr.bf16.mxu1 %v1246_v38 }
  0x3e   : > { %768 = vmatpush1.bf16.msra.mxu0 %v1248_v39 }
  0x3f   : > { %809 = vmatpush1.bf16.msra.mxu1 %v1249_v40  ;;  %769 = vmatprep.subr.bf16.mxu0 %v1250_v41 }
  0x40   : > { %810 = vmatprep.subr.bf16.mxu1 %v1252_v42 }
  0x42   : > { %770 = vmatpush1.bf16.msra.mxu0 %v1254_v43 }
  0x43   : > { %811 = vmatpush1.bf16.msra.mxu1 %v1255_v44  ;;  %771 = vmatprep.subr.bf16.mxu0 %v1256_v45 }
  0x44   : > { %812 = vmatprep.subr.bf16.mxu1 %v1258_v46 }
  0x46   : > { %772 = vmatpush1.bf16.msra.mxu0 %v1260_v50 }
  0x47   : > { %813 = vmatpush1.bf16.msra.mxu1 %v1261_v51  ;;  %773 = vmatprep.subr.bf16.mxu0 %v1262_v53 }
  0x48   : > { %814 = vmatprep.subr.bf16.mxu1 %v1264_v54 }
  0x4a   : > { %774 = vmatpush1.bf16.msra.mxu0 %v1266_v55 }
  0x4b   : > { %815 = vmatpush1.bf16.msra.mxu1 %v1267_v56  ;;  %775 = vmatprep.subr.bf16.mxu0 %v1268_v57  ;;  %v1319_v57 = vmov (!%p1158_p7), 1966171168  }
  0x4c   : > { %816 = vmatprep.subr.bf16.mxu1 %v1270_v58  ;;  %v883_v58 = vunpack.c.l.s4 (!%p1158_p7), %v1319_v57 }
  0x4e   : > { %776 = vmatpush1.bf16.msra.mxu0 %v1272_v59  ;;  %v885_v59 = vlaneseq (!%p1158_p7) }
  0x4f   : > { %817 = vmatpush1.bf16.msra.mxu1 %v1273_v60  ;;  %777 = vmatprep.subr.bf16.mxu0 %v1274_v61  ;;  %v884_v60 = vunpack.c.0.s8 (!%p1158_p7), %v883_v58 }
  0x50   : > { %818 = vmatprep.subr.bf16.mxu1 %v1276_v62  ;;  %v886_v61 = vshrl.u32 (!%p1158_p7), %v885_v59, 7 }
  0x52   : > { %778 = vmatpush1.bf16.msra.mxu0 %v1278_v63  ;;  %v887_v63 = vsub.s32 (!%p1158_p7), %v884_v60, %v886_v61 }
  0x53   : > { %819 = vmatpush1.bf16.msra.mxu1 %v1279_v0  ;;  %779 = vmatprep.subr.bf16.mxu0 %v1280_v1 }
  0x54   : > { %820 = vmatprep.subr.bf16.mxu1 %v1282_v2 }
  0x56   : > { %780 = vmatpush1.bf16.msra.mxu0 %v1284_v3  ;;  %v874_v3 = vld [vmem:[%s1479_s2] sm:$0x3] (!%p1158_p7) }
  0x57   : > { %821 = vmatpush1.bf16.msra.mxu1 %v1285_v4 }
  0x59   : > { %782 = vmatmul.mubr.bf16.vlgmr.msra.gmra.mrb[0].mxu0 %v1090_v5  ;;  %v902_v5 = vsub.s32 (!%p1158_p7), 0, %v886_v61 }
  0x5a   : > { %823 = vmatmul.mubr.bf16.vlgmr.msra.gmra.mrb[0].mxu1 %v1092_v6  ;;  %v906_v6 = vsub.s32 (!%p1158_p7), 1, %v886_v61 }
 0x12c   : > { %v783_v7 = vpop.f32.mrb[0].mxu0 }
 0x12d   : > { %v824_v9 = vpop.f32.mrb[0].mxu1  ;;  %v785_v11 = vpop.f32.mrb[1].mxu0  ;;  %838 = sbr.rel (%p1158_p7) target bundleno = 390 (0x186), region = 48 }
 0x12e   : > { %v825_v10 = vadd.f32 %v824_v9, %v783_v7  ;;  %v826_v13 = vpop.f32.mrb[1].mxu1  ;;  %v787_v15 = vpop.f32.mrb[2].mxu0 }
 0x12f   : > { %v827_v14 = vadd.f32 %v826_v13, %v785_v11  ;;  %v828_v16 = vpop.f32.mrb[2].mxu1  ;;  %v788_v18 = vpop.f32.mrb[3].mxu0 }
 0x130   : > { %v831_v17 = vadd.f32 %v825_v10, %v347_v8  ;;  %v829_v19 = vpop.f32.mrb[3].mxu1 }
 0x131   : > { %v832_v20 = vadd.f32 %v827_v14, %v348_v12  ;;  %v898_v14 = vld [vmem:[%s1480_s3] sm:$0x3] (!%p1158_p7) }
 0x132   : > { %833 = vst [vmem:[#allocation2] sm:$0xff] %v831_v17 }
 0x133   : > { %834 = vst [vmem:[#allocation2 + $0x8] sm:$0xff] %v832_v20 }
 0x139   : > { %v839_v21 = vld [vmem:[#allocation2] sm:$0xff] }
 0x13a   : > { %v840_v22 = vld [vmem:[#allocation2 + $0x8] sm:$0xff]  ;;  %v841_v23 = vrot.slane %v839_v21, 4 }
 0x13b   : > { %v847_v24 = vrot.slane %v840_v22, 4 }
 0x13c   : > { %v842_v25 = vadd.f32 %v841_v23, %v839_v21 }
 0x13d   : > { %v848_v26 = vadd.f32 %v847_v24, %v840_v22 }
 0x13e   : > { %v843_v27 = vrot.slane %v842_v25, 2 }
 0x13f   : > { %v849_v28 = vrot.slane %v848_v26, 2 }
 0x140   : > { %v844_v29 = vadd.f32 %v843_v27, %v842_v25  ;;  %v946_v25 = vld [vmem:[%s1481_s4] sm:$0xff] }
 0x141   : > { %v850_v30 = vadd.f32 %v849_v28, %v848_v26  ;;  %v947_v26 = vld [vmem:[%s1481_s4 + $0x8] sm:$0xff] }
 0x142   : > { %v845_v31 = vrot.slane %v844_v29, 1 }
 0x143   : > { %v851_v32 = vrot.slane %v850_v30, 1 }
 0x144   : > { %v846_v33 = vadd.f32 %v845_v31, %v844_v29 }
 0x145   : > { %v852_v34 = vadd.f32 %v851_v32, %v850_v30 }
 0x146   : > { %v854_v35 = vmul.f32 0.125, %v846_v33 }
 0x147   : > { %v855_v36 = vmul.f32 0.125, %v852_v34 }
 0x148   : > { %v856_v37 = vsub.f32 %v839_v21, %v854_v35 }
 0x149   : > { %v857_v38 = vsub.f32 %v840_v22, %v855_v36 }
 0x14a   : > { %v858_v39 = vmul.f32 %v856_v37, %v856_v37 }
 0x14b   : > { %v859_v40 = vmul.f32 %v857_v38, %v857_v38 }
 0x14c   : > { %v860_v41 = vrot.slane %v858_v39, 4 }
 0x14d   : > { %v866_v42 = vrot.slane %v859_v40, 4 }
 0x14e   : > { %v861_v43 = vadd.f32 %v860_v41, %v858_v39 }
 0x14f   : > { %v867_v44 = vadd.f32 %v866_v42, %v859_v40 }
 0x150   : > { %v862_v45 = vrot.slane %v861_v43, 2 }
 0x151   : > { %v868_v46 = vrot.slane %v867_v44, 2 }
 0x152   : > { %v863_v47 = vadd.f32 %v862_v45, %v861_v43 }
 0x153   : > { %v869_v48 = vadd.f32 %v868_v46, %v867_v44 }
 0x154   : > { %v864_v49 = vrot.slane %v863_v47, 1 }
 0x155   : > { %v870_v50 = vrot.slane %v869_v48, 1 }
 0x156   : > { %v865_v51 = vadd.f32 %v864_v49, %v863_v47 }
 0x157   : > { %v871_v52 = vadd.f32 %v870_v50, %v869_v48 }
 0x158   : > { %v872_v53 = vmul.f32 0.125, %v865_v51 }
 0x159   : > { %v873_v54 = vmul.f32 0.125, %v871_v52 }
 0x15a   : > { %v875_v55 = vadd.f32 1e-05, %v872_v53 }
 0x15b   : > { %v876_v56 = vadd.f32 1e-05, %v873_v54 }
 0x15c   : > { %1290 = vrsqrt.f32 %v875_v55 }
 0x15d   : > { %1292 = vrsqrt.f32 %v876_v56 }
 0x166   : > { %v1291_v62 = vpop.eup %1290 }
 0x167   : > { %v1293_v0 = vpop.eup %1292 }
 0x168   : > { %v881_v1 = vcombine.low %v1291_v62, %v1293_v0 }
 0x16a   : > { %v888_v2 = vrot.slane %v881_v1, %v887_v63 }
 0x16c   : > { %v895_v4 = vrot.slane %v888_v2, %v887_v63 }
 0x16e   : > { %v897_v7 = vmul.f32 %v895_v4, %v874_v3 }
 0x170   : > { %v903_v8 = vrot.slane %v897_v7, %v902_v5  ;;  %v907_v9 = vrot.slane %v897_v7, %v906_v6 }
 0x172   : > { %v910_v10 = vmul.f32 %v903_v8, %v854_v35  ;;  %v911_v11 = vmul.f32 %v907_v9, %v855_v36  ;;  %v931_v17 = vmul.f32 %v903_v8, %v839_v21  ;;  %v932_v18 = vmul.f32 %v907_v9, %v840_v22 }
 0x174   : > { %v914_v12 = vcombine.low %v910_v10, %v911_v11 }
 0x176   : > { %v921_v13 = vrot.slane %v914_v12, %v887_v63 }
 0x178   : > { %v928_v15 = vrot.slane %v921_v13, %v887_v63 }
 0x17a   : > { %v930_v16 = vsub.f32 %v898_v14, %v928_v15 }
 0x17c   : > { %v937_v19 = vrot.slane %v930_v16, %v902_v5  ;;  %v941_v20 = vrot.slane %v930_v16, %v906_v6 }
 0x17e   : > { %v944_v23 = vadd.f32 %v937_v19, %v931_v17  ;;  %v945_v24 = vadd.f32 %v941_v20, %v932_v18 }
 0x180   : > { %vm948_vm0 = vcmp.ge.f32.partialorder %v944_v23, 0.0  ;;  %v950_v27 = vmul.f32 0.1, %v944_v23  ;;  %vm949_vm1 = vcmp.ge.f32.partialorder %v945_v24, 0.0  ;;  %v951_v28 = vmul.f32 0.1, %v945_v24 }
 0x182   : > { %v952_v29 = vsel %vm948_vm0, %v944_v23, %v950_v27  ;;  %v953_v30 = vsel %vm949_vm1, %v945_v24, %v951_v28 }
 0x183   : > { %v954_v21 = vadd.f32 %v952_v29, %v946_v25  ;;  %v955_v22 = vadd.f32 %v953_v30, %v947_v26 }
 0x185   : > { %956 = vst [vmem:[%s1482_s5] sm:$0xff] %v954_v21  ;;  %957 = vst [vmem:[%s1482_s5 + $0x8] sm:$0xff] %v955_v22 }
 0x186 PF: > { %s15_s20 = sadd.s32 1, %s1316_s20   ;;  %s1483_s18 = smov %s1312_s19 }
 0x187   : > { %p12_p8 = scmp.ge.s32.totalorder %s15_s20, 5   ;;  %s1484_s19 = smov %s1486_s21 }
 0x189   :  { %14 = sbr.rel (!%p12_p8) target bundleno = 2 (0x2), region = 90 }

// kernel: net_forward.26
= control target key start
LH: loop header
LB: loop body
LE: loop exit
PB: predicated region body
PF: predicated region fallthrough
CT: control target
= control target key end

     0   :  { %s1676_s15 = smov 0   ;;  %s1678_s16 = smov 0   ;;  %s2031_s0 = inlined_call_operand.vmem [shape: bf16[2,2560], index: 0, kind: input, shape index: {}]   ;;  %s2032_s1 = inlined_call_operand.vmem [shape: bf16[2560,512], index: 1, kind: input, shape index: {}]   ;;  %s2033_s2 = inlined_call_operand.vmem [shape: f32[1,512], index: 2, kind: input, shape index: {}]   ;;  %s2034_s3 = inlined_call_operand.vmem [shape: f32[1,512], index: 3, kind: input, shape index: {}]   ;;  %s2035_s4 = inlined_call_operand.vmem [shape: f32[2,512], index: 4, kind: output, shape index: {}]  }
   0x1   :  { %s1680_s17 = smov 0   ;;  %s1682_s18 = smov 0  }
   0x2   :  { %s1684_s19 = smov 0   ;;  %s1686_s20 = smov 0  }
   0x3   :  { %s1688_s21 = smov 0  }
   0x4 LB: > { %s23_s22 = sadd.s32 1, %s1638_s19  ;;  %s26_s23 = sadd.s32 1, %s1642_s20  ;;  %s1646_s21 = sphi %s1688_s21, %s14_s21   ;;  %s1642_s20 = sphi %s1686_s20, %s2041_s20   ;;  %s1638_s19 = sphi %s1684_s19, %s2040_s19   ;;  %s1634_s18 = sphi %s1682_s18, %s2039_s18   ;;  %s1630_s17 = sphi %s1680_s17, %s2038_s17   ;;  %s1626_s16 = sphi %s1678_s16, %s2037_s16   ;;  %s1622_s15 = sphi %s1676_s15, %s2036_s15  }
   0x5   : > { %p24_p0 = scmp.ge.s32.totalorder %s23_s22, 5  ;;  %p68_p1 = scmp.ne.s32.totalorder %s1626_s16, %s1622_s15 }
   0x6   : > { %p69_p2 = scmp.eq.s32.totalorder %s1646_s21, 0  ;;  %s61_s27 = sadd.s32 1, %s1626_s16 }
   0x7   : > { %s2043_s22 = smov (%p24_p0, %s23_s22), 0  ;;  %s2045_s23 = smov (!%p24_p0, %s26_s23), %s1642_s20 }
   0x8   : > { %p70_p3 = por %p69_p2, %p68_p1  ;;  %p28_p4 = scmp.ge.s32.totalorder %s2045_s23, 2 }
   0x9   : > { %s56_s24 = ssub.s32 %s1638_s19, %s2043_s22  ;;  %p1348_p6 = scmp.ge.s32.totalorder %s1646_s21, 10 }
   0xa   : > { %s2047_s23 = smov (%p28_p4, %s2045_s23), 0 }
   0xb   : > { %s57_s25 = ssub.s32 %s1642_s20, %s2047_s23  ;;  %172 = sbr.rel (%p1348_p6) target bundleno = 57 (0x39), region = 16 }
   0xc   : > { %s58_s26 = sor.u32 %s57_s25, %s56_s24 }
   0xd   : > { %p59_p5 = scmp.eq.s32.totalorder %s58_s26, 0 }
   0xf   : > { %s1727_s28 = scalar_select %p59_p5, %s1626_s16, %s61_s27  }
  0x12   : > { %183 = sbr.rel (!%p70_p3) target bundleno = 57 (0x39), region = 24  ;;  %s185_s29 = sand.u32 (%p70_p3), 1, %s1626_s16  }
  0x13   : > { %s1351_s30 = sshll.u32 (%p70_p3), %s1642_s20, 1  ;;  %s1349_s5 = sshll.u32 (%p70_p3), %s185_s29, 9 }
  0x14   : > { %s1430_s6 = sshll.u32 (%p70_p3), %s1638_s19, 8  ;;  %s1741_s12 = scalar_lea.vmem (%p70_p3), [#allocation3], %s1349_s5 }
  0x15   : > { %s191_s7 = sadd.s32 (%p70_p3), %s1430_s6, %s1351_s30 }
  0x16   : > { %s1353_s8 = sshll.u32 (%p70_p3), %s191_s7, 2 }
  0x17   : > { %s1736_s11 = scalar_lea.vmem (%p70_p3), %s2032_s1, %s1353_s8 }
  0x18   : > { %v347_v0 = vld [vmem:[%s1736_s11] sm:$0xff] (%p70_p3)  ;;  %v349_v1 = vld [vmem:[%s1736_s11 + $0x10] sm:$0xff] (%p70_p3) }
  0x19   : > { %v351_v2 = vld [vmem:[%s1736_s11 + $0x20] sm:$0xff]  ;;  %348 = vst [vmem:[%s1741_s12] sm:$0xff] %v347_v0  ;;  %350 = vst [vmem:[%s1741_s12 + $0x8] sm:$0xff] %v349_v1  ;;  %v353_v3 = vld [vmem:[%s1736_s11 + $0x30] sm:$0xff] }
  0x1a   : > { %352 = vst [vmem:[%s1741_s12 + $0x10] sm:$0xff] %v351_v2  ;;  %v355_v4 = vld [vmem:[%s1736_s11 + $0x40] sm:$0xff]  ;;  %v357_v5 = vld [vmem:[%s1736_s11 + $0x50] sm:$0xff]  ;;  %354 = vst [vmem:[%s1741_s12 + $0x18] sm:$0xff] %v353_v3 }
  0x1b   : > { %356 = vst [vmem:[%s1741_s12 + $0x20] sm:$0xff] %v355_v4  ;;  %358 = vst [vmem:[%s1741_s12 + $0x28] sm:$0xff] %v357_v5  ;;  %v359_v6 = vld [vmem:[%s1736_s11 + $0x60] sm:$0xff]  ;;  %v361_v7 = vld [vmem:[%s1736_s11 + $0x70] sm:$0xff] }
  0x1c   : > { %v363_v8 = vld [vmem:[%s1736_s11 + $0x80] sm:$0xff]  ;;  %360 = vst [vmem:[%s1741_s12 + $0x30] sm:$0xff] %v359_v6  ;;  %362 = vst [vmem:[%s1741_s12 + $0x38] sm:$0xff] %v361_v7  ;;  %v365_v9 = vld [vmem:[%s1736_s11 + $0x90] sm:$0xff] }
  0x1d   : > { %364 = vst [vmem:[%s1741_s12 + $0x40] sm:$0xff] %v363_v8  ;;  %v367_v10 = vld [vmem:[%s1736_s11 + $0xa0] sm:$0xff]  ;;  %v369_v11 = vld [vmem:[%s1736_s11 + $0xb0] sm:$0xff]  ;;  %366 = vst [vmem:[%s1741_s12 + $0x48] sm:$0xff] %v365_v9 }
  0x1e   : > { %368 = vst [vmem:[%s1741_s12 + $0x50] sm:$0xff] %v367_v10  ;;  %370 = vst [vmem:[%s1741_s12 + $0x58] sm:$0xff] %v369_v11  ;;  %v371_v12 = vld [vmem:[%s1736_s11 + $0xc0] sm:$0xff]  ;;  %v373_v13 = vld [vmem:[%s1736_s11 + $0xd0] sm:$0xff] }
  0x1f   : > { %v375_v14 = vld [vmem:[%s1736_s11 + $0xe0] sm:$0xff]  ;;  %372 = vst [vmem:[%s1741_s12 + $0x60] sm:$0xff] %v371_v12  ;;  %374 = vst [vmem:[%s1741_s12 + $0x68] sm:$0xff] %v373_v13  ;;  %v377_v15 = vld [vmem:[%s1736_s11 + $0xf0] sm:$0xff] }
  0x20   : > { %376 = vst [vmem:[%s1741_s12 + $0x70] sm:$0xff] %v375_v14  ;;  %v379_v16 = vld [vmem:[%s1736_s11 + $0x100] sm:$0xff]  ;;  %v381_v17 = vld [vmem:[%s1736_s11 + $0x110] sm:$0xff]  ;;  %378 = vst [vmem:[%s1741_s12 + $0x78] sm:$0xff] %v377_v15 }
  0x21   : > { %380 = vst [vmem:[%s1741_s12 + $0x80] sm:$0xff] %v379_v16  ;;  %382 = vst [vmem:[%s1741_s12 + $0x88] sm:$0xff] %v381_v17  ;;  %v383_v18 = vld [vmem:[%s1736_s11 + $0x120] sm:$0xff]  ;;  %v385_v19 = vld [vmem:[%s1736_s11 + $0x130] sm:$0xff] }
  0x22   : > { %v387_v20 = vld [vmem:[%s1736_s11 + $0x140] sm:$0xff]  ;;  %384 = vst [vmem:[%s1741_s12 + $0x90] sm:$0xff] %v383_v18  ;;  %386 = vst [vmem:[%s1741_s12 + $0x98] sm:$0xff] %v385_v19  ;;  %v389_v21 = vld [vmem:[%s1736_s11 + $0x150] sm:$0xff] }
  0x23   : > { %388 = vst [vmem:[%s1741_s12 + $0xa0] sm:$0xff] %v387_v20  ;;  %v391_v22 = vld [vmem:[%s1736_s11 + $0x160] sm:$0xff]  ;;  %v393_v23 = vld [vmem:[%s1736_s11 + $0x170] sm:$0xff]  ;;  %390 = vst [vmem:[%s1741_s12 + $0xa8] sm:$0xff] %v389_v21 }
  0x24   : > { %392 = vst [vmem:[%s1741_s12 + $0xb0] sm:$0xff] %v391_v22  ;;  %394 = vst [vmem:[%s1741_s12 + $0xb8] sm:$0xff] %v393_v23  ;;  %v395_v24 = vld [vmem:[%s1736_s11 + $0x180] sm:$0xff]  ;;  %v397_v25 = vld [vmem:[%s1736_s11 + $0x190] sm:$0xff] }
  0x25   : > { %v399_v26 = vld [vmem:[%s1736_s11 + $0x1a0] sm:$0xff]  ;;  %396 = vst [vmem:[%s1741_s12 + $0xc0] sm:$0xff] %v395_v24  ;;  %398 = vst [vmem:[%s1741_s12 + $0xc8] sm:$0xff] %v397_v25  ;;  %v401_v27 = vld [vmem:[%s1736_s11 + $0x1b0] sm:$0xff] }
  0x26   : > { %400 = vst [vmem:[%s1741_s12 + $0xd0] sm:$0xff] %v399_v26  ;;  %v403_v28 = vld [vmem:[%s1736_s11 + $0x1c0] sm:$0xff]  ;;  %v405_v29 = vld [vmem:[%s1736_s11 + $0x1d0] sm:$0xff]  ;;  %402 = vst [vmem:[%s1741_s12 + $0xd8] sm:$0xff] %v401_v27 }
  0x27   : > { %404 = vst [vmem:[%s1741_s12 + $0xe0] sm:$0xff] %v403_v28  ;;  %406 = vst [vmem:[%s1741_s12 + $0xe8] sm:$0xff] %v405_v29  ;;  %v407_v30 = vld [vmem:[%s1736_s11 + $0x1e0] sm:$0xff]  ;;  %v409_v31 = vld [vmem:[%s1736_s11 + $0x1f0] sm:$0xff] }
  0x28   : > { %v411_v32 = vld [vmem:[%s1736_s11 + $0x200] sm:$0xff]  ;;  %408 = vst [vmem:[%s1741_s12 + $0xf0] sm:$0xff] %v407_v30  ;;  %410 = vst [vmem:[%s1741_s12 + $0xf8] sm:$0xff] %v409_v31  ;;  %v413_v33 = vld [vmem:[%s1736_s11 + $0x210] sm:$0xff] }
  0x29   : > { %412 = vst [vmem:[%s1741_s12 + $0x100] sm:$0xff] %v411_v32  ;;  %v415_v34 = vld [vmem:[%s1736_s11 + $0x220] sm:$0xff]  ;;  %v417_v35 = vld [vmem:[%s1736_s11 + $0x230] sm:$0xff]  ;;  %414 = vst [vmem:[%s1741_s12 + $0x108] sm:$0xff] %v413_v33 }
  0x2a   : > { %416 = vst [vmem:[%s1741_s12 + $0x110] sm:$0xff] %v415_v34  ;;  %418 = vst [vmem:[%s1741_s12 + $0x118] sm:$0xff] %v417_v35  ;;  %v419_v36 = vld [vmem:[%s1736_s11 + $0x240] sm:$0xff]  ;;  %v421_v37 = vld [vmem:[%s1736_s11 + $0x250] sm:$0xff] }
  0x2b   : > { %v423_v38 = vld [vmem:[%s1736_s11 + $0x260] sm:$0xff]  ;;  %420 = vst [vmem:[%s1741_s12 + $0x120] sm:$0xff] %v419_v36  ;;  %422 = vst [vmem:[%s1741_s12 + $0x128] sm:$0xff] %v421_v37  ;;  %v425_v39 = vld [vmem:[%s1736_s11 + $0x270] sm:$0xff] }
  0x2c   : > { %424 = vst [vmem:[%s1741_s12 + $0x130] sm:$0xff] %v423_v38  ;;  %v427_v40 = vld [vmem:[%s1736_s11 + $0x280] sm:$0xff]  ;;  %v429_v41 = vld [vmem:[%s1736_s11 + $0x290] sm:$0xff]  ;;  %426 = vst [vmem:[%s1741_s12 + $0x138] sm:$0xff] %v425_v39 }
  0x2d   : > { %428 = vst [vmem:[%s1741_s12 + $0x140] sm:$0xff] %v427_v40  ;;  %430 = vst [vmem:[%s1741_s12 + $0x148] sm:$0xff] %v429_v41  ;;  %v431_v42 = vld [vmem:[%s1736_s11 + $0x2a0] sm:$0xff]  ;;  %v433_v43 = vld [vmem:[%s1736_s11 + $0x2b0] sm:$0xff] }
  0x2e   : > { %v435_v44 = vld [vmem:[%s1736_s11 + $0x2c0] sm:$0xff]  ;;  %432 = vst [vmem:[%s1741_s12 + $0x150] sm:$0xff] %v431_v42  ;;  %434 = vst [vmem:[%s1741_s12 + $0x158] sm:$0xff] %v433_v43  ;;  %v437_v45 = vld [vmem:[%s1736_s11 + $0x2d0] sm:$0xff] }
  0x2f   : > { %436 = vst [vmem:[%s1741_s12 + $0x160] sm:$0xff] %v435_v44  ;;  %v439_v46 = vld [vmem:[%s1736_s11 + $0x2e0] sm:$0xff]  ;;  %v441_v47 = vld [vmem:[%s1736_s11 + $0x2f0] sm:$0xff]  ;;  %438 = vst [vmem:[%s1741_s12 + $0x168] sm:$0xff] %v437_v45 }
  0x30   : > { %440 = vst [vmem:[%s1741_s12 + $0x170] sm:$0xff] %v439_v46  ;;  %442 = vst [vmem:[%s1741_s12 + $0x178] sm:$0xff] %v441_v47  ;;  %v443_v48 = vld [vmem:[%s1736_s11 + $0x300] sm:$0xff]  ;;  %v445_v49 = vld [vmem:[%s1736_s11 + $0x310] sm:$0xff] }
  0x31   : > { %v447_v50 = vld [vmem:[%s1736_s11 + $0x320] sm:$0xff]  ;;  %444 = vst [vmem:[%s1741_s12 + $0x180] sm:$0xff] %v443_v48  ;;  %446 = vst [vmem:[%s1741_s12 + $0x188] sm:$0xff] %v445_v49  ;;  %v449_v51 = vld [vmem:[%s1736_s11 + $0x330] sm:$0xff] }
  0x32   : > { %448 = vst [vmem:[%s1741_s12 + $0x190] sm:$0xff] %v447_v50  ;;  %v451_v52 = vld [vmem:[%s1736_s11 + $0x340] sm:$0xff]  ;;  %v453_v53 = vld [vmem:[%s1736_s11 + $0x350] sm:$0xff]  ;;  %450 = vst [vmem:[%s1741_s12 + $0x198] sm:$0xff] %v449_v51 }
  0x33   : > { %452 = vst [vmem:[%s1741_s12 + $0x1a0] sm:$0xff] %v451_v52  ;;  %454 = vst [vmem:[%s1741_s12 + $0x1a8] sm:$0xff] %v453_v53  ;;  %v455_v54 = vld [vmem:[%s1736_s11 + $0x360] sm:$0xff]  ;;  %v457_v55 = vld [vmem:[%s1736_s11 + $0x370] sm:$0xff] }
  0x34   : > { %v459_v56 = vld [vmem:[%s1736_s11 + $0x380] sm:$0xff]  ;;  %456 = vst [vmem:[%s1741_s12 + $0x1b0] sm:$0xff] %v455_v54  ;;  %458 = vst [vmem:[%s1741_s12 + $0x1b8] sm:$0xff] %v457_v55  ;;  %v461_v57 = vld [vmem:[%s1736_s11 + $0x390] sm:$0xff] }
  0x35   : > { %460 = vst [vmem:[%s1741_s12 + $0x1c0] sm:$0xff] %v459_v56  ;;  %v463_v58 = vld [vmem:[%s1736_s11 + $0x3a0] sm:$0xff]  ;;  %v465_v59 = vld [vmem:[%s1736_s11 + $0x3b0] sm:$0xff]  ;;  %462 = vst [vmem:[%s1741_s12 + $0x1c8] sm:$0xff] %v461_v57 }
  0x36   : > { %464 = vst [vmem:[%s1741_s12 + $0x1d0] sm:$0xff] %v463_v58  ;;  %466 = vst [vmem:[%s1741_s12 + $0x1d8] sm:$0xff] %v465_v59  ;;  %v467_v60 = vld [vmem:[%s1736_s11 + $0x3c0] sm:$0xff]  ;;  %v469_v61 = vld [vmem:[%s1736_s11 + $0x3d0] sm:$0xff] }
  0x37   : > { %v471_v62 = vld [vmem:[%s1736_s11 + $0x3e0] sm:$0xff]  ;;  %468 = vst [vmem:[%s1741_s12 + $0x1e0] sm:$0xff] %v467_v60  ;;  %470 = vst [vmem:[%s1741_s12 + $0x1e8] sm:$0xff] %v469_v61  ;;  %v473_v63 = vld [vmem:[%s1736_s11 + $0x3f0] sm:$0xff] }
  0x38   : > { %472 = vst [vmem:[%s1741_s12 + $0x1f0] sm:$0xff] %v471_v62  ;;  %474 = vst [vmem:[%s1741_s12 + $0x1f8] sm:$0xff] %v473_v63 }
  0x39 PF: > { %p1354_p7 = scmp.ge.s32.totalorder %s1646_s21, 1  ;;  %p495_p8 = scmp.lt.s32.totalorder %s1646_s21, 11 }
  0x3b   : > { %p496_p9 = pnand %p1354_p7, %p495_p8 }
  0x3c   : > { %s502_s13 = sand.u32 (!%p496_p9), 1, %s1622_s15   ;;  %s1356_s14 = sshll.u32 (!%p496_p9), %s1630_s17, 2 }
  0x3d   : > { %499 = sbr.rel (%p496_p9) target bundleno = 464 (0x1d0), region = 70  ;;  %s1355_s24 = sshll.u32 (!%p496_p9), %s502_s13, 9 }
  0x3e   : > { %p540_p10 = scmp.lt.s32.totalorder (!%p496_p9), %s1356_s14, 19  ;;  %s1357_s25 = sshll.u32 (!%p496_p9), %s1634_s18, 1 }
  0x3f   : > { %p547_p11 = scmp.lt.s32.totalorder (!%p496_p9), %s1357_s25, 3  ;;  %s1895_s12 = scalar_lea.vmem (!%p496_p9), [#allocation3], %s1355_s24 }
  0x40   : > { %p1361_p12 = scmp.ne.s32.totalorder (!%p496_p9), %s1630_s17, 0 }
  0x44   : > { %s2049_s14 = smov (!%p540_p10, %s1356_s14), 19  ;;  %s2051_s25 = smov (!%p547_p11, %s1357_s25), 3 }
  0x45   : > { %s542_s29 = scalar_lea.vmem %s2031_s0, %s2049_s14  ;;  %s549_s15 = scalar_lea.vmem %s2033_s2, %s2051_s25  ;;  %v1648_v0 = vmov (!%p1361_p12), 0.0  }
  0x46   : > { %s554_s18 = scalar_lea.vmem %s2034_s3, %s2051_s25  ;;  %s1360_s8 = sshll.u32 %s2051_s25, 1  ;;  %566 = vst [vmem:[#allocation2] sm:$0xf] (!%p1361_p12), %v1648_v0 }
  0x47   : > { %s1893_s11 = scalar_lea.vmem %s2035_s4, %s1360_s8  ;;  %565 = sbr.rel (%p1361_p12) target bundleno = 78 (0x4e), region = 78 }
  0x4e PF: > { %v1492_v1 = vld [vmem:[%s1895_s12 + $0x4] ss:$8 sps:$4 sm:$0xff]   ;;  %v1496_v3 = vld [vmem:[%s1895_s12] ss:$8 sps:$4 sm:$0xff]   ;;  %v1498_v5 = vld [vmem:[%s1895_s12 + $0x14] ss:$8 sps:$4 sm:$0xff]   ;;  %v645_v41 = vlaneseq }
  0x4f   : > { %v1494_v2 = vld [vmem:[%s1895_s12 + $0x104] ss:$8 sps:$4 sm:$0xff]   ;;  %982 = vmatprep.subr.bf16.mxu1 %v1492_v1  ;;  %v1497_v4 = vld [vmem:[%s1895_s12 + $0x100] ss:$8 sps:$4 sm:$0xff]   ;;  %v1500_v6 = vld [vmem:[%s1895_s12 + $0x114] ss:$8 sps:$4 sm:$0xff]  }
  0x50   : > { %1023 = vmatprep.subr.bf16.mxu0 %v1494_v2  ;;  %983 = vmatpush1.bf16.msra.mxu1 %v1496_v3  ;;  %v1502_v7 = vld [vmem:[%s1895_s12 + $0x10] ss:$8 sps:$4 sm:$0xff]   ;;  %v1504_v9 = vld [vmem:[%s1895_s12 + $0x24] ss:$8 sps:$4 sm:$0xff]   ;;  %v1508_v11 = vld [vmem:[%s1895_s12 + $0x20] ss:$8 sps:$4 sm:$0xff]  }
  0x51   : > { %1024 = vmatpush1.bf16.msra.mxu0 %v1497_v4  ;;  %984 = vmatprep.subr.bf16.mxu1 %v1498_v5  ;;  %v1503_v8 = vld [vmem:[%s1895_s12 + $0x110] ss:$8 sps:$4 sm:$0xff]   ;;  %v1506_v10 = vld [vmem:[%s1895_s12 + $0x124] ss:$8 sps:$4 sm:$0xff]   ;;  %v1509_v12 = vld [vmem:[%s1895_s12 + $0x120] ss:$8 sps:$4 sm:$0xff]  }
  0x52   : > { %1025 = vmatprep.subr.bf16.mxu0 %v1500_v6  ;;  %v1510_v13 = vld [vmem:[%s1895_s12 + $0x34] ss:$8 sps:$4 sm:$0xff]   ;;  %v1514_v15 = vld [vmem:[%s1895_s12 + $0x30] ss:$8 sps:$4 sm:$0xff]   ;;  %v1516_v17 = vld [vmem:[%s1895_s12 + $0x44] ss:$8 sps:$4 sm:$0xff]  }
  0x53   : > { %v1512_v14 = vld [vmem:[%s1895_s12 + $0x134] ss:$8 sps:$4 sm:$0xff]   ;;  %v1515_v16 = vld [vmem:[%s1895_s12 + $0x130] ss:$8 sps:$4 sm:$0xff]   ;;  %v1518_v18 = vld [vmem:[%s1895_s12 + $0x144] ss:$8 sps:$4 sm:$0xff]  }
  0x54   : > { %985 = vmatpush1.bf16.msra.mxu1 %v1502_v7  ;;  %v1520_v19 = vld [vmem:[%s1895_s12 + $0x40] ss:$8 sps:$4 sm:$0xff]   ;;  %v1522_v21 = vld [vmem:[%s1895_s12 + $0x54] ss:$8 sps:$4 sm:$0xff]   ;;  %v1526_v23 = vld [vmem:[%s1895_s12 + $0x50] ss:$8 sps:$4 sm:$0xff]  }
  0x55   : > { %1026 = vmatpush1.bf16.msra.mxu0 %v1503_v8  ;;  %986 = vmatprep.subr.bf16.mxu1 %v1504_v9  ;;  %v1521_v20 = vld [vmem:[%s1895_s12 + $0x140] ss:$8 sps:$4 sm:$0xff]   ;;  %v1524_v22 = vld [vmem:[%s1895_s12 + $0x154] ss:$8 sps:$4 sm:$0xff]   ;;  %v1527_v24 = vld [vmem:[%s1895_s12 + $0x150] ss:$8 sps:$4 sm:$0xff]  }
  0x56   : > { %1027 = vmatprep.subr.bf16.mxu0 %v1506_v10  ;;  %v1528_v25 = vld [vmem:[%s1895_s12 + $0x64] ss:$8 sps:$4 sm:$0xff]   ;;  %v1532_v27 = vld [vmem:[%s1895_s12 + $0x60] ss:$8 sps:$4 sm:$0xff]   ;;  %v1534_v29 = vld [vmem:[%s1895_s12 + $0x74] ss:$8 sps:$4 sm:$0xff]  }
  0x57   : > { %v1530_v26 = vld [vmem:[%s1895_s12 + $0x164] ss:$8 sps:$4 sm:$0xff]   ;;  %v1533_v28 = vld [vmem:[%s1895_s12 + $0x160] ss:$8 sps:$4 sm:$0xff]   ;;  %v1536_v30 = vld [vmem:[%s1895_s12 + $0x174] ss:$8 sps:$4 sm:$0xff]  }
  0x58   : > { %987 = vmatpush1.bf16.msra.mxu1 %v1508_v11  ;;  %v1538_v31 = vld [vmem:[%s1895_s12 + $0x70] ss:$8 sps:$4 sm:$0xff]   ;;  %v1540_v33 = vld [vmem:[%s1895_s12 + $0x84] ss:$8 sps:$4 sm:$0xff]   ;;  %v1544_v35 = vld [vmem:[%s1895_s12 + $0x80] ss:$8 sps:$4 sm:$0xff]  }
  0x59   : > { %1028 = vmatpush1.bf16.msra.mxu0 %v1509_v12  ;;  %988 = vmatprep.subr.bf16.mxu1 %v1510_v13  ;;  %v1539_v32 = vld [vmem:[%s1895_s12 + $0x170] ss:$8 sps:$4 sm:$0xff]   ;;  %v1542_v34 = vld [vmem:[%s1895_s12 + $0x184] ss:$8 sps:$4 sm:$0xff]   ;;  %v1545_v36 = vld [vmem:[%s1895_s12 + $0x180] ss:$8 sps:$4 sm:$0xff]  }
  0x5a   : > { %1029 = vmatprep.subr.bf16.mxu0 %v1512_v14  ;;  %v1546_v37 = vld [vmem:[%s1895_s12 + $0x94] ss:$8 sps:$4 sm:$0xff]   ;;  %v1649_v39 = vmov 1966171168   ;;  %v1550_v42 = vld [vmem:[%s1895_s12 + $0x90] ss:$8 sps:$4 sm:$0xff]  }
  0x5b   : > { %v1548_v38 = vld [vmem:[%s1895_s12 + $0x194] ss:$8 sps:$4 sm:$0xff]   ;;  %v643_v40 = vunpack.c.l.s4 %v1649_v39  ;;  %v1551_v43 = vld [vmem:[%s1895_s12 + $0x190] ss:$8 sps:$4 sm:$0xff]   ;;  %v1552_v44 = vld [vmem:[%s1895_s12 + $0xa4] ss:$8 sps:$4 sm:$0xff]  }
  0x5c   : > { %989 = vmatpush1.bf16.msra.mxu1 %v1514_v15  ;;  %v1554_v45 = vld [vmem:[%s1895_s12 + $0x1a4] ss:$8 sps:$4 sm:$0xff]   ;;  %v1940_v47 = vshrl.u32 %v645_v41, 7  ;;  %v1556_v48 = vld [vmem:[%s1895_s12 + $0xa0] ss:$8 sps:$4 sm:$0xff]   ;;  %p1427_p13 = scmp.ne.s32.totalorder %s1630_s17, 4 }
  0x5d   : > { %1030 = vmatpush1.bf16.msra.mxu0 %v1515_v16  ;;  %990 = vmatprep.subr.bf16.mxu1 %v1516_v17  ;;  %v644_v46 = vunpack.c.0.s8 %v643_v40  ;;  %v1557_v49 = vld [vmem:[%s1895_s12 + $0x1a0] ss:$8 sps:$4 sm:$0xff]   ;;  %v1558_v50 = vld [vmem:[%s1895_s12 + $0xb4] ss:$8 sps:$4 sm:$0xff]   ;;  %v1562_v54 = vld [vmem:[%s1895_s12 + $0xb0] ss:$8 sps:$4 sm:$0xff]  }
  0x5e   : > { %1031 = vmatprep.subr.bf16.mxu0 %v1518_v18  ;;  %v1560_v51 = vld [vmem:[%s1895_s12 + $0x1b4] ss:$8 sps:$4 sm:$0xff]   ;;  %v1563_v55 = vld [vmem:[%s1895_s12 + $0x1b0] ss:$8 sps:$4 sm:$0xff]   ;;  %v1564_v57 = vld [vmem:[%s1895_s12 + $0xc4] ss:$8 sps:$4 sm:$0xff]  }
  0x5f   : > { %v1947_v52 = vsub.s32 %v644_v46, %v1940_v47  ;;  %v1362_v53 = vld.sshfl [vmem:[%s542_s29] sm:$0x33 pattern:$0x75316420]  ;;  %v1566_v58 = vld [vmem:[%s1895_s12 + $0x1c4] ss:$8 sps:$4 sm:$0xff]  }
  0x60   : > { %991 = vmatpush1.bf16.msra.mxu1 %v1520_v19  ;;  %v641_v56 = vcombine.high %v1362_v53, %v1362_v53  ;;  %v1568_v60 = vld [vmem:[%s1895_s12 + $0xc0] ss:$8 sps:$4 sm:$0xff]   ;;  %v1570_v63 = vld [vmem:[%s1895_s12 + $0xd4] ss:$8 sps:$4 sm:$0xff]   ;;  %v1574_v1 = vld [vmem:[%s1895_s12 + $0xd0] ss:$8 sps:$4 sm:$0xff]  }
  0x61   : > { %1032 = vmatpush1.bf16.msra.mxu0 %v1521_v20  ;;  %992 = vmatprep.subr.bf16.mxu1 %v1522_v21  ;;  %v1569_v61 = vld [vmem:[%s1895_s12 + $0x1c0] ss:$8 sps:$4 sm:$0xff]   ;;  %v1572_v0 = vld [vmem:[%s1895_s12 + $0x1d4] ss:$8 sps:$4 sm:$0xff]   ;;  %v1575_v2 = vld [vmem:[%s1895_s12 + $0x1d0] ss:$8 sps:$4 sm:$0xff]   ;;  %v648_v9 = vrot.slane %v1362_v53, %v1947_v52 }
  0x62   : > { %1033 = vmatprep.subr.bf16.mxu0 %v1524_v22  ;;  %v655_v59 = vrot.slane %v641_v56, %v1947_v52  ;;  %v1576_v3 = vld [vmem:[%s1895_s12 + $0xe4] ss:$8 sps:$4 sm:$0xff]   ;;  %v1580_v5 = vld [vmem:[%s1895_s12 + $0xe0] ss:$8 sps:$4 sm:$0xff]   ;;  %v1582_v7 = vld [vmem:[%s1895_s12 + $0xf4] ss:$8 sps:$4 sm:$0xff]  }
  0x63   : > { %v1578_v4 = vld [vmem:[%s1895_s12 + $0x1e4] ss:$8 sps:$4 sm:$0xff]   ;;  %v1581_v6 = vld [vmem:[%s1895_s12 + $0x1e0] ss:$8 sps:$4 sm:$0xff]   ;;  %v1584_v8 = vld [vmem:[%s1895_s12 + $0x1f4] ss:$8 sps:$4 sm:$0xff]   ;;  %v656_v12 = vcombine.high %v648_v9, %v648_v9 }
  0x64   : > { %993 = vmatpush1.bf16.msra.mxu1 %v1526_v23  ;;  %v657_v62 = vcombine.high %v655_v59, %v655_v59  ;;  %1014 = vmatprep.mubr.bf16.mxu1 %v655_v59  ;;  %v1586_v10 = vld [vmem:[%s1895_s12 + $0xf0] ss:$8 sps:$4 sm:$0xff]   ;;  %v1650_v13 = vmov 1983009808   ;;  %vm1093_vm0 = vcmask (!%p1427_p13), 1041408  }
  0x65   : > { %1034 = vmatpush1.bf16.msra.mxu0 %v1527_v24  ;;  %994 = vmatprep.subr.bf16.mxu1 %v1528_v25  ;;  %v1587_v11 = vld [vmem:[%s1895_s12 + $0x1f0] ss:$8 sps:$4 sm:$0xff]   ;;  %v1068_v14 = vunpack.c.l.s4 %v1650_v13 }
  0x66   : > { %1035 = vmatprep.subr.bf16.mxu0 %v1530_v26  ;;  %1055 = vmatprep.mubr.bf16.mxu0 %v657_v62 }
  0x67   : > { %v1069_v15 = vunpack.c.0.s8 %v1068_v14 }
  0x68   : > { %995 = vmatpush1.bf16.msra.mxu1 %v1532_v27 }
  0x69   : > { %1036 = vmatpush1.bf16.msra.mxu0 %v1533_v28  ;;  %996 = vmatprep.subr.bf16.mxu1 %v1534_v29  ;;  %v1975_v22 = vsub.s32 %v1069_v15, %v1940_v47  ;;  %v567_v28 = vld [vmem:[#allocation2] sm:$0xf] }
  0x6a   : > { %1037 = vmatprep.subr.bf16.mxu0 %v1536_v30 }
  0x6c   : > { %997 = vmatpush1.bf16.msra.mxu1 %v1538_v31 }
  0x6d   : > { %1038 = vmatpush1.bf16.msra.mxu0 %v1539_v32  ;;  %998 = vmatprep.subr.bf16.mxu1 %v1540_v33 }
  0x6e   : > { %1039 = vmatprep.subr.bf16.mxu0 %v1542_v34 }
  0x70   : > { %999 = vmatpush1.bf16.msra.mxu1 %v1544_v35 }
  0x71   : > { %1040 = vmatpush1.bf16.msra.mxu0 %v1545_v36  ;;  %1000 = vmatprep.subr.bf16.mxu1 %v1546_v37 }
  0x72   : > { %1041 = vmatprep.subr.bf16.mxu0 %v1548_v38 }
  0x74   : > { %1001 = vmatpush1.bf16.msra.mxu1 %v1550_v42 }
  0x75   : > { %1042 = vmatpush1.bf16.msra.mxu0 %v1551_v43  ;;  %1002 = vmatprep.subr.bf16.mxu1 %v1552_v44 }
  0x76   : > { %1043 = vmatprep.subr.bf16.mxu0 %v1554_v45 }
  0x78   : > { %1003 = vmatpush1.bf16.msra.mxu1 %v1556_v48 }
  0x79   : > { %1044 = vmatpush1.bf16.msra.mxu0 %v1557_v49  ;;  %1004 = vmatprep.subr.bf16.mxu1 %v1558_v50 }
  0x7a   : > { %1045 = vmatprep.subr.bf16.mxu0 %v1560_v51 }
  0x7c   : > { %1005 = vmatpush1.bf16.msra.mxu1 %v1562_v54 }
  0x7d   : > { %1046 = vmatpush1.bf16.msra.mxu0 %v1563_v55  ;;  %1006 = vmatprep.subr.bf16.mxu1 %v1564_v57 }
  0x7e   : > { %1047 = vmatprep.subr.bf16.mxu0 %v1566_v58 }
  0x80   : > { %1007 = vmatpush1.bf16.msra.mxu1 %v1568_v60 }
  0x81   : > { %1048 = vmatpush1.bf16.msra.mxu0 %v1569_v61  ;;  %1008 = vmatprep.subr.bf16.mxu1 %v1570_v63 }
  0x82   : > { %1049 = vmatprep.subr.bf16.mxu0 %v1572_v0 }
  0x84   : > { %1009 = vmatpush1.bf16.msra.mxu1 %v1574_v1 }
  0x85   : > { %1050 = vmatpush1.bf16.msra.mxu0 %v1575_v2  ;;  %1010 = vmatprep.subr.bf16.mxu1 %v1576_v3 }
  0x86   : > { %1051 = vmatprep.subr.bf16.mxu0 %v1578_v4 }
  0x88   : > { %1011 = vmatpush1.bf16.msra.mxu1 %v1580_v5 }
  0x89   : > { %1052 = vmatpush1.bf16.msra.mxu0 %v1581_v6  ;;  %1012 = vmatprep.subr.bf16.mxu1 %v1582_v7 }
  0x8a   : > { %1053 = vmatprep.subr.bf16.mxu0 %v1584_v8 }
  0x8c   : > { %1013 = vmatpush1.bf16.msra.mxu1 %v1586_v10 }
  0x8d   : > { %1054 = vmatpush1.bf16.msra.mxu0 %v1587_v11 }
  0x8f   : > { %1015 = vmatmul.mubr.bf16.vlgmr.msra.gmra.mrb[0].mxu1 %v648_v9 }
  0x90   : > { %1056 = vmatmul.mubr.bf16.vlgmr.msra.gmra.mrb[0].mxu0 %v656_v12 }
 0x162   : > { %v1016_v16 = vpop.f32.mrb[0].mxu1 }
 0x163   : > { %v1057_v17 = vpop.f32.mrb[0].mxu0  ;;  %v1018_v19 = vpop.f32.mrb[1].mxu1 }
 0x164   : > { %v1058_v18 = vadd.f32 %v1057_v17, %v1016_v16  ;;  %v1059_v20 = vpop.f32.mrb[1].mxu0  ;;  %v1020_v23 = vpop.f32.mrb[2].mxu1  ;;  %v1151_v16 = vld [vmem:[%s549_s15] sm:$0x3] (!%p1427_p13) }
 0x165   : > { %v1060_v21 = vadd.f32 %v1059_v20, %v1018_v19  ;;  %v1061_v24 = vpop.f32.mrb[2].mxu0  ;;  %v1021_v25 = vpop.f32.mrb[3].mxu1  ;;  %v1183_v19 = vsub.s32 (!%p1427_p13), 1, %v1940_v47 }
 0x166   : > { %v1062_v26 = vpop.f32.mrb[3].mxu0 }
 0x167   : > { %v1066_v27 = vcombine.low %v1058_v18, %v1060_v21  ;;  %1080 = sbr.rel (%p1427_p13) target bundleno = 464 (0x1d0), region = 82  ;;  %v1179_v18 = vsub.s32 (!%p1427_p13), 0, %v1940_v47 }
 0x169   : > { %v1073_v29 = vrot.slane %v1066_v27, %v1975_v22 }
 0x16b   : > { %v1075_v30 = vadd.f32 %v1073_v29, %v567_v28  ;;  %v1175_v29 = vld [vmem:[%s554_s18] sm:$0x3] (!%p1427_p13) }
 0x16d   : > { %1076 = vst [vmem:[#allocation2] sm:$0xf] %v1075_v30 }
 0x174   : > { %v1979_v31 = vld [vmem:[#allocation2] sm:$0xf] }
 0x175   : > { %v1089_v32 = vrot.slane %v1979_v31, %v1975_v22 }
 0x177   : > { %v1090_v33 = vcombine.high %v1089_v32, %v1089_v32  ;;  %v1094_v34 = vsel %vm1093_vm0, %v1089_v32, 0.0 }
 0x178   : > { %v1095_v35 = vrot.slane %v1094_v34, 4 }
 0x179   : > { %v1101_v36 = vsel %vm1093_vm0, %v1090_v33, 0.0 }
 0x17a   : > { %v1096_v37 = vadd.f32 %v1095_v35, %v1094_v34  ;;  %v1102_v38 = vrot.slane %v1101_v36, 4 }
 0x17c   : > { %v1097_v39 = vrot.slane %v1096_v37, 2  ;;  %v1103_v40 = vadd.f32 %v1102_v38, %v1101_v36 }
 0x17e   : > { %v1098_v41 = vadd.f32 %v1097_v39, %v1096_v37  ;;  %v1104_v42 = vrot.slane %v1103_v40, 2 }
 0x180   : > { %v1099_v43 = vrot.slane %v1098_v41, 1  ;;  %v1105_v44 = vadd.f32 %v1104_v42, %v1103_v40 }
 0x182   : > { %v1100_v45 = vadd.f32 %v1099_v43, %v1098_v41  ;;  %v1106_v46 = vrot.slane %v1105_v44, 1 }
 0x184   : > { %v1107_v48 = vadd.f32 %v1106_v46, %v1105_v44  ;;  %v1109_v49 = vmul.f32 0.5, %v1100_v45 }
 0x186   : > { %v1110_v50 = vmul.f32 0.5, %v1107_v48 }
 0x188   : > { %v1113_v51 = vcombine.low %v1109_v49, %v1110_v50 }
 0x18a   : > { %v1120_v53 = vrot.slane %v1113_v51, %v1975_v22 }
 0x18c   : > { %v1122_v54 = vsub.f32 %v1979_v31, %v1120_v53 }
 0x18e   : > { %v1123_v55 = vmul.f32 %v1122_v54, %v1122_v54 }
 0x190   : > { %v1131_v56 = vrot.slane %v1123_v55, %v1975_v22 }
 0x192   : > { %v1132_v57 = vcombine.high %v1131_v56, %v1131_v56  ;;  %v1135_v58 = vsel %vm1093_vm0, %v1131_v56, 0.0 }
 0x193   : > { %v1136_v59 = vrot.slane %v1135_v58, 4 }
 0x194   : > { %v1142_v60 = vsel %vm1093_vm0, %v1132_v57, 0.0 }
 0x195   : > { %v1137_v61 = vadd.f32 %v1136_v59, %v1135_v58  ;;  %v1143_v62 = vrot.slane %v1142_v60, 4 }
 0x197   : > { %v1138_v63 = vrot.slane %v1137_v61, 2  ;;  %v1144_v0 = vadd.f32 %v1143_v62, %v1142_v60 }
 0x199   : > { %v1139_v1 = vadd.f32 %v1138_v63, %v1137_v61  ;;  %v1145_v2 = vrot.slane %v1144_v0, 2 }
 0x19b   : > { %v1140_v3 = vrot.slane %v1139_v1, 1  ;;  %v1146_v4 = vadd.f32 %v1145_v2, %v1144_v0 }
 0x19d   : > { %v1141_v5 = vadd.f32 %v1140_v3, %v1139_v1  ;;  %v1147_v6 = vrot.slane %v1146_v4, 1 }
 0x19f   : > { %v1148_v7 = vadd.f32 %v1147_v6, %v1146_v4  ;;  %v1149_v8 = vmul.f32 0.5, %v1141_v5 }
 0x1a1   : > { %v1150_v9 = vmul.f32 0.5, %v1148_v7  ;;  %v1152_v10 = vadd.f32 1e-05, %v1149_v8 }
 0x1a3   : > { %v1153_v11 = vadd.f32 1e-05, %v1150_v9  ;;  %1588 = vrsqrt.f32 %v1152_v10 }
 0x1a5   : > { %1590 = vrsqrt.f32 %v1153_v11 }
 0x1ad   : > { %v1589_v12 = vpop.eup %1588 }
 0x1af   : > { %v1591_v13 = vpop.eup %1590 }
 0x1b0   : > { %v1158_v14 = vcombine.low %v1589_v12, %v1591_v13 }
 0x1b2   : > { %v1165_v15 = vrot.slane %v1158_v14, %v1947_v52 }
 0x1b4   : > { %v1172_v17 = vrot.slane %v1165_v15, %v1947_v52 }
 0x1b6   : > { %v1174_v20 = vmul.f32 %v1172_v17, %v1151_v16 }
 0x1b8   : > { %v1180_v21 = vrot.slane %v1174_v20, %v1179_v18  ;;  %v1184_v23 = vrot.slane %v1174_v20, %v1183_v19 }
 0x1ba   : > { %v1187_v24 = vmul.f32 %v1180_v21, %v1109_v49  ;;  %v1188_v25 = vmul.f32 %v1184_v23, %v1110_v50  ;;  %v1208_v28 = vcombine.low %v1180_v21, %v1184_v23 }
 0x1bc   : > { %v1191_v26 = vcombine.low %v1187_v24, %v1188_v25  ;;  %v1215_v47 = vrot.slane %v1208_v28, %v1975_v22 }
 0x1be   : > { %v1198_v27 = vrot.slane %v1191_v26, %v1947_v52  ;;  %v1217_v35 = vmul.f32 %v1215_v47, %v1979_v31 }
 0x1c0   : > { %v1205_v30 = vrot.slane %v1198_v27, %v1947_v52 }
 0x1c2   : > { %v1207_v32 = vsub.f32 %v1175_v29, %v1205_v30 }
 0x1c4   : > { %v1222_v33 = vrot.slane %v1207_v32, %v1179_v18  ;;  %v1226_v34 = vrot.slane %v1207_v32, %v1183_v19 }
 0x1c6   : > { %v1227_v36 = vcombine.low %v1222_v33, %v1226_v34 }
 0x1c8   : > { %v1234_v37 = vrot.slane %v1227_v36, %v1975_v22 }
 0x1ca   : > { %v1236_v38 = vadd.f32 %v1234_v37, %v1217_v35 }
 0x1cc   : > { %vm1237_vm1 = vcmp.ge.f32.partialorder %v1236_v38, 0.0  ;;  %v1238_v39 = vmul.f32 0.1, %v1236_v38 }
 0x1ce   : > { %v1239_v40 = vsel %vm1237_vm1, %v1236_v38, %v1238_v39 }
 0x1cf   : > { %1240 = vst [vmem:[%s1893_s11] sm:$0xf] %v1239_v40 }
 0x1d0 PF: > { %s14_s21 = sadd.s32 1, %s1646_s21   ;;  %s2036_s15 = smov %s1626_s16 }
 0x1d1   : > { %p11_p0 = scmp.ge.s32.totalorder %s14_s21, 12   ;;  %s2037_s16 = smov %s1727_s28 }
 0x1d2   : > { %s2038_s17 = smov %s1638_s19  ;;  %s2039_s18 = smov %s1642_s20 }
 0x1d3   : > { %s2040_s19 = smov %s2043_s22  ;;  %s2041_s20 = smov %s2047_s23 }
 0x1d4   :  { %13 = sbr.rel (!%p11_p0) target bundleno = 4 (0x4), region = 126 }

// kernel: net_forward.27
= control target key start
LH: loop header
LB: loop body
LE: loop exit
PB: predicated region body
PF: predicated region fallthrough
CT: control target
= control target key end

     0   :  { %v869_v38 = vmov 1966171168   ;;  %v100_v40 = vlaneseq  ;;  %vm547_vm0 = vcmask 1041408   ;;  %s1132_s1 = inlined_call_operand.vmem [shape: bf16[512,256], index: 1, kind: input, shape index: {}]   ;;  %s1133_s0 = inlined_call_operand.vmem [shape: bf16[2,512], index: 0, kind: input, shape index: {}]   ;;  %s1134_s2 = inlined_call_operand.vmem [shape: f32[1,256], index: 2, kind: input, shape index: {}]   ;;  %s1135_s3 = inlined_call_operand.vmem [shape: f32[1,256], index: 3, kind: input, shape index: {}]   ;;  %s1136_s4 = inlined_call_operand.vmem [shape: f32[2,256], index: 4, kind: output, shape index: {}]  }
   0x1   :  { %v769_v0 = vld [vmem:[%s1132_s1 + $0x4] ss:$8 sps:$4 sm:$0xff]   ;;  %v773_v2 = vld [vmem:[%s1132_s1] ss:$8 sps:$4 sm:$0xff]   ;;  %v775_v4 = vld [vmem:[%s1132_s1 + $0x14] ss:$8 sps:$4 sm:$0xff]   ;;  %v98_v39 = vunpack.c.l.s4 %v869_v38 }
   0x2   :  { %v771_v1 = vld [vmem:[%s1132_s1 + $0x104] ss:$8 sps:$4 sm:$0xff]   ;;  %437 = vmatprep.subr.bf16.mxu1 %v769_v0  ;;  %v774_v3 = vld [vmem:[%s1132_s1 + $0x100] ss:$8 sps:$4 sm:$0xff]   ;;  %v777_v5 = vld [vmem:[%s1132_s1 + $0x114] ss:$8 sps:$4 sm:$0xff]  }
   0x3   :  { %478 = vmatprep.subr.bf16.mxu0 %v771_v1  ;;  %438 = vmatpush1.bf16.msra.mxu1 %v773_v2  ;;  %v779_v6 = vld [vmem:[%s1132_s1 + $0x10] ss:$8 sps:$4 sm:$0xff]   ;;  %v781_v8 = vld [vmem:[%s1132_s1 + $0x24] ss:$8 sps:$4 sm:$0xff]   ;;  %v785_v10 = vld [vmem:[%s1132_s1 + $0x20] ss:$8 sps:$4 sm:$0xff]   ;;  %v99_v45 = vunpack.c.0.s8 %v98_v39 }
   0x4   :  { %479 = vmatpush1.bf16.msra.mxu0 %v774_v3  ;;  %439 = vmatprep.subr.bf16.mxu1 %v775_v4  ;;  %v780_v7 = vld [vmem:[%s1132_s1 + $0x110] ss:$8 sps:$4 sm:$0xff]   ;;  %v783_v9 = vld [vmem:[%s1132_s1 + $0x124] ss:$8 sps:$4 sm:$0xff]   ;;  %v786_v11 = vld [vmem:[%s1132_s1 + $0x120] ss:$8 sps:$4 sm:$0xff]  }
   0x5   :  { %480 = vmatprep.subr.bf16.mxu0 %v777_v5  ;;  %v787_v12 = vld [vmem:[%s1132_s1 + $0x34] ss:$8 sps:$4 sm:$0xff]   ;;  %v791_v14 = vld [vmem:[%s1132_s1 + $0x30] ss:$8 sps:$4 sm:$0xff]   ;;  %v793_v16 = vld [vmem:[%s1132_s1 + $0x44] ss:$8 sps:$4 sm:$0xff]  }
   0x6   :  { %v789_v13 = vld [vmem:[%s1132_s1 + $0x134] ss:$8 sps:$4 sm:$0xff]   ;;  %v792_v15 = vld [vmem:[%s1132_s1 + $0x130] ss:$8 sps:$4 sm:$0xff]   ;;  %v795_v17 = vld [vmem:[%s1132_s1 + $0x144] ss:$8 sps:$4 sm:$0xff]  }
   0x7   :  { %440 = vmatpush1.bf16.msra.mxu1 %v779_v6  ;;  %v797_v18 = vld [vmem:[%s1132_s1 + $0x40] ss:$8 sps:$4 sm:$0xff]   ;;  %v799_v20 = vld [vmem:[%s1132_s1 + $0x54] ss:$8 sps:$4 sm:$0xff]   ;;  %v803_v22 = vld [vmem:[%s1132_s1 + $0x50] ss:$8 sps:$4 sm:$0xff]  }
   0x8   :  { %481 = vmatpush1.bf16.msra.mxu0 %v780_v7  ;;  %441 = vmatprep.subr.bf16.mxu1 %v781_v8  ;;  %v798_v19 = vld [vmem:[%s1132_s1 + $0x140] ss:$8 sps:$4 sm:$0xff]   ;;  %v801_v21 = vld [vmem:[%s1132_s1 + $0x154] ss:$8 sps:$4 sm:$0xff]   ;;  %v804_v23 = vld [vmem:[%s1132_s1 + $0x150] ss:$8 sps:$4 sm:$0xff]  }
   0x9   :  { %482 = vmatprep.subr.bf16.mxu0 %v783_v9  ;;  %v805_v24 = vld [vmem:[%s1132_s1 + $0x64] ss:$8 sps:$4 sm:$0xff]   ;;  %v809_v26 = vld [vmem:[%s1132_s1 + $0x60] ss:$8 sps:$4 sm:$0xff]   ;;  %v811_v28 = vld [vmem:[%s1132_s1 + $0x74] ss:$8 sps:$4 sm:$0xff]  }
   0xa   :  { %v807_v25 = vld [vmem:[%s1132_s1 + $0x164] ss:$8 sps:$4 sm:$0xff]   ;;  %v810_v27 = vld [vmem:[%s1132_s1 + $0x160] ss:$8 sps:$4 sm:$0xff]   ;;  %v813_v29 = vld [vmem:[%s1132_s1 + $0x174] ss:$8 sps:$4 sm:$0xff]  }
   0xb   :  { %442 = vmatpush1.bf16.msra.mxu1 %v785_v10  ;;  %v815_v30 = vld [vmem:[%s1132_s1 + $0x70] ss:$8 sps:$4 sm:$0xff]   ;;  %v817_v32 = vld [vmem:[%s1132_s1 + $0x84] ss:$8 sps:$4 sm:$0xff]   ;;  %v821_v34 = vld [vmem:[%s1132_s1 + $0x80] ss:$8 sps:$4 sm:$0xff]  }
   0xc   :  { %483 = vmatpush1.bf16.msra.mxu0 %v786_v11  ;;  %443 = vmatprep.subr.bf16.mxu1 %v787_v12  ;;  %v816_v31 = vld [vmem:[%s1132_s1 + $0x170] ss:$8 sps:$4 sm:$0xff]   ;;  %v819_v33 = vld [vmem:[%s1132_s1 + $0x184] ss:$8 sps:$4 sm:$0xff]   ;;  %v822_v35 = vld [vmem:[%s1132_s1 + $0x180] ss:$8 sps:$4 sm:$0xff]  }
   0xd   :  { %484 = vmatprep.subr.bf16.mxu0 %v789_v13  ;;  %v823_v36 = vld [vmem:[%s1132_s1 + $0x94] ss:$8 sps:$4 sm:$0xff]   ;;  %v827_v41 = vld [vmem:[%s1132_s1 + $0x90] ss:$8 sps:$4 sm:$0xff]   ;;  %v829_v43 = vld [vmem:[%s1132_s1 + $0xa4] ss:$8 sps:$4 sm:$0xff]  }
   0xe   :  { %v825_v37 = vld [vmem:[%s1132_s1 + $0x194] ss:$8 sps:$4 sm:$0xff]   ;;  %v828_v42 = vld [vmem:[%s1132_s1 + $0x190] ss:$8 sps:$4 sm:$0xff]   ;;  %v831_v44 = vld [vmem:[%s1132_s1 + $0x1a4] ss:$8 sps:$4 sm:$0xff]  }
   0xf   :  { %444 = vmatpush1.bf16.msra.mxu1 %v791_v14  ;;  %v1023_v46 = vshrl.u32 %v100_v40, 7  ;;  %v833_v47 = vld [vmem:[%s1132_s1 + $0xa0] ss:$8 sps:$4 sm:$0xff]   ;;  %v835_v49 = vld [vmem:[%s1132_s1 + $0xb4] ss:$8 sps:$4 sm:$0xff]   ;;  %v870_v12 = vmov 0.0  }
  0x10   :  { %485 = vmatpush1.bf16.msra.mxu0 %v792_v15  ;;  %445 = vmatprep.subr.bf16.mxu1 %v793_v16  ;;  %v834_v48 = vld [vmem:[%s1132_s1 + $0x1a0] ss:$8 sps:$4 sm:$0xff]   ;;  %v837_v50 = vld [vmem:[%s1132_s1 + $0x1b4] ss:$8 sps:$4 sm:$0xff]   ;;  %v839_v53 = vld [vmem:[%s1132_s1 + $0xb0] ss:$8 sps:$4 sm:$0xff]  }
  0x11   :  { %486 = vmatprep.subr.bf16.mxu0 %v795_v17  ;;  %v1038_v51 = vsub.s32 %v99_v45, %v1023_v46  ;;  %v699_v52 = vld.sshfl [vmem:[%s1133_s0] sm:$0x33 pattern:$0x75316420]  ;;  %v840_v54 = vld [vmem:[%s1132_s1 + $0x1b0] ss:$8 sps:$4 sm:$0xff]  }
  0x12   :  { %v96_v55 = vcombine.high %v699_v52, %v699_v52  ;;  %v841_v56 = vld [vmem:[%s1132_s1 + $0xc4] ss:$8 sps:$4 sm:$0xff]   ;;  %v845_v59 = vld [vmem:[%s1132_s1 + $0xc0] ss:$8 sps:$4 sm:$0xff]   ;;  %v847_v62 = vld [vmem:[%s1132_s1 + $0xd4] ss:$8 sps:$4 sm:$0xff]  }
  0x13   :  { %446 = vmatpush1.bf16.msra.mxu1 %v797_v18  ;;  %v843_v57 = vld [vmem:[%s1132_s1 + $0x1c4] ss:$8 sps:$4 sm:$0xff]   ;;  %v846_v60 = vld [vmem:[%s1132_s1 + $0x1c0] ss:$8 sps:$4 sm:$0xff]   ;;  %v849_v63 = vld [vmem:[%s1132_s1 + $0x1d4] ss:$8 sps:$4 sm:$0xff]   ;;  %v103_v8 = vrot.slane %v699_v52, %v1038_v51 }
  0x14   :  { %487 = vmatpush1.bf16.msra.mxu0 %v798_v19  ;;  %447 = vmatprep.subr.bf16.mxu1 %v799_v20  ;;  %v110_v58 = vrot.slane %v96_v55, %v1038_v51  ;;  %v851_v0 = vld [vmem:[%s1132_s1 + $0xd0] ss:$8 sps:$4 sm:$0xff]   ;;  %v853_v2 = vld [vmem:[%s1132_s1 + $0xe4] ss:$8 sps:$4 sm:$0xff]   ;;  %v857_v4 = vld [vmem:[%s1132_s1 + $0xe0] ss:$8 sps:$4 sm:$0xff]  }
  0x15   :  { %488 = vmatprep.subr.bf16.mxu0 %v801_v21  ;;  %v852_v1 = vld [vmem:[%s1132_s1 + $0x1d0] ss:$8 sps:$4 sm:$0xff]   ;;  %v855_v3 = vld [vmem:[%s1132_s1 + $0x1e4] ss:$8 sps:$4 sm:$0xff]   ;;  %v858_v5 = vld [vmem:[%s1132_s1 + $0x1e0] ss:$8 sps:$4 sm:$0xff]   ;;  %v111_v11 = vcombine.high %v103_v8, %v103_v8 }
  0x16   :  { %v112_v61 = vcombine.high %v110_v58, %v110_v58  ;;  %469 = vmatprep.mubr.bf16.mxu1 %v110_v58  ;;  %v859_v6 = vld [vmem:[%s1132_s1 + $0xf4] ss:$8 sps:$4 sm:$0xff]   ;;  %v863_v9 = vld [vmem:[%s1132_s1 + $0xf0] ss:$8 sps:$4 sm:$0xff]   ;;  %21 = vst [vmem:[#allocation2] sm:$0xf] %v870_v12 }
  0x17   :  { %448 = vmatpush1.bf16.msra.mxu1 %v803_v22  ;;  %v861_v7 = vld [vmem:[%s1132_s1 + $0x1f4] ss:$8 sps:$4 sm:$0xff]   ;;  %v864_v10 = vld [vmem:[%s1132_s1 + $0x1f0] ss:$8 sps:$4 sm:$0xff]   ;;  %v871_v13 = vmov 1983009808  }
  0x18   :  { %489 = vmatpush1.bf16.msra.mxu0 %v804_v23  ;;  %449 = vmatprep.subr.bf16.mxu1 %v805_v24  ;;  %v523_v14 = vunpack.c.l.s4 %v871_v13 }
  0x19   :  { %490 = vmatprep.subr.bf16.mxu0 %v807_v25  ;;  %510 = vmatprep.mubr.bf16.mxu0 %v112_v61 }
  0x1a   :  { %v524_v15 = vunpack.c.0.s8 %v523_v14 }
  0x1b   :  { %450 = vmatpush1.bf16.msra.mxu1 %v809_v26 }
  0x1c   :  { %491 = vmatpush1.bf16.msra.mxu0 %v810_v27  ;;  %451 = vmatprep.subr.bf16.mxu1 %v811_v28  ;;  %v1100_v22 = vsub.s32 %v524_v15, %v1023_v46 }
  0x1d   :  { %492 = vmatprep.subr.bf16.mxu0 %v813_v29  ;;  %v22_v28 = vld [vmem:[#allocation2] sm:$0xf] }
  0x1f   :  { %452 = vmatpush1.bf16.msra.mxu1 %v815_v30 }
  0x20   :  { %493 = vmatpush1.bf16.msra.mxu0 %v816_v31  ;;  %453 = vmatprep.subr.bf16.mxu1 %v817_v32 }
  0x21   :  { %494 = vmatprep.subr.bf16.mxu0 %v819_v33 }
  0x23   :  { %454 = vmatpush1.bf16.msra.mxu1 %v821_v34 }
  0x24   :  { %495 = vmatpush1.bf16.msra.mxu0 %v822_v35  ;;  %455 = vmatprep.subr.bf16.mxu1 %v823_v36 }
  0x25   :  { %496 = vmatprep.subr.bf16.mxu0 %v825_v37 }
  0x27   :  { %456 = vmatpush1.bf16.msra.mxu1 %v827_v41 }
  0x28   :  { %497 = vmatpush1.bf16.msra.mxu0 %v828_v42  ;;  %457 = vmatprep.subr.bf16.mxu1 %v829_v43 }
  0x29   :  { %498 = vmatprep.subr.bf16.mxu0 %v831_v44 }
  0x2b   :  { %458 = vmatpush1.bf16.msra.mxu1 %v833_v47 }
  0x2c   :  { %499 = vmatpush1.bf16.msra.mxu0 %v834_v48  ;;  %459 = vmatprep.subr.bf16.mxu1 %v835_v49 }
  0x2d   :  { %500 = vmatprep.subr.bf16.mxu0 %v837_v50 }
  0x2f   :  { %460 = vmatpush1.bf16.msra.mxu1 %v839_v53 }
  0x30   :  { %501 = vmatpush1.bf16.msra.mxu0 %v840_v54  ;;  %461 = vmatprep.subr.bf16.mxu1 %v841_v56 }
  0x31   :  { %502 = vmatprep.subr.bf16.mxu0 %v843_v57 }
  0x33   :  { %462 = vmatpush1.bf16.msra.mxu1 %v845_v59 }
  0x34   :  { %503 = vmatpush1.bf16.msra.mxu0 %v846_v60  ;;  %463 = vmatprep.subr.bf16.mxu1 %v847_v62 }
  0x35   :  { %504 = vmatprep.subr.bf16.mxu0 %v849_v63 }
  0x37   :  { %464 = vmatpush1.bf16.msra.mxu1 %v851_v0 }
  0x38   :  { %505 = vmatpush1.bf16.msra.mxu0 %v852_v1  ;;  %465 = vmatprep.subr.bf16.mxu1 %v853_v2 }
  0x39   :  { %506 = vmatprep.subr.bf16.mxu0 %v855_v3 }
  0x3b   :  { %466 = vmatpush1.bf16.msra.mxu1 %v857_v4 }
  0x3c   :  { %507 = vmatpush1.bf16.msra.mxu0 %v858_v5  ;;  %467 = vmatprep.subr.bf16.mxu1 %v859_v6 }
  0x3d   :  { %508 = vmatprep.subr.bf16.mxu0 %v861_v7 }
  0x3f   :  { %468 = vmatpush1.bf16.msra.mxu1 %v863_v9 }
  0x40   :  { %509 = vmatpush1.bf16.msra.mxu0 %v864_v10 }
  0x42   :  { %470 = vmatmul.mubr.bf16.vlgmr.msra.gmra.mrb[0].mxu1 %v103_v8 }
  0x43   :  { %511 = vmatmul.mubr.bf16.vlgmr.msra.gmra.mrb[0].mxu0 %v111_v11 }
 0x115   :  { %v471_v16 = vpop.f32.mrb[0].mxu1 }
 0x116   :  { %v512_v17 = vpop.f32.mrb[0].mxu0  ;;  %v473_v19 = vpop.f32.mrb[1].mxu1 }
 0x117   :  { %v513_v18 = vadd.f32 %v512_v17, %v471_v16  ;;  %v514_v20 = vpop.f32.mrb[1].mxu0  ;;  %v475_v23 = vpop.f32.mrb[2].mxu1  ;;  %v605_v16 = vld [vmem:[%s1134_s2] sm:$0x3]  ;;  %v633_v17 = vsub.s32 0, %v1023_v46 }
 0x118   :  { %v515_v21 = vadd.f32 %v514_v20, %v473_v19  ;;  %v516_v24 = vpop.f32.mrb[2].mxu0  ;;  %v476_v25 = vpop.f32.mrb[3].mxu1 }
 0x119   :  { %v517_v26 = vpop.f32.mrb[3].mxu0 }
 0x11a   :  { %v521_v27 = vcombine.low %v513_v18, %v515_v21  ;;  %v637_v18 = vsub.s32 1, %v1023_v46 }
 0x11c   :  { %v528_v29 = vrot.slane %v521_v27, %v1100_v22 }
 0x11e   :  { %v530_v30 = vadd.f32 %v528_v29, %v22_v28  ;;  %v629_v28 = vld [vmem:[%s1135_s3] sm:$0x3] }
 0x120   :  { %531 = vst [vmem:[#allocation2] sm:$0xf] %v530_v30 }
 0x127   :  { %v1103_v31 = vld [vmem:[#allocation2] sm:$0xf] }
 0x128   :  { %v543_v32 = vrot.slane %v1103_v31, %v1100_v22 }
 0x12a   :  { %v544_v33 = vcombine.high %v543_v32, %v543_v32  ;;  %v548_v34 = vsel %vm547_vm0, %v543_v32, 0.0 }
 0x12b   :  { %v549_v35 = vrot.slane %v548_v34, 4 }
 0x12c   :  { %v555_v36 = vsel %vm547_vm0, %v544_v33, 0.0 }
 0x12d   :  { %v550_v37 = vadd.f32 %v549_v35, %v548_v34  ;;  %v556_v38 = vrot.slane %v555_v36, 4 }
 0x12f   :  { %v551_v39 = vrot.slane %v550_v37, 2  ;;  %v557_v40 = vadd.f32 %v556_v38, %v555_v36 }
 0x131   :  { %v552_v41 = vadd.f32 %v551_v39, %v550_v37  ;;  %v558_v42 = vrot.slane %v557_v40, 2 }
 0x133   :  { %v553_v43 = vrot.slane %v552_v41, 1  ;;  %v559_v44 = vadd.f32 %v558_v42, %v557_v40 }
 0x135   :  { %v554_v45 = vadd.f32 %v553_v43, %v552_v41  ;;  %v560_v47 = vrot.slane %v559_v44, 1 }
 0x137   :  { %v561_v48 = vadd.f32 %v560_v47, %v559_v44  ;;  %v563_v49 = vmul.f32 0.5, %v554_v45 }
 0x139   :  { %v564_v50 = vmul.f32 0.5, %v561_v48 }
 0x13b   :  { %v567_v52 = vcombine.low %v563_v49, %v564_v50 }
 0x13d   :  { %v574_v53 = vrot.slane %v567_v52, %v1100_v22 }
 0x13f   :  { %v576_v54 = vsub.f32 %v1103_v31, %v574_v53 }
 0x141   :  { %v577_v55 = vmul.f32 %v576_v54, %v576_v54 }
 0x143   :  { %v585_v56 = vrot.slane %v577_v55, %v1100_v22 }
 0x145   :  { %v586_v57 = vcombine.high %v585_v56, %v585_v56  ;;  %v589_v58 = vsel %vm547_vm0, %v585_v56, 0.0 }
 0x146   :  { %v590_v59 = vrot.slane %v589_v58, 4 }
 0x147   :  { %v596_v60 = vsel %vm547_vm0, %v586_v57, 0.0 }
 0x148   :  { %v591_v61 = vadd.f32 %v590_v59, %v589_v58  ;;  %v597_v62 = vrot.slane %v596_v60, 4 }
 0x14a   :  { %v592_v63 = vrot.slane %v591_v61, 2  ;;  %v598_v0 = vadd.f32 %v597_v62, %v596_v60 }
 0x14c   :  { %v593_v1 = vadd.f32 %v592_v63, %v591_v61  ;;  %v599_v2 = vrot.slane %v598_v0, 2 }
 0x14e   :  { %v594_v3 = vrot.slane %v593_v1, 1  ;;  %v600_v4 = vadd.f32 %v599_v2, %v598_v0 }
 0x150   :  { %v595_v5 = vadd.f32 %v594_v3, %v593_v1  ;;  %v601_v6 = vrot.slane %v600_v4, 1 }
 0x152   :  { %v602_v7 = vadd.f32 %v601_v6, %v600_v4  ;;  %v603_v8 = vmul.f32 0.5, %v595_v5 }
 0x154   :  { %v604_v9 = vmul.f32 0.5, %v602_v7  ;;  %v606_v10 = vadd.f32 1e-05, %v603_v8 }
 0x156   :  { %v607_v11 = vadd.f32 1e-05, %v604_v9  ;;  %865 = vrsqrt.f32 %v606_v10 }
 0x158   :  { %867 = vrsqrt.f32 %v607_v11 }
 0x160   :  { %v866_v12 = vpop.eup %865 }
 0x162   :  { %v868_v13 = vpop.eup %867 }
 0x163   :  { %v612_v14 = vcombine.low %v866_v12, %v868_v13 }
 0x165   :  { %v619_v15 = vrot.slane %v612_v14, %v1038_v51 }
 0x167   :  { %v626_v19 = vrot.slane %v619_v15, %v1038_v51 }
 0x169   :  { %v628_v20 = vmul.f32 %v626_v19, %v605_v16 }
 0x16b   :  { %v634_v21 = vrot.slane %v628_v20, %v633_v17  ;;  %v638_v23 = vrot.slane %v628_v20, %v637_v18 }
 0x16d   :  { %v641_v24 = vmul.f32 %v634_v21, %v563_v49  ;;  %v642_v25 = vmul.f32 %v638_v23, %v564_v50  ;;  %v662_v30 = vcombine.low %v634_v21, %v638_v23 }
 0x16f   :  { %v645_v26 = vcombine.low %v641_v24, %v642_v25  ;;  %v669_v46 = vrot.slane %v662_v30, %v1100_v22 }
 0x171   :  { %v652_v27 = vrot.slane %v645_v26, %v1038_v51  ;;  %v671_v36 = vmul.f32 %v669_v46, %v1103_v31 }
 0x173   :  { %v659_v29 = vrot.slane %v652_v27, %v1038_v51 }
 0x175   :  { %v661_v32 = vsub.f32 %v629_v28, %v659_v29 }
 0x177   :  { %v676_v33 = vrot.slane %v661_v32, %v633_v17  ;;  %v680_v34 = vrot.slane %v661_v32, %v637_v18 }
 0x179   :  { %v681_v35 = vcombine.low %v676_v33, %v680_v34 }
 0x17b   :  { %v688_v37 = vrot.slane %v681_v35, %v1100_v22 }
 0x17d   :  { %v690_v38 = vadd.f32 %v688_v37, %v671_v36 }
 0x17f   :  { %vm691_vm1 = vcmp.ge.f32.partialorder %v690_v38, 0.0  ;;  %v692_v39 = vmul.f32 0.1, %v690_v38 }
 0x181   :  { %v693_v40 = vsel %vm691_vm1, %v690_v38, %v692_v39 }
 0x182   :  { %694 = vst [vmem:[%s1136_s4] sm:$0xf] %v693_v40 }

// kernel: net_forward.28
= control target key start
LH: loop header
LB: loop body
LE: loop exit
PB: predicated region body
PF: predicated region fallthrough
CT: control target
= control target key end

     0   :  { %s1746_s18 = smov 0   ;;  %s1748_s19 = smov 0   ;;  %s2107_s0 = inlined_call_operand.vmem [shape: bf16[2,2560], index: 0, kind: input, shape index: {}]   ;;  %s2108_s1 = inlined_call_operand.vmem [shape: bf16[2560,512], index: 1, kind: input, shape index: {}]   ;;  %s2109_s2 = inlined_call_operand.vmem [shape: f32[1,512], index: 2, kind: input, shape index: {}]   ;;  %s2110_s3 = inlined_call_operand.vmem [shape: f32[1,512], index: 3, kind: input, shape index: {}]   ;;  %s2111_s4 = inlined_call_operand.vmem [shape: f32[2,512], index: 4, kind: input, shape index: {}, may-alias: {4,5}]   ;;  %s2112_s5 = inlined_call_operand.vmem [shape: f32[2,512], index: 5, kind: output, shape index: {}, may-alias: {4,5}]  }
   0x1   :  { %s1750_s20 = smov 0   ;;  %s1752_s21 = smov 0  }
   0x2   :  { %s1754_s22 = smov 0   ;;  %s1756_s23 = smov 0  }
   0x3   :  { %s1758_s24 = smov 0  }
   0x4 LB: > { %s24_s25 = sadd.s32 1, %s1703_s22  ;;  %s27_s26 = sadd.s32 1, %s1707_s23  ;;  %s1711_s24 = sphi %s1758_s24, %s15_s24   ;;  %s1707_s23 = sphi %s1756_s23, %s2119_s23   ;;  %s1703_s22 = sphi %s1754_s22, %s2118_s22   ;;  %s1699_s21 = sphi %s1752_s21, %s2117_s21   ;;  %s1695_s20 = sphi %s1750_s20, %s2116_s20   ;;  %s1691_s19 = sphi %s1748_s19, %s2115_s19   ;;  %s1687_s18 = sphi %s1746_s18, %s2114_s18  }
   0x5   : > { %p25_p0 = scmp.ge.s32.totalorder %s24_s25, 5  ;;  %p69_p1 = scmp.ne.s32.totalorder %s1691_s19, %s1687_s18 }
   0x6   : > { %p70_p2 = scmp.eq.s32.totalorder %s1711_s24, 0  ;;  %s62_s30 = sadd.s32 1, %s1691_s19 }
   0x7   : > { %s2121_s25 = smov (%p25_p0, %s24_s25), 0  ;;  %s2123_s26 = smov (!%p25_p0, %s27_s26), %s1707_s23 }
   0x8   : > { %p71_p3 = por %p70_p2, %p69_p1  ;;  %p29_p4 = scmp.ge.s32.totalorder %s2123_s26, 2 }
   0x9   : > { %s57_s27 = ssub.s32 %s1703_s22, %s2121_s25  ;;  %p1411_p6 = scmp.ge.s32.totalorder %s1711_s24, 10 }
   0xa   : > { %s2125_s26 = smov (%p29_p4, %s2123_s26), 0 }
   0xb   : > { %s58_s28 = ssub.s32 %s1707_s23, %s2125_s26  ;;  %199 = sbr.rel (%p1411_p6) target bundleno = 57 (0x39), region = 16 }
   0xc   : > { %s59_s29 = sor.u32 %s58_s28, %s57_s27 }
   0xd   : > { %p60_p5 = scmp.eq.s32.totalorder %s59_s29, 0 }
   0xf   : > { %s1797_s6 = scalar_select %p60_p5, %s1691_s19, %s62_s30  }
  0x12   : > { %210 = sbr.rel (!%p71_p3) target bundleno = 57 (0x39), region = 24  ;;  %s212_s7 = sand.u32 (%p71_p3), 1, %s1691_s19  }
  0x13   : > { %s1414_s8 = sshll.u32 (%p71_p3), %s1707_s23, 1  ;;  %s1412_s9 = sshll.u32 (%p71_p3), %s212_s7, 9 }
  0x14   : > { %s1495_s10 = sshll.u32 (%p71_p3), %s1703_s22, 8  ;;  %s1811_s16 = scalar_lea.vmem (%p71_p3), [#allocation3], %s1412_s9 }
  0x15   : > { %s218_s11 = sadd.s32 (%p71_p3), %s1495_s10, %s1414_s8 }
  0x16   : > { %s1416_s12 = sshll.u32 (%p71_p3), %s218_s11, 2 }
  0x17   : > { %s1806_s15 = scalar_lea.vmem (%p71_p3), %s2108_s1, %s1416_s12 }
  0x18   : > { %v374_v0 = vld [vmem:[%s1806_s15] sm:$0xff] (%p71_p3)  ;;  %v376_v1 = vld [vmem:[%s1806_s15 + $0x10] sm:$0xff] (%p71_p3) }
  0x19   : > { %v378_v2 = vld [vmem:[%s1806_s15 + $0x20] sm:$0xff]  ;;  %375 = vst [vmem:[%s1811_s16] sm:$0xff] %v374_v0  ;;  %377 = vst [vmem:[%s1811_s16 + $0x8] sm:$0xff] %v376_v1  ;;  %v380_v3 = vld [vmem:[%s1806_s15 + $0x30] sm:$0xff] }
  0x1a   : > { %379 = vst [vmem:[%s1811_s16 + $0x10] sm:$0xff] %v378_v2  ;;  %v382_v4 = vld [vmem:[%s1806_s15 + $0x40] sm:$0xff]  ;;  %v384_v5 = vld [vmem:[%s1806_s15 + $0x50] sm:$0xff]  ;;  %381 = vst [vmem:[%s1811_s16 + $0x18] sm:$0xff] %v380_v3 }
  0x1b   : > { %383 = vst [vmem:[%s1811_s16 + $0x20] sm:$0xff] %v382_v4  ;;  %385 = vst [vmem:[%s1811_s16 + $0x28] sm:$0xff] %v384_v5  ;;  %v386_v6 = vld [vmem:[%s1806_s15 + $0x60] sm:$0xff]  ;;  %v388_v7 = vld [vmem:[%s1806_s15 + $0x70] sm:$0xff] }
  0x1c   : > { %v390_v8 = vld [vmem:[%s1806_s15 + $0x80] sm:$0xff]  ;;  %387 = vst [vmem:[%s1811_s16 + $0x30] sm:$0xff] %v386_v6  ;;  %389 = vst [vmem:[%s1811_s16 + $0x38] sm:$0xff] %v388_v7  ;;  %v392_v9 = vld [vmem:[%s1806_s15 + $0x90] sm:$0xff] }
  0x1d   : > { %391 = vst [vmem:[%s1811_s16 + $0x40] sm:$0xff] %v390_v8  ;;  %v394_v10 = vld [vmem:[%s1806_s15 + $0xa0] sm:$0xff]  ;;  %v396_v11 = vld [vmem:[%s1806_s15 + $0xb0] sm:$0xff]  ;;  %393 = vst [vmem:[%s1811_s16 + $0x48] sm:$0xff] %v392_v9 }
  0x1e   : > { %395 = vst [vmem:[%s1811_s16 + $0x50] sm:$0xff] %v394_v10  ;;  %397 = vst [vmem:[%s1811_s16 + $0x58] sm:$0xff] %v396_v11  ;;  %v398_v12 = vld [vmem:[%s1806_s15 + $0xc0] sm:$0xff]  ;;  %v400_v13 = vld [vmem:[%s1806_s15 + $0xd0] sm:$0xff] }
  0x1f   : > { %v402_v14 = vld [vmem:[%s1806_s15 + $0xe0] sm:$0xff]  ;;  %399 = vst [vmem:[%s1811_s16 + $0x60] sm:$0xff] %v398_v12  ;;  %401 = vst [vmem:[%s1811_s16 + $0x68] sm:$0xff] %v400_v13  ;;  %v404_v15 = vld [vmem:[%s1806_s15 + $0xf0] sm:$0xff] }
  0x20   : > { %403 = vst [vmem:[%s1811_s16 + $0x70] sm:$0xff] %v402_v14  ;;  %v406_v16 = vld [vmem:[%s1806_s15 + $0x100] sm:$0xff]  ;;  %v408_v17 = vld [vmem:[%s1806_s15 + $0x110] sm:$0xff]  ;;  %405 = vst [vmem:[%s1811_s16 + $0x78] sm:$0xff] %v404_v15 }
  0x21   : > { %407 = vst [vmem:[%s1811_s16 + $0x80] sm:$0xff] %v406_v16  ;;  %409 = vst [vmem:[%s1811_s16 + $0x88] sm:$0xff] %v408_v17  ;;  %v410_v18 = vld [vmem:[%s1806_s15 + $0x120] sm:$0xff]  ;;  %v412_v19 = vld [vmem:[%s1806_s15 + $0x130] sm:$0xff] }
  0x22   : > { %v414_v20 = vld [vmem:[%s1806_s15 + $0x140] sm:$0xff]  ;;  %411 = vst [vmem:[%s1811_s16 + $0x90] sm:$0xff] %v410_v18  ;;  %413 = vst [vmem:[%s1811_s16 + $0x98] sm:$0xff] %v412_v19  ;;  %v416_v21 = vld [vmem:[%s1806_s15 + $0x150] sm:$0xff] }
  0x23   : > { %415 = vst [vmem:[%s1811_s16 + $0xa0] sm:$0xff] %v414_v20  ;;  %v418_v22 = vld [vmem:[%s1806_s15 + $0x160] sm:$0xff]  ;;  %v420_v23 = vld [vmem:[%s1806_s15 + $0x170] sm:$0xff]  ;;  %417 = vst [vmem:[%s1811_s16 + $0xa8] sm:$0xff] %v416_v21 }
  0x24   : > { %419 = vst [vmem:[%s1811_s16 + $0xb0] sm:$0xff] %v418_v22  ;;  %421 = vst [vmem:[%s1811_s16 + $0xb8] sm:$0xff] %v420_v23  ;;  %v422_v24 = vld [vmem:[%s1806_s15 + $0x180] sm:$0xff]  ;;  %v424_v25 = vld [vmem:[%s1806_s15 + $0x190] sm:$0xff] }
  0x25   : > { %v426_v26 = vld [vmem:[%s1806_s15 + $0x1a0] sm:$0xff]  ;;  %423 = vst [vmem:[%s1811_s16 + $0xc0] sm:$0xff] %v422_v24  ;;  %425 = vst [vmem:[%s1811_s16 + $0xc8] sm:$0xff] %v424_v25  ;;  %v428_v27 = vld [vmem:[%s1806_s15 + $0x1b0] sm:$0xff] }
  0x26   : > { %427 = vst [vmem:[%s1811_s16 + $0xd0] sm:$0xff] %v426_v26  ;;  %v430_v28 = vld [vmem:[%s1806_s15 + $0x1c0] sm:$0xff]  ;;  %v432_v29 = vld [vmem:[%s1806_s15 + $0x1d0] sm:$0xff]  ;;  %429 = vst [vmem:[%s1811_s16 + $0xd8] sm:$0xff] %v428_v27 }
  0x27   : > { %431 = vst [vmem:[%s1811_s16 + $0xe0] sm:$0xff] %v430_v28  ;;  %433 = vst [vmem:[%s1811_s16 + $0xe8] sm:$0xff] %v432_v29  ;;  %v434_v30 = vld [vmem:[%s1806_s15 + $0x1e0] sm:$0xff]  ;;  %v436_v31 = vld [vmem:[%s1806_s15 + $0x1f0] sm:$0xff] }
  0x28   : > { %v438_v32 = vld [vmem:[%s1806_s15 + $0x200] sm:$0xff]  ;;  %435 = vst [vmem:[%s1811_s16 + $0xf0] sm:$0xff] %v434_v30  ;;  %437 = vst [vmem:[%s1811_s16 + $0xf8] sm:$0xff] %v436_v31  ;;  %v440_v33 = vld [vmem:[%s1806_s15 + $0x210] sm:$0xff] }
  0x29   : > { %439 = vst [vmem:[%s1811_s16 + $0x100] sm:$0xff] %v438_v32  ;;  %v442_v34 = vld [vmem:[%s1806_s15 + $0x220] sm:$0xff]  ;;  %v444_v35 = vld [vmem:[%s1806_s15 + $0x230] sm:$0xff]  ;;  %441 = vst [vmem:[%s1811_s16 + $0x108] sm:$0xff] %v440_v33 }
  0x2a   : > { %443 = vst [vmem:[%s1811_s16 + $0x110] sm:$0xff] %v442_v34  ;;  %445 = vst [vmem:[%s1811_s16 + $0x118] sm:$0xff] %v444_v35  ;;  %v446_v36 = vld [vmem:[%s1806_s15 + $0x240] sm:$0xff]  ;;  %v448_v37 = vld [vmem:[%s1806_s15 + $0x250] sm:$0xff] }
  0x2b   : > { %v450_v38 = vld [vmem:[%s1806_s15 + $0x260] sm:$0xff]  ;;  %447 = vst [vmem:[%s1811_s16 + $0x120] sm:$0xff] %v446_v36  ;;  %449 = vst [vmem:[%s1811_s16 + $0x128] sm:$0xff] %v448_v37  ;;  %v452_v39 = vld [vmem:[%s1806_s15 + $0x270] sm:$0xff] }
  0x2c   : > { %451 = vst [vmem:[%s1811_s16 + $0x130] sm:$0xff] %v450_v38  ;;  %v454_v40 = vld [vmem:[%s1806_s15 + $0x280] sm:$0xff]  ;;  %v456_v41 = vld [vmem:[%s1806_s15 + $0x290] sm:$0xff]  ;;  %453 = vst [vmem:[%s1811_s16 + $0x138] sm:$0xff] %v452_v39 }
  0x2d   : > { %455 = vst [vmem:[%s1811_s16 + $0x140] sm:$0xff] %v454_v40  ;;  %457 = vst [vmem:[%s1811_s16 + $0x148] sm:$0xff] %v456_v41  ;;  %v458_v42 = vld [vmem:[%s1806_s15 + $0x2a0] sm:$0xff]  ;;  %v460_v43 = vld [vmem:[%s1806_s15 + $0x2b0] sm:$0xff] }
  0x2e   : > { %v462_v44 = vld [vmem:[%s1806_s15 + $0x2c0] sm:$0xff]  ;;  %459 = vst [vmem:[%s1811_s16 + $0x150] sm:$0xff] %v458_v42  ;;  %461 = vst [vmem:[%s1811_s16 + $0x158] sm:$0xff] %v460_v43  ;;  %v464_v45 = vld [vmem:[%s1806_s15 + $0x2d0] sm:$0xff] }
  0x2f   : > { %463 = vst [vmem:[%s1811_s16 + $0x160] sm:$0xff] %v462_v44  ;;  %v466_v46 = vld [vmem:[%s1806_s15 + $0x2e0] sm:$0xff]  ;;  %v468_v47 = vld [vmem:[%s1806_s15 + $0x2f0] sm:$0xff]  ;;  %465 = vst [vmem:[%s1811_s16 + $0x168] sm:$0xff] %v464_v45 }
  0x30   : > { %467 = vst [vmem:[%s1811_s16 + $0x170] sm:$0xff] %v466_v46  ;;  %469 = vst [vmem:[%s1811_s16 + $0x178] sm:$0xff] %v468_v47  ;;  %v470_v48 = vld [vmem:[%s1806_s15 + $0x300] sm:$0xff]  ;;  %v472_v49 = vld [vmem:[%s1806_s15 + $0x310] sm:$0xff] }
  0x31   : > { %v474_v50 = vld [vmem:[%s1806_s15 + $0x320] sm:$0xff]  ;;  %471 = vst [vmem:[%s1811_s16 + $0x180] sm:$0xff] %v470_v48  ;;  %473 = vst [vmem:[%s1811_s16 + $0x188] sm:$0xff] %v472_v49  ;;  %v476_v51 = vld [vmem:[%s1806_s15 + $0x330] sm:$0xff] }
  0x32   : > { %475 = vst [vmem:[%s1811_s16 + $0x190] sm:$0xff] %v474_v50  ;;  %v478_v52 = vld [vmem:[%s1806_s15 + $0x340] sm:$0xff]  ;;  %v480_v53 = vld [vmem:[%s1806_s15 + $0x350] sm:$0xff]  ;;  %477 = vst [vmem:[%s1811_s16 + $0x198] sm:$0xff] %v476_v51 }
  0x33   : > { %479 = vst [vmem:[%s1811_s16 + $0x1a0] sm:$0xff] %v478_v52  ;;  %481 = vst [vmem:[%s1811_s16 + $0x1a8] sm:$0xff] %v480_v53  ;;  %v482_v54 = vld [vmem:[%s1806_s15 + $0x360] sm:$0xff]  ;;  %v484_v55 = vld [vmem:[%s1806_s15 + $0x370] sm:$0xff] }
  0x34   : > { %v486_v56 = vld [vmem:[%s1806_s15 + $0x380] sm:$0xff]  ;;  %483 = vst [vmem:[%s1811_s16 + $0x1b0] sm:$0xff] %v482_v54  ;;  %485 = vst [vmem:[%s1811_s16 + $0x1b8] sm:$0xff] %v484_v55  ;;  %v488_v57 = vld [vmem:[%s1806_s15 + $0x390] sm:$0xff] }
  0x35   : > { %487 = vst [vmem:[%s1811_s16 + $0x1c0] sm:$0xff] %v486_v56  ;;  %v490_v58 = vld [vmem:[%s1806_s15 + $0x3a0] sm:$0xff]  ;;  %v492_v59 = vld [vmem:[%s1806_s15 + $0x3b0] sm:$0xff]  ;;  %489 = vst [vmem:[%s1811_s16 + $0x1c8] sm:$0xff] %v488_v57 }
  0x36   : > { %491 = vst [vmem:[%s1811_s16 + $0x1d0] sm:$0xff] %v490_v58  ;;  %493 = vst [vmem:[%s1811_s16 + $0x1d8] sm:$0xff] %v492_v59  ;;  %v494_v60 = vld [vmem:[%s1806_s15 + $0x3c0] sm:$0xff]  ;;  %v496_v61 = vld [vmem:[%s1806_s15 + $0x3d0] sm:$0xff] }
  0x37   : > { %v498_v62 = vld [vmem:[%s1806_s15 + $0x3e0] sm:$0xff]  ;;  %495 = vst [vmem:[%s1811_s16 + $0x1e0] sm:$0xff] %v494_v60  ;;  %497 = vst [vmem:[%s1811_s16 + $0x1e8] sm:$0xff] %v496_v61  ;;  %v500_v63 = vld [vmem:[%s1806_s15 + $0x3f0] sm:$0xff] }
  0x38   : > { %499 = vst [vmem:[%s1811_s16 + $0x1f0] sm:$0xff] %v498_v62  ;;  %501 = vst [vmem:[%s1811_s16 + $0x1f8] sm:$0xff] %v500_v63 }
  0x39 PF: > { %p1417_p7 = scmp.ge.s32.totalorder %s1711_s24, 1  ;;  %p531_p8 = scmp.lt.s32.totalorder %s1711_s24, 11 }
  0x3b   : > { %p532_p9 = pnand %p1417_p7, %p531_p8 }
  0x3c   : > { %s538_s17 = sand.u32 (!%p532_p9), 1, %s1687_s18   ;;  %s1419_s27 = sshll.u32 (!%p532_p9), %s1695_s20, 2 }
  0x3d   : > { %535 = sbr.rel (%p532_p9) target bundleno = 465 (0x1d1), region = 74  ;;  %s1418_s28 = sshll.u32 (!%p532_p9), %s538_s17, 9 }
  0x3e   : > { %p583_p10 = scmp.lt.s32.totalorder (!%p532_p9), %s1419_s27, 19  ;;  %s1420_s29 = sshll.u32 (!%p532_p9), %s1699_s21, 1 }
  0x3f   : > { %p590_p11 = scmp.lt.s32.totalorder (!%p532_p9), %s1420_s29, 3  ;;  %s1970_s8 = scalar_lea.vmem (!%p532_p9), [#allocation3], %s1418_s28 }
  0x40   : > { %p1426_p12 = scmp.ne.s32.totalorder (!%p532_p9), %s1695_s20, 0 }
  0x44   : > { %s2127_s27 = smov (!%p583_p10, %s1419_s27), 19  ;;  %s2129_s29 = smov (!%p590_p11, %s1420_s29), 3 }
  0x45   : > { %s592_s18 = scalar_lea.vmem %s2109_s2, %s2129_s29  ;;  %s597_s21 = scalar_lea.vmem %s2110_s3, %s2129_s29  ;;  %v1713_v0 = vmov (!%p1426_p12), 0.0  }
  0x46   : > { %s1423_s13 = sshll.u32 %s2129_s29, 1  ;;  %614 = sbr.rel (%p1426_p12) target bundleno = 77 (0x4d), region = 82  ;;  %615 = vst [vmem:[#allocation2] sm:$0xf] (!%p1426_p12), %v1713_v0 }
  0x47   : > { %s1963_s16 = scalar_lea.vmem %s2111_s4, %s1423_s13  ;;  %s1968_s7 = scalar_lea.vmem %s2112_s5, %s1423_s13 }
  0x4d PF: > { %v1557_v1 = vld [vmem:[%s1970_s8 + $0x4] ss:$8 sps:$4 sm:$0xff]   ;;  %v1561_v3 = vld [vmem:[%s1970_s8] ss:$8 sps:$4 sm:$0xff]   ;;  %v1563_v5 = vld [vmem:[%s1970_s8 + $0x14] ss:$8 sps:$4 sm:$0xff]   ;;  %v694_v41 = vlaneseq  ;;  %s2113_s10 = scalar_lea.vmem %s2107_s0, %s2127_s27 }
  0x4e   : > { %v1559_v2 = vld [vmem:[%s1970_s8 + $0x104] ss:$8 sps:$4 sm:$0xff]   ;;  %1031 = vmatprep.subr.bf16.mxu1 %v1557_v1  ;;  %v1562_v4 = vld [vmem:[%s1970_s8 + $0x100] ss:$8 sps:$4 sm:$0xff]   ;;  %v1565_v6 = vld [vmem:[%s1970_s8 + $0x114] ss:$8 sps:$4 sm:$0xff]  }
  0x4f   : > { %1072 = vmatprep.subr.bf16.mxu0 %v1559_v2  ;;  %1032 = vmatpush1.bf16.msra.mxu1 %v1561_v3  ;;  %v1567_v7 = vld [vmem:[%s1970_s8 + $0x10] ss:$8 sps:$4 sm:$0xff]   ;;  %v1569_v9 = vld [vmem:[%s1970_s8 + $0x24] ss:$8 sps:$4 sm:$0xff]   ;;  %v1573_v11 = vld [vmem:[%s1970_s8 + $0x20] ss:$8 sps:$4 sm:$0xff]  }
  0x50   : > { %1073 = vmatpush1.bf16.msra.mxu0 %v1562_v4  ;;  %1033 = vmatprep.subr.bf16.mxu1 %v1563_v5  ;;  %v1568_v8 = vld [vmem:[%s1970_s8 + $0x110] ss:$8 sps:$4 sm:$0xff]   ;;  %v1571_v10 = vld [vmem:[%s1970_s8 + $0x124] ss:$8 sps:$4 sm:$0xff]   ;;  %v1574_v12 = vld [vmem:[%s1970_s8 + $0x120] ss:$8 sps:$4 sm:$0xff]  }
  0x51   : > { %1074 = vmatprep.subr.bf16.mxu0 %v1565_v6  ;;  %v1575_v13 = vld [vmem:[%s1970_s8 + $0x34] ss:$8 sps:$4 sm:$0xff]   ;;  %v1579_v15 = vld [vmem:[%s1970_s8 + $0x30] ss:$8 sps:$4 sm:$0xff]   ;;  %v1581_v17 = vld [vmem:[%s1970_s8 + $0x44] ss:$8 sps:$4 sm:$0xff]  }
  0x52   : > { %v1577_v14 = vld [vmem:[%s1970_s8 + $0x134] ss:$8 sps:$4 sm:$0xff]   ;;  %v1580_v16 = vld [vmem:[%s1970_s8 + $0x130] ss:$8 sps:$4 sm:$0xff]   ;;  %v1583_v18 = vld [vmem:[%s1970_s8 + $0x144] ss:$8 sps:$4 sm:$0xff]  }
  0x53   : > { %1034 = vmatpush1.bf16.msra.mxu1 %v1567_v7  ;;  %v1585_v19 = vld [vmem:[%s1970_s8 + $0x40] ss:$8 sps:$4 sm:$0xff]   ;;  %v1587_v21 = vld [vmem:[%s1970_s8 + $0x54] ss:$8 sps:$4 sm:$0xff]   ;;  %v1591_v23 = vld [vmem:[%s1970_s8 + $0x50] ss:$8 sps:$4 sm:$0xff]  }
  0x54   : > { %1075 = vmatpush1.bf16.msra.mxu0 %v1568_v8  ;;  %1035 = vmatprep.subr.bf16.mxu1 %v1569_v9  ;;  %v1586_v20 = vld [vmem:[%s1970_s8 + $0x140] ss:$8 sps:$4 sm:$0xff]   ;;  %v1589_v22 = vld [vmem:[%s1970_s8 + $0x154] ss:$8 sps:$4 sm:$0xff]   ;;  %v1592_v24 = vld [vmem:[%s1970_s8 + $0x150] ss:$8 sps:$4 sm:$0xff]  }
  0x55   : > { %1076 = vmatprep.subr.bf16.mxu0 %v1571_v10  ;;  %v1593_v25 = vld [vmem:[%s1970_s8 + $0x64] ss:$8 sps:$4 sm:$0xff]   ;;  %v1597_v27 = vld [vmem:[%s1970_s8 + $0x60] ss:$8 sps:$4 sm:$0xff]   ;;  %v1599_v29 = vld [vmem:[%s1970_s8 + $0x74] ss:$8 sps:$4 sm:$0xff]  }
  0x56   : > { %v1595_v26 = vld [vmem:[%s1970_s8 + $0x164] ss:$8 sps:$4 sm:$0xff]   ;;  %v1598_v28 = vld [vmem:[%s1970_s8 + $0x160] ss:$8 sps:$4 sm:$0xff]   ;;  %v1601_v30 = vld [vmem:[%s1970_s8 + $0x174] ss:$8 sps:$4 sm:$0xff]  }
  0x57   : > { %1036 = vmatpush1.bf16.msra.mxu1 %v1573_v11  ;;  %v1603_v31 = vld [vmem:[%s1970_s8 + $0x70] ss:$8 sps:$4 sm:$0xff]   ;;  %v1605_v33 = vld [vmem:[%s1970_s8 + $0x84] ss:$8 sps:$4 sm:$0xff]   ;;  %v1609_v35 = vld [vmem:[%s1970_s8 + $0x80] ss:$8 sps:$4 sm:$0xff]  }
  0x58   : > { %1077 = vmatpush1.bf16.msra.mxu0 %v1574_v12  ;;  %1037 = vmatprep.subr.bf16.mxu1 %v1575_v13  ;;  %v1604_v32 = vld [vmem:[%s1970_s8 + $0x170] ss:$8 sps:$4 sm:$0xff]   ;;  %v1607_v34 = vld [vmem:[%s1970_s8 + $0x184] ss:$8 sps:$4 sm:$0xff]   ;;  %v1610_v36 = vld [vmem:[%s1970_s8 + $0x180] ss:$8 sps:$4 sm:$0xff]  }
  0x59   : > { %1078 = vmatprep.subr.bf16.mxu0 %v1577_v14  ;;  %v1611_v37 = vld [vmem:[%s1970_s8 + $0x94] ss:$8 sps:$4 sm:$0xff]   ;;  %v1714_v39 = vmov 1966171168   ;;  %v1615_v42 = vld [vmem:[%s1970_s8 + $0x90] ss:$8 sps:$4 sm:$0xff]  }
  0x5a   : > { %v1613_v38 = vld [vmem:[%s1970_s8 + $0x194] ss:$8 sps:$4 sm:$0xff]   ;;  %v692_v40 = vunpack.c.l.s4 %v1714_v39  ;;  %v1616_v43 = vld [vmem:[%s1970_s8 + $0x190] ss:$8 sps:$4 sm:$0xff]   ;;  %v1617_v44 = vld [vmem:[%s1970_s8 + $0xa4] ss:$8 sps:$4 sm:$0xff]  }
  0x5b   : > { %1038 = vmatpush1.bf16.msra.mxu1 %v1579_v15  ;;  %v1619_v45 = vld [vmem:[%s1970_s8 + $0x1a4] ss:$8 sps:$4 sm:$0xff]   ;;  %v2015_v47 = vshrl.u32 %v694_v41, 7  ;;  %v1621_v48 = vld [vmem:[%s1970_s8 + $0xa0] ss:$8 sps:$4 sm:$0xff]   ;;  %p1492_p13 = scmp.ne.s32.totalorder %s1695_s20, 4 }
  0x5c   : > { %1079 = vmatpush1.bf16.msra.mxu0 %v1580_v16  ;;  %1039 = vmatprep.subr.bf16.mxu1 %v1581_v17  ;;  %v693_v46 = vunpack.c.0.s8 %v692_v40  ;;  %v1622_v49 = vld [vmem:[%s1970_s8 + $0x1a0] ss:$8 sps:$4 sm:$0xff]   ;;  %v1623_v50 = vld [vmem:[%s1970_s8 + $0xb4] ss:$8 sps:$4 sm:$0xff]   ;;  %v1627_v54 = vld [vmem:[%s1970_s8 + $0xb0] ss:$8 sps:$4 sm:$0xff]  }
  0x5d   : > { %1080 = vmatprep.subr.bf16.mxu0 %v1583_v18  ;;  %v1625_v51 = vld [vmem:[%s1970_s8 + $0x1b4] ss:$8 sps:$4 sm:$0xff]   ;;  %v1628_v55 = vld [vmem:[%s1970_s8 + $0x1b0] ss:$8 sps:$4 sm:$0xff]   ;;  %v1629_v57 = vld [vmem:[%s1970_s8 + $0xc4] ss:$8 sps:$4 sm:$0xff]  }
  0x5e   : > { %v2022_v52 = vsub.s32 %v693_v46, %v2015_v47  ;;  %v1427_v53 = vld.sshfl [vmem:[%s2113_s10] sm:$0x33 pattern:$0x75316420]  ;;  %v1631_v58 = vld [vmem:[%s1970_s8 + $0x1c4] ss:$8 sps:$4 sm:$0xff]  }
  0x5f   : > { %1040 = vmatpush1.bf16.msra.mxu1 %v1585_v19  ;;  %v690_v56 = vcombine.high %v1427_v53, %v1427_v53  ;;  %v1633_v60 = vld [vmem:[%s1970_s8 + $0xc0] ss:$8 sps:$4 sm:$0xff]   ;;  %v1635_v63 = vld [vmem:[%s1970_s8 + $0xd4] ss:$8 sps:$4 sm:$0xff]   ;;  %v1639_v1 = vld [vmem:[%s1970_s8 + $0xd0] ss:$8 sps:$4 sm:$0xff]  }
  0x60   : > { %1081 = vmatpush1.bf16.msra.mxu0 %v1586_v20  ;;  %1041 = vmatprep.subr.bf16.mxu1 %v1587_v21  ;;  %v1634_v61 = vld [vmem:[%s1970_s8 + $0x1c0] ss:$8 sps:$4 sm:$0xff]   ;;  %v1637_v0 = vld [vmem:[%s1970_s8 + $0x1d4] ss:$8 sps:$4 sm:$0xff]   ;;  %v1640_v2 = vld [vmem:[%s1970_s8 + $0x1d0] ss:$8 sps:$4 sm:$0xff]   ;;  %v697_v9 = vrot.slane %v1427_v53, %v2022_v52 }
  0x61   : > { %1082 = vmatprep.subr.bf16.mxu0 %v1589_v22  ;;  %v704_v59 = vrot.slane %v690_v56, %v2022_v52  ;;  %v1641_v3 = vld [vmem:[%s1970_s8 + $0xe4] ss:$8 sps:$4 sm:$0xff]   ;;  %v1645_v5 = vld [vmem:[%s1970_s8 + $0xe0] ss:$8 sps:$4 sm:$0xff]   ;;  %v1647_v7 = vld [vmem:[%s1970_s8 + $0xf4] ss:$8 sps:$4 sm:$0xff]  }
  0x62   : > { %v1643_v4 = vld [vmem:[%s1970_s8 + $0x1e4] ss:$8 sps:$4 sm:$0xff]   ;;  %v1646_v6 = vld [vmem:[%s1970_s8 + $0x1e0] ss:$8 sps:$4 sm:$0xff]   ;;  %v1649_v8 = vld [vmem:[%s1970_s8 + $0x1f4] ss:$8 sps:$4 sm:$0xff]   ;;  %v705_v12 = vcombine.high %v697_v9, %v697_v9 }
  0x63   : > { %1042 = vmatpush1.bf16.msra.mxu1 %v1591_v23  ;;  %v706_v62 = vcombine.high %v704_v59, %v704_v59  ;;  %1063 = vmatprep.mubr.bf16.mxu1 %v704_v59  ;;  %v1651_v10 = vld [vmem:[%s1970_s8 + $0xf0] ss:$8 sps:$4 sm:$0xff]   ;;  %v1715_v13 = vmov 1983009808   ;;  %vm1142_vm0 = vcmask (!%p1492_p13), 1041408  }
  0x64   : > { %1083 = vmatpush1.bf16.msra.mxu0 %v1592_v24  ;;  %1043 = vmatprep.subr.bf16.mxu1 %v1593_v25  ;;  %v1652_v11 = vld [vmem:[%s1970_s8 + $0x1f0] ss:$8 sps:$4 sm:$0xff]   ;;  %v1117_v14 = vunpack.c.l.s4 %v1715_v13 }
  0x65   : > { %1084 = vmatprep.subr.bf16.mxu0 %v1595_v26  ;;  %1104 = vmatprep.mubr.bf16.mxu0 %v706_v62 }
  0x66   : > { %v1118_v15 = vunpack.c.0.s8 %v1117_v14 }
  0x67   : > { %1044 = vmatpush1.bf16.msra.mxu1 %v1597_v27 }
  0x68   : > { %1085 = vmatpush1.bf16.msra.mxu0 %v1598_v28  ;;  %1045 = vmatprep.subr.bf16.mxu1 %v1599_v29  ;;  %v2050_v22 = vsub.s32 %v1118_v15, %v2015_v47  ;;  %v616_v28 = vld [vmem:[#allocation2] sm:$0xf] }
  0x69   : > { %1086 = vmatprep.subr.bf16.mxu0 %v1601_v30 }
  0x6b   : > { %1046 = vmatpush1.bf16.msra.mxu1 %v1603_v31 }
  0x6c   : > { %1087 = vmatpush1.bf16.msra.mxu0 %v1604_v32  ;;  %1047 = vmatprep.subr.bf16.mxu1 %v1605_v33 }
  0x6d   : > { %1088 = vmatprep.subr.bf16.mxu0 %v1607_v34 }
  0x6f   : > { %1048 = vmatpush1.bf16.msra.mxu1 %v1609_v35 }
  0x70   : > { %1089 = vmatpush1.bf16.msra.mxu0 %v1610_v36  ;;  %1049 = vmatprep.subr.bf16.mxu1 %v1611_v37 }
  0x71   : > { %1090 = vmatprep.subr.bf16.mxu0 %v1613_v38 }
  0x73   : > { %1050 = vmatpush1.bf16.msra.mxu1 %v1615_v42 }
  0x74   : > { %1091 = vmatpush1.bf16.msra.mxu0 %v1616_v43  ;;  %1051 = vmatprep.subr.bf16.mxu1 %v1617_v44 }
  0x75   : > { %1092 = vmatprep.subr.bf16.mxu0 %v1619_v45 }
  0x77   : > { %1052 = vmatpush1.bf16.msra.mxu1 %v1621_v48 }
  0x78   : > { %1093 = vmatpush1.bf16.msra.mxu0 %v1622_v49  ;;  %1053 = vmatprep.subr.bf16.mxu1 %v1623_v50 }
  0x79   : > { %1094 = vmatprep.subr.bf16.mxu0 %v1625_v51 }
  0x7b   : > { %1054 = vmatpush1.bf16.msra.mxu1 %v1627_v54 }
  0x7c   : > { %1095 = vmatpush1.bf16.msra.mxu0 %v1628_v55  ;;  %1055 = vmatprep.subr.bf16.mxu1 %v1629_v57 }
  0x7d   : > { %1096 = vmatprep.subr.bf16.mxu0 %v1631_v58 }
  0x7f   : > { %1056 = vmatpush1.bf16.msra.mxu1 %v1633_v60 }
  0x80   : > { %1097 = vmatpush1.bf16.msra.mxu0 %v1634_v61  ;;  %1057 = vmatprep.subr.bf16.mxu1 %v1635_v63 }
  0x81   : > { %1098 = vmatprep.subr.bf16.mxu0 %v1637_v0 }
  0x83   : > { %1058 = vmatpush1.bf16.msra.mxu1 %v1639_v1 }
  0x84   : > { %1099 = vmatpush1.bf16.msra.mxu0 %v1640_v2  ;;  %1059 = vmatprep.subr.bf16.mxu1 %v1641_v3 }
  0x85   : > { %1100 = vmatprep.subr.bf16.mxu0 %v1643_v4 }
  0x87   : > { %1060 = vmatpush1.bf16.msra.mxu1 %v1645_v5 }
  0x88   : > { %1101 = vmatpush1.bf16.msra.mxu0 %v1646_v6  ;;  %1061 = vmatprep.subr.bf16.mxu1 %v1647_v7 }
  0x89   : > { %1102 = vmatprep.subr.bf16.mxu0 %v1649_v8 }
  0x8b   : > { %1062 = vmatpush1.bf16.msra.mxu1 %v1651_v10 }
  0x8c   : > { %1103 = vmatpush1.bf16.msra.mxu0 %v1652_v11 }
  0x8e   : > { %1064 = vmatmul.mubr.bf16.vlgmr.msra.gmra.mrb[0].mxu1 %v697_v9 }
  0x8f   : > { %1105 = vmatmul.mubr.bf16.vlgmr.msra.gmra.mrb[0].mxu0 %v705_v12 }
 0x161   : > { %v1065_v16 = vpop.f32.mrb[0].mxu1 }
 0x162   : > { %v1106_v17 = vpop.f32.mrb[0].mxu0  ;;  %v1067_v19 = vpop.f32.mrb[1].mxu1 }
 0x163   : > { %v1107_v18 = vadd.f32 %v1106_v17, %v1065_v16  ;;  %v1108_v20 = vpop.f32.mrb[1].mxu0  ;;  %v1069_v23 = vpop.f32.mrb[2].mxu1  ;;  %v1200_v16 = vld [vmem:[%s592_s18] sm:$0x3] (!%p1492_p13) }
 0x164   : > { %v1109_v21 = vadd.f32 %v1108_v20, %v1067_v19  ;;  %v1110_v24 = vpop.f32.mrb[2].mxu0  ;;  %v1070_v25 = vpop.f32.mrb[3].mxu1  ;;  %v1232_v19 = vsub.s32 (!%p1492_p13), 1, %v2015_v47 }
 0x165   : > { %v1111_v26 = vpop.f32.mrb[3].mxu0 }
 0x166   : > { %v1115_v27 = vcombine.low %v1107_v18, %v1109_v21  ;;  %1129 = sbr.rel (%p1492_p13) target bundleno = 465 (0x1d1), region = 86  ;;  %v1228_v18 = vsub.s32 (!%p1492_p13), 0, %v2015_v47 }
 0x168   : > { %v1122_v29 = vrot.slane %v1115_v27, %v2050_v22 }
 0x16a   : > { %v1124_v30 = vadd.f32 %v1122_v29, %v616_v28  ;;  %v1224_v29 = vld [vmem:[%s597_s21] sm:$0x3] (!%p1492_p13) }
 0x16c   : > { %1125 = vst [vmem:[#allocation2] sm:$0xf] %v1124_v30 }
 0x173   : > { %v2054_v31 = vld [vmem:[#allocation2] sm:$0xf] }
 0x174   : > { %v1138_v32 = vrot.slane %v2054_v31, %v2050_v22 }
 0x176   : > { %v1139_v33 = vcombine.high %v1138_v32, %v1138_v32  ;;  %v1143_v34 = vsel %vm1142_vm0, %v1138_v32, 0.0 }
 0x177   : > { %v1144_v35 = vrot.slane %v1143_v34, 4 }
 0x178   : > { %v1150_v36 = vsel %vm1142_vm0, %v1139_v33, 0.0 }
 0x179   : > { %v1145_v37 = vadd.f32 %v1144_v35, %v1143_v34  ;;  %v1151_v38 = vrot.slane %v1150_v36, 4 }
 0x17b   : > { %v1146_v39 = vrot.slane %v1145_v37, 2  ;;  %v1152_v40 = vadd.f32 %v1151_v38, %v1150_v36 }
 0x17d   : > { %v1147_v41 = vadd.f32 %v1146_v39, %v1145_v37  ;;  %v1153_v42 = vrot.slane %v1152_v40, 2  ;;  %v1286_v39 = vld [vmem:[%s1963_s16] sm:$0xf] }
 0x17f   : > { %v1148_v43 = vrot.slane %v1147_v41, 1  ;;  %v1154_v44 = vadd.f32 %v1153_v42, %v1152_v40 }
 0x181   : > { %v1149_v45 = vadd.f32 %v1148_v43, %v1147_v41  ;;  %v1155_v46 = vrot.slane %v1154_v44, 1 }
 0x183   : > { %v1156_v48 = vadd.f32 %v1155_v46, %v1154_v44  ;;  %v1158_v49 = vmul.f32 0.5, %v1149_v45 }
 0x185   : > { %v1159_v50 = vmul.f32 0.5, %v1156_v48 }
 0x187   : > { %v1162_v51 = vcombine.low %v1158_v49, %v1159_v50 }
 0x189   : > { %v1169_v53 = vrot.slane %v1162_v51, %v2050_v22 }
 0x18b   : > { %v1171_v54 = vsub.f32 %v2054_v31, %v1169_v53 }
 0x18d   : > { %v1172_v55 = vmul.f32 %v1171_v54, %v1171_v54 }
 0x18f   : > { %v1180_v56 = vrot.slane %v1172_v55, %v2050_v22 }
 0x191   : > { %v1181_v57 = vcombine.high %v1180_v56, %v1180_v56  ;;  %v1184_v58 = vsel %vm1142_vm0, %v1180_v56, 0.0 }
 0x192   : > { %v1185_v59 = vrot.slane %v1184_v58, 4 }
 0x193   : > { %v1191_v60 = vsel %vm1142_vm0, %v1181_v57, 0.0 }
 0x194   : > { %v1186_v61 = vadd.f32 %v1185_v59, %v1184_v58  ;;  %v1192_v62 = vrot.slane %v1191_v60, 4 }
 0x196   : > { %v1187_v63 = vrot.slane %v1186_v61, 2  ;;  %v1193_v0 = vadd.f32 %v1192_v62, %v1191_v60 }
 0x198   : > { %v1188_v1 = vadd.f32 %v1187_v63, %v1186_v61  ;;  %v1194_v2 = vrot.slane %v1193_v0, 2 }
 0x19a   : > { %v1189_v3 = vrot.slane %v1188_v1, 1  ;;  %v1195_v4 = vadd.f32 %v1194_v2, %v1193_v0 }
 0x19c   : > { %v1190_v5 = vadd.f32 %v1189_v3, %v1188_v1  ;;  %v1196_v6 = vrot.slane %v1195_v4, 1 }
 0x19e   : > { %v1197_v7 = vadd.f32 %v1196_v6, %v1195_v4  ;;  %v1198_v8 = vmul.f32 0.5, %v1190_v5 }
 0x1a0   : > { %v1199_v9 = vmul.f32 0.5, %v1197_v7  ;;  %v1201_v10 = vadd.f32 1e-05, %v1198_v8 }
 0x1a2   : > { %v1202_v11 = vadd.f32 1e-05, %v1199_v9  ;;  %1653 = vrsqrt.f32 %v1201_v10 }
 0x1a4   : > { %1655 = vrsqrt.f32 %v1202_v11 }
 0x1ac   : > { %v1654_v12 = vpop.eup %1653 }
 0x1ae   : > { %v1656_v13 = vpop.eup %1655 }
 0x1af   : > { %v1207_v14 = vcombine.low %v1654_v12, %v1656_v13 }
 0x1b1   : > { %v1214_v15 = vrot.slane %v1207_v14, %v2022_v52 }
 0x1b3   : > { %v1221_v17 = vrot.slane %v1214_v15, %v2022_v52 }
 0x1b5   : > { %v1223_v20 = vmul.f32 %v1221_v17, %v1200_v16 }
 0x1b7   : > { %v1229_v21 = vrot.slane %v1223_v20, %v1228_v18  ;;  %v1233_v23 = vrot.slane %v1223_v20, %v1232_v19 }
 0x1b9   : > { %v1236_v24 = vmul.f32 %v1229_v21, %v1158_v49  ;;  %v1237_v25 = vmul.f32 %v1233_v23, %v1159_v50  ;;  %v1257_v28 = vcombine.low %v1229_v21, %v1233_v23 }
 0x1bb   : > { %v1240_v26 = vcombine.low %v1236_v24, %v1237_v25  ;;  %v1264_v47 = vrot.slane %v1257_v28, %v2050_v22 }
 0x1bd   : > { %v1247_v27 = vrot.slane %v1240_v26, %v2022_v52  ;;  %v1266_v35 = vmul.f32 %v1264_v47, %v2054_v31 }
 0x1bf   : > { %v1254_v30 = vrot.slane %v1247_v27, %v2022_v52 }
 0x1c1   : > { %v1256_v32 = vsub.f32 %v1224_v29, %v1254_v30 }
 0x1c3   : > { %v1271_v33 = vrot.slane %v1256_v32, %v1228_v18  ;;  %v1275_v34 = vrot.slane %v1256_v32, %v1232_v19 }
 0x1c5   : > { %v1276_v36 = vcombine.low %v1271_v33, %v1275_v34 }
 0x1c7   : > { %v1283_v37 = vrot.slane %v1276_v36, %v2050_v22 }
 0x1c9   : > { %v1285_v38 = vadd.f32 %v1283_v37, %v1266_v35 }
 0x1cb   : > { %vm1287_vm1 = vcmp.ge.f32.partialorder %v1285_v38, 0.0  ;;  %v1288_v40 = vmul.f32 0.1, %v1285_v38 }
 0x1cd   : > { %v1289_v41 = vsel %vm1287_vm1, %v1285_v38, %v1288_v40 }
 0x1ce   : > { %v1290_v42 = vadd.f32 %v1289_v41, %v1286_v39 }
 0x1d0   : > { %1291 = vst [vmem:[%s1968_s7] sm:$0xf] %v1290_v42 }
 0x1d1 PF: > { %s15_s24 = sadd.s32 1, %s1711_s24   ;;  %s2114_s18 = smov %s1691_s19 }
 0x1d2   : > { %p12_p0 = scmp.ge.s32.totalorder %s15_s24, 12   ;;  %s2115_s19 = smov %s1797_s6 }
 0x1d3   : > { %s2116_s20 = smov %s1703_s22  ;;  %s2117_s21 = smov %s1707_s23 }
 0x1d4   : > { %s2118_s22 = smov %s2121_s25  ;;  %s2119_s23 = smov %s2125_s26 }
 0x1d5   :  { %14 = sbr.rel (!%p12_p0) target bundleno = 4 (0x4), region = 133 }

// kernel: net_forward.29
= control target key start
LH: loop header
LB: loop body
LE: loop exit
PB: predicated region body
PF: predicated region fallthrough
CT: control target
= control target key end

     0   :  { %s1676_s15 = smov 0   ;;  %s1678_s16 = smov 0   ;;  %s2031_s0 = inlined_call_operand.vmem [shape: bf16[2,4608], index: 0, kind: input, shape index: {}]   ;;  %s2032_s1 = inlined_call_operand.vmem [shape: bf16[4608,512], index: 1, kind: input, shape index: {}]   ;;  %s2033_s2 = inlined_call_operand.vmem [shape: f32[1,512], index: 2, kind: input, shape index: {}]   ;;  %s2034_s3 = inlined_call_operand.vmem [shape: f32[1,512], index: 3, kind: input, shape index: {}]   ;;  %s2035_s4 = inlined_call_operand.vmem [shape: f32[2,512], index: 4, kind: output, shape index: {}]  }
   0x1   :  { %s1680_s17 = smov 0   ;;  %s1682_s18 = smov 0  }
   0x2   :  { %s1684_s19 = smov 0   ;;  %s1686_s20 = smov 0  }
   0x3   :  { %s1688_s21 = smov 0  }
   0x4 LB: > { %s23_s22 = sadd.s32 1, %s1638_s19  ;;  %s26_s23 = sadd.s32 1, %s1642_s20  ;;  %s1646_s21 = sphi %s1688_s21, %s14_s21   ;;  %s1642_s20 = sphi %s1686_s20, %s2041_s20   ;;  %s1638_s19 = sphi %s1684_s19, %s2040_s19   ;;  %s1634_s18 = sphi %s1682_s18, %s2039_s18   ;;  %s1630_s17 = sphi %s1680_s17, %s2038_s17   ;;  %s1626_s16 = sphi %s1678_s16, %s2037_s16   ;;  %s1622_s15 = sphi %s1676_s15, %s2036_s15  }
   0x5   : > { %p24_p0 = scmp.ge.s32.totalorder %s23_s22, 9  ;;  %p68_p1 = scmp.ne.s32.totalorder %s1626_s16, %s1622_s15 }
   0x6   : > { %p69_p2 = scmp.eq.s32.totalorder %s1646_s21, 0  ;;  %s61_s27 = sadd.s32 1, %s1626_s16 }
   0x7   : > { %s2043_s22 = smov (%p24_p0, %s23_s22), 0  ;;  %s2045_s23 = smov (!%p24_p0, %s26_s23), %s1642_s20 }
   0x8   : > { %p70_p3 = por %p69_p2, %p68_p1  ;;  %p28_p4 = scmp.ge.s32.totalorder %s2045_s23, 2 }
   0x9   : > { %s56_s24 = ssub.s32 %s1638_s19, %s2043_s22  ;;  %p1348_p6 = scmp.ge.s32.totalorder %s1646_s21, 18 }
   0xa   : > { %s2047_s23 = smov (%p28_p4, %s2045_s23), 0 }
   0xb   : > { %s57_s25 = ssub.s32 %s1642_s20, %s2047_s23  ;;  %172 = sbr.rel (%p1348_p6) target bundleno = 57 (0x39), region = 16 }
   0xc   : > { %s58_s26 = sor.u32 %s57_s25, %s56_s24 }
   0xd   : > { %p59_p5 = scmp.eq.s32.totalorder %s58_s26, 0 }
   0xf   : > { %s1727_s28 = scalar_select %p59_p5, %s1626_s16, %s61_s27  }
  0x12   : > { %183 = sbr.rel (!%p70_p3) target bundleno = 57 (0x39), region = 24  ;;  %s185_s29 = sand.u32 (%p70_p3), 1, %s1626_s16  }
  0x13   : > { %s1351_s30 = sshll.u32 (%p70_p3), %s1642_s20, 1  ;;  %s1349_s5 = sshll.u32 (%p70_p3), %s185_s29, 9 }
  0x14   : > { %s1430_s6 = sshll.u32 (%p70_p3), %s1638_s19, 8  ;;  %s1741_s12 = scalar_lea.vmem (%p70_p3), [#allocation3], %s1349_s5 }
  0x15   : > { %s191_s7 = sadd.s32 (%p70_p3), %s1430_s6, %s1351_s30 }
  0x16   : > { %s1353_s8 = sshll.u32 (%p70_p3), %s191_s7, 2 }
  0x17   : > { %s1736_s11 = scalar_lea.vmem (%p70_p3), %s2032_s1, %s1353_s8 }
  0x18   : > { %v347_v0 = vld [vmem:[%s1736_s11] sm:$0xff] (%p70_p3)  ;;  %v349_v1 = vld [vmem:[%s1736_s11 + $0x10] sm:$0xff] (%p70_p3) }
  0x19   : > { %v351_v2 = vld [vmem:[%s1736_s11 + $0x20] sm:$0xff]  ;;  %348 = vst [vmem:[%s1741_s12] sm:$0xff] %v347_v0  ;;  %350 = vst [vmem:[%s1741_s12 + $0x8] sm:$0xff] %v349_v1  ;;  %v353_v3 = vld [vmem:[%s1736_s11 + $0x30] sm:$0xff] }
  0x1a   : > { %352 = vst [vmem:[%s1741_s12 + $0x10] sm:$0xff] %v351_v2  ;;  %v355_v4 = vld [vmem:[%s1736_s11 + $0x40] sm:$0xff]  ;;  %v357_v5 = vld [vmem:[%s1736_s11 + $0x50] sm:$0xff]  ;;  %354 = vst [vmem:[%s1741_s12 + $0x18] sm:$0xff] %v353_v3 }
  0x1b   : > { %356 = vst [vmem:[%s1741_s12 + $0x20] sm:$0xff] %v355_v4  ;;  %358 = vst [vmem:[%s1741_s12 + $0x28] sm:$0xff] %v357_v5  ;;  %v359_v6 = vld [vmem:[%s1736_s11 + $0x60] sm:$0xff]  ;;  %v361_v7 = vld [vmem:[%s1736_s11 + $0x70] sm:$0xff] }
  0x1c   : > { %v363_v8 = vld [vmem:[%s1736_s11 + $0x80] sm:$0xff]  ;;  %360 = vst [vmem:[%s1741_s12 + $0x30] sm:$0xff] %v359_v6  ;;  %362 = vst [vmem:[%s1741_s12 + $0x38] sm:$0xff] %v361_v7  ;;  %v365_v9 = vld [vmem:[%s1736_s11 + $0x90] sm:$0xff] }
  0x1d   : > { %364 = vst [vmem:[%s1741_s12 + $0x40] sm:$0xff] %v363_v8  ;;  %v367_v10 = vld [vmem:[%s1736_s11 + $0xa0] sm:$0xff]  ;;  %v369_v11 = vld [vmem:[%s1736_s11 + $0xb0] sm:$0xff]  ;;  %366 = vst [vmem:[%s1741_s12 + $0x48] sm:$0xff] %v365_v9 }
  0x1e   : > { %368 = vst [vmem:[%s1741_s12 + $0x50] sm:$0xff] %v367_v10  ;;  %370 = vst [vmem:[%s1741_s12 + $0x58] sm:$0xff] %v369_v11  ;;  %v371_v12 = vld [vmem:[%s1736_s11 + $0xc0] sm:$0xff]  ;;  %v373_v13 = vld [vmem:[%s1736_s11 + $0xd0] sm:$0xff] }
  0x1f   : > { %v375_v14 = vld [vmem:[%s1736_s11 + $0xe0] sm:$0xff]  ;;  %372 = vst [vmem:[%s1741_s12 + $0x60] sm:$0xff] %v371_v12  ;;  %374 = vst [vmem:[%s1741_s12 + $0x68] sm:$0xff] %v373_v13  ;;  %v377_v15 = vld [vmem:[%s1736_s11 + $0xf0] sm:$0xff] }
  0x20   : > { %376 = vst [vmem:[%s1741_s12 + $0x70] sm:$0xff] %v375_v14  ;;  %v379_v16 = vld [vmem:[%s1736_s11 + $0x100] sm:$0xff]  ;;  %v381_v17 = vld [vmem:[%s1736_s11 + $0x110] sm:$0xff]  ;;  %378 = vst [vmem:[%s1741_s12 + $0x78] sm:$0xff] %v377_v15 }
  0x21   : > { %380 = vst [vmem:[%s1741_s12 + $0x80] sm:$0xff] %v379_v16  ;;  %382 = vst [vmem:[%s1741_s12 + $0x88] sm:$0xff] %v381_v17  ;;  %v383_v18 = vld [vmem:[%s1736_s11 + $0x120] sm:$0xff]  ;;  %v385_v19 = vld [vmem:[%s1736_s11 + $0x130] sm:$0xff] }
  0x22   : > { %v387_v20 = vld [vmem:[%s1736_s11 + $0x140] sm:$0xff]  ;;  %384 = vst [vmem:[%s1741_s12 + $0x90] sm:$0xff] %v383_v18  ;;  %386 = vst [vmem:[%s1741_s12 + $0x98] sm:$0xff] %v385_v19  ;;  %v389_v21 = vld [vmem:[%s1736_s11 + $0x150] sm:$0xff] }
  0x23   : > { %388 = vst [vmem:[%s1741_s12 + $0xa0] sm:$0xff] %v387_v20  ;;  %v391_v22 = vld [vmem:[%s1736_s11 + $0x160] sm:$0xff]  ;;  %v393_v23 = vld [vmem:[%s1736_s11 + $0x170] sm:$0xff]  ;;  %390 = vst [vmem:[%s1741_s12 + $0xa8] sm:$0xff] %v389_v21 }
  0x24   : > { %392 = vst [vmem:[%s1741_s12 + $0xb0] sm:$0xff] %v391_v22  ;;  %394 = vst [vmem:[%s1741_s12 + $0xb8] sm:$0xff] %v393_v23  ;;  %v395_v24 = vld [vmem:[%s1736_s11 + $0x180] sm:$0xff]  ;;  %v397_v25 = vld [vmem:[%s1736_s11 + $0x190] sm:$0xff] }
  0x25   : > { %v399_v26 = vld [vmem:[%s1736_s11 + $0x1a0] sm:$0xff]  ;;  %396 = vst [vmem:[%s1741_s12 + $0xc0] sm:$0xff] %v395_v24  ;;  %398 = vst [vmem:[%s1741_s12 + $0xc8] sm:$0xff] %v397_v25  ;;  %v401_v27 = vld [vmem:[%s1736_s11 + $0x1b0] sm:$0xff] }
  0x26   : > { %400 = vst [vmem:[%s1741_s12 + $0xd0] sm:$0xff] %v399_v26  ;;  %v403_v28 = vld [vmem:[%s1736_s11 + $0x1c0] sm:$0xff]  ;;  %v405_v29 = vld [vmem:[%s1736_s11 + $0x1d0] sm:$0xff]  ;;  %402 = vst [vmem:[%s1741_s12 + $0xd8] sm:$0xff] %v401_v27 }
  0x27   : > { %404 = vst [vmem:[%s1741_s12 + $0xe0] sm:$0xff] %v403_v28  ;;  %406 = vst [vmem:[%s1741_s12 + $0xe8] sm:$0xff] %v405_v29  ;;  %v407_v30 = vld [vmem:[%s1736_s11 + $0x1e0] sm:$0xff]  ;;  %v409_v31 = vld [vmem:[%s1736_s11 + $0x1f0] sm:$0xff] }
  0x28   : > { %v411_v32 = vld [vmem:[%s1736_s11 + $0x200] sm:$0xff]  ;;  %408 = vst [vmem:[%s1741_s12 + $0xf0] sm:$0xff] %v407_v30  ;;  %410 = vst [vmem:[%s1741_s12 + $0xf8] sm:$0xff] %v409_v31  ;;  %v413_v33 = vld [vmem:[%s1736_s11 + $0x210] sm:$0xff] }
  0x29   : > { %412 = vst [vmem:[%s1741_s12 + $0x100] sm:$0xff] %v411_v32  ;;  %v415_v34 = vld [vmem:[%s1736_s11 + $0x220] sm:$0xff]  ;;  %v417_v35 = vld [vmem:[%s1736_s11 + $0x230] sm:$0xff]  ;;  %414 = vst [vmem:[%s1741_s12 + $0x108] sm:$0xff] %v413_v33 }
  0x2a   : > { %416 = vst [vmem:[%s1741_s12 + $0x110] sm:$0xff] %v415_v34  ;;  %418 = vst [vmem:[%s1741_s12 + $0x118] sm:$0xff] %v417_v35  ;;  %v419_v36 = vld [vmem:[%s1736_s11 + $0x240] sm:$0xff]  ;;  %v421_v37 = vld [vmem:[%s1736_s11 + $0x250] sm:$0xff] }
  0x2b   : > { %v423_v38 = vld [vmem:[%s1736_s11 + $0x260] sm:$0xff]  ;;  %420 = vst [vmem:[%s1741_s12 + $0x120] sm:$0xff] %v419_v36  ;;  %422 = vst [vmem:[%s1741_s12 + $0x128] sm:$0xff] %v421_v37  ;;  %v425_v39 = vld [vmem:[%s1736_s11 + $0x270] sm:$0xff] }
  0x2c   : > { %424 = vst [vmem:[%s1741_s12 + $0x130] sm:$0xff] %v423_v38  ;;  %v427_v40 = vld [vmem:[%s1736_s11 + $0x280] sm:$0xff]  ;;  %v429_v41 = vld [vmem:[%s1736_s11 + $0x290] sm:$0xff]  ;;  %426 = vst [vmem:[%s1741_s12 + $0x138] sm:$0xff] %v425_v39 }
  0x2d   : > { %428 = vst [vmem:[%s1741_s12 + $0x140] sm:$0xff] %v427_v40  ;;  %430 = vst [vmem:[%s1741_s12 + $0x148] sm:$0xff] %v429_v41  ;;  %v431_v42 = vld [vmem:[%s1736_s11 + $0x2a0] sm:$0xff]  ;;  %v433_v43 = vld [vmem:[%s1736_s11 + $0x2b0] sm:$0xff] }
  0x2e   : > { %v435_v44 = vld [vmem:[%s1736_s11 + $0x2c0] sm:$0xff]  ;;  %432 = vst [vmem:[%s1741_s12 + $0x150] sm:$0xff] %v431_v42  ;;  %434 = vst [vmem:[%s1741_s12 + $0x158] sm:$0xff] %v433_v43  ;;  %v437_v45 = vld [vmem:[%s1736_s11 + $0x2d0] sm:$0xff] }
  0x2f   : > { %436 = vst [vmem:[%s1741_s12 + $0x160] sm:$0xff] %v435_v44  ;;  %v439_v46 = vld [vmem:[%s1736_s11 + $0x2e0] sm:$0xff]  ;;  %v441_v47 = vld [vmem:[%s1736_s11 + $0x2f0] sm:$0xff]  ;;  %438 = vst [vmem:[%s1741_s12 + $0x168] sm:$0xff] %v437_v45 }
  0x30   : > { %440 = vst [vmem:[%s1741_s12 + $0x170] sm:$0xff] %v439_v46  ;;  %442 = vst [vmem:[%s1741_s12 + $0x178] sm:$0xff] %v441_v47  ;;  %v443_v48 = vld [vmem:[%s1736_s11 + $0x300] sm:$0xff]  ;;  %v445_v49 = vld [vmem:[%s1736_s11 + $0x310] sm:$0xff] }
  0x31   : > { %v447_v50 = vld [vmem:[%s1736_s11 + $0x320] sm:$0xff]  ;;  %444 = vst [vmem:[%s1741_s12 + $0x180] sm:$0xff] %v443_v48  ;;  %446 = vst [vmem:[%s1741_s12 + $0x188] sm:$0xff] %v445_v49  ;;  %v449_v51 = vld [vmem:[%s1736_s11 + $0x330] sm:$0xff] }
  0x32   : > { %448 = vst [vmem:[%s1741_s12 + $0x190] sm:$0xff] %v447_v50  ;;  %v451_v52 = vld [vmem:[%s1736_s11 + $0x340] sm:$0xff]  ;;  %v453_v53 = vld [vmem:[%s1736_s11 + $0x350] sm:$0xff]  ;;  %450 = vst [vmem:[%s1741_s12 + $0x198] sm:$0xff] %v449_v51 }
  0x33   : > { %452 = vst [vmem:[%s1741_s12 + $0x1a0] sm:$0xff] %v451_v52  ;;  %454 = vst [vmem:[%s1741_s12 + $0x1a8] sm:$0xff] %v453_v53  ;;  %v455_v54 = vld [vmem:[%s1736_s11 + $0x360] sm:$0xff]  ;;  %v457_v55 = vld [vmem:[%s1736_s11 + $0x370] sm:$0xff] }
  0x34   : > { %v459_v56 = vld [vmem:[%s1736_s11 + $0x380] sm:$0xff]  ;;  %456 = vst [vmem:[%s1741_s12 + $0x1b0] sm:$0xff] %v455_v54  ;;  %458 = vst [vmem:[%s1741_s12 + $0x1b8] sm:$0xff] %v457_v55  ;;  %v461_v57 = vld [vmem:[%s1736_s11 + $0x390] sm:$0xff] }
  0x35   : > { %460 = vst [vmem:[%s1741_s12 + $0x1c0] sm:$0xff] %v459_v56  ;;  %v463_v58 = vld [vmem:[%s1736_s11 + $0x3a0] sm:$0xff]  ;;  %v465_v59 = vld [vmem:[%s1736_s11 + $0x3b0] sm:$0xff]  ;;  %462 = vst [vmem:[%s1741_s12 + $0x1c8] sm:$0xff] %v461_v57 }
  0x36   : > { %464 = vst [vmem:[%s1741_s12 + $0x1d0] sm:$0xff] %v463_v58  ;;  %466 = vst [vmem:[%s1741_s12 + $0x1d8] sm:$0xff] %v465_v59  ;;  %v467_v60 = vld [vmem:[%s1736_s11 + $0x3c0] sm:$0xff]  ;;  %v469_v61 = vld [vmem:[%s1736_s11 + $0x3d0] sm:$0xff] }
  0x37   : > { %v471_v62 = vld [vmem:[%s1736_s11 + $0x3e0] sm:$0xff]  ;;  %468 = vst [vmem:[%s1741_s12 + $0x1e0] sm:$0xff] %v467_v60  ;;  %470 = vst [vmem:[%s1741_s12 + $0x1e8] sm:$0xff] %v469_v61  ;;  %v473_v63 = vld [vmem:[%s1736_s11 + $0x3f0] sm:$0xff] }
  0x38   : > { %472 = vst [vmem:[%s1741_s12 + $0x1f0] sm:$0xff] %v471_v62  ;;  %474 = vst [vmem:[%s1741_s12 + $0x1f8] sm:$0xff] %v473_v63 }
  0x39 PF: > { %p1354_p7 = scmp.ge.s32.totalorder %s1646_s21, 1  ;;  %p495_p8 = scmp.lt.s32.totalorder %s1646_s21, 19 }
  0x3b   : > { %p496_p9 = pnand %p1354_p7, %p495_p8 }
  0x3c   : > { %s502_s13 = sand.u32 (!%p496_p9), 1, %s1622_s15   ;;  %s1356_s14 = sshll.u32 (!%p496_p9), %s1630_s17, 2 }
  0x3d   : > { %499 = sbr.rel (%p496_p9) target bundleno = 464 (0x1d0), region = 70  ;;  %s1355_s24 = sshll.u32 (!%p496_p9), %s502_s13, 9 }
  0x3e   : > { %p540_p10 = scmp.lt.s32.totalorder (!%p496_p9), %s1356_s14, 35  ;;  %s1357_s25 = sshll.u32 (!%p496_p9), %s1634_s18, 1 }
  0x3f   : > { %p547_p11 = scmp.lt.s32.totalorder (!%p496_p9), %s1357_s25, 3  ;;  %s1895_s12 = scalar_lea.vmem (!%p496_p9), [#allocation3], %s1355_s24 }
  0x40   : > { %p1361_p12 = scmp.ne.s32.totalorder (!%p496_p9), %s1630_s17, 0 }
  0x44   : > { %s2049_s14 = smov (!%p540_p10, %s1356_s14), 35  ;;  %s2051_s25 = smov (!%p547_p11, %s1357_s25), 3 }
  0x45   : > { %s542_s29 = scalar_lea.vmem %s2031_s0, %s2049_s14  ;;  %s549_s15 = scalar_lea.vmem %s2033_s2, %s2051_s25  ;;  %v1648_v0 = vmov (!%p1361_p12), 0.0  }
  0x46   : > { %s554_s18 = scalar_lea.vmem %s2034_s3, %s2051_s25  ;;  %s1360_s8 = sshll.u32 %s2051_s25, 1  ;;  %566 = vst [vmem:[#allocation2] sm:$0xf] (!%p1361_p12), %v1648_v0 }
  0x47   : > { %s1893_s11 = scalar_lea.vmem %s2035_s4, %s1360_s8  ;;  %565 = sbr.rel (%p1361_p12) target bundleno = 78 (0x4e), region = 78 }
  0x4e PF: > { %v1492_v1 = vld [vmem:[%s1895_s12 + $0x4] ss:$8 sps:$4 sm:$0xff]   ;;  %v1496_v3 = vld [vmem:[%s1895_s12] ss:$8 sps:$4 sm:$0xff]   ;;  %v1498_v5 = vld [vmem:[%s1895_s12 + $0x14] ss:$8 sps:$4 sm:$0xff]   ;;  %v645_v41 = vlaneseq }
  0x4f   : > { %v1494_v2 = vld [vmem:[%s1895_s12 + $0x104] ss:$8 sps:$4 sm:$0xff]   ;;  %982 = vmatprep.subr.bf16.mxu1 %v1492_v1  ;;  %v1497_v4 = vld [vmem:[%s1895_s12 + $0x100] ss:$8 sps:$4 sm:$0xff]   ;;  %v1500_v6 = vld [vmem:[%s1895_s12 + $0x114] ss:$8 sps:$4 sm:$0xff]  }
  0x50   : > { %1023 = vmatprep.subr.bf16.mxu0 %v1494_v2  ;;  %983 = vmatpush1.bf16.msra.mxu1 %v1496_v3  ;;  %v1502_v7 = vld [vmem:[%s1895_s12 + $0x10] ss:$8 sps:$4 sm:$0xff]   ;;  %v1504_v9 = vld [vmem:[%s1895_s12 + $0x24] ss:$8 sps:$4 sm:$0xff]   ;;  %v1508_v11 = vld [vmem:[%s1895_s12 + $0x20] ss:$8 sps:$4 sm:$0xff]  }
  0x51   : > { %1024 = vmatpush1.bf16.msra.mxu0 %v1497_v4  ;;  %984 = vmatprep.subr.bf16.mxu1 %v1498_v5  ;;  %v1503_v8 = vld [vmem:[%s1895_s12 + $0x110] ss:$8 sps:$4 sm:$0xff]   ;;  %v1506_v10 = vld [vmem:[%s1895_s12 + $0x124] ss:$8 sps:$4 sm:$0xff]   ;;  %v1509_v12 = vld [vmem:[%s1895_s12 + $0x120] ss:$8 sps:$4 sm:$0xff]  }
  0x52   : > { %1025 = vmatprep.subr.bf16.mxu0 %v1500_v6  ;;  %v1510_v13 = vld [vmem:[%s1895_s12 + $0x34] ss:$8 sps:$4 sm:$0xff]   ;;  %v1514_v15 = vld [vmem:[%s1895_s12 + $0x30] ss:$8 sps:$4 sm:$0xff]   ;;  %v1516_v17 = vld [vmem:[%s1895_s12 + $0x44] ss:$8 sps:$4 sm:$0xff]  }
  0x53   : > { %v1512_v14 = vld [vmem:[%s1895_s12 + $0x134] ss:$8 sps:$4 sm:$0xff]   ;;  %v1515_v16 = vld [vmem:[%s1895_s12 + $0x130] ss:$8 sps:$4 sm:$0xff]   ;;  %v1518_v18 = vld [vmem:[%s1895_s12 + $0x144] ss:$8 sps:$4 sm:$0xff]  }
  0x54   : > { %985 = vmatpush1.bf16.msra.mxu1 %v1502_v7  ;;  %v1520_v19 = vld [vmem:[%s1895_s12 + $0x40] ss:$8 sps:$4 sm:$0xff]   ;;  %v1522_v21 = vld [vmem:[%s1895_s12 + $0x54] ss:$8 sps:$4 sm:$0xff]   ;;  %v1526_v23 = vld [vmem:[%s1895_s12 + $0x50] ss:$8 sps:$4 sm:$0xff]  }
  0x55   : > { %1026 = vmatpush1.bf16.msra.mxu0 %v1503_v8  ;;  %986 = vmatprep.subr.bf16.mxu1 %v1504_v9  ;;  %v1521_v20 = vld [vmem:[%s1895_s12 + $0x140] ss:$8 sps:$4 sm:$0xff]   ;;  %v1524_v22 = vld [vmem:[%s1895_s12 + $0x154] ss:$8 sps:$4 sm:$0xff]   ;;  %v1527_v24 = vld [vmem:[%s1895_s12 + $0x150] ss:$8 sps:$4 sm:$0xff]  }
  0x56   : > { %1027 = vmatprep.subr.bf16.mxu0 %v1506_v10  ;;  %v1528_v25 = vld [vmem:[%s1895_s12 + $0x64] ss:$8 sps:$4 sm:$0xff]   ;;  %v1532_v27 = vld [vmem:[%s1895_s12 + $0x60] ss:$8 sps:$4 sm:$0xff]   ;;  %v1534_v29 = vld [vmem:[%s1895_s12 + $0x74] ss:$8 sps:$4 sm:$0xff]  }
  0x57   : > { %v1530_v26 = vld [vmem:[%s1895_s12 + $0x164] ss:$8 sps:$4 sm:$0xff]   ;;  %v1533_v28 = vld [vmem:[%s1895_s12 + $0x160] ss:$8 sps:$4 sm:$0xff]   ;;  %v1536_v30 = vld [vmem:[%s1895_s12 + $0x174] ss:$8 sps:$4 sm:$0xff]  }
  0x58   : > { %987 = vmatpush1.bf16.msra.mxu1 %v1508_v11  ;;  %v1538_v31 = vld [vmem:[%s1895_s12 + $0x70] ss:$8 sps:$4 sm:$0xff]   ;;  %v1540_v33 = vld [vmem:[%s1895_s12 + $0x84] ss:$8 sps:$4 sm:$0xff]   ;;  %v1544_v35 = vld [vmem:[%s1895_s12 + $0x80] ss:$8 sps:$4 sm:$0xff]  }
  0x59   : > { %1028 = vmatpush1.bf16.msra.mxu0 %v1509_v12  ;;  %988 = vmatprep.subr.bf16.mxu1 %v1510_v13  ;;  %v1539_v32 = vld [vmem:[%s1895_s12 + $0x170] ss:$8 sps:$4 sm:$0xff]   ;;  %v1542_v34 = vld [vmem:[%s1895_s12 + $0x184] ss:$8 sps:$4 sm:$0xff]   ;;  %v1545_v36 = vld [vmem:[%s1895_s12 + $0x180] ss:$8 sps:$4 sm:$0xff]  }
  0x5a   : > { %1029 = vmatprep.subr.bf16.mxu0 %v1512_v14  ;;  %v1546_v37 = vld [vmem:[%s1895_s12 + $0x94] ss:$8 sps:$4 sm:$0xff]   ;;  %v1649_v39 = vmov 1966171168   ;;  %v1550_v42 = vld [vmem:[%s1895_s12 + $0x90] ss:$8 sps:$4 sm:$0xff]  }
  0x5b   : > { %v1548_v38 = vld [vmem:[%s1895_s12 + $0x194] ss:$8 sps:$4 sm:$0xff]   ;;  %v643_v40 = vunpack.c.l.s4 %v1649_v39  ;;  %v1551_v43 = vld [vmem:[%s1895_s12 + $0x190] ss:$8 sps:$4 sm:$0xff]   ;;  %v1552_v44 = vld [vmem:[%s1895_s12 + $0xa4] ss:$8 sps:$4 sm:$0xff]  }
  0x5c   : > { %989 = vmatpush1.bf16.msra.mxu1 %v1514_v15  ;;  %v1554_v45 = vld [vmem:[%s1895_s12 + $0x1a4] ss:$8 sps:$4 sm:$0xff]   ;;  %v1940_v47 = vshrl.u32 %v645_v41, 7  ;;  %v1556_v48 = vld [vmem:[%s1895_s12 + $0xa0] ss:$8 sps:$4 sm:$0xff]   ;;  %p1427_p13 = scmp.ne.s32.totalorder %s1630_s17, 8 }
  0x5d   : > { %1030 = vmatpush1.bf16.msra.mxu0 %v1515_v16  ;;  %990 = vmatprep.subr.bf16.mxu1 %v1516_v17  ;;  %v644_v46 = vunpack.c.0.s8 %v643_v40  ;;  %v1557_v49 = vld [vmem:[%s1895_s12 + $0x1a0] ss:$8 sps:$4 sm:$0xff]   ;;  %v1558_v50 = vld [vmem:[%s1895_s12 + $0xb4] ss:$8 sps:$4 sm:$0xff]   ;;  %v1562_v54 = vld [vmem:[%s1895_s12 + $0xb0] ss:$8 sps:$4 sm:$0xff]  }
  0x5e   : > { %1031 = vmatprep.subr.bf16.mxu0 %v1518_v18  ;;  %v1560_v51 = vld [vmem:[%s1895_s12 + $0x1b4] ss:$8 sps:$4 sm:$0xff]   ;;  %v1563_v55 = vld [vmem:[%s1895_s12 + $0x1b0] ss:$8 sps:$4 sm:$0xff]   ;;  %v1564_v57 = vld [vmem:[%s1895_s12 + $0xc4] ss:$8 sps:$4 sm:$0xff]  }
  0x5f   : > { %v1947_v52 = vsub.s32 %v644_v46, %v1940_v47  ;;  %v1362_v53 = vld.sshfl [vmem:[%s542_s29] sm:$0x33 pattern:$0x75316420]  ;;  %v1566_v58 = vld [vmem:[%s1895_s12 + $0x1c4] ss:$8 sps:$4 sm:$0xff]  }
  0x60   : > { %991 = vmatpush1.bf16.msra.mxu1 %v1520_v19  ;;  %v641_v56 = vcombine.high %v1362_v53, %v1362_v53  ;;  %v1568_v60 = vld [vmem:[%s1895_s12 + $0xc0] ss:$8 sps:$4 sm:$0xff]   ;;  %v1570_v63 = vld [vmem:[%s1895_s12 + $0xd4] ss:$8 sps:$4 sm:$0xff]   ;;  %v1574_v1 = vld [vmem:[%s1895_s12 + $0xd0] ss:$8 sps:$4 sm:$0xff]  }
  0x61   : > { %1032 = vmatpush1.bf16.msra.mxu0 %v1521_v20  ;;  %992 = vmatprep.subr.bf16.mxu1 %v1522_v21  ;;  %v1569_v61 = vld [vmem:[%s1895_s12 + $0x1c0] ss:$8 sps:$4 sm:$0xff]   ;;  %v1572_v0 = vld [vmem:[%s1895_s12 + $0x1d4] ss:$8 sps:$4 sm:$0xff]   ;;  %v1575_v2 = vld [vmem:[%s1895_s12 + $0x1d0] ss:$8 sps:$4 sm:$0xff]   ;;  %v648_v9 = vrot.slane %v1362_v53, %v1947_v52 }
  0x62   : > { %1033 = vmatprep.subr.bf16.mxu0 %v1524_v22  ;;  %v655_v59 = vrot.slane %v641_v56, %v1947_v52  ;;  %v1576_v3 = vld [vmem:[%s1895_s12 + $0xe4] ss:$8 sps:$4 sm:$0xff]   ;;  %v1580_v5 = vld [vmem:[%s1895_s12 + $0xe0] ss:$8 sps:$4 sm:$0xff]   ;;  %v1582_v7 = vld [vmem:[%s1895_s12 + $0xf4] ss:$8 sps:$4 sm:$0xff]  }
  0x63   : > { %v1578_v4 = vld [vmem:[%s1895_s12 + $0x1e4] ss:$8 sps:$4 sm:$0xff]   ;;  %v1581_v6 = vld [vmem:[%s1895_s12 + $0x1e0] ss:$8 sps:$4 sm:$0xff]   ;;  %v1584_v8 = vld [vmem:[%s1895_s12 + $0x1f4] ss:$8 sps:$4 sm:$0xff]   ;;  %v656_v12 = vcombine.high %v648_v9, %v648_v9 }
  0x64   : > { %993 = vmatpush1.bf16.msra.mxu1 %v1526_v23  ;;  %v657_v62 = vcombine.high %v655_v59, %v655_v59  ;;  %1014 = vmatprep.mubr.bf16.mxu1 %v655_v59  ;;  %v1586_v10 = vld [vmem:[%s1895_s12 + $0xf0] ss:$8 sps:$4 sm:$0xff]   ;;  %v1650_v13 = vmov 1983009808   ;;  %vm1093_vm0 = vcmask (!%p1427_p13), 1041408  }
  0x65   : > { %1034 = vmatpush1.bf16.msra.mxu0 %v1527_v24  ;;  %994 = vmatprep.subr.bf16.mxu1 %v1528_v25  ;;  %v1587_v11 = vld [vmem:[%s1895_s12 + $0x1f0] ss:$8 sps:$4 sm:$0xff]   ;;  %v1068_v14 = vunpack.c.l.s4 %v1650_v13 }
  0x66   : > { %1035 = vmatprep.subr.bf16.mxu0 %v1530_v26  ;;  %1055 = vmatprep.mubr.bf16.mxu0 %v657_v62 }
  0x67   : > { %v1069_v15 = vunpack.c.0.s8 %v1068_v14 }
  0x68   : > { %995 = vmatpush1.bf16.msra.mxu1 %v1532_v27 }
  0x69   : > { %1036 = vmatpush1.bf16.msra.mxu0 %v1533_v28  ;;  %996 = vmatprep.subr.bf16.mxu1 %v1534_v29  ;;  %v1975_v22 = vsub.s32 %v1069_v15, %v1940_v47  ;;  %v567_v28 = vld [vmem:[#allocation2] sm:$0xf] }
  0x6a   : > { %1037 = vmatprep.subr.bf16.mxu0 %v1536_v30 }
  0x6c   : > { %997 = vmatpush1.bf16.msra.mxu1 %v1538_v31 }
  0x6d   : > { %1038 = vmatpush1.bf16.msra.mxu0 %v1539_v32  ;;  %998 = vmatprep.subr.bf16.mxu1 %v1540_v33 }
  0x6e   : > { %1039 = vmatprep.subr.bf16.mxu0 %v1542_v34 }
  0x70   : > { %999 = vmatpush1.bf16.msra.mxu1 %v1544_v35 }
  0x71   : > { %1040 = vmatpush1.bf16.msra.mxu0 %v1545_v36  ;;  %1000 = vmatprep.subr.bf16.mxu1 %v1546_v37 }
  0x72   : > { %1041 = vmatprep.subr.bf16.mxu0 %v1548_v38 }
  0x74   : > { %1001 = vmatpush1.bf16.msra.mxu1 %v1550_v42 }
  0x75   : > { %1042 = vmatpush1.bf16.msra.mxu0 %v1551_v43  ;;  %1002 = vmatprep.subr.bf16.mxu1 %v1552_v44 }
  0x76   : > { %1043 = vmatprep.subr.bf16.mxu0 %v1554_v45 }
  0x78   : > { %1003 = vmatpush1.bf16.msra.mxu1 %v1556_v48 }
  0x79   : > { %1044 = vmatpush1.bf16.msra.mxu0 %v1557_v49  ;;  %1004 = vmatprep.subr.bf16.mxu1 %v1558_v50 }
  0x7a   : > { %1045 = vmatprep.subr.bf16.mxu0 %v1560_v51 }
  0x7c   : > { %1005 = vmatpush1.bf16.msra.mxu1 %v1562_v54 }
  0x7d   : > { %1046 = vmatpush1.bf16.msra.mxu0 %v1563_v55  ;;  %1006 = vmatprep.subr.bf16.mxu1 %v1564_v57 }
  0x7e   : > { %1047 = vmatprep.subr.bf16.mxu0 %v1566_v58 }
  0x80   : > { %1007 = vmatpush1.bf16.msra.mxu1 %v1568_v60 }
  0x81   : > { %1048 = vmatpush1.bf16.msra.mxu0 %v1569_v61  ;;  %1008 = vmatprep.subr.bf16.mxu1 %v1570_v63 }
  0x82   : > { %1049 = vmatprep.subr.bf16.mxu0 %v1572_v0 }
  0x84   : > { %1009 = vmatpush1.bf16.msra.mxu1 %v1574_v1 }
  0x85   : > { %1050 = vmatpush1.bf16.msra.mxu0 %v1575_v2  ;;  %1010 = vmatprep.subr.bf16.mxu1 %v1576_v3 }
  0x86   : > { %1051 = vmatprep.subr.bf16.mxu0 %v1578_v4 }
  0x88   : > { %1011 = vmatpush1.bf16.msra.mxu1 %v1580_v5 }
  0x89   : > { %1052 = vmatpush1.bf16.msra.mxu0 %v1581_v6  ;;  %1012 = vmatprep.subr.bf16.mxu1 %v1582_v7 }
  0x8a   : > { %1053 = vmatprep.subr.bf16.mxu0 %v1584_v8 }
  0x8c   : > { %1013 = vmatpush1.bf16.msra.mxu1 %v1586_v10 }
  0x8d   : > { %1054 = vmatpush1.bf16.msra.mxu0 %v1587_v11 }
  0x8f   : > { %1015 = vmatmul.mubr.bf16.vlgmr.msra.gmra.mrb[0].mxu1 %v648_v9 }
  0x90   : > { %1056 = vmatmul.mubr.bf16.vlgmr.msra.gmra.mrb[0].mxu0 %v656_v12 }
 0x162   : > { %v1016_v16 = vpop.f32.mrb[0].mxu1 }
 0x163   : > { %v1057_v17 = vpop.f32.mrb[0].mxu0  ;;  %v1018_v19 = vpop.f32.mrb[1].mxu1 }
 0x164   : > { %v1058_v18 = vadd.f32 %v1057_v17, %v1016_v16  ;;  %v1059_v20 = vpop.f32.mrb[1].mxu0  ;;  %v1020_v23 = vpop.f32.mrb[2].mxu1  ;;  %v1151_v16 = vld [vmem:[%s549_s15] sm:$0x3] (!%p1427_p13) }
 0x165   : > { %v1060_v21 = vadd.f32 %v1059_v20, %v1018_v19  ;;  %v1061_v24 = vpop.f32.mrb[2].mxu0  ;;  %v1021_v25 = vpop.f32.mrb[3].mxu1  ;;  %v1183_v19 = vsub.s32 (!%p1427_p13), 1, %v1940_v47 }
 0x166   : > { %v1062_v26 = vpop.f32.mrb[3].mxu0 }
 0x167   : > { %v1066_v27 = vcombine.low %v1058_v18, %v1060_v21  ;;  %1080 = sbr.rel (%p1427_p13) target bundleno = 464 (0x1d0), region = 82  ;;  %v1179_v18 = vsub.s32 (!%p1427_p13), 0, %v1940_v47 }
 0x169   : > { %v1073_v29 = vrot.slane %v1066_v27, %v1975_v22 }
 0x16b   : > { %v1075_v30 = vadd.f32 %v1073_v29, %v567_v28  ;;  %v1175_v29 = vld [vmem:[%s554_s18] sm:$0x3] (!%p1427_p13) }
 0x16d   : > { %1076 = vst [vmem:[#allocation2] sm:$0xf] %v1075_v30 }
 0x174   : > { %v1979_v31 = vld [vmem:[#allocation2] sm:$0xf] }
 0x175   : > { %v1089_v32 = vrot.slane %v1979_v31, %v1975_v22 }
 0x177   : > { %v1090_v33 = vcombine.high %v1089_v32, %v1089_v32  ;;  %v1094_v34 = vsel %vm1093_vm0, %v1089_v32, 0.0 }
 0x178   : > { %v1095_v35 = vrot.slane %v1094_v34, 4 }
 0x179   : > { %v1101_v36 = vsel %vm1093_vm0, %v1090_v33, 0.0 }
 0x17a   : > { %v1096_v37 = vadd.f32 %v1095_v35, %v1094_v34  ;;  %v1102_v38 = vrot.slane %v1101_v36, 4 }
 0x17c   : > { %v1097_v39 = vrot.slane %v1096_v37, 2  ;;  %v1103_v40 = vadd.f32 %v1102_v38, %v1101_v36 }
 0x17e   : > { %v1098_v41 = vadd.f32 %v1097_v39, %v1096_v37  ;;  %v1104_v42 = vrot.slane %v1103_v40, 2 }
 0x180   : > { %v1099_v43 = vrot.slane %v1098_v41, 1  ;;  %v1105_v44 = vadd.f32 %v1104_v42, %v1103_v40 }
 0x182   : > { %v1100_v45 = vadd.f32 %v1099_v43, %v1098_v41  ;;  %v1106_v46 = vrot.slane %v1105_v44, 1 }
 0x184   : > { %v1107_v48 = vadd.f32 %v1106_v46, %v1105_v44  ;;  %v1109_v49 = vmul.f32 0.5, %v1100_v45 }
 0x186   : > { %v1110_v50 = vmul.f32 0.5, %v1107_v48 }
 0x188   : > { %v1113_v51 = vcombine.low %v1109_v49, %v1110_v50 }
 0x18a   : > { %v1120_v53 = vrot.slane %v1113_v51, %v1975_v22 }
 0x18c   : > { %v1122_v54 = vsub.f32 %v1979_v31, %v1120_v53 }
 0x18e   : > { %v1123_v55 = vmul.f32 %v1122_v54, %v1122_v54 }
 0x190   : > { %v1131_v56 = vrot.slane %v1123_v55, %v1975_v22 }
 0x192   : > { %v1132_v57 = vcombine.high %v1131_v56, %v1131_v56  ;;  %v1135_v58 = vsel %vm1093_vm0, %v1131_v56, 0.0 }
 0x193   : > { %v1136_v59 = vrot.slane %v1135_v58, 4 }
 0x194   : > { %v1142_v60 = vsel %vm1093_vm0, %v1132_v57, 0.0 }
 0x195   : > { %v1137_v61 = vadd.f32 %v1136_v59, %v1135_v58  ;;  %v1143_v62 = vrot.slane %v1142_v60, 4 }
 0x197   : > { %v1138_v63 = vrot.slane %v1137_v61, 2  ;;  %v1144_v0 = vadd.f32 %v1143_v62, %v1142_v60 }
 0x199   : > { %v1139_v1 = vadd.f32 %v1138_v63, %v1137_v61  ;;  %v1145_v2 = vrot.slane %v1144_v0, 2 }
 0x19b   : > { %v1140_v3 = vrot.slane %v1139_v1, 1  ;;  %v1146_v4 = vadd.f32 %v1145_v2, %v1144_v0 }
 0x19d   : > { %v1141_v5 = vadd.f32 %v1140_v3, %v1139_v1  ;;  %v1147_v6 = vrot.slane %v1146_v4, 1 }
 0x19f   : > { %v1148_v7 = vadd.f32 %v1147_v6, %v1146_v4  ;;  %v1149_v8 = vmul.f32 0.5, %v1141_v5 }
 0x1a1   : > { %v1150_v9 = vmul.f32 0.5, %v1148_v7  ;;  %v1152_v10 = vadd.f32 1e-05, %v1149_v8 }
 0x1a3   : > { %v1153_v11 = vadd.f32 1e-05, %v1150_v9  ;;  %1588 = vrsqrt.f32 %v1152_v10 }
 0x1a5   : > { %1590 = vrsqrt.f32 %v1153_v11 }
 0x1ad   : > { %v1589_v12 = vpop.eup %1588 }
 0x1af   : > { %v1591_v13 = vpop.eup %1590 }
 0x1b0   : > { %v1158_v14 = vcombine.low %v1589_v12, %v1591_v13 }
 0x1b2   : > { %v1165_v15 = vrot.slane %v1158_v14, %v1947_v52 }
 0x1b4   : > { %v1172_v17 = vrot.slane %v1165_v15, %v1947_v52 }
 0x1b6   : > { %v1174_v20 = vmul.f32 %v1172_v17, %v1151_v16 }
 0x1b8   : > { %v1180_v21 = vrot.slane %v1174_v20, %v1179_v18  ;;  %v1184_v23 = vrot.slane %v1174_v20, %v1183_v19 }
 0x1ba   : > { %v1187_v24 = vmul.f32 %v1180_v21, %v1109_v49  ;;  %v1188_v25 = vmul.f32 %v1184_v23, %v1110_v50  ;;  %v1208_v28 = vcombine.low %v1180_v21, %v1184_v23 }
 0x1bc   : > { %v1191_v26 = vcombine.low %v1187_v24, %v1188_v25  ;;  %v1215_v47 = vrot.slane %v1208_v28, %v1975_v22 }
 0x1be   : > { %v1198_v27 = vrot.slane %v1191_v26, %v1947_v52  ;;  %v1217_v35 = vmul.f32 %v1215_v47, %v1979_v31 }
 0x1c0   : > { %v1205_v30 = vrot.slane %v1198_v27, %v1947_v52 }
 0x1c2   : > { %v1207_v32 = vsub.f32 %v1175_v29, %v1205_v30 }
 0x1c4   : > { %v1222_v33 = vrot.slane %v1207_v32, %v1179_v18  ;;  %v1226_v34 = vrot.slane %v1207_v32, %v1183_v19 }
 0x1c6   : > { %v1227_v36 = vcombine.low %v1222_v33, %v1226_v34 }
 0x1c8   : > { %v1234_v37 = vrot.slane %v1227_v36, %v1975_v22 }
 0x1ca   : > { %v1236_v38 = vadd.f32 %v1234_v37, %v1217_v35 }
 0x1cc   : > { %vm1237_vm1 = vcmp.ge.f32.partialorder %v1236_v38, 0.0  ;;  %v1238_v39 = vmul.f32 0.1, %v1236_v38 }
 0x1ce   : > { %v1239_v40 = vsel %vm1237_vm1, %v1236_v38, %v1238_v39 }
 0x1cf   : > { %1240 = vst [vmem:[%s1893_s11] sm:$0xf] %v1239_v40 }
 0x1d0 PF: > { %s14_s21 = sadd.s32 1, %s1646_s21   ;;  %s2036_s15 = smov %s1626_s16 }
 0x1d1   : > { %p11_p0 = scmp.ge.s32.totalorder %s14_s21, 20   ;;  %s2037_s16 = smov %s1727_s28 }
 0x1d2   : > { %s2038_s17 = smov %s1638_s19  ;;  %s2039_s18 = smov %s1642_s20 }
 0x1d3   : > { %s2040_s19 = smov %s2043_s22  ;;  %s2041_s20 = smov %s2047_s23 }
 0x1d4   :  { %13 = sbr.rel (!%p11_p0) target bundleno = 4 (0x4), region = 126 }

</bundles_post_ra>
